<compile_context>
chip_gen: v5e
topology: v5e:2x2
jax: 0.10.0
libtpu: 0.0.40
codegen_flags: <defaults>
</compile_context>

<pallas_src>
import functools
import math

import jax
import jax.numpy as jnp
from jax.experimental import pallas as pl
from jax.experimental.pallas import tpu as pltpu

_EPS = 1e-5


def _vmem_limit(footprint_bytes):
    # Leave headroom on v7x (64 MiB physical VMEM): never request > 48 MiB.
    return int(min(max(4 * footprint_bytes, 16 << 20), 48 << 20))


def _flat_phases(x2d, bases, stride, m_out, pad_value):
    """Split the flattened padded plane (N, Hp*Wp, C) into `stride` phases so
    every tap becomes a contiguous static row-slice inside the kernel.  Each
    phase is padded so every tap window is in-bounds; pad rows only ever feed
    garbage output columns that the wrapper slices away."""
    used = sorted({b % stride for b in bases})
    pos = {q: k for k, q in enumerate(used)}
    phases = []
    for q in used:
        need = max(b // stride for b in bases if b % stride == q) + m_out
        ph = x2d[:, q::stride, :]
        cur = ph.shape[1]
        if cur < need:
            ph = jnp.pad(ph, ((0, 0), (0, need - cur), (0, 0)),
                         constant_values=pad_value)
        elif cur > need:
            ph = ph[:, :need, :]
        phases.append(ph)
    return phases, pos


# ----------------------------------------------------------------------------
# Fused conv + folded-BN bias + (residual) + (ReLU) [+ fused 1x1 downsample]
# Grid = (N,); each step produces the whole flattened output plane of one
# batch item: (1, M_out, Cout) with M_out = Hout*Wp (lane-dense, Cout lanes).
# ----------------------------------------------------------------------------
def _make_conv_kernel(taps, pos, stride, m_out, relu, has_residual, extra_tap):
    nph = len(pos)

    def kernel(*refs):
        phase_refs = refs[:nph]          # bf16 (1, Lq, Cin) flattened phases
        k = nph
        w_ref, b_ref = refs[k], refs[k + 1]   # (kh,kw,Cin,Cout) bf16 / (1,Cout) f32
        k += 2
        if extra_tap is not None:
            w2_ref, b2_ref = refs[k], refs[k + 1]
            k += 2
        if has_residual:
            r_ref = refs[k]
            k += 1
        out_refs = refs[k:]

        def tap_lhs(base):
            q = base % stride
            off = base // stride
            return phase_refs[pos[q]][0, off:off + m_out, :]   # (M_out, Cin)

        acc = None
        for i, j, base in taps:
            d = jnp.dot(tap_lhs(base), w_ref[i, j],
                        preferred_element_type=jnp.float32)
            acc = d if acc is None else acc + d

        y = acc + b_ref[...]                                   # f32 epilogue
        if has_residual:
            y = y + r_ref[0].astype(jnp.float32)
        if relu:
            y = jnp.maximum(y, 0.0)
        out_refs[0][0] = y.astype(out_refs[0].dtype)           # bf16 store

        if extra_tap is not None:                              # fused 1x1 ds
            y2 = jnp.dot(tap_lhs(extra_tap), w2_ref[0, 0],
                         preferred_element_type=jnp.float32) + b2_ref[...]
            out_refs[1][0] = y2.astype(out_refs[1].dtype)

    return kernel


def conv_bn_act(x, w, bias, *, stride, padding, dilation, relu,
                residual=None, extra_1x1=None, out_dtype=jnp.bfloat16):
    """x: NHWC (bf16 or f32).  w: (kh, kw, Cin, Cout) with BN scale folded in.
    bias: folded BN bias (Cout,).  `residual` (NHWC of output shape) is added
    before the ReLU.  `extra_1x1={"w","bias"}` computes a second, fused 1x1
    conv (same stride, padding 0) over the same input -> (main, extra)."""
    n, h, w_sp, cin = x.shape
    kh, kw, _, cout = w.shape

    # K=4 stem input: zero-pad channels to 8 (exact same result).
    if cin < 8:
        pc = 8 - cin
        x = jnp.pad(x, ((0, 0), (0, 0), (0, 0), (0, pc)))
        w = jnp.pad(w, ((0, 0), (0, 0), (0, pc), (0, 0)))
        if extra_1x1 is not None:
            extra_1x1 = dict(extra_1x1)
            extra_1x1["w"] = jnp.pad(extra_1x1["w"],
                                     ((0, 0), (0, 0), (0, pc), (0, 0)))
        cin = 8

    xp = jnp.pad(x.astype(jnp.bfloat16),
                 ((0, 0), (padding, padding), (padding, padding), (0, 0)))
    hp, wp = h + 2 * padding, w_sp + 2 * padding
    hout = (hp - dilation * (kh - 1) - 1) // stride + 1
    wout = (wp - dilation * (kw - 1) - 1) // stride + 1
    m_out = hout * wp                       # flattened rows (incl. garbage cols)
    x2d = xp.reshape(n, hp * wp, cin)

    taps = [(i, j, i * dilation * wp + j * dilation)
            for i in range(kh) for j in range(kw)]
    bases = [b for (_, _, b) in taps]

    extra_tap = None
    cout2 = None
    if extra_1x1 is not None:
        cout2 = extra_1x1["w"].shape[-1]
        # 1x1 / stride `stride` / pad 0 over the *unpadded* input == a tap at
        # padded offset (padding, padding); it shares the main conv's output grid.
        assert (h - 1) // stride + 1 == hout
        assert (w_sp - 1) // stride + 1 == wout
        extra_tap = padding * wp + padding
        bases = bases + [extra_tap]

    phases, pos = _flat_phases(x2d, bases, stride, m_out, 0.0)

    inputs, in_specs = [], []
    for ph in phases:
        inputs.append(ph)
        in_specs.append(pl.BlockSpec((1, ph.shape[1], cin),
                                     lambda nn: (nn, 0, 0)))
    inputs.append(w.astype(jnp.bfloat16))
    in_specs.append(pl.BlockSpec((kh, kw, cin, cout), lambda nn: (0, 0, 0, 0)))
    inputs.append(bias.reshape(1, cout).astype(jnp.float32))
    in_specs.append(pl.BlockSpec((1, cout), lambda nn: (0, 0)))
    if extra_1x1 is not None:
        inputs.append(extra_1x1["w"].astype(jnp.bfloat16))
        in_specs.append(pl.BlockSpec((1, 1, cin, cout2),
                                     lambda nn: (0, 0, 0, 0)))
        inputs.append(extra_1x1["bias"].reshape(1, cout2).astype(jnp.float32))
        in_specs.append(pl.BlockSpec((1, cout2), lambda nn: (0, 0)))
    if residual is not None:
        assert residual.shape == (n, hout, wout, cout)
        r = jnp.pad(residual.astype(jnp.bfloat16),
                    ((0, 0), (0, 0), (0, wp - wout), (0, 0)))
        r = r.reshape(n, m_out, cout)
        inputs.append(r)
        in_specs.append(pl.BlockSpec((1, m_out, cout), lambda nn: (nn, 0, 0)))

    out_shapes = [jax.ShapeDtypeStruct((n, m_out, cout), out_dtype)]
    out_specs = [pl.BlockSpec((1, m_out, cout), lambda nn: (nn, 0, 0))]
    if extra_1x1 is not None:
        out_shapes.append(jax.ShapeDtypeStruct((n, m_out, cout2), out_dtype))
        out_specs.append(pl.BlockSpec((1, m_out, cout2), lambda nn: (nn, 0, 0)))

    fp = sum(ph.shape[1] * cin * 2 for ph in phases)        # bf16 inputs
    fp += kh * kw * cin * cout * 2 + cout * 4               # weights + bias
    fp += m_out * cout * 2                                   # output
    if residual is not None:
        fp += m_out * cout * 2
    if extra_1x1 is not None:
        fp += cin * cout2 * 2 + cout2 * 4 + m_out * cout2 * 2
    fp *= 2                                                  # double buffering

    kern = _make_conv_kernel(taps, pos, stride, m_out, relu,
                             residual is not None, extra_tap)
    outs = pl.pallas_call(
        kern,
        out_shape=tuple(out_shapes),
        grid=(n,),
        in_specs=in_specs,
        out_specs=tuple(out_specs),
        compiler_params=pltpu.CompilerParams(
            dimension_semantics=("parallel",),
            vmem_limit_bytes=_vmem_limit(fp)),
    )(*inputs)

    def unflat(o2d, c):
        return o2d.reshape(n, hout, wp, c)[:, :, :wout, :]

    if extra_1x1 is not None:
        return unflat(outs[0], cout), unflat(outs[1], cout2)
    return unflat(outs[0], cout)


# ----------------------------------------------------------------------------
# MaxPool2d(kernel=3, stride=2, padding=1) — same flattened-plane scheme,
# running max over the 9 taps, bf16 in/out, whole plane per batch item.
# ----------------------------------------------------------------------------
def _make_maxpool_kernel(taps, pos, stride, m_out):
    nph = len(pos)

    def kernel(*refs):
        phase_refs = refs[:nph]
        o_ref = refs[-1]
        res = None
        for _, _, base in taps:
            q = base % stride
            off = base // stride
            seg = phase_refs[pos[q]][0, off:off + m_out, :]
            res = seg if res is None else jnp.maximum(res, seg)
        o_ref[0] = res

    return kernel


def maxpool_3x3_s2_p1(x):
    n, h, w_sp, c = x.shape
    kh = kw = 3
    stride, padding = 2, 1
    xp = jnp.pad(x.astype(jnp.bfloat16),
                 ((0, 0), (padding, padding), (padding, padding), (0, 0)),
                 constant_values=-jnp.inf)
    hp, wp = h + 2 * padding, w_sp + 2 * padding
    hout = (hp - kh) // stride + 1
    wout = (wp - kw) // stride + 1
    m_out = hout * wp
    x2d = xp.reshape(n, hp * wp, c)

    taps = [(i, j, i * wp + j) for i in range(kh) for j in range(kw)]
    phases, pos = _flat_phases(x2d, [b for *_, b in taps], stride, m_out,
                               -jnp.inf)

    inputs, in_specs = [], []
    for ph in phases:
        inputs.append(ph)
        in_specs.append(pl.BlockSpec((1, ph.shape[1], c),
                                     lambda nn: (nn, 0, 0)))

    fp = 2 * (sum(ph.shape[1] * c * 2 for ph in phases) + m_out * c * 2)
    out = pl.pallas_call(
        _make_maxpool_kernel(taps, pos, stride, m_out),
        out_shape=jax.ShapeDtypeStruct((n, m_out, c), jnp.bfloat16),
        grid=(n,),
        in_specs=in_specs,
        out_specs=pl.BlockSpec((1, m_out, c), lambda nn: (nn, 0, 0)),
        compiler_params=pltpu.CompilerParams(
            dimension_semantics=("parallel",),
            vmem_limit_bytes=_vmem_limit(fp)),
    )(*inputs)
    return out.reshape(n, hout, wp, c)[:, :, :wout, :]


# ----------------------------------------------------------------------------
# Deterministic synthetic parameters (conv weight with folded eval-mode BN)
# ----------------------------------------------------------------------------
def _make_conv_bn(key, kh, kw, cin, cout):
    k_w, k_g, k_b, k_m, k_v = jax.random.split(key, 5)
    w = jax.random.normal(k_w, (kh, kw, cin, cout), jnp.float32)
    w = w / math.sqrt(kh * kw * cin)
    gamma = 1.0 + 0.1 * jax.random.normal(k_g, (cout,), jnp.float32)
    beta = 0.1 * jax.random.normal(k_b, (cout,), jnp.float32)
    r_mean = 0.1 * jax.random.normal(k_m, (cout,), jnp.float32)
    r_var = 1.0 + 0.1 * jax.random.uniform(k_v, (cout,), jnp.float32)
    scale = gamma / jnp.sqrt(r_var + _EPS)
    bias = beta - r_mean * scale
    # Fold the BN scale into the conv weights so the kernel only adds bias.
    return {"w": w * scale, "bias": bias}


def make_params(key, in_ch=4, widths=(64, 128, 128, 128), stem=(32, 32, 64)):
    keys = iter(jax.random.split(key, 32))
    p = {
        "conv1": _make_conv_bn(next(keys), 3, 3, in_ch, stem[0]),
        "conv2": _make_conv_bn(next(keys), 3, 3, stem[0], stem[1]),
        "conv3": _make_conv_bn(next(keys), 3, 3, stem[1], stem[2]),
    }
    # (stride, pad, dil) for (conv1, conv2) of each BasicBlock, post
    # _nostride_dilate(dilate_scale=8) rewrite; ds = downsample stride (None =>
    # identity skip connection).
    cfgs = {
        "layer1": dict(cin=stem[2], cout=widths[0],
                       c1=(1, 1, 1), c2=(1, 1, 1), ds=None),
        "layer2": dict(cin=widths[0], cout=widths[1],
                       c1=(2, 1, 1), c2=(1, 1, 1), ds=2),
        "layer3": dict(cin=widths[1], cout=widths[2],   # dilate=2
                       c1=(1, 1, 1), c2=(1, 2, 2), ds=1),
        "layer4": dict(cin=widths[2], cout=widths[3],   # dilate=4
                       c1=(1, 2, 2), c2=(1, 4, 4), ds=1),
    }
    for name, cfg in cfgs.items():
        blk = {
            "cfg": cfg,
            "conv1": _make_conv_bn(next(keys), 3, 3, cfg["cin"], cfg["cout"]),
            "conv2": _make_conv_bn(next(keys), 3, 3, cfg["cout"], cfg["cout"]),
        }
        if cfg["ds"] is not None:
            blk["downsample"] = _make_conv_bn(next(keys), 1, 1,
                                              cfg["cin"], cfg["cout"])
        p[name] = blk
    return p


# ----------------------------------------------------------------------------
# Forward pass (mirrors ResnetEncoder.forward, dilate_scale=8, eval mode)
# ----------------------------------------------------------------------------
def _basic_block(x, blk):
    cfg = blk["cfg"]
    s1, p1, d1 = cfg["c1"]
    s2, p2, d2 = cfg["c2"]
    if "downsample" in blk:
        assert cfg["ds"] == s1      # downsample fused into conv1's pallas_call
        ds = blk["downsample"]
        h, identity = conv_bn_act(
            x, blk["conv1"]["w"], blk["conv1"]["bias"],
            stride=s1, padding=p1, dilation=d1, relu=True,
            extra_1x1={"w": ds["w"], "bias": ds["bias"]})
    else:
        identity = x
        h = conv_bn_act(x, blk["conv1"]["w"], blk["conv1"]["bias"],
                        stride=s1, padding=p1, dilation=d1, relu=True)
    return conv_bn_act(h, blk["conv2"]["w"], blk["conv2"]["bias"],
                       stride=s2, padding=p2, dilation=d2,
                       relu=True, residual=identity)   # fused add + ReLU


def resnet_encoder_forward(x_nchw, params):
    # NCHW (PyTorch) -> NHWC bf16 for the kernels.
    x = jnp.transpose(x_nchw, (0, 2, 3, 1)).astype(jnp.bfloat16)
    c1, c2, c3 = params["conv1"], params["conv2"], params["conv3"]
    x = conv_bn_act(x, c1["w"], c1["bias"],
                    stride=2, padding=1, dilation=1, relu=True)
    x = conv_bn_act(x, c2["w"], c2["bias"],
                    stride=1, padding=1, dilation=1, relu=True)
    x = conv_bn_act(x, c3["w"], c3["bias"],
                    stride=1, padding=1, dilation=1, relu=True)
    x = maxpool_3x3_s2_p1(x)
    for name in ("layer1", "layer2", "layer3", "layer4"):
        x = _basic_block(x, params[name])
    # TODO(synk): dropout2d branch omitted (constructor default dropout2d=False;
    # identity in eval mode anyway).
    return jnp.transpose(x, (0, 3, 1, 2)).astype(jnp.float32)  # back to NCHW


if __name__ == "__main__":
    key = jax.random.PRNGKey(0)
    k_x, k_p = jax.random.split(key)
    x = jax.random.normal(k_x, (2, 4, 16, 16), jnp.float32)  # NCHW
    params = make_params(k_p, in_ch=4)

    fwd = jax.jit(functools.partial(resnet_encoder_forward, params=params))
    y = fwd(x)
    jax.block_until_ready(y)

    # dilate_scale=8 => overall stride 8: 16x16 -> 2x2, 128 output channels.
    assert y.shape == (2, 128, 2, 2), y.shape
    assert bool(jnp.all(jnp.isfinite(y)))
    print("KERNEL_OK")
</pallas_src>

<mosaic_0001>
module attributes {stable_mosaic.version = 11 : i64} {
  func.func @kernel(%arg0: i32, %arg1: memref<1x163x8xbf16, #tpu.memory_space<vmem>>, %arg2: memref<1x162x8xbf16, #tpu.memory_space<vmem>>, %arg3: memref<3x3x8x32xbf16, #tpu.memory_space<vmem>>, %arg4: memref<1x32xf32, #tpu.memory_space<vmem>>, %arg5: memref<1x144x32xbf16, #tpu.memory_space<vmem>>) attributes {dimension_semantics = [#tpu.dimension_semantics<parallel>], iteration_bounds = array<i64: 2>, scalar_prefetch = 0 : i64, scratch_operands = 0 : i64, tpu.core_type = #tpu.core_type<tc>, window_params = [{transform_indices = @transform_0, window_bounds = array<i64: 1, 163, 8>}, {transform_indices = @transform_1, window_bounds = array<i64: 1, 162, 8>}, {pipeline_mode = #tpu.pipeline_mode<synchronous>, transform_indices = @transform_2, window_bounds = array<i64: 3, 3, 8, 32>}, {pipeline_mode = #tpu.pipeline_mode<synchronous>, transform_indices = @transform_3, window_bounds = array<i64: 1, 32>}, {transform_indices = @transform_4, window_bounds = array<i64: 1, 144, 32>}]} {
    %c0 = arith.constant 0 : index
    %c0_0 = arith.constant 0 : index
    %c0_1 = arith.constant 0 : index
    %0 = vector.load %arg1[%c0, %c0_0, %c0_1] : memref<1x163x8xbf16, #tpu.memory_space<vmem>>, vector<1x144x8xbf16>
    %1 = vector.shape_cast %0 : vector<1x144x8xbf16> to vector<144x8xbf16>
    %c0_2 = arith.constant 0 : index
    %c0_3 = arith.constant 0 : index
    %c0_4 = arith.constant 0 : index
    %c0_5 = arith.constant 0 : index
    %2 = vector.load %arg3[%c0_2, %c0_3, %c0_4, %c0_5] : memref<3x3x8x32xbf16, #tpu.memory_space<vmem>>, vector<1x1x8x32xbf16>
    %3 = vector.shape_cast %2 : vector<1x1x8x32xbf16> to vector<8x32xbf16>
    %cst = arith.constant dense<0.000000e+00> : vector<144x32xf32>
    %4 = tpu.matmul %1, %3, %cst {dimension_numbers = #tpu.dot_dimension_numbers<[1], [0], [0], [1], [0, 0, 1, 1], [], []>} : vector<144x8xbf16>, vector<8x32xbf16>, vector<144x32xf32> -> vector<144x32xf32>
    %c0_6 = arith.constant 0 : index
    %c0_7 = arith.constant 0 : index
    %c0_8 = arith.constant 0 : index
    %5 = vector.load %arg2[%c0_6, %c0_7, %c0_8] : memref<1x162x8xbf16, #tpu.memory_space<vmem>>, vector<1x144x8xbf16>
    %6 = vector.shape_cast %5 : vector<1x144x8xbf16> to vector<144x8xbf16>
    %c0_9 = arith.constant 0 : index
    %c1 = arith.constant 1 : index
    %c0_10 = arith.constant 0 : index
    %c0_11 = arith.constant 0 : index
    %7 = vector.load %arg3[%c0_9, %c1, %c0_10, %c0_11] : memref<3x3x8x32xbf16, #tpu.memory_space<vmem>>, vector<1x1x8x32xbf16>
    %8 = vector.shape_cast %7 : vector<1x1x8x32xbf16> to vector<8x32xbf16>
    %cst_12 = arith.constant dense<0.000000e+00> : vector<144x32xf32>
    %9 = tpu.matmul %6, %8, %cst_12 {dimension_numbers = #tpu.dot_dimension_numbers<[1], [0], [0], [1], [0, 0, 1, 1], [], []>} : vector<144x8xbf16>, vector<8x32xbf16>, vector<144x32xf32> -> vector<144x32xf32>
    %10 = arith.addf %4, %9 : vector<144x32xf32>
    %c0_13 = arith.constant 0 : index
    %c1_14 = arith.constant 1 : index
    %c0_15 = arith.constant 0 : index
    %11 = vector.load %arg1[%c0_13, %c1_14, %c0_15] : memref<1x163x8xbf16, #tpu.memory_space<vmem>>, vector<1x144x8xbf16>
    %12 = vector.shape_cast %11 : vector<1x144x8xbf16> to vector<144x8xbf16>
    %c0_16 = arith.constant 0 : index
    %c2 = arith.constant 2 : index
    %c0_17 = arith.constant 0 : index
    %c0_18 = arith.constant 0 : index
    %13 = vector.load %arg3[%c0_16, %c2, %c0_17, %c0_18] : memref<3x3x8x32xbf16, #tpu.memory_space<vmem>>, vector<1x1x8x32xbf16>
    %14 = vector.shape_cast %13 : vector<1x1x8x32xbf16> to vector<8x32xbf16>
    %cst_19 = arith.constant dense<0.000000e+00> : vector<144x32xf32>
    %15 = tpu.matmul %12, %14, %cst_19 {dimension_numbers = #tpu.dot_dimension_numbers<[1], [0], [0], [1], [0, 0, 1, 1], [], []>} : vector<144x8xbf16>, vector<8x32xbf16>, vector<144x32xf32> -> vector<144x32xf32>
    %16 = arith.addf %10, %15 : vector<144x32xf32>
    %c0_20 = arith.constant 0 : index
    %c9 = arith.constant 9 : index
    %c0_21 = arith.constant 0 : index
    %17 = vector.load %arg1[%c0_20, %c9, %c0_21] : memref<1x163x8xbf16, #tpu.memory_space<vmem>>, vector<1x144x8xbf16>
    %18 = vector.shape_cast %17 : vector<1x144x8xbf16> to vector<144x8xbf16>
    %c1_22 = arith.constant 1 : index
    %c0_23 = arith.constant 0 : index
    %c0_24 = arith.constant 0 : index
    %c0_25 = arith.constant 0 : index
    %19 = vector.load %arg3[%c1_22, %c0_23, %c0_24, %c0_25] : memref<3x3x8x32xbf16, #tpu.memory_space<vmem>>, vector<1x1x8x32xbf16>
    %20 = vector.shape_cast %19 : vector<1x1x8x32xbf16> to vector<8x32xbf16>
    %cst_26 = arith.constant dense<0.000000e+00> : vector<144x32xf32>
    %21 = tpu.matmul %18, %20, %cst_26 {dimension_numbers = #tpu.dot_dimension_numbers<[1], [0], [0], [1], [0, 0, 1, 1], [], []>} : vector<144x8xbf16>, vector<8x32xbf16>, vector<144x32xf32> -> vector<144x32xf32>
    %22 = arith.addf %16, %21 : vector<144x32xf32>
    %c0_27 = arith.constant 0 : index
    %c9_28 = arith.constant 9 : index
    %c0_29 = arith.constant 0 : index
    %23 = vector.load %arg2[%c0_27, %c9_28, %c0_29] : memref<1x162x8xbf16, #tpu.memory_space<vmem>>, vector<1x144x8xbf16>
    %24 = vector.shape_cast %23 : vector<1x144x8xbf16> to vector<144x8xbf16>
    %c1_30 = arith.constant 1 : index
    %c1_31 = arith.constant 1 : index
    %c0_32 = arith.constant 0 : index
    %c0_33 = arith.constant 0 : index
    %25 = vector.load %arg3[%c1_30, %c1_31, %c0_32, %c0_33] : memref<3x3x8x32xbf16, #tpu.memory_space<vmem>>, vector<1x1x8x32xbf16>
    %26 = vector.shape_cast %25 : vector<1x1x8x32xbf16> to vector<8x32xbf16>
    %cst_34 = arith.constant dense<0.000000e+00> : vector<144x32xf32>
    %27 = tpu.matmul %24, %26, %cst_34 {dimension_numbers = #tpu.dot_dimension_numbers<[1], [0], [0], [1], [0, 0, 1, 1], [], []>} : vector<144x8xbf16>, vector<8x32xbf16>, vector<144x32xf32> -> vector<144x32xf32>
    %28 = arith.addf %22, %27 : vector<144x32xf32>
    %c0_35 = arith.constant 0 : index
    %c10 = arith.constant 10 : index
    %c0_36 = arith.constant 0 : index
    %29 = vector.load %arg1[%c0_35, %c10, %c0_36] : memref<1x163x8xbf16, #tpu.memory_space<vmem>>, vector<1x144x8xbf16>
    %30 = vector.shape_cast %29 : vector<1x144x8xbf16> to vector<144x8xbf16>
    %c1_37 = arith.constant 1 : index
    %c2_38 = arith.constant 2 : index
    %c0_39 = arith.constant 0 : index
    %c0_40 = arith.constant 0 : index
    %31 = vector.load %arg3[%c1_37, %c2_38, %c0_39, %c0_40] : memref<3x3x8x32xbf16, #tpu.memory_space<vmem>>, vector<1x1x8x32xbf16>
    %32 = vector.shape_cast %31 : vector<1x1x8x32xbf16> to vector<8x32xbf16>
    %cst_41 = arith.constant dense<0.000000e+00> : vector<144x32xf32>
    %33 = tpu.matmul %30, %32, %cst_41 {dimension_numbers = #tpu.dot_dimension_numbers<[1], [0], [0], [1], [0, 0, 1, 1], [], []>} : vector<144x8xbf16>, vector<8x32xbf16>, vector<144x32xf32> -> vector<144x32xf32>
    %34 = arith.addf %28, %33 : vector<144x32xf32>
    %c0_42 = arith.constant 0 : index
    %c18 = arith.constant 18 : index
    %c0_43 = arith.constant 0 : index
    %35 = vector.load %arg1[%c0_42, %c18, %c0_43] : memref<1x163x8xbf16, #tpu.memory_space<vmem>>, vector<1x144x8xbf16>
    %36 = vector.shape_cast %35 : vector<1x144x8xbf16> to vector<144x8xbf16>
    %c2_44 = arith.constant 2 : index
    %c0_45 = arith.constant 0 : index
    %c0_46 = arith.constant 0 : index
    %c0_47 = arith.constant 0 : index
    %37 = vector.load %arg3[%c2_44, %c0_45, %c0_46, %c0_47] : memref<3x3x8x32xbf16, #tpu.memory_space<vmem>>, vector<1x1x8x32xbf16>
    %38 = vector.shape_cast %37 : vector<1x1x8x32xbf16> to vector<8x32xbf16>
    %cst_48 = arith.constant dense<0.000000e+00> : vector<144x32xf32>
    %39 = tpu.matmul %36, %38, %cst_48 {dimension_numbers = #tpu.dot_dimension_numbers<[1], [0], [0], [1], [0, 0, 1, 1], [], []>} : vector<144x8xbf16>, vector<8x32xbf16>, vector<144x32xf32> -> vector<144x32xf32>
    %40 = arith.addf %34, %39 : vector<144x32xf32>
    %c0_49 = arith.constant 0 : index
    %c18_50 = arith.constant 18 : index
    %c0_51 = arith.constant 0 : index
    %41 = vector.load %arg2[%c0_49, %c18_50, %c0_51] : memref<1x162x8xbf16, #tpu.memory_space<vmem>>, vector<1x144x8xbf16>
    %42 = vector.shape_cast %41 : vector<1x144x8xbf16> to vector<144x8xbf16>
    %c2_52 = arith.constant 2 : index
    %c1_53 = arith.constant 1 : index
    %c0_54 = arith.constant 0 : index
    %c0_55 = arith.constant 0 : index
    %43 = vector.load %arg3[%c2_52, %c1_53, %c0_54, %c0_55] : memref<3x3x8x32xbf16, #tpu.memory_space<vmem>>, vector<1x1x8x32xbf16>
    %44 = vector.shape_cast %43 : vector<1x1x8x32xbf16> to vector<8x32xbf16>
    %cst_56 = arith.constant dense<0.000000e+00> : vector<144x32xf32>
    %45 = tpu.matmul %42, %44, %cst_56 {dimension_numbers = #tpu.dot_dimension_numbers<[1], [0], [0], [1], [0, 0, 1, 1], [], []>} : vector<144x8xbf16>, vector<8x32xbf16>, vector<144x32xf32> -> vector<144x32xf32>
    %46 = arith.addf %40, %45 : vector<144x32xf32>
    %c0_57 = arith.constant 0 : index
    %c19 = arith.constant 19 : index
    %c0_58 = arith.constant 0 : index
    %47 = vector.load %arg1[%c0_57, %c19, %c0_58] : memref<1x163x8xbf16, #tpu.memory_space<vmem>>, vector<1x144x8xbf16>
    %48 = vector.shape_cast %47 : vector<1x144x8xbf16> to vector<144x8xbf16>
    %c2_59 = arith.constant 2 : index
    %c2_60 = arith.constant 2 : index
    %c0_61 = arith.constant 0 : index
    %c0_62 = arith.constant 0 : index
    %49 = vector.load %arg3[%c2_59, %c2_60, %c0_61, %c0_62] : memref<3x3x8x32xbf16, #tpu.memory_space<vmem>>, vector<1x1x8x32xbf16>
    %50 = vector.shape_cast %49 : vector<1x1x8x32xbf16> to vector<8x32xbf16>
    %cst_63 = arith.constant dense<0.000000e+00> : vector<144x32xf32>
    %51 = tpu.matmul %48, %50, %cst_63 {dimension_numbers = #tpu.dot_dimension_numbers<[1], [0], [0], [1], [0, 0, 1, 1], [], []>} : vector<144x8xbf16>, vector<8x32xbf16>, vector<144x32xf32> -> vector<144x32xf32>
    %52 = arith.addf %46, %51 : vector<144x32xf32>
    %c0_64 = arith.constant 0 : index
    %c0_65 = arith.constant 0 : index
    %53 = vector.load %arg4[%c0_64, %c0_65] : memref<1x32xf32, #tpu.memory_space<vmem>>, vector<1x32xf32>
    %54 = vector.broadcast %53 : vector<1x32xf32> to vector<144x32xf32>
    %55 = arith.addf %52, %54 : vector<144x32xf32>
    %cst_66 = arith.constant 0.000000e+00 : f32
    %56 = vector.broadcast %cst_66 : f32 to vector<144x32xf32>
    %57 = arith.maximumf %55, %56 : vector<144x32xf32>
    %58 = arith.truncf %57 : vector<144x32xf32> to vector<144x32xbf16>
    %c0_67 = arith.constant 0 : index
    %c0_68 = arith.constant 0 : index
    %c0_69 = arith.constant 0 : index
    %59 = vector.load %arg5[%c0_67, %c0_68, %c0_69] : memref<1x144x32xbf16, #tpu.memory_space<vmem>>, vector<1x144x32xbf16>
    %60 = vector.shape_cast %59 : vector<1x144x32xbf16> to vector<144x32xbf16>
    %61 = vector.shape_cast %58 : vector<144x32xbf16> to vector<1x144x32xbf16>
    tpu.vector_store %arg5[%c0_67, %c0_68, %c0_69], %61 {strides = array<i32>} : memref<1x144x32xbf16, #tpu.memory_space<vmem>>, vector<1x144x32xbf16>,
    return
  }
  func.func @transform_0(%arg0: i32) -> (i32, i32, i32) {
    %c0_i32 = arith.constant 0 : i32
    %c0_i32_0 = arith.constant 0 : i32
    %c0_i32_1 = arith.constant 0 : i32
    return %arg0, %c0_i32, %c0_i32_0 : i32, i32, i32
  }
  func.func @transform_1(%arg0: i32) -> (i32, i32, i32) {
    %c0_i32 = arith.constant 0 : i32
    %c0_i32_0 = arith.constant 0 : i32
    %c0_i32_1 = arith.constant 0 : i32
    return %arg0, %c0_i32, %c0_i32_0 : i32, i32, i32
  }
  func.func @transform_2(%arg0: i32) -> (i32, i32, i32, i32) {
    %c0_i32 = arith.constant 0 : i32
    %c0_i32_0 = arith.constant 0 : i32
    %c0_i32_1 = arith.constant 0 : i32
    %c0_i32_2 = arith.constant 0 : i32
    %c0_i32_3 = arith.constant 0 : i32
    return %c0_i32, %c0_i32_0, %c0_i32_1, %c0_i32_2 : i32, i32, i32, i32
  }
  func.func @transform_3(%arg0: i32) -> (i32, i32) {
    %c0_i32 = arith.constant 0 : i32
    %c0_i32_0 = arith.constant 0 : i32
    %c0_i32_1 = arith.constant 0 : i32
    return %c0_i32, %c0_i32_0 : i32, i32
  }
  func.func @transform_4(%arg0: i32) -> (i32, i32, i32) {
    %c0_i32 = arith.constant 0 : i32
    %c0_i32_0 = arith.constant 0 : i32
    %c0_i32_1 = arith.constant 0 : i32
    return %arg0, %c0_i32, %c0_i32_0 : i32, i32, i32
  }
}

module attributes {stable_mosaic.version = 11 : i64} {
  func.func @kernel(%arg0: i32, %arg1: memref<1x102x32xbf16, #tpu.memory_space<vmem>>, %arg2: memref<3x3x32x32xbf16, #tpu.memory_space<vmem>>, %arg3: memref<1x32xf32, #tpu.memory_space<vmem>>, %arg4: memref<1x80x32xbf16, #tpu.memory_space<vmem>>) attributes {dimension_semantics = [#tpu.dimension_semantics<parallel>], iteration_bounds = array<i64: 2>, scalar_prefetch = 0 : i64, scratch_operands = 0 : i64, tpu.core_type = #tpu.core_type<tc>, window_params = [{transform_indices = @transform_0, window_bounds = array<i64: 1, 102, 32>}, {pipeline_mode = #tpu.pipeline_mode<synchronous>, transform_indices = @transform_1, window_bounds = array<i64: 3, 3, 32, 32>}, {pipeline_mode = #tpu.pipeline_mode<synchronous>, transform_indices = @transform_2, window_bounds = array<i64: 1, 32>}, {transform_indices = @transform_3, window_bounds = array<i64: 1, 80, 32>}]} {
    %c0 = arith.constant 0 : index
    %c0_0 = arith.constant 0 : index
    %c0_1 = arith.constant 0 : index
    %0 = vector.load %arg1[%c0, %c0_0, %c0_1] : memref<1x102x32xbf16, #tpu.memory_space<vmem>>, vector<1x80x32xbf16>
    %1 = vector.shape_cast %0 : vector<1x80x32xbf16> to vector<80x32xbf16>
    %c0_2 = arith.constant 0 : index
    %c0_3 = arith.constant 0 : index
    %c0_4 = arith.constant 0 : index
    %c0_5 = arith.constant 0 : index
    %2 = vector.load %arg2[%c0_2, %c0_3, %c0_4, %c0_5] : memref<3x3x32x32xbf16, #tpu.memory_space<vmem>>, vector<1x1x32x32xbf16>
    %3 = vector.shape_cast %2 : vector<1x1x32x32xbf16> to vector<32x32xbf16>
    %cst = arith.constant dense<0.000000e+00> : vector<80x32xf32>
    %4 = tpu.matmul %1, %3, %cst {dimension_numbers = #tpu.dot_dimension_numbers<[1], [0], [0], [1], [0, 0, 1, 1], [], []>} : vector<80x32xbf16>, vector<32x32xbf16>, vector<80x32xf32> -> vector<80x32xf32>
    %c0_6 = arith.constant 0 : index
    %c1 = arith.constant 1 : index
    %c0_7 = arith.constant 0 : index
    %5 = vector.load %arg1[%c0_6, %c1, %c0_7] : memref<1x102x32xbf16, #tpu.memory_space<vmem>>, vector<1x80x32xbf16>
    %6 = vector.shape_cast %5 : vector<1x80x32xbf16> to vector<80x32xbf16>
    %c0_8 = arith.constant 0 : index
    %c1_9 = arith.constant 1 : index
    %c0_10 = arith.constant 0 : index
    %c0_11 = arith.constant 0 : index
    %7 = vector.load %arg2[%c0_8, %c1_9, %c0_10, %c0_11] : memref<3x3x32x32xbf16, #tpu.memory_space<vmem>>, vector<1x1x32x32xbf16>
    %8 = vector.shape_cast %7 : vector<1x1x32x32xbf16> to vector<32x32xbf16>
    %cst_12 = arith.constant dense<0.000000e+00> : vector<80x32xf32>
    %9 = tpu.matmul %6, %8, %cst_12 {dimension_numbers = #tpu.dot_dimension_numbers<[1], [0], [0], [1], [0, 0, 1, 1], [], []>} : vector<80x32xbf16>, vector<32x32xbf16>, vector<80x32xf32> -> vector<80x32xf32>
    %10 = arith.addf %4, %9 : vector<80x32xf32>
    %c0_13 = arith.constant 0 : index
    %c2 = arith.constant 2 : index
    %c0_14 = arith.constant 0 : index
    %11 = vector.load %arg1[%c0_13, %c2, %c0_14] : memref<1x102x32xbf16, #tpu.memory_space<vmem>>, vector<1x80x32xbf16>
    %12 = vector.shape_cast %11 : vector<1x80x32xbf16> to vector<80x32xbf16>
    %c0_15 = arith.constant 0 : index
    %c2_16 = arith.constant 2 : index
    %c0_17 = arith.constant 0 : index
    %c0_18 = arith.constant 0 : index
    %13 = vector.load %arg2[%c0_15, %c2_16, %c0_17, %c0_18] : memref<3x3x32x32xbf16, #tpu.memory_space<vmem>>, vector<1x1x32x32xbf16>
    %14 = vector.shape_cast %13 : vector<1x1x32x32xbf16> to vector<32x32xbf16>
    %cst_19 = arith.constant dense<0.000000e+00> : vector<80x32xf32>
    %15 = tpu.matmul %12, %14, %cst_19 {dimension_numbers = #tpu.dot_dimension_numbers<[1], [0], [0], [1], [0, 0, 1, 1], [], []>} : vector<80x32xbf16>, vector<32x32xbf16>, vector<80x32xf32> -> vector<80x32xf32>
    %16 = arith.addf %10, %15 : vector<80x32xf32>
    %c0_20 = arith.constant 0 : index
    %c10 = arith.constant 10 : index
    %c0_21 = arith.constant 0 : index
    %17 = vector.load %arg1[%c0_20, %c10, %c0_21] : memref<1x102x32xbf16, #tpu.memory_space<vmem>>, vector<1x80x32xbf16>
    %18 = vector.shape_cast %17 : vector<1x80x32xbf16> to vector<80x32xbf16>
    %c1_22 = arith.constant 1 : index
    %c0_23 = arith.constant 0 : index
    %c0_24 = arith.constant 0 : index
    %c0_25 = arith.constant 0 : index
    %19 = vector.load %arg2[%c1_22, %c0_23, %c0_24, %c0_25] : memref<3x3x32x32xbf16, #tpu.memory_space<vmem>>, vector<1x1x32x32xbf16>
    %20 = vector.shape_cast %19 : vector<1x1x32x32xbf16> to vector<32x32xbf16>
    %cst_26 = arith.constant dense<0.000000e+00> : vector<80x32xf32>
    %21 = tpu.matmul %18, %20, %cst_26 {dimension_numbers = #tpu.dot_dimension_numbers<[1], [0], [0], [1], [0, 0, 1, 1], [], []>} : vector<80x32xbf16>, vector<32x32xbf16>, vector<80x32xf32> -> vector<80x32xf32>
    %22 = arith.addf %16, %21 : vector<80x32xf32>
    %c0_27 = arith.constant 0 : index
    %c11 = arith.constant 11 : index
    %c0_28 = arith.constant 0 : index
    %23 = vector.load %arg1[%c0_27, %c11, %c0_28] : memref<1x102x32xbf16, #tpu.memory_space<vmem>>, vector<1x80x32xbf16>
    %24 = vector.shape_cast %23 : vector<1x80x32xbf16> to vector<80x32xbf16>
    %c1_29 = arith.constant 1 : index
    %c1_30 = arith.constant 1 : index
    %c0_31 = arith.constant 0 : index
    %c0_32 = arith.constant 0 : index
    %25 = vector.load %arg2[%c1_29, %c1_30, %c0_31, %c0_32] : memref<3x3x32x32xbf16, #tpu.memory_space<vmem>>, vector<1x1x32x32xbf16>
    %26 = vector.shape_cast %25 : vector<1x1x32x32xbf16> to vector<32x32xbf16>
    %cst_33 = arith.constant dense<0.000000e+00> : vector<80x32xf32>
    %27 = tpu.matmul %24, %26, %cst_33 {dimension_numbers = #tpu.dot_dimension_numbers<[1], [0], [0], [1], [0, 0, 1, 1], [], []>} : vector<80x32xbf16>, vector<32x32xbf16>, vector<80x32xf32> -> vector<80x32xf32>
    %28 = arith.addf %22, %27 : vector<80x32xf32>
    %c0_34 = arith.constant 0 : index
    %c12 = arith.constant 12 : index
    %c0_35 = arith.constant 0 : index
    %29 = vector.load %arg1[%c0_34, %c12, %c0_35] : memref<1x102x32xbf16, #tpu.memory_space<vmem>>, vector<1x80x32xbf16>
    %30 = vector.shape_cast %29 : vector<1x80x32xbf16> to vector<80x32xbf16>
    %c1_36 = arith.constant 1 : index
    %c2_37 = arith.constant 2 : index
    %c0_38 = arith.constant 0 : index
    %c0_39 = arith.constant 0 : index
    %31 = vector.load %arg2[%c1_36, %c2_37, %c0_38, %c0_39] : memref<3x3x32x32xbf16, #tpu.memory_space<vmem>>, vector<1x1x32x32xbf16>
    %32 = vector.shape_cast %31 : vector<1x1x32x32xbf16> to vector<32x32xbf16>
    %cst_40 = arith.constant dense<0.000000e+00> : vector<80x32xf32>
    %33 = tpu.matmul %30, %32, %cst_40 {dimension_numbers = #tpu.dot_dimension_numbers<[1], [0], [0], [1], [0, 0, 1, 1], [], []>} : vector<80x32xbf16>, vector<32x32xbf16>, vector<80x32xf32> -> vector<80x32xf32>
    %34 = arith.addf %28, %33 : vector<80x32xf32>
    %c0_41 = arith.constant 0 : index
    %c20 = arith.constant 20 : index
    %c0_42 = arith.constant 0 : index
    %35 = vector.load %arg1[%c0_41, %c20, %c0_42] : memref<1x102x32xbf16, #tpu.memory_space<vmem>>, vector<1x80x32xbf16>
    %36 = vector.shape_cast %35 : vector<1x80x32xbf16> to vector<80x32xbf16>
    %c2_43 = arith.constant 2 : index
    %c0_44 = arith.constant 0 : index
    %c0_45 = arith.constant 0 : index
    %c0_46 = arith.constant 0 : index
    %37 = vector.load %arg2[%c2_43, %c0_44, %c0_45, %c0_46] : memref<3x3x32x32xbf16, #tpu.memory_space<vmem>>, vector<1x1x32x32xbf16>
    %38 = vector.shape_cast %37 : vector<1x1x32x32xbf16> to vector<32x32xbf16>
    %cst_47 = arith.constant dense<0.000000e+00> : vector<80x32xf32>
    %39 = tpu.matmul %36, %38, %cst_47 {dimension_numbers = #tpu.dot_dimension_numbers<[1], [0], [0], [1], [0, 0, 1, 1], [], []>} : vector<80x32xbf16>, vector<32x32xbf16>, vector<80x32xf32> -> vector<80x32xf32>
    %40 = arith.addf %34, %39 : vector<80x32xf32>
    %c0_48 = arith.constant 0 : index
    %c21 = arith.constant 21 : index
    %c0_49 = arith.constant 0 : index
    %41 = vector.load %arg1[%c0_48, %c21, %c0_49] : memref<1x102x32xbf16, #tpu.memory_space<vmem>>, vector<1x80x32xbf16>
    %42 = vector.shape_cast %41 : vector<1x80x32xbf16> to vector<80x32xbf16>
    %c2_50 = arith.constant 2 : index
    %c1_51 = arith.constant 1 : index
    %c0_52 = arith.constant 0 : index
    %c0_53 = arith.constant 0 : index
    %43 = vector.load %arg2[%c2_50, %c1_51, %c0_52, %c0_53] : memref<3x3x32x32xbf16, #tpu.memory_space<vmem>>, vector<1x1x32x32xbf16>
    %44 = vector.shape_cast %43 : vector<1x1x32x32xbf16> to vector<32x32xbf16>
    %cst_54 = arith.constant dense<0.000000e+00> : vector<80x32xf32>
    %45 = tpu.matmul %42, %44, %cst_54 {dimension_numbers = #tpu.dot_dimension_numbers<[1], [0], [0], [1], [0, 0, 1, 1], [], []>} : vector<80x32xbf16>, vector<32x32xbf16>, vector<80x32xf32> -> vector<80x32xf32>
    %46 = arith.addf %40, %45 : vector<80x32xf32>
    %c0_55 = arith.constant 0 : index
    %c22 = arith.constant 22 : index
    %c0_56 = arith.constant 0 : index
    %47 = vector.load %arg1[%c0_55, %c22, %c0_56] : memref<1x102x32xbf16, #tpu.memory_space<vmem>>, vector<1x80x32xbf16>
    %48 = vector.shape_cast %47 : vector<1x80x32xbf16> to vector<80x32xbf16>
    %c2_57 = arith.constant 2 : index
    %c2_58 = arith.constant 2 : index
    %c0_59 = arith.constant 0 : index
    %c0_60 = arith.constant 0 : index
    %49 = vector.load %arg2[%c2_57, %c2_58, %c0_59, %c0_60] : memref<3x3x32x32xbf16, #tpu.memory_space<vmem>>, vector<1x1x32x32xbf16>
    %50 = vector.shape_cast %49 : vector<1x1x32x32xbf16> to vector<32x32xbf16>
    %cst_61 = arith.constant dense<0.000000e+00> : vector<80x32xf32>
    %51 = tpu.matmul %48, %50, %cst_61 {dimension_numbers = #tpu.dot_dimension_numbers<[1], [0], [0], [1], [0, 0, 1, 1], [], []>} : vector<80x32xbf16>, vector<32x32xbf16>, vector<80x32xf32> -> vector<80x32xf32>
    %52 = arith.addf %46, %51 : vector<80x32xf32>
    %c0_62 = arith.constant 0 : index
    %c0_63 = arith.constant 0 : index
    %53 = vector.load %arg3[%c0_62, %c0_63] : memref<1x32xf32, #tpu.memory_space<vmem>>, vector<1x32xf32>
    %54 = vector.broadcast %53 : vector<1x32xf32> to vector<80x32xf32>
    %55 = arith.addf %52, %54 : vector<80x32xf32>
    %cst_64 = arith.constant 0.000000e+00 : f32
    %56 = vector.broadcast %cst_64 : f32 to vector<80x32xf32>
    %57 = arith.maximumf %55, %56 : vector<80x32xf32>
    %58 = arith.truncf %57 : vector<80x32xf32> to vector<80x32xbf16>
    %c0_65 = arith.constant 0 : index
    %c0_66 = arith.constant 0 : index
    %c0_67 = arith.constant 0 : index
    %59 = vector.load %arg4[%c0_65, %c0_66, %c0_67] : memref<1x80x32xbf16, #tpu.memory_space<vmem>>, vector<1x80x32xbf16>
    %60 = vector.shape_cast %59 : vector<1x80x32xbf16> to vector<80x32xbf16>
    %61 = vector.shape_cast %58 : vector<80x32xbf16> to vector<1x80x32xbf16>
    tpu.vector_store %arg4[%c0_65, %c0_66, %c0_67], %61 {strides = array<i32>} : memref<1x80x32xbf16, #tpu.memory_space<vmem>>, vector<1x80x32xbf16>,
    return
  }
  func.func @transform_0(%arg0: i32) -> (i32, i32, i32) {
    %c0_i32 = arith.constant 0 : i32
    %c0_i32_0 = arith.constant 0 : i32
    %c0_i32_1 = arith.constant 0 : i32
    return %arg0, %c0_i32, %c0_i32_0 : i32, i32, i32
  }
  func.func @transform_1(%arg0: i32) -> (i32, i32, i32, i32) {
    %c0_i32 = arith.constant 0 : i32
    %c0_i32_0 = arith.constant 0 : i32
    %c0_i32_1 = arith.constant 0 : i32
    %c0_i32_2 = arith.constant 0 : i32
    %c0_i32_3 = arith.constant 0 : i32
    return %c0_i32, %c0_i32_0, %c0_i32_1, %c0_i32_2 : i32, i32, i32, i32
  }
  func.func @transform_2(%arg0: i32) -> (i32, i32) {
    %c0_i32 = arith.constant 0 : i32
    %c0_i32_0 = arith.constant 0 : i32
    %c0_i32_1 = arith.constant 0 : i32
    return %c0_i32, %c0_i32_0 : i32, i32
  }
  func.func @transform_3(%arg0: i32) -> (i32, i32, i32) {
    %c0_i32 = arith.constant 0 : i32
    %c0_i32_0 = arith.constant 0 : i32
    %c0_i32_1 = arith.constant 0 : i32
    return %arg0, %c0_i32, %c0_i32_0 : i32, i32, i32
  }
}

module attributes {stable_mosaic.version = 11 : i64} {
  func.func @kernel(%arg0: i32, %arg1: memref<1x102x32xbf16, #tpu.memory_space<vmem>>, %arg2: memref<3x3x32x64xbf16, #tpu.memory_space<vmem>>, %arg3: memref<1x64xf32, #tpu.memory_space<vmem>>, %arg4: memref<1x80x64xbf16, #tpu.memory_space<vmem>>) attributes {dimension_semantics = [#tpu.dimension_semantics<parallel>], iteration_bounds = array<i64: 2>, scalar_prefetch = 0 : i64, scratch_operands = 0 : i64, tpu.core_type = #tpu.core_type<tc>, window_params = [{transform_indices = @transform_0, window_bounds = array<i64: 1, 102, 32>}, {pipeline_mode = #tpu.pipeline_mode<synchronous>, transform_indices = @transform_1, window_bounds = array<i64: 3, 3, 32, 64>}, {pipeline_mode = #tpu.pipeline_mode<synchronous>, transform_indices = @transform_2, window_bounds = array<i64: 1, 64>}, {transform_indices = @transform_3, window_bounds = array<i64: 1, 80, 64>}]} {
    %c0 = arith.constant 0 : index
    %c0_0 = arith.constant 0 : index
    %c0_1 = arith.constant 0 : index
    %0 = vector.load %arg1[%c0, %c0_0, %c0_1] : memref<1x102x32xbf16, #tpu.memory_space<vmem>>, vector<1x80x32xbf16>
    %1 = vector.shape_cast %0 : vector<1x80x32xbf16> to vector<80x32xbf16>
    %c0_2 = arith.constant 0 : index
    %c0_3 = arith.constant 0 : index
    %c0_4 = arith.constant 0 : index
    %c0_5 = arith.constant 0 : index
    %2 = vector.load %arg2[%c0_2, %c0_3, %c0_4, %c0_5] : memref<3x3x32x64xbf16, #tpu.memory_space<vmem>>, vector<1x1x32x64xbf16>
    %3 = vector.shape_cast %2 : vector<1x1x32x64xbf16> to vector<32x64xbf16>
    %cst = arith.constant dense<0.000000e+00> : vector<80x64xf32>
    %4 = tpu.matmul %1, %3, %cst {dimension_numbers = #tpu.dot_dimension_numbers<[1], [0], [0], [1], [0, 0, 1, 1], [], []>} : vector<80x32xbf16>, vector<32x64xbf16>, vector<80x64xf32> -> vector<80x64xf32>
    %c0_6 = arith.constant 0 : index
    %c1 = arith.constant 1 : index
    %c0_7 = arith.constant 0 : index
    %5 = vector.load %arg1[%c0_6, %c1, %c0_7] : memref<1x102x32xbf16, #tpu.memory_space<vmem>>, vector<1x80x32xbf16>
    %6 = vector.shape_cast %5 : vector<1x80x32xbf16> to vector<80x32xbf16>
    %c0_8 = arith.constant 0 : index
    %c1_9 = arith.constant 1 : index
    %c0_10 = arith.constant 0 : index
    %c0_11 = arith.constant 0 : index
    %7 = vector.load %arg2[%c0_8, %c1_9, %c0_10, %c0_11] : memref<3x3x32x64xbf16, #tpu.memory_space<vmem>>, vector<1x1x32x64xbf16>
    %8 = vector.shape_cast %7 : vector<1x1x32x64xbf16> to vector<32x64xbf16>
    %cst_12 = arith.constant dense<0.000000e+00> : vector<80x64xf32>
    %9 = tpu.matmul %6, %8, %cst_12 {dimension_numbers = #tpu.dot_dimension_numbers<[1], [0], [0], [1], [0, 0, 1, 1], [], []>} : vector<80x32xbf16>, vector<32x64xbf16>, vector<80x64xf32> -> vector<80x64xf32>
    %10 = arith.addf %4, %9 : vector<80x64xf32>
    %c0_13 = arith.constant 0 : index
    %c2 = arith.constant 2 : index
    %c0_14 = arith.constant 0 : index
    %11 = vector.load %arg1[%c0_13, %c2, %c0_14] : memref<1x102x32xbf16, #tpu.memory_space<vmem>>, vector<1x80x32xbf16>
    %12 = vector.shape_cast %11 : vector<1x80x32xbf16> to vector<80x32xbf16>
    %c0_15 = arith.constant 0 : index
    %c2_16 = arith.constant 2 : index
    %c0_17 = arith.constant 0 : index
    %c0_18 = arith.constant 0 : index
    %13 = vector.load %arg2[%c0_15, %c2_16, %c0_17, %c0_18] : memref<3x3x32x64xbf16, #tpu.memory_space<vmem>>, vector<1x1x32x64xbf16>
    %14 = vector.shape_cast %13 : vector<1x1x32x64xbf16> to vector<32x64xbf16>
    %cst_19 = arith.constant dense<0.000000e+00> : vector<80x64xf32>
    %15 = tpu.matmul %12, %14, %cst_19 {dimension_numbers = #tpu.dot_dimension_numbers<[1], [0], [0], [1], [0, 0, 1, 1], [], []>} : vector<80x32xbf16>, vector<32x64xbf16>, vector<80x64xf32> -> vector<80x64xf32>
    %16 = arith.addf %10, %15 : vector<80x64xf32>
    %c0_20 = arith.constant 0 : index
    %c10 = arith.constant 10 : index
    %c0_21 = arith.constant 0 : index
    %17 = vector.load %arg1[%c0_20, %c10, %c0_21] : memref<1x102x32xbf16, #tpu.memory_space<vmem>>, vector<1x80x32xbf16>
    %18 = vector.shape_cast %17 : vector<1x80x32xbf16> to vector<80x32xbf16>
    %c1_22 = arith.constant 1 : index
    %c0_23 = arith.constant 0 : index
    %c0_24 = arith.constant 0 : index
    %c0_25 = arith.constant 0 : index
    %19 = vector.load %arg2[%c1_22, %c0_23, %c0_24, %c0_25] : memref<3x3x32x64xbf16, #tpu.memory_space<vmem>>, vector<1x1x32x64xbf16>
    %20 = vector.shape_cast %19 : vector<1x1x32x64xbf16> to vector<32x64xbf16>
    %cst_26 = arith.constant dense<0.000000e+00> : vector<80x64xf32>
    %21 = tpu.matmul %18, %20, %cst_26 {dimension_numbers = #tpu.dot_dimension_numbers<[1], [0], [0], [1], [0, 0, 1, 1], [], []>} : vector<80x32xbf16>, vector<32x64xbf16>, vector<80x64xf32> -> vector<80x64xf32>
    %22 = arith.addf %16, %21 : vector<80x64xf32>
    %c0_27 = arith.constant 0 : index
    %c11 = arith.constant 11 : index
    %c0_28 = arith.constant 0 : index
    %23 = vector.load %arg1[%c0_27, %c11, %c0_28] : memref<1x102x32xbf16, #tpu.memory_space<vmem>>, vector<1x80x32xbf16>
    %24 = vector.shape_cast %23 : vector<1x80x32xbf16> to vector<80x32xbf16>
    %c1_29 = arith.constant 1 : index
    %c1_30 = arith.constant 1 : index
    %c0_31 = arith.constant 0 : index
    %c0_32 = arith.constant 0 : index
    %25 = vector.load %arg2[%c1_29, %c1_30, %c0_31, %c0_32] : memref<3x3x32x64xbf16, #tpu.memory_space<vmem>>, vector<1x1x32x64xbf16>
    %26 = vector.shape_cast %25 : vector<1x1x32x64xbf16> to vector<32x64xbf16>
    %cst_33 = arith.constant dense<0.000000e+00> : vector<80x64xf32>
    %27 = tpu.matmul %24, %26, %cst_33 {dimension_numbers = #tpu.dot_dimension_numbers<[1], [0], [0], [1], [0, 0, 1, 1], [], []>} : vector<80x32xbf16>, vector<32x64xbf16>, vector<80x64xf32> -> vector<80x64xf32>
    %28 = arith.addf %22, %27 : vector<80x64xf32>
    %c0_34 = arith.constant 0 : index
    %c12 = arith.constant 12 : index
    %c0_35 = arith.constant 0 : index
    %29 = vector.load %arg1[%c0_34, %c12, %c0_35] : memref<1x102x32xbf16, #tpu.memory_space<vmem>>, vector<1x80x32xbf16>
    %30 = vector.shape_cast %29 : vector<1x80x32xbf16> to vector<80x32xbf16>
    %c1_36 = arith.constant 1 : index
    %c2_37 = arith.constant 2 : index
    %c0_38 = arith.constant 0 : index
    %c0_39 = arith.constant 0 : index
    %31 = vector.load %arg2[%c1_36, %c2_37, %c0_38, %c0_39] : memref<3x3x32x64xbf16, #tpu.memory_space<vmem>>, vector<1x1x32x64xbf16>
    %32 = vector.shape_cast %31 : vector<1x1x32x64xbf16> to vector<32x64xbf16>
    %cst_40 = arith.constant dense<0.000000e+00> : vector<80x64xf32>
    %33 = tpu.matmul %30, %32, %cst_40 {dimension_numbers = #tpu.dot_dimension_numbers<[1], [0], [0], [1], [0, 0, 1, 1], [], []>} : vector<80x32xbf16>, vector<32x64xbf16>, vector<80x64xf32> -> vector<80x64xf32>
    %34 = arith.addf %28, %33 : vector<80x64xf32>
    %c0_41 = arith.constant 0 : index
    %c20 = arith.constant 20 : index
    %c0_42 = arith.constant 0 : index
    %35 = vector.load %arg1[%c0_41, %c20, %c0_42] : memref<1x102x32xbf16, #tpu.memory_space<vmem>>, vector<1x80x32xbf16>
    %36 = vector.shape_cast %35 : vector<1x80x32xbf16> to vector<80x32xbf16>
    %c2_43 = arith.constant 2 : index
    %c0_44 = arith.constant 0 : index
    %c0_45 = arith.constant 0 : index
    %c0_46 = arith.constant 0 : index
    %37 = vector.load %arg2[%c2_43, %c0_44, %c0_45, %c0_46] : memref<3x3x32x64xbf16, #tpu.memory_space<vmem>>, vector<1x1x32x64xbf16>
    %38 = vector.shape_cast %37 : vector<1x1x32x64xbf16> to vector<32x64xbf16>
    %cst_47 = arith.constant dense<0.000000e+00> : vector<80x64xf32>
    %39 = tpu.matmul %36, %38, %cst_47 {dimension_numbers = #tpu.dot_dimension_numbers<[1], [0], [0], [1], [0, 0, 1, 1], [], []>} : vector<80x32xbf16>, vector<32x64xbf16>, vector<80x64xf32> -> vector<80x64xf32>
    %40 = arith.addf %34, %39 : vector<80x64xf32>
    %c0_48 = arith.constant 0 : index
    %c21 = arith.constant 21 : index
    %c0_49 = arith.constant 0 : index
    %41 = vector.load %arg1[%c0_48, %c21, %c0_49] : memref<1x102x32xbf16, #tpu.memory_space<vmem>>, vector<1x80x32xbf16>
    %42 = vector.shape_cast %41 : vector<1x80x32xbf16> to vector<80x32xbf16>
    %c2_50 = arith.constant 2 : index
    %c1_51 = arith.constant 1 : index
    %c0_52 = arith.constant 0 : index
    %c0_53 = arith.constant 0 : index
    %43 = vector.load %arg2[%c2_50, %c1_51, %c0_52, %c0_53] : memref<3x3x32x64xbf16, #tpu.memory_space<vmem>>, vector<1x1x32x64xbf16>
    %44 = vector.shape_cast %43 : vector<1x1x32x64xbf16> to vector<32x64xbf16>
    %cst_54 = arith.constant dense<0.000000e+00> : vector<80x64xf32>
    %45 = tpu.matmul %42, %44, %cst_54 {dimension_numbers = #tpu.dot_dimension_numbers<[1], [0], [0], [1], [0, 0, 1, 1], [], []>} : vector<80x32xbf16>, vector<32x64xbf16>, vector<80x64xf32> -> vector<80x64xf32>
    %46 = arith.addf %40, %45 : vector<80x64xf32>
    %c0_55 = arith.constant 0 : index
    %c22 = arith.constant 22 : index
    %c0_56 = arith.constant 0 : index
    %47 = vector.load %arg1[%c0_55, %c22, %c0_56] : memref<1x102x32xbf16, #tpu.memory_space<vmem>>, vector<1x80x32xbf16>
    %48 = vector.shape_cast %47 : vector<1x80x32xbf16> to vector<80x32xbf16>
    %c2_57 = arith.constant 2 : index
    %c2_58 = arith.constant 2 : index
    %c0_59 = arith.constant 0 : index
    %c0_60 = arith.constant 0 : index
    %49 = vector.load %arg2[%c2_57, %c2_58, %c0_59, %c0_60] : memref<3x3x32x64xbf16, #tpu.memory_space<vmem>>, vector<1x1x32x64xbf16>
    %50 = vector.shape_cast %49 : vector<1x1x32x64xbf16> to vector<32x64xbf16>
    %cst_61 = arith.constant dense<0.000000e+00> : vector<80x64xf32>
    %51 = tpu.matmul %48, %50, %cst_61 {dimension_numbers = #tpu.dot_dimension_numbers<[1], [0], [0], [1], [0, 0, 1, 1], [], []>} : vector<80x32xbf16>, vector<32x64xbf16>, vector<80x64xf32> -> vector<80x64xf32>
    %52 = arith.addf %46, %51 : vector<80x64xf32>
    %c0_62 = arith.constant 0 : index
    %c0_63 = arith.constant 0 : index
    %53 = vector.load %arg3[%c0_62, %c0_63] : memref<1x64xf32, #tpu.memory_space<vmem>>, vector<1x64xf32>
    %54 = vector.broadcast %53 : vector<1x64xf32> to vector<80x64xf32>
    %55 = arith.addf %52, %54 : vector<80x64xf32>
    %cst_64 = arith.constant 0.000000e+00 : f32
    %56 = vector.broadcast %cst_64 : f32 to vector<80x64xf32>
    %57 = arith.maximumf %55, %56 : vector<80x64xf32>
    %58 = arith.truncf %57 : vector<80x64xf32> to vector<80x64xbf16>
    %c0_65 = arith.constant 0 : index
    %c0_66 = arith.constant 0 : index
    %c0_67 = arith.constant 0 : index
    %59 = vector.load %arg4[%c0_65, %c0_66, %c0_67] : memref<1x80x64xbf16, #tpu.memory_space<vmem>>, vector<1x80x64xbf16>
    %60 = vector.shape_cast %59 : vector<1x80x64xbf16> to vector<80x64xbf16>
    %61 = vector.shape_cast %58 : vector<80x64xbf16> to vector<1x80x64xbf16>
    tpu.vector_store %arg4[%c0_65, %c0_66, %c0_67], %61 {strides = array<i32>} : memref<1x80x64xbf16, #tpu.memory_space<vmem>>, vector<1x80x64xbf16>,
    return
  }
  func.func @transform_0(%arg0: i32) -> (i32, i32, i32) {
    %c0_i32 = arith.constant 0 : i32
    %c0_i32_0 = arith.constant 0 : i32
    %c0_i32_1 = arith.constant 0 : i32
    return %arg0, %c0_i32, %c0_i32_0 : i32, i32, i32
  }
  func.func @transform_1(%arg0: i32) -> (i32, i32, i32, i32) {
    %c0_i32 = arith.constant 0 : i32
    %c0_i32_0 = arith.constant 0 : i32
    %c0_i32_1 = arith.constant 0 : i32
    %c0_i32_2 = arith.constant 0 : i32
    %c0_i32_3 = arith.constant 0 : i32
    return %c0_i32, %c0_i32_0, %c0_i32_1, %c0_i32_2 : i32, i32, i32, i32
  }
  func.func @transform_2(%arg0: i32) -> (i32, i32) {
    %c0_i32 = arith.constant 0 : i32
    %c0_i32_0 = arith.constant 0 : i32
    %c0_i32_1 = arith.constant 0 : i32
    return %c0_i32, %c0_i32_0 : i32, i32
  }
  func.func @transform_3(%arg0: i32) -> (i32, i32, i32) {
    %c0_i32 = arith.constant 0 : i32
    %c0_i32_0 = arith.constant 0 : i32
    %c0_i32_1 = arith.constant 0 : i32
    return %arg0, %c0_i32, %c0_i32_0 : i32, i32, i32
  }
}

module attributes {stable_mosaic.version = 11 : i64} {
  func.func @kernel(%arg0: i32, %arg1: memref<1x51x64xbf16, #tpu.memory_space<vmem>>, %arg2: memref<1x50x64xbf16, #tpu.memory_space<vmem>>, %arg3: memref<1x40x64xbf16, #tpu.memory_space<vmem>>) attributes {dimension_semantics = [#tpu.dimension_semantics<parallel>], iteration_bounds = array<i64: 2>, scalar_prefetch = 0 : i64, scratch_operands = 0 : i64, tpu.core_type = #tpu.core_type<tc>, window_params = [{transform_indices = @transform_0, window_bounds = array<i64: 1, 51, 64>}, {transform_indices = @transform_1, window_bounds = array<i64: 1, 50, 64>}, {transform_indices = @transform_2, window_bounds = array<i64: 1, 40, 64>}]} {
    %c0 = arith.constant 0 : index
    %c0_0 = arith.constant 0 : index
    %c0_1 = arith.constant 0 : index
    %0 = vector.load %arg1[%c0, %c0_0, %c0_1] : memref<1x51x64xbf16, #tpu.memory_space<vmem>>, vector<1x40x64xbf16>
    %1 = vector.shape_cast %0 : vector<1x40x64xbf16> to vector<40x64xbf16>
    %c0_2 = arith.constant 0 : index
    %c0_3 = arith.constant 0 : index
    %c0_4 = arith.constant 0 : index
    %2 = vector.load %arg2[%c0_2, %c0_3, %c0_4] : memref<1x50x64xbf16, #tpu.memory_space<vmem>>, vector<1x40x64xbf16>
    %3 = vector.shape_cast %2 : vector<1x40x64xbf16> to vector<40x64xbf16>
    %4 = arith.maximumf %1, %3 : vector<40x64xbf16>
    %c0_5 = arith.constant 0 : index
    %c1 = arith.constant 1 : index
    %c0_6 = arith.constant 0 : index
    %5 = vector.load %arg1[%c0_5, %c1, %c0_6] : memref<1x51x64xbf16, #tpu.memory_space<vmem>>, vector<1x40x64xbf16>
    %6 = vector.shape_cast %5 : vector<1x40x64xbf16> to vector<40x64xbf16>
    %7 = arith.maximumf %4, %6 : vector<40x64xbf16>
    %c0_7 = arith.constant 0 : index
    %c5 = arith.constant 5 : index
    %c0_8 = arith.constant 0 : index
    %8 = vector.load %arg1[%c0_7, %c5, %c0_8] : memref<1x51x64xbf16, #tpu.memory_space<vmem>>, vector<1x40x64xbf16>
    %9 = vector.shape_cast %8 : vector<1x40x64xbf16> to vector<40x64xbf16>
    %10 = arith.maximumf %7, %9 : vector<40x64xbf16>
    %c0_9 = arith.constant 0 : index
    %c5_10 = arith.constant 5 : index
    %c0_11 = arith.constant 0 : index
    %11 = vector.load %arg2[%c0_9, %c5_10, %c0_11] : memref<1x50x64xbf16, #tpu.memory_space<vmem>>, vector<1x40x64xbf16>
    %12 = vector.shape_cast %11 : vector<1x40x64xbf16> to vector<40x64xbf16>
    %13 = arith.maximumf %10, %12 : vector<40x64xbf16>
    %c0_12 = arith.constant 0 : index
    %c6 = arith.constant 6 : index
    %c0_13 = arith.constant 0 : index
    %14 = vector.load %arg1[%c0_12, %c6, %c0_13] : memref<1x51x64xbf16, #tpu.memory_space<vmem>>, vector<1x40x64xbf16>
    %15 = vector.shape_cast %14 : vector<1x40x64xbf16> to vector<40x64xbf16>
    %16 = arith.maximumf %13, %15 : vector<40x64xbf16>
    %c0_14 = arith.constant 0 : index
    %c10 = arith.constant 10 : index
    %c0_15 = arith.constant 0 : index
    %17 = vector.load %arg1[%c0_14, %c10, %c0_15] : memref<1x51x64xbf16, #tpu.memory_space<vmem>>, vector<1x40x64xbf16>
    %18 = vector.shape_cast %17 : vector<1x40x64xbf16> to vector<40x64xbf16>
    %19 = arith.maximumf %16, %18 : vector<40x64xbf16>
    %c0_16 = arith.constant 0 : index
    %c10_17 = arith.constant 10 : index
    %c0_18 = arith.constant 0 : index
    %20 = vector.load %arg2[%c0_16, %c10_17, %c0_18] : memref<1x50x64xbf16, #tpu.memory_space<vmem>>, vector<1x40x64xbf16>
    %21 = vector.shape_cast %20 : vector<1x40x64xbf16> to vector<40x64xbf16>
    %22 = arith.maximumf %19, %21 : vector<40x64xbf16>
    %c0_19 = arith.constant 0 : index
    %c11 = arith.constant 11 : index
    %c0_20 = arith.constant 0 : index
    %23 = vector.load %arg1[%c0_19, %c11, %c0_20] : memref<1x51x64xbf16, #tpu.memory_space<vmem>>, vector<1x40x64xbf16>
    %24 = vector.shape_cast %23 : vector<1x40x64xbf16> to vector<40x64xbf16>
    %25 = arith.maximumf %22, %24 : vector<40x64xbf16>
    %c0_21 = arith.constant 0 : index
    %c0_22 = arith.constant 0 : index
    %c0_23 = arith.constant 0 : index
    %26 = vector.load %arg3[%c0_21, %c0_22, %c0_23] : memref<1x40x64xbf16, #tpu.memory_space<vmem>>, vector<1x40x64xbf16>
    %27 = vector.shape_cast %26 : vector<1x40x64xbf16> to vector<40x64xbf16>
    %28 = vector.shape_cast %25 : vector<40x64xbf16> to vector<1x40x64xbf16>
    tpu.vector_store %arg3[%c0_21, %c0_22, %c0_23], %28 {strides = array<i32>} : memref<1x40x64xbf16, #tpu.memory_space<vmem>>, vector<1x40x64xbf16>,
    return
  }
  func.func @transform_0(%arg0: i32) -> (i32, i32, i32) {
    %c0_i32 = arith.constant 0 : i32
    %c0_i32_0 = arith.constant 0 : i32
    %c0_i32_1 = arith.constant 0 : i32
    return %arg0, %c0_i32, %c0_i32_0 : i32, i32, i32
  }
  func.func @transform_1(%arg0: i32) -> (i32, i32, i32) {
    %c0_i32 = arith.constant 0 : i32
    %c0_i32_0 = arith.constant 0 : i32
    %c0_i32_1 = arith.constant 0 : i32
    return %arg0, %c0_i32, %c0_i32_0 : i32, i32, i32
  }
  func.func @transform_2(%arg0: i32) -> (i32, i32, i32) {
    %c0_i32 = arith.constant 0 : i32
    %c0_i32_0 = arith.constant 0 : i32
    %c0_i32_1 = arith.constant 0 : i32
    return %arg0, %c0_i32, %c0_i32_0 : i32, i32, i32
  }
}

module attributes {stable_mosaic.version = 11 : i64} {
  func.func @kernel(%arg0: i32, %arg1: memref<1x38x64xbf16, #tpu.memory_space<vmem>>, %arg2: memref<3x3x64x64xbf16, #tpu.memory_space<vmem>>, %arg3: memref<1x64xf32, #tpu.memory_space<vmem>>, %arg4: memref<1x24x64xbf16, #tpu.memory_space<vmem>>) attributes {dimension_semantics = [#tpu.dimension_semantics<parallel>], iteration_bounds = array<i64: 2>, scalar_prefetch = 0 : i64, scratch_operands = 0 : i64, tpu.core_type = #tpu.core_type<tc>, window_params = [{transform_indices = @transform_0, window_bounds = array<i64: 1, 38, 64>}, {pipeline_mode = #tpu.pipeline_mode<synchronous>, transform_indices = @transform_1, window_bounds = array<i64: 3, 3, 64, 64>}, {pipeline_mode = #tpu.pipeline_mode<synchronous>, transform_indices = @transform_2, window_bounds = array<i64: 1, 64>}, {transform_indices = @transform_3, window_bounds = array<i64: 1, 24, 64>}]} {
    %c0 = arith.constant 0 : index
    %c0_0 = arith.constant 0 : index
    %c0_1 = arith.constant 0 : index
    %0 = vector.load %arg1[%c0, %c0_0, %c0_1] : memref<1x38x64xbf16, #tpu.memory_space<vmem>>, vector<1x24x64xbf16>
    %1 = vector.shape_cast %0 : vector<1x24x64xbf16> to vector<24x64xbf16>
    %c0_2 = arith.constant 0 : index
    %c0_3 = arith.constant 0 : index
    %c0_4 = arith.constant 0 : index
    %c0_5 = arith.constant 0 : index
    %2 = vector.load %arg2[%c0_2, %c0_3, %c0_4, %c0_5] : memref<3x3x64x64xbf16, #tpu.memory_space<vmem>>, vector<1x1x64x64xbf16>
    %3 = vector.shape_cast %2 : vector<1x1x64x64xbf16> to vector<64x64xbf16>
    %cst = arith.constant dense<0.000000e+00> : vector<24x64xf32>
    %4 = tpu.matmul %1, %3, %cst {dimension_numbers = #tpu.dot_dimension_numbers<[1], [0], [0], [1], [0, 0, 1, 1], [], []>} : vector<24x64xbf16>, vector<64x64xbf16>, vector<24x64xf32> -> vector<24x64xf32>
    %c0_6 = arith.constant 0 : index
    %c1 = arith.constant 1 : index
    %c0_7 = arith.constant 0 : index
    %5 = vector.load %arg1[%c0_6, %c1, %c0_7] : memref<1x38x64xbf16, #tpu.memory_space<vmem>>, vector<1x24x64xbf16>
    %6 = vector.shape_cast %5 : vector<1x24x64xbf16> to vector<24x64xbf16>
    %c0_8 = arith.constant 0 : index
    %c1_9 = arith.constant 1 : index
    %c0_10 = arith.constant 0 : index
    %c0_11 = arith.constant 0 : index
    %7 = vector.load %arg2[%c0_8, %c1_9, %c0_10, %c0_11] : memref<3x3x64x64xbf16, #tpu.memory_space<vmem>>, vector<1x1x64x64xbf16>
    %8 = vector.shape_cast %7 : vector<1x1x64x64xbf16> to vector<64x64xbf16>
    %cst_12 = arith.constant dense<0.000000e+00> : vector<24x64xf32>
    %9 = tpu.matmul %6, %8, %cst_12 {dimension_numbers = #tpu.dot_dimension_numbers<[1], [0], [0], [1], [0, 0, 1, 1], [], []>} : vector<24x64xbf16>, vector<64x64xbf16>, vector<24x64xf32> -> vector<24x64xf32>
    %10 = arith.addf %4, %9 : vector<24x64xf32>
    %c0_13 = arith.constant 0 : index
    %c2 = arith.constant 2 : index
    %c0_14 = arith.constant 0 : index
    %11 = vector.load %arg1[%c0_13, %c2, %c0_14] : memref<1x38x64xbf16, #tpu.memory_space<vmem>>, vector<1x24x64xbf16>
    %12 = vector.shape_cast %11 : vector<1x24x64xbf16> to vector<24x64xbf16>
    %c0_15 = arith.constant 0 : index
    %c2_16 = arith.constant 2 : index
    %c0_17 = arith.constant 0 : index
    %c0_18 = arith.constant 0 : index
    %13 = vector.load %arg2[%c0_15, %c2_16, %c0_17, %c0_18] : memref<3x3x64x64xbf16, #tpu.memory_space<vmem>>, vector<1x1x64x64xbf16>
    %14 = vector.shape_cast %13 : vector<1x1x64x64xbf16> to vector<64x64xbf16>
    %cst_19 = arith.constant dense<0.000000e+00> : vector<24x64xf32>
    %15 = tpu.matmul %12, %14, %cst_19 {dimension_numbers = #tpu.dot_dimension_numbers<[1], [0], [0], [1], [0, 0, 1, 1], [], []>} : vector<24x64xbf16>, vector<64x64xbf16>, vector<24x64xf32> -> vector<24x64xf32>
    %16 = arith.addf %10, %15 : vector<24x64xf32>
    %c0_20 = arith.constant 0 : index
    %c6 = arith.constant 6 : index
    %c0_21 = arith.constant 0 : index
    %17 = vector.load %arg1[%c0_20, %c6, %c0_21] : memref<1x38x64xbf16, #tpu.memory_space<vmem>>, vector<1x24x64xbf16>
    %18 = vector.shape_cast %17 : vector<1x24x64xbf16> to vector<24x64xbf16>
    %c1_22 = arith.constant 1 : index
    %c0_23 = arith.constant 0 : index
    %c0_24 = arith.constant 0 : index
    %c0_25 = arith.constant 0 : index
    %19 = vector.load %arg2[%c1_22, %c0_23, %c0_24, %c0_25] : memref<3x3x64x64xbf16, #tpu.memory_space<vmem>>, vector<1x1x64x64xbf16>
    %20 = vector.shape_cast %19 : vector<1x1x64x64xbf16> to vector<64x64xbf16>
    %cst_26 = arith.constant dense<0.000000e+00> : vector<24x64xf32>
    %21 = tpu.matmul %18, %20, %cst_26 {dimension_numbers = #tpu.dot_dimension_numbers<[1], [0], [0], [1], [0, 0, 1, 1], [], []>} : vector<24x64xbf16>, vector<64x64xbf16>, vector<24x64xf32> -> vector<24x64xf32>
    %22 = arith.addf %16, %21 : vector<24x64xf32>
    %c0_27 = arith.constant 0 : index
    %c7 = arith.constant 7 : index
    %c0_28 = arith.constant 0 : index
    %23 = vector.load %arg1[%c0_27, %c7, %c0_28] : memref<1x38x64xbf16, #tpu.memory_space<vmem>>, vector<1x24x64xbf16>
    %24 = vector.shape_cast %23 : vector<1x24x64xbf16> to vector<24x64xbf16>
    %c1_29 = arith.constant 1 : index
    %c1_30 = arith.constant 1 : index
    %c0_31 = arith.constant 0 : index
    %c0_32 = arith.constant 0 : index
    %25 = vector.load %arg2[%c1_29, %c1_30, %c0_31, %c0_32] : memref<3x3x64x64xbf16, #tpu.memory_space<vmem>>, vector<1x1x64x64xbf16>
    %26 = vector.shape_cast %25 : vector<1x1x64x64xbf16> to vector<64x64xbf16>
    %cst_33 = arith.constant dense<0.000000e+00> : vector<24x64xf32>
    %27 = tpu.matmul %24, %26, %cst_33 {dimension_numbers = #tpu.dot_dimension_numbers<[1], [0], [0], [1], [0, 0, 1, 1], [], []>} : vector<24x64xbf16>, vector<64x64xbf16>, vector<24x64xf32> -> vector<24x64xf32>
    %28 = arith.addf %22, %27 : vector<24x64xf32>
    %c0_34 = arith.constant 0 : index
    %c8 = arith.constant 8 : index
    %c0_35 = arith.constant 0 : index
    %29 = vector.load %arg1[%c0_34, %c8, %c0_35] : memref<1x38x64xbf16, #tpu.memory_space<vmem>>, vector<1x24x64xbf16>
    %30 = vector.shape_cast %29 : vector<1x24x64xbf16> to vector<24x64xbf16>
    %c1_36 = arith.constant 1 : index
    %c2_37 = arith.constant 2 : index
    %c0_38 = arith.constant 0 : index
    %c0_39 = arith.constant 0 : index
    %31 = vector.load %arg2[%c1_36, %c2_37, %c0_38, %c0_39] : memref<3x3x64x64xbf16, #tpu.memory_space<vmem>>, vector<1x1x64x64xbf16>
    %32 = vector.shape_cast %31 : vector<1x1x64x64xbf16> to vector<64x64xbf16>
    %cst_40 = arith.constant dense<0.000000e+00> : vector<24x64xf32>
    %33 = tpu.matmul %30, %32, %cst_40 {dimension_numbers = #tpu.dot_dimension_numbers<[1], [0], [0], [1], [0, 0, 1, 1], [], []>} : vector<24x64xbf16>, vector<64x64xbf16>, vector<24x64xf32> -> vector<24x64xf32>
    %34 = arith.addf %28, %33 : vector<24x64xf32>
    %c0_41 = arith.constant 0 : index
    %c12 = arith.constant 12 : index
    %c0_42 = arith.constant 0 : index
    %35 = vector.load %arg1[%c0_41, %c12, %c0_42] : memref<1x38x64xbf16, #tpu.memory_space<vmem>>, vector<1x24x64xbf16>
    %36 = vector.shape_cast %35 : vector<1x24x64xbf16> to vector<24x64xbf16>
    %c2_43 = arith.constant 2 : index
    %c0_44 = arith.constant 0 : index
    %c0_45 = arith.constant 0 : index
    %c0_46 = arith.constant 0 : index
    %37 = vector.load %arg2[%c2_43, %c0_44, %c0_45, %c0_46] : memref<3x3x64x64xbf16, #tpu.memory_space<vmem>>, vector<1x1x64x64xbf16>
    %38 = vector.shape_cast %37 : vector<1x1x64x64xbf16> to vector<64x64xbf16>
    %cst_47 = arith.constant dense<0.000000e+00> : vector<24x64xf32>
    %39 = tpu.matmul %36, %38, %cst_47 {dimension_numbers = #tpu.dot_dimension_numbers<[1], [0], [0], [1], [0, 0, 1, 1], [], []>} : vector<24x64xbf16>, vector<64x64xbf16>, vector<24x64xf32> -> vector<24x64xf32>
    %40 = arith.addf %34, %39 : vector<24x64xf32>
    %c0_48 = arith.constant 0 : index
    %c13 = arith.constant 13 : index
    %c0_49 = arith.constant 0 : index
    %41 = vector.load %arg1[%c0_48, %c13, %c0_49] : memref<1x38x64xbf16, #tpu.memory_space<vmem>>, vector<1x24x64xbf16>
    %42 = vector.shape_cast %41 : vector<1x24x64xbf16> to vector<24x64xbf16>
    %c2_50 = arith.constant 2 : index
    %c1_51 = arith.constant 1 : index
    %c0_52 = arith.constant 0 : index
    %c0_53 = arith.constant 0 : index
    %43 = vector.load %arg2[%c2_50, %c1_51, %c0_52, %c0_53] : memref<3x3x64x64xbf16, #tpu.memory_space<vmem>>, vector<1x1x64x64xbf16>
    %44 = vector.shape_cast %43 : vector<1x1x64x64xbf16> to vector<64x64xbf16>
    %cst_54 = arith.constant dense<0.000000e+00> : vector<24x64xf32>
    %45 = tpu.matmul %42, %44, %cst_54 {dimension_numbers = #tpu.dot_dimension_numbers<[1], [0], [0], [1], [0, 0, 1, 1], [], []>} : vector<24x64xbf16>, vector<64x64xbf16>, vector<24x64xf32> -> vector<24x64xf32>
    %46 = arith.addf %40, %45 : vector<24x64xf32>
    %c0_55 = arith.constant 0 : index
    %c14 = arith.constant 14 : index
    %c0_56 = arith.constant 0 : index
    %47 = vector.load %arg1[%c0_55, %c14, %c0_56] : memref<1x38x64xbf16, #tpu.memory_space<vmem>>, vector<1x24x64xbf16>
    %48 = vector.shape_cast %47 : vector<1x24x64xbf16> to vector<24x64xbf16>
    %c2_57 = arith.constant 2 : index
    %c2_58 = arith.constant 2 : index
    %c0_59 = arith.constant 0 : index
    %c0_60 = arith.constant 0 : index
    %49 = vector.load %arg2[%c2_57, %c2_58, %c0_59, %c0_60] : memref<3x3x64x64xbf16, #tpu.memory_space<vmem>>, vector<1x1x64x64xbf16>
    %50 = vector.shape_cast %49 : vector<1x1x64x64xbf16> to vector<64x64xbf16>
    %cst_61 = arith.constant dense<0.000000e+00> : vector<24x64xf32>
    %51 = tpu.matmul %48, %50, %cst_61 {dimension_numbers = #tpu.dot_dimension_numbers<[1], [0], [0], [1], [0, 0, 1, 1], [], []>} : vector<24x64xbf16>, vector<64x64xbf16>, vector<24x64xf32> -> vector<24x64xf32>
    %52 = arith.addf %46, %51 : vector<24x64xf32>
    %c0_62 = arith.constant 0 : index
    %c0_63 = arith.constant 0 : index
    %53 = vector.load %arg3[%c0_62, %c0_63] : memref<1x64xf32, #tpu.memory_space<vmem>>, vector<1x64xf32>
    %54 = vector.broadcast %53 : vector<1x64xf32> to vector<24x64xf32>
    %55 = arith.addf %52, %54 : vector<24x64xf32>
    %cst_64 = arith.constant 0.000000e+00 : f32
    %56 = vector.broadcast %cst_64 : f32 to vector<24x64xf32>
    %57 = arith.maximumf %55, %56 : vector<24x64xf32>
    %58 = arith.truncf %57 : vector<24x64xf32> to vector<24x64xbf16>
    %c0_65 = arith.constant 0 : index
    %c0_66 = arith.constant 0 : index
    %c0_67 = arith.constant 0 : index
    %59 = vector.load %arg4[%c0_65, %c0_66, %c0_67] : memref<1x24x64xbf16, #tpu.memory_space<vmem>>, vector<1x24x64xbf16>
    %60 = vector.shape_cast %59 : vector<1x24x64xbf16> to vector<24x64xbf16>
    %61 = vector.shape_cast %58 : vector<24x64xbf16> to vector<1x24x64xbf16>
    tpu.vector_store %arg4[%c0_65, %c0_66, %c0_67], %61 {strides = array<i32>} : memref<1x24x64xbf16, #tpu.memory_space<vmem>>, vector<1x24x64xbf16>,
    return
  }
  func.func @transform_0(%arg0: i32) -> (i32, i32, i32) {
    %c0_i32 = arith.constant 0 : i32
    %c0_i32_0 = arith.constant 0 : i32
    %c0_i32_1 = arith.constant 0 : i32
    return %arg0, %c0_i32, %c0_i32_0 : i32, i32, i32
  }
  func.func @transform_1(%arg0: i32) -> (i32, i32, i32, i32) {
    %c0_i32 = arith.constant 0 : i32
    %c0_i32_0 = arith.constant 0 : i32
    %c0_i32_1 = arith.constant 0 : i32
    %c0_i32_2 = arith.constant 0 : i32
    %c0_i32_3 = arith.constant 0 : i32
    return %c0_i32, %c0_i32_0, %c0_i32_1, %c0_i32_2 : i32, i32, i32, i32
  }
  func.func @transform_2(%arg0: i32) -> (i32, i32) {
    %c0_i32 = arith.constant 0 : i32
    %c0_i32_0 = arith.constant 0 : i32
    %c0_i32_1 = arith.constant 0 : i32
    return %c0_i32, %c0_i32_0 : i32, i32
  }
  func.func @transform_3(%arg0: i32) -> (i32, i32, i32) {
    %c0_i32 = arith.constant 0 : i32
    %c0_i32_0 = arith.constant 0 : i32
    %c0_i32_1 = arith.constant 0 : i32
    return %arg0, %c0_i32, %c0_i32_0 : i32, i32, i32
  }
}

module attributes {stable_mosaic.version = 11 : i64} {
  func.func @kernel(%arg0: i32, %arg1: memref<1x38x64xbf16, #tpu.memory_space<vmem>>, %arg2: memref<3x3x64x64xbf16, #tpu.memory_space<vmem>>, %arg3: memref<1x64xf32, #tpu.memory_space<vmem>>, %arg4: memref<1x24x64xbf16, #tpu.memory_space<vmem>>, %arg5: memref<1x24x64xbf16, #tpu.memory_space<vmem>>) attributes {dimension_semantics = [#tpu.dimension_semantics<parallel>], iteration_bounds = array<i64: 2>, scalar_prefetch = 0 : i64, scratch_operands = 0 : i64, tpu.core_type = #tpu.core_type<tc>, window_params = [{transform_indices = @transform_0, window_bounds = array<i64: 1, 38, 64>}, {pipeline_mode = #tpu.pipeline_mode<synchronous>, transform_indices = @transform_1, window_bounds = array<i64: 3, 3, 64, 64>}, {pipeline_mode = #tpu.pipeline_mode<synchronous>, transform_indices = @transform_2, window_bounds = array<i64: 1, 64>}, {transform_indices = @transform_3, window_bounds = array<i64: 1, 24, 64>}, {transform_indices = @transform_4, window_bounds = array<i64: 1, 24, 64>}]} {
    %c0 = arith.constant 0 : index
    %c0_0 = arith.constant 0 : index
    %c0_1 = arith.constant 0 : index
    %0 = vector.load %arg1[%c0, %c0_0, %c0_1] : memref<1x38x64xbf16, #tpu.memory_space<vmem>>, vector<1x24x64xbf16>
    %1 = vector.shape_cast %0 : vector<1x24x64xbf16> to vector<24x64xbf16>
    %c0_2 = arith.constant 0 : index
    %c0_3 = arith.constant 0 : index
    %c0_4 = arith.constant 0 : index
    %c0_5 = arith.constant 0 : index
    %2 = vector.load %arg2[%c0_2, %c0_3, %c0_4, %c0_5] : memref<3x3x64x64xbf16, #tpu.memory_space<vmem>>, vector<1x1x64x64xbf16>
    %3 = vector.shape_cast %2 : vector<1x1x64x64xbf16> to vector<64x64xbf16>
    %cst = arith.constant dense<0.000000e+00> : vector<24x64xf32>
    %4 = tpu.matmul %1, %3, %cst {dimension_numbers = #tpu.dot_dimension_numbers<[1], [0], [0], [1], [0, 0, 1, 1], [], []>} : vector<24x64xbf16>, vector<64x64xbf16>, vector<24x64xf32> -> vector<24x64xf32>
    %c0_6 = arith.constant 0 : index
    %c1 = arith.constant 1 : index
    %c0_7 = arith.constant 0 : index
    %5 = vector.load %arg1[%c0_6, %c1, %c0_7] : memref<1x38x64xbf16, #tpu.memory_space<vmem>>, vector<1x24x64xbf16>
    %6 = vector.shape_cast %5 : vector<1x24x64xbf16> to vector<24x64xbf16>
    %c0_8 = arith.constant 0 : index
    %c1_9 = arith.constant 1 : index
    %c0_10 = arith.constant 0 : index
    %c0_11 = arith.constant 0 : index
    %7 = vector.load %arg2[%c0_8, %c1_9, %c0_10, %c0_11] : memref<3x3x64x64xbf16, #tpu.memory_space<vmem>>, vector<1x1x64x64xbf16>
    %8 = vector.shape_cast %7 : vector<1x1x64x64xbf16> to vector<64x64xbf16>
    %cst_12 = arith.constant dense<0.000000e+00> : vector<24x64xf32>
    %9 = tpu.matmul %6, %8, %cst_12 {dimension_numbers = #tpu.dot_dimension_numbers<[1], [0], [0], [1], [0, 0, 1, 1], [], []>} : vector<24x64xbf16>, vector<64x64xbf16>, vector<24x64xf32> -> vector<24x64xf32>
    %10 = arith.addf %4, %9 : vector<24x64xf32>
    %c0_13 = arith.constant 0 : index
    %c2 = arith.constant 2 : index
    %c0_14 = arith.constant 0 : index
    %11 = vector.load %arg1[%c0_13, %c2, %c0_14] : memref<1x38x64xbf16, #tpu.memory_space<vmem>>, vector<1x24x64xbf16>
    %12 = vector.shape_cast %11 : vector<1x24x64xbf16> to vector<24x64xbf16>
    %c0_15 = arith.constant 0 : index
    %c2_16 = arith.constant 2 : index
    %c0_17 = arith.constant 0 : index
    %c0_18 = arith.constant 0 : index
    %13 = vector.load %arg2[%c0_15, %c2_16, %c0_17, %c0_18] : memref<3x3x64x64xbf16, #tpu.memory_space<vmem>>, vector<1x1x64x64xbf16>
    %14 = vector.shape_cast %13 : vector<1x1x64x64xbf16> to vector<64x64xbf16>
    %cst_19 = arith.constant dense<0.000000e+00> : vector<24x64xf32>
    %15 = tpu.matmul %12, %14, %cst_19 {dimension_numbers = #tpu.dot_dimension_numbers<[1], [0], [0], [1], [0, 0, 1, 1], [], []>} : vector<24x64xbf16>, vector<64x64xbf16>, vector<24x64xf32> -> vector<24x64xf32>
    %16 = arith.addf %10, %15 : vector<24x64xf32>
    %c0_20 = arith.constant 0 : index
    %c6 = arith.constant 6 : index
    %c0_21 = arith.constant 0 : index
    %17 = vector.load %arg1[%c0_20, %c6, %c0_21] : memref<1x38x64xbf16, #tpu.memory_space<vmem>>, vector<1x24x64xbf16>
    %18 = vector.shape_cast %17 : vector<1x24x64xbf16> to vector<24x64xbf16>
    %c1_22 = arith.constant 1 : index
    %c0_23 = arith.constant 0 : index
    %c0_24 = arith.constant 0 : index
    %c0_25 = arith.constant 0 : index
    %19 = vector.load %arg2[%c1_22, %c0_23, %c0_24, %c0_25] : memref<3x3x64x64xbf16, #tpu.memory_space<vmem>>, vector<1x1x64x64xbf16>
    %20 = vector.shape_cast %19 : vector<1x1x64x64xbf16> to vector<64x64xbf16>
    %cst_26 = arith.constant dense<0.000000e+00> : vector<24x64xf32>
    %21 = tpu.matmul %18, %20, %cst_26 {dimension_numbers = #tpu.dot_dimension_numbers<[1], [0], [0], [1], [0, 0, 1, 1], [], []>} : vector<24x64xbf16>, vector<64x64xbf16>, vector<24x64xf32> -> vector<24x64xf32>
    %22 = arith.addf %16, %21 : vector<24x64xf32>
    %c0_27 = arith.constant 0 : index
    %c7 = arith.constant 7 : index
    %c0_28 = arith.constant 0 : index
    %23 = vector.load %arg1[%c0_27, %c7, %c0_28] : memref<1x38x64xbf16, #tpu.memory_space<vmem>>, vector<1x24x64xbf16>
    %24 = vector.shape_cast %23 : vector<1x24x64xbf16> to vector<24x64xbf16>
    %c1_29 = arith.constant 1 : index
    %c1_30 = arith.constant 1 : index
    %c0_31 = arith.constant 0 : index
    %c0_32 = arith.constant 0 : index
    %25 = vector.load %arg2[%c1_29, %c1_30, %c0_31, %c0_32] : memref<3x3x64x64xbf16, #tpu.memory_space<vmem>>, vector<1x1x64x64xbf16>
    %26 = vector.shape_cast %25 : vector<1x1x64x64xbf16> to vector<64x64xbf16>
    %cst_33 = arith.constant dense<0.000000e+00> : vector<24x64xf32>
    %27 = tpu.matmul %24, %26, %cst_33 {dimension_numbers = #tpu.dot_dimension_numbers<[1], [0], [0], [1], [0, 0, 1, 1], [], []>} : vector<24x64xbf16>, vector<64x64xbf16>, vector<24x64xf32> -> vector<24x64xf32>
    %28 = arith.addf %22, %27 : vector<24x64xf32>
    %c0_34 = arith.constant 0 : index
    %c8 = arith.constant 8 : index
    %c0_35 = arith.constant 0 : index
    %29 = vector.load %arg1[%c0_34, %c8, %c0_35] : memref<1x38x64xbf16, #tpu.memory_space<vmem>>, vector<1x24x64xbf16>
    %30 = vector.shape_cast %29 : vector<1x24x64xbf16> to vector<24x64xbf16>
    %c1_36 = arith.constant 1 : index
    %c2_37 = arith.constant 2 : index
    %c0_38 = arith.constant 0 : index
    %c0_39 = arith.constant 0 : index
    %31 = vector.load %arg2[%c1_36, %c2_37, %c0_38, %c0_39] : memref<3x3x64x64xbf16, #tpu.memory_space<vmem>>, vector<1x1x64x64xbf16>
    %32 = vector.shape_cast %31 : vector<1x1x64x64xbf16> to vector<64x64xbf16>
    %cst_40 = arith.constant dense<0.000000e+00> : vector<24x64xf32>
    %33 = tpu.matmul %30, %32, %cst_40 {dimension_numbers = #tpu.dot_dimension_numbers<[1], [0], [0], [1], [0, 0, 1, 1], [], []>} : vector<24x64xbf16>, vector<64x64xbf16>, vector<24x64xf32> -> vector<24x64xf32>
    %34 = arith.addf %28, %33 : vector<24x64xf32>
    %c0_41 = arith.constant 0 : index
    %c12 = arith.constant 12 : index
    %c0_42 = arith.constant 0 : index
    %35 = vector.load %arg1[%c0_41, %c12, %c0_42] : memref<1x38x64xbf16, #tpu.memory_space<vmem>>, vector<1x24x64xbf16>
    %36 = vector.shape_cast %35 : vector<1x24x64xbf16> to vector<24x64xbf16>
    %c2_43 = arith.constant 2 : index
    %c0_44 = arith.constant 0 : index
    %c0_45 = arith.constant 0 : index
    %c0_46 = arith.constant 0 : index
    %37 = vector.load %arg2[%c2_43, %c0_44, %c0_45, %c0_46] : memref<3x3x64x64xbf16, #tpu.memory_space<vmem>>, vector<1x1x64x64xbf16>
    %38 = vector.shape_cast %37 : vector<1x1x64x64xbf16> to vector<64x64xbf16>
    %cst_47 = arith.constant dense<0.000000e+00> : vector<24x64xf32>
    %39 = tpu.matmul %36, %38, %cst_47 {dimension_numbers = #tpu.dot_dimension_numbers<[1], [0], [0], [1], [0, 0, 1, 1], [], []>} : vector<24x64xbf16>, vector<64x64xbf16>, vector<24x64xf32> -> vector<24x64xf32>
    %40 = arith.addf %34, %39 : vector<24x64xf32>
    %c0_48 = arith.constant 0 : index
    %c13 = arith.constant 13 : index
    %c0_49 = arith.constant 0 : index
    %41 = vector.load %arg1[%c0_48, %c13, %c0_49] : memref<1x38x64xbf16, #tpu.memory_space<vmem>>, vector<1x24x64xbf16>
    %42 = vector.shape_cast %41 : vector<1x24x64xbf16> to vector<24x64xbf16>
    %c2_50 = arith.constant 2 : index
    %c1_51 = arith.constant 1 : index
    %c0_52 = arith.constant 0 : index
    %c0_53 = arith.constant 0 : index
    %43 = vector.load %arg2[%c2_50, %c1_51, %c0_52, %c0_53] : memref<3x3x64x64xbf16, #tpu.memory_space<vmem>>, vector<1x1x64x64xbf16>
    %44 = vector.shape_cast %43 : vector<1x1x64x64xbf16> to vector<64x64xbf16>
    %cst_54 = arith.constant dense<0.000000e+00> : vector<24x64xf32>
    %45 = tpu.matmul %42, %44, %cst_54 {dimension_numbers = #tpu.dot_dimension_numbers<[1], [0], [0], [1], [0, 0, 1, 1], [], []>} : vector<24x64xbf16>, vector<64x64xbf16>, vector<24x64xf32> -> vector<24x64xf32>
    %46 = arith.addf %40, %45 : vector<24x64xf32>
    %c0_55 = arith.constant 0 : index
    %c14 = arith.constant 14 : index
    %c0_56 = arith.constant 0 : index
    %47 = vector.load %arg1[%c0_55, %c14, %c0_56] : memref<1x38x64xbf16, #tpu.memory_space<vmem>>, vector<1x24x64xbf16>
    %48 = vector.shape_cast %47 : vector<1x24x64xbf16> to vector<24x64xbf16>
    %c2_57 = arith.constant 2 : index
    %c2_58 = arith.constant 2 : index
    %c0_59 = arith.constant 0 : index
    %c0_60 = arith.constant 0 : index
    %49 = vector.load %arg2[%c2_57, %c2_58, %c0_59, %c0_60] : memref<3x3x64x64xbf16, #tpu.memory_space<vmem>>, vector<1x1x64x64xbf16>
    %50 = vector.shape_cast %49 : vector<1x1x64x64xbf16> to vector<64x64xbf16>
    %cst_61 = arith.constant dense<0.000000e+00> : vector<24x64xf32>
    %51 = tpu.matmul %48, %50, %cst_61 {dimension_numbers = #tpu.dot_dimension_numbers<[1], [0], [0], [1], [0, 0, 1, 1], [], []>} : vector<24x64xbf16>, vector<64x64xbf16>, vector<24x64xf32> -> vector<24x64xf32>
    %52 = arith.addf %46, %51 : vector<24x64xf32>
    %c0_62 = arith.constant 0 : index
    %c0_63 = arith.constant 0 : index
    %53 = vector.load %arg3[%c0_62, %c0_63] : memref<1x64xf32, #tpu.memory_space<vmem>>, vector<1x64xf32>
    %54 = vector.broadcast %53 : vector<1x64xf32> to vector<24x64xf32>
    %55 = arith.addf %52, %54 : vector<24x64xf32>
    %c0_64 = arith.constant 0 : index
    %c0_65 = arith.constant 0 : index
    %c0_66 = arith.constant 0 : index
    %56 = vector.load %arg4[%c0_64, %c0_65, %c0_66] : memref<1x24x64xbf16, #tpu.memory_space<vmem>>, vector<1x24x64xbf16>
    %57 = vector.shape_cast %56 : vector<1x24x64xbf16> to vector<24x64xbf16>
    %58 = arith.extf %57 : vector<24x64xbf16> to vector<24x64xf32>
    %59 = arith.addf %55, %58 : vector<24x64xf32>
    %cst_67 = arith.constant 0.000000e+00 : f32
    %60 = vector.broadcast %cst_67 : f32 to vector<24x64xf32>
    %61 = arith.maximumf %59, %60 : vector<24x64xf32>
    %62 = arith.truncf %61 : vector<24x64xf32> to vector<24x64xbf16>
    %c0_68 = arith.constant 0 : index
    %c0_69 = arith.constant 0 : index
    %c0_70 = arith.constant 0 : index
    %63 = vector.load %arg5[%c0_68, %c0_69, %c0_70] : memref<1x24x64xbf16, #tpu.memory_space<vmem>>, vector<1x24x64xbf16>
    %64 = vector.shape_cast %63 : vector<1x24x64xbf16> to vector<24x64xbf16>
    %65 = vector.shape_cast %62 : vector<24x64xbf16> to vector<1x24x64xbf16>
    tpu.vector_store %arg5[%c0_68, %c0_69, %c0_70], %65 {strides = array<i32>} : memref<1x24x64xbf16, #tpu.memory_space<vmem>>, vector<1x24x64xbf16>,
    return
  }
  func.func @transform_0(%arg0: i32) -> (i32, i32, i32) {
    %c0_i32 = arith.constant 0 : i32
    %c0_i32_0 = arith.constant 0 : i32
    %c0_i32_1 = arith.constant 0 : i32
    return %arg0, %c0_i32, %c0_i32_0 : i32, i32, i32
  }
  func.func @transform_1(%arg0: i32) -> (i32, i32, i32, i32) {
    %c0_i32 = arith.constant 0 : i32
    %c0_i32_0 = arith.constant 0 : i32
    %c0_i32_1 = arith.constant 0 : i32
    %c0_i32_2 = arith.constant 0 : i32
    %c0_i32_3 = arith.constant 0 : i32
    return %c0_i32, %c0_i32_0, %c0_i32_1, %c0_i32_2 : i32, i32, i32, i32
  }
  func.func @transform_2(%arg0: i32) -> (i32, i32) {
    %c0_i32 = arith.constant 0 : i32
    %c0_i32_0 = arith.constant 0 : i32
    %c0_i32_1 = arith.constant 0 : i32
    return %c0_i32, %c0_i32_0 : i32, i32
  }
  func.func @transform_3(%arg0: i32) -> (i32, i32, i32) {
    %c0_i32 = arith.constant 0 : i32
    %c0_i32_0 = arith.constant 0 : i32
    %c0_i32_1 = arith.constant 0 : i32
    return %arg0, %c0_i32, %c0_i32_0 : i32, i32, i32
  }
  func.func @transform_4(%arg0: i32) -> (i32, i32, i32) {
    %c0_i32 = arith.constant 0 : i32
    %c0_i32_0 = arith.constant 0 : i32
    %c0_i32_1 = arith.constant 0 : i32
    return %arg0, %c0_i32, %c0_i32_0 : i32, i32, i32
  }
}

module attributes {stable_mosaic.version = 11 : i64} {
  func.func @kernel(%arg0: i32, %arg1: memref<1x19x64xbf16, #tpu.memory_space<vmem>>, %arg2: memref<1x18x64xbf16, #tpu.memory_space<vmem>>, %arg3: memref<3x3x64x128xbf16, #tpu.memory_space<vmem>>, %arg4: memref<1x128xf32, #tpu.memory_space<vmem>>, %arg5: memref<1x1x64x128xbf16, #tpu.memory_space<vmem>>, %arg6: memref<1x128xf32, #tpu.memory_space<vmem>>, %arg7: memref<1x12x128xbf16, #tpu.memory_space<vmem>>, %arg8: memref<1x12x128xbf16, #tpu.memory_space<vmem>>) attributes {dimension_semantics = [#tpu.dimension_semantics<parallel>], iteration_bounds = array<i64: 2>, scalar_prefetch = 0 : i64, scratch_operands = 0 : i64, tpu.core_type = #tpu.core_type<tc>, window_params = [{transform_indices = @transform_0, window_bounds = array<i64: 1, 19, 64>}, {transform_indices = @transform_1, window_bounds = array<i64: 1, 18, 64>}, {pipeline_mode = #tpu.pipeline_mode<synchronous>, transform_indices = @transform_2, window_bounds = array<i64: 3, 3, 64, 128>}, {pipeline_mode = #tpu.pipeline_mode<synchronous>, transform_indices = @transform_3, window_bounds = array<i64: 1, 128>}, {pipeline_mode = #tpu.pipeline_mode<synchronous>, transform_indices = @transform_4, window_bounds = array<i64: 1, 1, 64, 128>}, {pipeline_mode = #tpu.pipeline_mode<synchronous>, transform_indices = @transform_5, window_bounds = array<i64: 1, 128>}, {transform_indices = @transform_6, window_bounds = array<i64: 1, 12, 128>}, {transform_indices = @transform_7, window_bounds = array<i64: 1, 12, 128>}]} {
    %c0 = arith.constant 0 : index
    %c0_0 = arith.constant 0 : index
    %c0_1 = arith.constant 0 : index
    %0 = vector.load %arg1[%c0, %c0_0, %c0_1] : memref<1x19x64xbf16, #tpu.memory_space<vmem>>, vector<1x12x64xbf16>
    %1 = vector.shape_cast %0 : vector<1x12x64xbf16> to vector<12x64xbf16>
    %c0_2 = arith.constant 0 : index
    %c0_3 = arith.constant 0 : index
    %c0_4 = arith.constant 0 : index
    %c0_5 = arith.constant 0 : index
    %2 = vector.load %arg3[%c0_2, %c0_3, %c0_4, %c0_5] : memref<3x3x64x128xbf16, #tpu.memory_space<vmem>>, vector<1x1x64x128xbf16>
    %3 = vector.shape_cast %2 : vector<1x1x64x128xbf16> to vector<64x128xbf16>
    %cst = arith.constant dense<0.000000e+00> : vector<12x128xf32>
    %4 = tpu.matmul %1, %3, %cst {dimension_numbers = #tpu.dot_dimension_numbers<[1], [0], [0], [1], [0, 0, 1, 1], [], []>} : vector<12x64xbf16>, vector<64x128xbf16>, vector<12x128xf32> -> vector<12x128xf32>
    %c0_6 = arith.constant 0 : index
    %c0_7 = arith.constant 0 : index
    %c0_8 = arith.constant 0 : index
    %5 = vector.load %arg2[%c0_6, %c0_7, %c0_8] : memref<1x18x64xbf16, #tpu.memory_space<vmem>>, vector<1x12x64xbf16>
    %6 = vector.shape_cast %5 : vector<1x12x64xbf16> to vector<12x64xbf16>
    %c0_9 = arith.constant 0 : index
    %c1 = arith.constant 1 : index
    %c0_10 = arith.constant 0 : index
    %c0_11 = arith.constant 0 : index
    %7 = vector.load %arg3[%c0_9, %c1, %c0_10, %c0_11] : memref<3x3x64x128xbf16, #tpu.memory_space<vmem>>, vector<1x1x64x128xbf16>
    %8 = vector.shape_cast %7 : vector<1x1x64x128xbf16> to vector<64x128xbf16>
    %cst_12 = arith.constant dense<0.000000e+00> : vector<12x128xf32>
    %9 = tpu.matmul %6, %8, %cst_12 {dimension_numbers = #tpu.dot_dimension_numbers<[1], [0], [0], [1], [0, 0, 1, 1], [], []>} : vector<12x64xbf16>, vector<64x128xbf16>, vector<12x128xf32> -> vector<12x128xf32>
    %10 = arith.addf %4, %9 : vector<12x128xf32>
    %c0_13 = arith.constant 0 : index
    %c1_14 = arith.constant 1 : index
    %c0_15 = arith.constant 0 : index
    %11 = vector.load %arg1[%c0_13, %c1_14, %c0_15] : memref<1x19x64xbf16, #tpu.memory_space<vmem>>, vector<1x12x64xbf16>
    %12 = vector.shape_cast %11 : vector<1x12x64xbf16> to vector<12x64xbf16>
    %c0_16 = arith.constant 0 : index
    %c2 = arith.constant 2 : index
    %c0_17 = arith.constant 0 : index
    %c0_18 = arith.constant 0 : index
    %13 = vector.load %arg3[%c0_16, %c2, %c0_17, %c0_18] : memref<3x3x64x128xbf16, #tpu.memory_space<vmem>>, vector<1x1x64x128xbf16>
    %14 = vector.shape_cast %13 : vector<1x1x64x128xbf16> to vector<64x128xbf16>
    %cst_19 = arith.constant dense<0.000000e+00> : vector<12x128xf32>
    %15 = tpu.matmul %12, %14, %cst_19 {dimension_numbers = #tpu.dot_dimension_numbers<[1], [0], [0], [1], [0, 0, 1, 1], [], []>} : vector<12x64xbf16>, vector<64x128xbf16>, vector<12x128xf32> -> vector<12x128xf32>
    %16 = arith.addf %10, %15 : vector<12x128xf32>
    %c0_20 = arith.constant 0 : index
    %c3 = arith.constant 3 : index
    %c0_21 = arith.constant 0 : index
    %17 = vector.load %arg1[%c0_20, %c3, %c0_21] : memref<1x19x64xbf16, #tpu.memory_space<vmem>>, vector<1x12x64xbf16>
    %18 = vector.shape_cast %17 : vector<1x12x64xbf16> to vector<12x64xbf16>
    %c1_22 = arith.constant 1 : index
    %c0_23 = arith.constant 0 : index
    %c0_24 = arith.constant 0 : index
    %c0_25 = arith.constant 0 : index
    %19 = vector.load %arg3[%c1_22, %c0_23, %c0_24, %c0_25] : memref<3x3x64x128xbf16, #tpu.memory_space<vmem>>, vector<1x1x64x128xbf16>
    %20 = vector.shape_cast %19 : vector<1x1x64x128xbf16> to vector<64x128xbf16>
    %cst_26 = arith.constant dense<0.000000e+00> : vector<12x128xf32>
    %21 = tpu.matmul %18, %20, %cst_26 {dimension_numbers = #tpu.dot_dimension_numbers<[1], [0], [0], [1], [0, 0, 1, 1], [], []>} : vector<12x64xbf16>, vector<64x128xbf16>, vector<12x128xf32> -> vector<12x128xf32>
    %22 = arith.addf %16, %21 : vector<12x128xf32>
    %c0_27 = arith.constant 0 : index
    %c3_28 = arith.constant 3 : index
    %c0_29 = arith.constant 0 : index
    %23 = vector.load %arg2[%c0_27, %c3_28, %c0_29] : memref<1x18x64xbf16, #tpu.memory_space<vmem>>, vector<1x12x64xbf16>
    %24 = vector.shape_cast %23 : vector<1x12x64xbf16> to vector<12x64xbf16>
    %c1_30 = arith.constant 1 : index
    %c1_31 = arith.constant 1 : index
    %c0_32 = arith.constant 0 : index
    %c0_33 = arith.constant 0 : index
    %25 = vector.load %arg3[%c1_30, %c1_31, %c0_32, %c0_33] : memref<3x3x64x128xbf16, #tpu.memory_space<vmem>>, vector<1x1x64x128xbf16>
    %26 = vector.shape_cast %25 : vector<1x1x64x128xbf16> to vector<64x128xbf16>
    %cst_34 = arith.constant dense<0.000000e+00> : vector<12x128xf32>
    %27 = tpu.matmul %24, %26, %cst_34 {dimension_numbers = #tpu.dot_dimension_numbers<[1], [0], [0], [1], [0, 0, 1, 1], [], []>} : vector<12x64xbf16>, vector<64x128xbf16>, vector<12x128xf32> -> vector<12x128xf32>
    %28 = arith.addf %22, %27 : vector<12x128xf32>
    %c0_35 = arith.constant 0 : index
    %c4 = arith.constant 4 : index
    %c0_36 = arith.constant 0 : index
    %29 = vector.load %arg1[%c0_35, %c4, %c0_36] : memref<1x19x64xbf16, #tpu.memory_space<vmem>>, vector<1x12x64xbf16>
    %30 = vector.shape_cast %29 : vector<1x12x64xbf16> to vector<12x64xbf16>
    %c1_37 = arith.constant 1 : index
    %c2_38 = arith.constant 2 : index
    %c0_39 = arith.constant 0 : index
    %c0_40 = arith.constant 0 : index
    %31 = vector.load %arg3[%c1_37, %c2_38, %c0_39, %c0_40] : memref<3x3x64x128xbf16, #tpu.memory_space<vmem>>, vector<1x1x64x128xbf16>
    %32 = vector.shape_cast %31 : vector<1x1x64x128xbf16> to vector<64x128xbf16>
    %cst_41 = arith.constant dense<0.000000e+00> : vector<12x128xf32>
    %33 = tpu.matmul %30, %32, %cst_41 {dimension_numbers = #tpu.dot_dimension_numbers<[1], [0], [0], [1], [0, 0, 1, 1], [], []>} : vector<12x64xbf16>, vector<64x128xbf16>, vector<12x128xf32> -> vector<12x128xf32>
    %34 = arith.addf %28, %33 : vector<12x128xf32>
    %c0_42 = arith.constant 0 : index
    %c6 = arith.constant 6 : index
    %c0_43 = arith.constant 0 : index
    %35 = vector.load %arg1[%c0_42, %c6, %c0_43] : memref<1x19x64xbf16, #tpu.memory_space<vmem>>, vector<1x12x64xbf16>
    %36 = vector.shape_cast %35 : vector<1x12x64xbf16> to vector<12x64xbf16>
    %c2_44 = arith.constant 2 : index
    %c0_45 = arith.constant 0 : index
    %c0_46 = arith.constant 0 : index
    %c0_47 = arith.constant 0 : index
    %37 = vector.load %arg3[%c2_44, %c0_45, %c0_46, %c0_47] : memref<3x3x64x128xbf16, #tpu.memory_space<vmem>>, vector<1x1x64x128xbf16>
    %38 = vector.shape_cast %37 : vector<1x1x64x128xbf16> to vector<64x128xbf16>
    %cst_48 = arith.constant dense<0.000000e+00> : vector<12x128xf32>
    %39 = tpu.matmul %36, %38, %cst_48 {dimension_numbers = #tpu.dot_dimension_numbers<[1], [0], [0], [1], [0, 0, 1, 1], [], []>} : vector<12x64xbf16>, vector<64x128xbf16>, vector<12x128xf32> -> vector<12x128xf32>
    %40 = arith.addf %34, %39 : vector<12x128xf32>
    %c0_49 = arith.constant 0 : index
    %c6_50 = arith.constant 6 : index
    %c0_51 = arith.constant 0 : index
    %41 = vector.load %arg2[%c0_49, %c6_50, %c0_51] : memref<1x18x64xbf16, #tpu.memory_space<vmem>>, vector<1x12x64xbf16>
    %42 = vector.shape_cast %41 : vector<1x12x64xbf16> to vector<12x64xbf16>
    %c2_52 = arith.constant 2 : index
    %c1_53 = arith.constant 1 : index
    %c0_54 = arith.constant 0 : index
    %c0_55 = arith.constant 0 : index
    %43 = vector.load %arg3[%c2_52, %c1_53, %c0_54, %c0_55] : memref<3x3x64x128xbf16, #tpu.memory_space<vmem>>, vector<1x1x64x128xbf16>
    %44 = vector.shape_cast %43 : vector<1x1x64x128xbf16> to vector<64x128xbf16>
    %cst_56 = arith.constant dense<0.000000e+00> : vector<12x128xf32>
    %45 = tpu.matmul %42, %44, %cst_56 {dimension_numbers = #tpu.dot_dimension_numbers<[1], [0], [0], [1], [0, 0, 1, 1], [], []>} : vector<12x64xbf16>, vector<64x128xbf16>, vector<12x128xf32> -> vector<12x128xf32>
    %46 = arith.addf %40, %45 : vector<12x128xf32>
    %c0_57 = arith.constant 0 : index
    %c7 = arith.constant 7 : index
    %c0_58 = arith.constant 0 : index
    %47 = vector.load %arg1[%c0_57, %c7, %c0_58] : memref<1x19x64xbf16, #tpu.memory_space<vmem>>, vector<1x12x64xbf16>
    %48 = vector.shape_cast %47 : vector<1x12x64xbf16> to vector<12x64xbf16>
    %c2_59 = arith.constant 2 : index
    %c2_60 = arith.constant 2 : index
    %c0_61 = arith.constant 0 : index
    %c0_62 = arith.constant 0 : index
    %49 = vector.load %arg3[%c2_59, %c2_60, %c0_61, %c0_62] : memref<3x3x64x128xbf16, #tpu.memory_space<vmem>>, vector<1x1x64x128xbf16>
    %50 = vector.shape_cast %49 : vector<1x1x64x128xbf16> to vector<64x128xbf16>
    %cst_63 = arith.constant dense<0.000000e+00> : vector<12x128xf32>
    %51 = tpu.matmul %48, %50, %cst_63 {dimension_numbers = #tpu.dot_dimension_numbers<[1], [0], [0], [1], [0, 0, 1, 1], [], []>} : vector<12x64xbf16>, vector<64x128xbf16>, vector<12x128xf32> -> vector<12x128xf32>
    %52 = arith.addf %46, %51 : vector<12x128xf32>
    %c0_64 = arith.constant 0 : index
    %c0_65 = arith.constant 0 : index
    %53 = vector.load %arg4[%c0_64, %c0_65] : memref<1x128xf32, #tpu.memory_space<vmem>>, vector<1x128xf32>
    %54 = vector.broadcast %53 : vector<1x128xf32> to vector<12x128xf32>
    %55 = arith.addf %52, %54 : vector<12x128xf32>
    %cst_66 = arith.constant 0.000000e+00 : f32
    %56 = vector.broadcast %cst_66 : f32 to vector<12x128xf32>
    %57 = arith.maximumf %55, %56 : vector<12x128xf32>
    %58 = arith.truncf %57 : vector<12x128xf32> to vector<12x128xbf16>
    %c0_67 = arith.constant 0 : index
    %c0_68 = arith.constant 0 : index
    %c0_69 = arith.constant 0 : index
    %59 = vector.load %arg7[%c0_67, %c0_68, %c0_69] : memref<1x12x128xbf16, #tpu.memory_space<vmem>>, vector<1x12x128xbf16>
    %60 = vector.shape_cast %59 : vector<1x12x128xbf16> to vector<12x128xbf16>
    %61 = vector.shape_cast %58 : vector<12x128xbf16> to vector<1x12x128xbf16>
    tpu.vector_store %arg7[%c0_67, %c0_68, %c0_69], %61 {strides = array<i32>} : memref<1x12x128xbf16, #tpu.memory_space<vmem>>, vector<1x12x128xbf16>,
    %c0_70 = arith.constant 0 : index
    %c3_71 = arith.constant 3 : index
    %c0_72 = arith.constant 0 : index
    %62 = vector.load %arg2[%c0_70, %c3_71, %c0_72] : memref<1x18x64xbf16, #tpu.memory_space<vmem>>, vector<1x12x64xbf16>
    %63 = vector.shape_cast %62 : vector<1x12x64xbf16> to vector<12x64xbf16>
    %c0_73 = arith.constant 0 : index
    %c0_74 = arith.constant 0 : index
    %c0_75 = arith.constant 0 : index
    %c0_76 = arith.constant 0 : index
    %64 = vector.load %arg5[%c0_73, %c0_74, %c0_75, %c0_76] : memref<1x1x64x128xbf16, #tpu.memory_space<vmem>>, vector<1x1x64x128xbf16>
    %65 = vector.shape_cast %64 : vector<1x1x64x128xbf16> to vector<64x128xbf16>
    %cst_77 = arith.constant dense<0.000000e+00> : vector<12x128xf32>
    %66 = tpu.matmul %63, %65, %cst_77 {dimension_numbers = #tpu.dot_dimension_numbers<[1], [0], [0], [1], [0, 0, 1, 1], [], []>} : vector<12x64xbf16>, vector<64x128xbf16>, vector<12x128xf32> -> vector<12x128xf32>
    %c0_78 = arith.constant 0 : index
    %c0_79 = arith.constant 0 : index
    %67 = vector.load %arg6[%c0_78, %c0_79] : memref<1x128xf32, #tpu.memory_space<vmem>>, vector<1x128xf32>
    %68 = vector.broadcast %67 : vector<1x128xf32> to vector<12x128xf32>
    %69 = arith.addf %66, %68 : vector<12x128xf32>
    %70 = arith.truncf %69 : vector<12x128xf32> to vector<12x128xbf16>
    %c0_80 = arith.constant 0 : index
    %c0_81 = arith.constant 0 : index
    %c0_82 = arith.constant 0 : index
    %71 = vector.load %arg8[%c0_80, %c0_81, %c0_82] : memref<1x12x128xbf16, #tpu.memory_space<vmem>>, vector<1x12x128xbf16>
    %72 = vector.shape_cast %71 : vector<1x12x128xbf16> to vector<12x128xbf16>
    %73 = vector.shape_cast %70 : vector<12x128xbf16> to vector<1x12x128xbf16>
    tpu.vector_store %arg8[%c0_80, %c0_81, %c0_82], %73 {strides = array<i32>} : memref<1x12x128xbf16, #tpu.memory_space<vmem>>, vector<1x12x128xbf16>,
    return
  }
  func.func @transform_0(%arg0: i32) -> (i32, i32, i32) {
    %c0_i32 = arith.constant 0 : i32
    %c0_i32_0 = arith.constant 0 : i32
    %c0_i32_1 = arith.constant 0 : i32
    return %arg0, %c0_i32, %c0_i32_0 : i32, i32, i32
  }
  func.func @transform_1(%arg0: i32) -> (i32, i32, i32) {
    %c0_i32 = arith.constant 0 : i32
    %c0_i32_0 = arith.constant 0 : i32
    %c0_i32_1 = arith.constant 0 : i32
    return %arg0, %c0_i32, %c0_i32_0 : i32, i32, i32
  }
  func.func @transform_2(%arg0: i32) -> (i32, i32, i32, i32) {
    %c0_i32 = arith.constant 0 : i32
    %c0_i32_0 = arith.constant 0 : i32
    %c0_i32_1 = arith.constant 0 : i32
    %c0_i32_2 = arith.constant 0 : i32
    %c0_i32_3 = arith.constant 0 : i32
    return %c0_i32, %c0_i32_0, %c0_i32_1, %c0_i32_2 : i32, i32, i32, i32
  }
  func.func @transform_3(%arg0: i32) -> (i32, i32) {
    %c0_i32 = arith.constant 0 : i32
    %c0_i32_0 = arith.constant 0 : i32
    %c0_i32_1 = arith.constant 0 : i32
    return %c0_i32, %c0_i32_0 : i32, i32
  }
  func.func @transform_4(%arg0: i32) -> (i32, i32, i32, i32) {
    %c0_i32 = arith.constant 0 : i32
    %c0_i32_0 = arith.constant 0 : i32
    %c0_i32_1 = arith.constant 0 : i32
    %c0_i32_2 = arith.constant 0 : i32
    %c0_i32_3 = arith.constant 0 : i32
    return %c0_i32, %c0_i32_0, %c0_i32_1, %c0_i32_2 : i32, i32, i32, i32
  }
  func.func @transform_5(%arg0: i32) -> (i32, i32) {
    %c0_i32 = arith.constant 0 : i32
    %c0_i32_0 = arith.constant 0 : i32
    %c0_i32_1 = arith.constant 0 : i32
    return %c0_i32, %c0_i32_0 : i32, i32
  }
  func.func @transform_6(%arg0: i32) -> (i32, i32, i32) {
    %c0_i32 = arith.constant 0 : i32
    %c0_i32_0 = arith.constant 0 : i32
    %c0_i32_1 = arith.constant 0 : i32
    return %arg0, %c0_i32, %c0_i32_0 : i32, i32, i32
  }
  func.func @transform_7(%arg0: i32) -> (i32, i32, i32) {
    %c0_i32 = arith.constant 0 : i32
    %c0_i32_0 = arith.constant 0 : i32
    %c0_i32_1 = arith.constant 0 : i32
    return %arg0, %c0_i32, %c0_i32_0 : i32, i32, i32
  }
}

module attributes {stable_mosaic.version = 11 : i64} {
  func.func @kernel(%arg0: i32, %arg1: memref<1x18x128xbf16, #tpu.memory_space<vmem>>, %arg2: memref<3x3x128x128xbf16, #tpu.memory_space<vmem>>, %arg3: memref<1x128xf32, #tpu.memory_space<vmem>>, %arg4: memref<1x1x128x128xbf16, #tpu.memory_space<vmem>>, %arg5: memref<1x128xf32, #tpu.memory_space<vmem>>, %arg6: memref<1x8x128xbf16, #tpu.memory_space<vmem>>, %arg7: memref<1x8x128xbf16, #tpu.memory_space<vmem>>) attributes {dimension_semantics = [#tpu.dimension_semantics<parallel>], iteration_bounds = array<i64: 2>, scalar_prefetch = 0 : i64, scratch_operands = 0 : i64, tpu.core_type = #tpu.core_type<tc>, window_params = [{transform_indices = @transform_0, window_bounds = array<i64: 1, 18, 128>}, {pipeline_mode = #tpu.pipeline_mode<synchronous>, transform_indices = @transform_1, window_bounds = array<i64: 3, 3, 128, 128>}, {pipeline_mode = #tpu.pipeline_mode<synchronous>, transform_indices = @transform_2, window_bounds = array<i64: 1, 128>}, {pipeline_mode = #tpu.pipeline_mode<synchronous>, transform_indices = @transform_3, window_bounds = array<i64: 1, 1, 128, 128>}, {pipeline_mode = #tpu.pipeline_mode<synchronous>, transform_indices = @transform_4, window_bounds = array<i64: 1, 128>}, {transform_indices = @transform_5, window_bounds = array<i64: 1, 8, 128>}, {transform_indices = @transform_6, window_bounds = array<i64: 1, 8, 128>}]} {
    %c0 = arith.constant 0 : index
    %c0_0 = arith.constant 0 : index
    %c0_1 = arith.constant 0 : index
    %0 = vector.load %arg1[%c0, %c0_0, %c0_1] : memref<1x18x128xbf16, #tpu.memory_space<vmem>>, vector<1x8x128xbf16>
    %1 = vector.shape_cast %0 : vector<1x8x128xbf16> to vector<8x128xbf16>
    %c0_2 = arith.constant 0 : index
    %c0_3 = arith.constant 0 : index
    %c0_4 = arith.constant 0 : index
    %c0_5 = arith.constant 0 : index
    %2 = vector.load %arg2[%c0_2, %c0_3, %c0_4, %c0_5] : memref<3x3x128x128xbf16, #tpu.memory_space<vmem>>, vector<1x1x128x128xbf16>
    %3 = vector.shape_cast %2 : vector<1x1x128x128xbf16> to vector<128x128xbf16>
    %cst = arith.constant dense<0.000000e+00> : vector<8x128xf32>
    %4 = tpu.matmul %1, %3, %cst {dimension_numbers = #tpu.dot_dimension_numbers<[1], [0], [0], [1], [0, 0, 1, 1], [], []>} : vector<8x128xbf16>, vector<128x128xbf16>, vector<8x128xf32> -> vector<8x128xf32>
    %c0_6 = arith.constant 0 : index
    %c1 = arith.constant 1 : index
    %c0_7 = arith.constant 0 : index
    %5 = vector.load %arg1[%c0_6, %c1, %c0_7] : memref<1x18x128xbf16, #tpu.memory_space<vmem>>, vector<1x8x128xbf16>
    %6 = vector.shape_cast %5 : vector<1x8x128xbf16> to vector<8x128xbf16>
    %c0_8 = arith.constant 0 : index
    %c1_9 = arith.constant 1 : index
    %c0_10 = arith.constant 0 : index
    %c0_11 = arith.constant 0 : index
    %7 = vector.load %arg2[%c0_8, %c1_9, %c0_10, %c0_11] : memref<3x3x128x128xbf16, #tpu.memory_space<vmem>>, vector<1x1x128x128xbf16>
    %8 = vector.shape_cast %7 : vector<1x1x128x128xbf16> to vector<128x128xbf16>
    %cst_12 = arith.constant dense<0.000000e+00> : vector<8x128xf32>
    %9 = tpu.matmul %6, %8, %cst_12 {dimension_numbers = #tpu.dot_dimension_numbers<[1], [0], [0], [1], [0, 0, 1, 1], [], []>} : vector<8x128xbf16>, vector<128x128xbf16>, vector<8x128xf32> -> vector<8x128xf32>
    %10 = arith.addf %4, %9 : vector<8x128xf32>
    %c0_13 = arith.constant 0 : index
    %c2 = arith.constant 2 : index
    %c0_14 = arith.constant 0 : index
    %11 = vector.load %arg1[%c0_13, %c2, %c0_14] : memref<1x18x128xbf16, #tpu.memory_space<vmem>>, vector<1x8x128xbf16>
    %12 = vector.shape_cast %11 : vector<1x8x128xbf16> to vector<8x128xbf16>
    %c0_15 = arith.constant 0 : index
    %c2_16 = arith.constant 2 : index
    %c0_17 = arith.constant 0 : index
    %c0_18 = arith.constant 0 : index
    %13 = vector.load %arg2[%c0_15, %c2_16, %c0_17, %c0_18] : memref<3x3x128x128xbf16, #tpu.memory_space<vmem>>, vector<1x1x128x128xbf16>
    %14 = vector.shape_cast %13 : vector<1x1x128x128xbf16> to vector<128x128xbf16>
    %cst_19 = arith.constant dense<0.000000e+00> : vector<8x128xf32>
    %15 = tpu.matmul %12, %14, %cst_19 {dimension_numbers = #tpu.dot_dimension_numbers<[1], [0], [0], [1], [0, 0, 1, 1], [], []>} : vector<8x128xbf16>, vector<128x128xbf16>, vector<8x128xf32> -> vector<8x128xf32>
    %16 = arith.addf %10, %15 : vector<8x128xf32>
    %c0_20 = arith.constant 0 : index
    %c4 = arith.constant 4 : index
    %c0_21 = arith.constant 0 : index
    %17 = vector.load %arg1[%c0_20, %c4, %c0_21] : memref<1x18x128xbf16, #tpu.memory_space<vmem>>, vector<1x8x128xbf16>
    %18 = vector.shape_cast %17 : vector<1x8x128xbf16> to vector<8x128xbf16>
    %c1_22 = arith.constant 1 : index
    %c0_23 = arith.constant 0 : index
    %c0_24 = arith.constant 0 : index
    %c0_25 = arith.constant 0 : index
    %19 = vector.load %arg2[%c1_22, %c0_23, %c0_24, %c0_25] : memref<3x3x128x128xbf16, #tpu.memory_space<vmem>>, vector<1x1x128x128xbf16>
    %20 = vector.shape_cast %19 : vector<1x1x128x128xbf16> to vector<128x128xbf16>
    %cst_26 = arith.constant dense<0.000000e+00> : vector<8x128xf32>
    %21 = tpu.matmul %18, %20, %cst_26 {dimension_numbers = #tpu.dot_dimension_numbers<[1], [0], [0], [1], [0, 0, 1, 1], [], []>} : vector<8x128xbf16>, vector<128x128xbf16>, vector<8x128xf32> -> vector<8x128xf32>
    %22 = arith.addf %16, %21 : vector<8x128xf32>
    %c0_27 = arith.constant 0 : index
    %c5 = arith.constant 5 : index
    %c0_28 = arith.constant 0 : index
    %23 = vector.load %arg1[%c0_27, %c5, %c0_28] : memref<1x18x128xbf16, #tpu.memory_space<vmem>>, vector<1x8x128xbf16>
    %24 = vector.shape_cast %23 : vector<1x8x128xbf16> to vector<8x128xbf16>
    %c1_29 = arith.constant 1 : index
    %c1_30 = arith.constant 1 : index
    %c0_31 = arith.constant 0 : index
    %c0_32 = arith.constant 0 : index
    %25 = vector.load %arg2[%c1_29, %c1_30, %c0_31, %c0_32] : memref<3x3x128x128xbf16, #tpu.memory_space<vmem>>, vector<1x1x128x128xbf16>
    %26 = vector.shape_cast %25 : vector<1x1x128x128xbf16> to vector<128x128xbf16>
    %cst_33 = arith.constant dense<0.000000e+00> : vector<8x128xf32>
    %27 = tpu.matmul %24, %26, %cst_33 {dimension_numbers = #tpu.dot_dimension_numbers<[1], [0], [0], [1], [0, 0, 1, 1], [], []>} : vector<8x128xbf16>, vector<128x128xbf16>, vector<8x128xf32> -> vector<8x128xf32>
    %28 = arith.addf %22, %27 : vector<8x128xf32>
    %c0_34 = arith.constant 0 : index
    %c6 = arith.constant 6 : index
    %c0_35 = arith.constant 0 : index
    %29 = vector.load %arg1[%c0_34, %c6, %c0_35] : memref<1x18x128xbf16, #tpu.memory_space<vmem>>, vector<1x8x128xbf16>
    %30 = vector.shape_cast %29 : vector<1x8x128xbf16> to vector<8x128xbf16>
    %c1_36 = arith.constant 1 : index
    %c2_37 = arith.constant 2 : index
    %c0_38 = arith.constant 0 : index
    %c0_39 = arith.constant 0 : index
    %31 = vector.load %arg2[%c1_36, %c2_37, %c0_38, %c0_39] : memref<3x3x128x128xbf16, #tpu.memory_space<vmem>>, vector<1x1x128x128xbf16>
    %32 = vector.shape_cast %31 : vector<1x1x128x128xbf16> to vector<128x128xbf16>
    %cst_40 = arith.constant dense<0.000000e+00> : vector<8x128xf32>
    %33 = tpu.matmul %30, %32, %cst_40 {dimension_numbers = #tpu.dot_dimension_numbers<[1], [0], [0], [1], [0, 0, 1, 1], [], []>} : vector<8x128xbf16>, vector<128x128xbf16>, vector<8x128xf32> -> vector<8x128xf32>
    %34 = arith.addf %28, %33 : vector<8x128xf32>
    %c0_41 = arith.constant 0 : index
    %c8 = arith.constant 8 : index
    %c0_42 = arith.constant 0 : index
    %35 = vector.load %arg1[%c0_41, %c8, %c0_42] : memref<1x18x128xbf16, #tpu.memory_space<vmem>>, vector<1x8x128xbf16>
    %36 = vector.shape_cast %35 : vector<1x8x128xbf16> to vector<8x128xbf16>
    %c2_43 = arith.constant 2 : index
    %c0_44 = arith.constant 0 : index
    %c0_45 = arith.constant 0 : index
    %c0_46 = arith.constant 0 : index
    %37 = vector.load %arg2[%c2_43, %c0_44, %c0_45, %c0_46] : memref<3x3x128x128xbf16, #tpu.memory_space<vmem>>, vector<1x1x128x128xbf16>
    %38 = vector.shape_cast %37 : vector<1x1x128x128xbf16> to vector<128x128xbf16>
    %cst_47 = arith.constant dense<0.000000e+00> : vector<8x128xf32>
    %39 = tpu.matmul %36, %38, %cst_47 {dimension_numbers = #tpu.dot_dimension_numbers<[1], [0], [0], [1], [0, 0, 1, 1], [], []>} : vector<8x128xbf16>, vector<128x128xbf16>, vector<8x128xf32> -> vector<8x128xf32>
    %40 = arith.addf %34, %39 : vector<8x128xf32>
    %c0_48 = arith.constant 0 : index
    %c9 = arith.constant 9 : index
    %c0_49 = arith.constant 0 : index
    %41 = vector.load %arg1[%c0_48, %c9, %c0_49] : memref<1x18x128xbf16, #tpu.memory_space<vmem>>, vector<1x8x128xbf16>
    %42 = vector.shape_cast %41 : vector<1x8x128xbf16> to vector<8x128xbf16>
    %c2_50 = arith.constant 2 : index
    %c1_51 = arith.constant 1 : index
    %c0_52 = arith.constant 0 : index
    %c0_53 = arith.constant 0 : index
    %43 = vector.load %arg2[%c2_50, %c1_51, %c0_52, %c0_53] : memref<3x3x128x128xbf16, #tpu.memory_space<vmem>>, vector<1x1x128x128xbf16>
    %44 = vector.shape_cast %43 : vector<1x1x128x128xbf16> to vector<128x128xbf16>
    %cst_54 = arith.constant dense<0.000000e+00> : vector<8x128xf32>
    %45 = tpu.matmul %42, %44, %cst_54 {dimension_numbers = #tpu.dot_dimension_numbers<[1], [0], [0], [1], [0, 0, 1, 1], [], []>} : vector<8x128xbf16>, vector<128x128xbf16>, vector<8x128xf32> -> vector<8x128xf32>
    %46 = arith.addf %40, %45 : vector<8x128xf32>
    %c0_55 = arith.constant 0 : index
    %c10 = arith.constant 10 : index
    %c0_56 = arith.constant 0 : index
    %47 = vector.load %arg1[%c0_55, %c10, %c0_56] : memref<1x18x128xbf16, #tpu.memory_space<vmem>>, vector<1x8x128xbf16>
    %48 = vector.shape_cast %47 : vector<1x8x128xbf16> to vector<8x128xbf16>
    %c2_57 = arith.constant 2 : index
    %c2_58 = arith.constant 2 : index
    %c0_59 = arith.constant 0 : index
    %c0_60 = arith.constant 0 : index
    %49 = vector.load %arg2[%c2_57, %c2_58, %c0_59, %c0_60] : memref<3x3x128x128xbf16, #tpu.memory_space<vmem>>, vector<1x1x128x128xbf16>
    %50 = vector.shape_cast %49 : vector<1x1x128x128xbf16> to vector<128x128xbf16>
    %cst_61 = arith.constant dense<0.000000e+00> : vector<8x128xf32>
    %51 = tpu.matmul %48, %50, %cst_61 {dimension_numbers = #tpu.dot_dimension_numbers<[1], [0], [0], [1], [0, 0, 1, 1], [], []>} : vector<8x128xbf16>, vector<128x128xbf16>, vector<8x128xf32> -> vector<8x128xf32>
    %52 = arith.addf %46, %51 : vector<8x128xf32>
    %c0_62 = arith.constant 0 : index
    %c0_63 = arith.constant 0 : index
    %53 = vector.load %arg3[%c0_62, %c0_63] : memref<1x128xf32, #tpu.memory_space<vmem>>, vector<1x128xf32>
    %54 = vector.broadcast %53 : vector<1x128xf32> to vector<8x128xf32>
    %55 = arith.addf %52, %54 : vector<8x128xf32>
    %cst_64 = arith.constant 0.000000e+00 : f32
    %56 = vector.broadcast %cst_64 : f32 to vector<8x128xf32>
    %57 = arith.maximumf %55, %56 : vector<8x128xf32>
    %58 = arith.truncf %57 : vector<8x128xf32> to vector<8x128xbf16>
    %c0_65 = arith.constant 0 : index
    %c0_66 = arith.constant 0 : index
    %c0_67 = arith.constant 0 : index
    %59 = vector.load %arg6[%c0_65, %c0_66, %c0_67] : memref<1x8x128xbf16, #tpu.memory_space<vmem>>, vector<1x8x128xbf16>
    %60 = vector.shape_cast %59 : vector<1x8x128xbf16> to vector<8x128xbf16>
    %61 = vector.shape_cast %58 : vector<8x128xbf16> to vector<1x8x128xbf16>
    tpu.vector_store %arg6[%c0_65, %c0_66, %c0_67], %61 {strides = array<i32>} : memref<1x8x128xbf16, #tpu.memory_space<vmem>>, vector<1x8x128xbf16>,
    %c0_68 = arith.constant 0 : index
    %c5_69 = arith.constant 5 : index
    %c0_70 = arith.constant 0 : index
    %62 = vector.load %arg1[%c0_68, %c5_69, %c0_70] : memref<1x18x128xbf16, #tpu.memory_space<vmem>>, vector<1x8x128xbf16>
    %63 = vector.shape_cast %62 : vector<1x8x128xbf16> to vector<8x128xbf16>
    %c0_71 = arith.constant 0 : index
    %c0_72 = arith.constant 0 : index
    %c0_73 = arith.constant 0 : index
    %c0_74 = arith.constant 0 : index
    %64 = vector.load %arg4[%c0_71, %c0_72, %c0_73, %c0_74] : memref<1x1x128x128xbf16, #tpu.memory_space<vmem>>, vector<1x1x128x128xbf16>
    %65 = vector.shape_cast %64 : vector<1x1x128x128xbf16> to vector<128x128xbf16>
    %cst_75 = arith.constant dense<0.000000e+00> : vector<8x128xf32>
    %66 = tpu.matmul %63, %65, %cst_75 {dimension_numbers = #tpu.dot_dimension_numbers<[1], [0], [0], [1], [0, 0, 1, 1], [], []>} : vector<8x128xbf16>, vector<128x128xbf16>, vector<8x128xf32> -> vector<8x128xf32>
    %c0_76 = arith.constant 0 : index
    %c0_77 = arith.constant 0 : index
    %67 = vector.load %arg5[%c0_76, %c0_77] : memref<1x128xf32, #tpu.memory_space<vmem>>, vector<1x128xf32>
    %68 = vector.broadcast %67 : vector<1x128xf32> to vector<8x128xf32>
    %69 = arith.addf %66, %68 : vector<8x128xf32>
    %70 = arith.truncf %69 : vector<8x128xf32> to vector<8x128xbf16>
    %c0_78 = arith.constant 0 : index
    %c0_79 = arith.constant 0 : index
    %c0_80 = arith.constant 0 : index
    %71 = vector.load %arg7[%c0_78, %c0_79, %c0_80] : memref<1x8x128xbf16, #tpu.memory_space<vmem>>, vector<1x8x128xbf16>
    %72 = vector.shape_cast %71 : vector<1x8x128xbf16> to vector<8x128xbf16>
    %73 = vector.shape_cast %70 : vector<8x128xbf16> to vector<1x8x128xbf16>
    tpu.vector_store %arg7[%c0_78, %c0_79, %c0_80], %73 {strides = array<i32>} : memref<1x8x128xbf16, #tpu.memory_space<vmem>>, vector<1x8x128xbf16>,
    return
  }
  func.func @transform_0(%arg0: i32) -> (i32, i32, i32) {
    %c0_i32 = arith.constant 0 : i32
    %c0_i32_0 = arith.constant 0 : i32
    %c0_i32_1 = arith.constant 0 : i32
    return %arg0, %c0_i32, %c0_i32_0 : i32, i32, i32
  }
  func.func @transform_1(%arg0: i32) -> (i32, i32, i32, i32) {
    %c0_i32 = arith.constant 0 : i32
    %c0_i32_0 = arith.constant 0 : i32
    %c0_i32_1 = arith.constant 0 : i32
    %c0_i32_2 = arith.constant 0 : i32
    %c0_i32_3 = arith.constant 0 : i32
    return %c0_i32, %c0_i32_0, %c0_i32_1, %c0_i32_2 : i32, i32, i32, i32
  }
  func.func @transform_2(%arg0: i32) -> (i32, i32) {
    %c0_i32 = arith.constant 0 : i32
    %c0_i32_0 = arith.constant 0 : i32
    %c0_i32_1 = arith.constant 0 : i32
    return %c0_i32, %c0_i32_0 : i32, i32
  }
  func.func @transform_3(%arg0: i32) -> (i32, i32, i32, i32) {
    %c0_i32 = arith.constant 0 : i32
    %c0_i32_0 = arith.constant 0 : i32
    %c0_i32_1 = arith.constant 0 : i32
    %c0_i32_2 = arith.constant 0 : i32
    %c0_i32_3 = arith.constant 0 : i32
    return %c0_i32, %c0_i32_0, %c0_i32_1, %c0_i32_2 : i32, i32, i32, i32
  }
  func.func @transform_4(%arg0: i32) -> (i32, i32) {
    %c0_i32 = arith.constant 0 : i32
    %c0_i32_0 = arith.constant 0 : i32
    %c0_i32_1 = arith.constant 0 : i32
    return %c0_i32, %c0_i32_0 : i32, i32
  }
  func.func @transform_5(%arg0: i32) -> (i32, i32, i32) {
    %c0_i32 = arith.constant 0 : i32
    %c0_i32_0 = arith.constant 0 : i32
    %c0_i32_1 = arith.constant 0 : i32
    return %arg0, %c0_i32, %c0_i32_0 : i32, i32, i32
  }
  func.func @transform_6(%arg0: i32) -> (i32, i32, i32) {
    %c0_i32 = arith.constant 0 : i32
    %c0_i32_0 = arith.constant 0 : i32
    %c0_i32_1 = arith.constant 0 : i32
    return %arg0, %c0_i32, %c0_i32_0 : i32, i32, i32
  }
}

module attributes {stable_mosaic.version = 11 : i64} {
  func.func @kernel(%arg0: i32, %arg1: memref<1x18x128xbf16, #tpu.memory_space<vmem>>, %arg2: memref<3x3x128x128xbf16, #tpu.memory_space<vmem>>, %arg3: memref<1x128xf32, #tpu.memory_space<vmem>>, %arg4: memref<1x8x128xbf16, #tpu.memory_space<vmem>>, %arg5: memref<1x8x128xbf16, #tpu.memory_space<vmem>>) attributes {dimension_semantics = [#tpu.dimension_semantics<parallel>], iteration_bounds = array<i64: 2>, scalar_prefetch = 0 : i64, scratch_operands = 0 : i64, tpu.core_type = #tpu.core_type<tc>, window_params = [{transform_indices = @transform_0, window_bounds = array<i64: 1, 18, 128>}, {pipeline_mode = #tpu.pipeline_mode<synchronous>, transform_indices = @transform_1, window_bounds = array<i64: 3, 3, 128, 128>}, {pipeline_mode = #tpu.pipeline_mode<synchronous>, transform_indices = @transform_2, window_bounds = array<i64: 1, 128>}, {transform_indices = @transform_3, window_bounds = array<i64: 1, 8, 128>}, {transform_indices = @transform_4, window_bounds = array<i64: 1, 8, 128>}]} {
    %c0 = arith.constant 0 : index
    %c0_0 = arith.constant 0 : index
    %c0_1 = arith.constant 0 : index
    %0 = vector.load %arg1[%c0, %c0_0, %c0_1] : memref<1x18x128xbf16, #tpu.memory_space<vmem>>, vector<1x8x128xbf16>
    %1 = vector.shape_cast %0 : vector<1x8x128xbf16> to vector<8x128xbf16>
    %c0_2 = arith.constant 0 : index
    %c0_3 = arith.constant 0 : index
    %c0_4 = arith.constant 0 : index
    %c0_5 = arith.constant 0 : index
    %2 = vector.load %arg2[%c0_2, %c0_3, %c0_4, %c0_5] : memref<3x3x128x128xbf16, #tpu.memory_space<vmem>>, vector<1x1x128x128xbf16>
    %3 = vector.shape_cast %2 : vector<1x1x128x128xbf16> to vector<128x128xbf16>
    %cst = arith.constant dense<0.000000e+00> : vector<8x128xf32>
    %4 = tpu.matmul %1, %3, %cst {dimension_numbers = #tpu.dot_dimension_numbers<[1], [0], [0], [1], [0, 0, 1, 1], [], []>} : vector<8x128xbf16>, vector<128x128xbf16>, vector<8x128xf32> -> vector<8x128xf32>
    %c0_6 = arith.constant 0 : index
    %c1 = arith.constant 1 : index
    %c0_7 = arith.constant 0 : index
    %5 = vector.load %arg1[%c0_6, %c1, %c0_7] : memref<1x18x128xbf16, #tpu.memory_space<vmem>>, vector<1x8x128xbf16>
    %6 = vector.shape_cast %5 : vector<1x8x128xbf16> to vector<8x128xbf16>
    %c0_8 = arith.constant 0 : index
    %c1_9 = arith.constant 1 : index
    %c0_10 = arith.constant 0 : index
    %c0_11 = arith.constant 0 : index
    %7 = vector.load %arg2[%c0_8, %c1_9, %c0_10, %c0_11] : memref<3x3x128x128xbf16, #tpu.memory_space<vmem>>, vector<1x1x128x128xbf16>
    %8 = vector.shape_cast %7 : vector<1x1x128x128xbf16> to vector<128x128xbf16>
    %cst_12 = arith.constant dense<0.000000e+00> : vector<8x128xf32>
    %9 = tpu.matmul %6, %8, %cst_12 {dimension_numbers = #tpu.dot_dimension_numbers<[1], [0], [0], [1], [0, 0, 1, 1], [], []>} : vector<8x128xbf16>, vector<128x128xbf16>, vector<8x128xf32> -> vector<8x128xf32>
    %10 = arith.addf %4, %9 : vector<8x128xf32>
    %c0_13 = arith.constant 0 : index
    %c2 = arith.constant 2 : index
    %c0_14 = arith.constant 0 : index
    %11 = vector.load %arg1[%c0_13, %c2, %c0_14] : memref<1x18x128xbf16, #tpu.memory_space<vmem>>, vector<1x8x128xbf16>
    %12 = vector.shape_cast %11 : vector<1x8x128xbf16> to vector<8x128xbf16>
    %c0_15 = arith.constant 0 : index
    %c2_16 = arith.constant 2 : index
    %c0_17 = arith.constant 0 : index
    %c0_18 = arith.constant 0 : index
    %13 = vector.load %arg2[%c0_15, %c2_16, %c0_17, %c0_18] : memref<3x3x128x128xbf16, #tpu.memory_space<vmem>>, vector<1x1x128x128xbf16>
    %14 = vector.shape_cast %13 : vector<1x1x128x128xbf16> to vector<128x128xbf16>
    %cst_19 = arith.constant dense<0.000000e+00> : vector<8x128xf32>
    %15 = tpu.matmul %12, %14, %cst_19 {dimension_numbers = #tpu.dot_dimension_numbers<[1], [0], [0], [1], [0, 0, 1, 1], [], []>} : vector<8x128xbf16>, vector<128x128xbf16>, vector<8x128xf32> -> vector<8x128xf32>
    %16 = arith.addf %10, %15 : vector<8x128xf32>
    %c0_20 = arith.constant 0 : index
    %c4 = arith.constant 4 : index
    %c0_21 = arith.constant 0 : index
    %17 = vector.load %arg1[%c0_20, %c4, %c0_21] : memref<1x18x128xbf16, #tpu.memory_space<vmem>>, vector<1x8x128xbf16>
    %18 = vector.shape_cast %17 : vector<1x8x128xbf16> to vector<8x128xbf16>
    %c1_22 = arith.constant 1 : index
    %c0_23 = arith.constant 0 : index
    %c0_24 = arith.constant 0 : index
    %c0_25 = arith.constant 0 : index
    %19 = vector.load %arg2[%c1_22, %c0_23, %c0_24, %c0_25] : memref<3x3x128x128xbf16, #tpu.memory_space<vmem>>, vector<1x1x128x128xbf16>
    %20 = vector.shape_cast %19 : vector<1x1x128x128xbf16> to vector<128x128xbf16>
    %cst_26 = arith.constant dense<0.000000e+00> : vector<8x128xf32>
    %21 = tpu.matmul %18, %20, %cst_26 {dimension_numbers = #tpu.dot_dimension_numbers<[1], [0], [0], [1], [0, 0, 1, 1], [], []>} : vector<8x128xbf16>, vector<128x128xbf16>, vector<8x128xf32> -> vector<8x128xf32>
    %22 = arith.addf %16, %21 : vector<8x128xf32>
    %c0_27 = arith.constant 0 : index
    %c5 = arith.constant 5 : index
    %c0_28 = arith.constant 0 : index
    %23 = vector.load %arg1[%c0_27, %c5, %c0_28] : memref<1x18x128xbf16, #tpu.memory_space<vmem>>, vector<1x8x128xbf16>
    %24 = vector.shape_cast %23 : vector<1x8x128xbf16> to vector<8x128xbf16>
    %c1_29 = arith.constant 1 : index
    %c1_30 = arith.constant 1 : index
    %c0_31 = arith.constant 0 : index
    %c0_32 = arith.constant 0 : index
    %25 = vector.load %arg2[%c1_29, %c1_30, %c0_31, %c0_32] : memref<3x3x128x128xbf16, #tpu.memory_space<vmem>>, vector<1x1x128x128xbf16>
    %26 = vector.shape_cast %25 : vector<1x1x128x128xbf16> to vector<128x128xbf16>
    %cst_33 = arith.constant dense<0.000000e+00> : vector<8x128xf32>
    %27 = tpu.matmul %24, %26, %cst_33 {dimension_numbers = #tpu.dot_dimension_numbers<[1], [0], [0], [1], [0, 0, 1, 1], [], []>} : vector<8x128xbf16>, vector<128x128xbf16>, vector<8x128xf32> -> vector<8x128xf32>
    %28 = arith.addf %22, %27 : vector<8x128xf32>
    %c0_34 = arith.constant 0 : index
    %c6 = arith.constant 6 : index
    %c0_35 = arith.constant 0 : index
    %29 = vector.load %arg1[%c0_34, %c6, %c0_35] : memref<1x18x128xbf16, #tpu.memory_space<vmem>>, vector<1x8x128xbf16>
    %30 = vector.shape_cast %29 : vector<1x8x128xbf16> to vector<8x128xbf16>
    %c1_36 = arith.constant 1 : index
    %c2_37 = arith.constant 2 : index
    %c0_38 = arith.constant 0 : index
    %c0_39 = arith.constant 0 : index
    %31 = vector.load %arg2[%c1_36, %c2_37, %c0_38, %c0_39] : memref<3x3x128x128xbf16, #tpu.memory_space<vmem>>, vector<1x1x128x128xbf16>
    %32 = vector.shape_cast %31 : vector<1x1x128x128xbf16> to vector<128x128xbf16>
    %cst_40 = arith.constant dense<0.000000e+00> : vector<8x128xf32>
    %33 = tpu.matmul %30, %32, %cst_40 {dimension_numbers = #tpu.dot_dimension_numbers<[1], [0], [0], [1], [0, 0, 1, 1], [], []>} : vector<8x128xbf16>, vector<128x128xbf16>, vector<8x128xf32> -> vector<8x128xf32>
    %34 = arith.addf %28, %33 : vector<8x128xf32>
    %c0_41 = arith.constant 0 : index
    %c8 = arith.constant 8 : index
    %c0_42 = arith.constant 0 : index
    %35 = vector.load %arg1[%c0_41, %c8, %c0_42] : memref<1x18x128xbf16, #tpu.memory_space<vmem>>, vector<1x8x128xbf16>
    %36 = vector.shape_cast %35 : vector<1x8x128xbf16> to vector<8x128xbf16>
    %c2_43 = arith.constant 2 : index
    %c0_44 = arith.constant 0 : index
    %c0_45 = arith.constant 0 : index
    %c0_46 = arith.constant 0 : index
    %37 = vector.load %arg2[%c2_43, %c0_44, %c0_45, %c0_46] : memref<3x3x128x128xbf16, #tpu.memory_space<vmem>>, vector<1x1x128x128xbf16>
    %38 = vector.shape_cast %37 : vector<1x1x128x128xbf16> to vector<128x128xbf16>
    %cst_47 = arith.constant dense<0.000000e+00> : vector<8x128xf32>
    %39 = tpu.matmul %36, %38, %cst_47 {dimension_numbers = #tpu.dot_dimension_numbers<[1], [0], [0], [1], [0, 0, 1, 1], [], []>} : vector<8x128xbf16>, vector<128x128xbf16>, vector<8x128xf32> -> vector<8x128xf32>
    %40 = arith.addf %34, %39 : vector<8x128xf32>
    %c0_48 = arith.constant 0 : index
    %c9 = arith.constant 9 : index
    %c0_49 = arith.constant 0 : index
    %41 = vector.load %arg1[%c0_48, %c9, %c0_49] : memref<1x18x128xbf16, #tpu.memory_space<vmem>>, vector<1x8x128xbf16>
    %42 = vector.shape_cast %41 : vector<1x8x128xbf16> to vector<8x128xbf16>
    %c2_50 = arith.constant 2 : index
    %c1_51 = arith.constant 1 : index
    %c0_52 = arith.constant 0 : index
    %c0_53 = arith.constant 0 : index
    %43 = vector.load %arg2[%c2_50, %c1_51, %c0_52, %c0_53] : memref<3x3x128x128xbf16, #tpu.memory_space<vmem>>, vector<1x1x128x128xbf16>
    %44 = vector.shape_cast %43 : vector<1x1x128x128xbf16> to vector<128x128xbf16>
    %cst_54 = arith.constant dense<0.000000e+00> : vector<8x128xf32>
    %45 = tpu.matmul %42, %44, %cst_54 {dimension_numbers = #tpu.dot_dimension_numbers<[1], [0], [0], [1], [0, 0, 1, 1], [], []>} : vector<8x128xbf16>, vector<128x128xbf16>, vector<8x128xf32> -> vector<8x128xf32>
    %46 = arith.addf %40, %45 : vector<8x128xf32>
    %c0_55 = arith.constant 0 : index
    %c10 = arith.constant 10 : index
    %c0_56 = arith.constant 0 : index
    %47 = vector.load %arg1[%c0_55, %c10, %c0_56] : memref<1x18x128xbf16, #tpu.memory_space<vmem>>, vector<1x8x128xbf16>
    %48 = vector.shape_cast %47 : vector<1x8x128xbf16> to vector<8x128xbf16>
    %c2_57 = arith.constant 2 : index
    %c2_58 = arith.constant 2 : index
    %c0_59 = arith.constant 0 : index
    %c0_60 = arith.constant 0 : index
    %49 = vector.load %arg2[%c2_57, %c2_58, %c0_59, %c0_60] : memref<3x3x128x128xbf16, #tpu.memory_space<vmem>>, vector<1x1x128x128xbf16>
    %50 = vector.shape_cast %49 : vector<1x1x128x128xbf16> to vector<128x128xbf16>
    %cst_61 = arith.constant dense<0.000000e+00> : vector<8x128xf32>
    %51 = tpu.matmul %48, %50, %cst_61 {dimension_numbers = #tpu.dot_dimension_numbers<[1], [0], [0], [1], [0, 0, 1, 1], [], []>} : vector<8x128xbf16>, vector<128x128xbf16>, vector<8x128xf32> -> vector<8x128xf32>
    %52 = arith.addf %46, %51 : vector<8x128xf32>
    %c0_62 = arith.constant 0 : index
    %c0_63 = arith.constant 0 : index
    %53 = vector.load %arg3[%c0_62, %c0_63] : memref<1x128xf32, #tpu.memory_space<vmem>>, vector<1x128xf32>
    %54 = vector.broadcast %53 : vector<1x128xf32> to vector<8x128xf32>
    %55 = arith.addf %52, %54 : vector<8x128xf32>
    %c0_64 = arith.constant 0 : index
    %c0_65 = arith.constant 0 : index
    %c0_66 = arith.constant 0 : index
    %56 = vector.load %arg4[%c0_64, %c0_65, %c0_66] : memref<1x8x128xbf16, #tpu.memory_space<vmem>>, vector<1x8x128xbf16>
    %57 = vector.shape_cast %56 : vector<1x8x128xbf16> to vector<8x128xbf16>
    %58 = arith.extf %57 : vector<8x128xbf16> to vector<8x128xf32>
    %59 = arith.addf %55, %58 : vector<8x128xf32>
    %cst_67 = arith.constant 0.000000e+00 : f32
    %60 = vector.broadcast %cst_67 : f32 to vector<8x128xf32>
    %61 = arith.maximumf %59, %60 : vector<8x128xf32>
    %62 = arith.truncf %61 : vector<8x128xf32> to vector<8x128xbf16>
    %c0_68 = arith.constant 0 : index
    %c0_69 = arith.constant 0 : index
    %c0_70 = arith.constant 0 : index
    %63 = vector.load %arg5[%c0_68, %c0_69, %c0_70] : memref<1x8x128xbf16, #tpu.memory_space<vmem>>, vector<1x8x128xbf16>
    %64 = vector.shape_cast %63 : vector<1x8x128xbf16> to vector<8x128xbf16>
    %65 = vector.shape_cast %62 : vector<8x128xbf16> to vector<1x8x128xbf16>
    tpu.vector_store %arg5[%c0_68, %c0_69, %c0_70], %65 {strides = array<i32>} : memref<1x8x128xbf16, #tpu.memory_space<vmem>>, vector<1x8x128xbf16>,
    return
  }
  func.func @transform_0(%arg0: i32) -> (i32, i32, i32) {
    %c0_i32 = arith.constant 0 : i32
    %c0_i32_0 = arith.constant 0 : i32
    %c0_i32_1 = arith.constant 0 : i32
    return %arg0, %c0_i32, %c0_i32_0 : i32, i32, i32
  }
  func.func @transform_1(%arg0: i32) -> (i32, i32, i32, i32) {
    %c0_i32 = arith.constant 0 : i32
    %c0_i32_0 = arith.constant 0 : i32
    %c0_i32_1 = arith.constant 0 : i32
    %c0_i32_2 = arith.constant 0 : i32
    %c0_i32_3 = arith.constant 0 : i32
    return %c0_i32, %c0_i32_0, %c0_i32_1, %c0_i32_2 : i32, i32, i32, i32
  }
  func.func @transform_2(%arg0: i32) -> (i32, i32) {
    %c0_i32 = arith.constant 0 : i32
    %c0_i32_0 = arith.constant 0 : i32
    %c0_i32_1 = arith.constant 0 : i32
    return %c0_i32, %c0_i32_0 : i32, i32
  }
  func.func @transform_3(%arg0: i32) -> (i32, i32, i32) {
    %c0_i32 = arith.constant 0 : i32
    %c0_i32_0 = arith.constant 0 : i32
    %c0_i32_1 = arith.constant 0 : i32
    return %arg0, %c0_i32, %c0_i32_0 : i32, i32, i32
  }
  func.func @transform_4(%arg0: i32) -> (i32, i32, i32) {
    %c0_i32 = arith.constant 0 : i32
    %c0_i32_0 = arith.constant 0 : i32
    %c0_i32_1 = arith.constant 0 : i32
    return %arg0, %c0_i32, %c0_i32_0 : i32, i32, i32
  }
}

module attributes {stable_mosaic.version = 11 : i64} {
  func.func @kernel(%arg0: i32, %arg1: memref<1x40x128xbf16, #tpu.memory_space<vmem>>, %arg2: memref<3x3x128x128xbf16, #tpu.memory_space<vmem>>, %arg3: memref<1x128xf32, #tpu.memory_space<vmem>>, %arg4: memref<1x1x128x128xbf16, #tpu.memory_space<vmem>>, %arg5: memref<1x128xf32, #tpu.memory_space<vmem>>, %arg6: memref<1x12x128xbf16, #tpu.memory_space<vmem>>, %arg7: memref<1x12x128xbf16, #tpu.memory_space<vmem>>) attributes {dimension_semantics = [#tpu.dimension_semantics<parallel>], iteration_bounds = array<i64: 2>, scalar_prefetch = 0 : i64, scratch_operands = 0 : i64, tpu.core_type = #tpu.core_type<tc>, window_params = [{transform_indices = @transform_0, window_bounds = array<i64: 1, 40, 128>}, {pipeline_mode = #tpu.pipeline_mode<synchronous>, transform_indices = @transform_1, window_bounds = array<i64: 3, 3, 128, 128>}, {pipeline_mode = #tpu.pipeline_mode<synchronous>, transform_indices = @transform_2, window_bounds = array<i64: 1, 128>}, {pipeline_mode = #tpu.pipeline_mode<synchronous>, transform_indices = @transform_3, window_bounds = array<i64: 1, 1, 128, 128>}, {pipeline_mode = #tpu.pipeline_mode<synchronous>, transform_indices = @transform_4, window_bounds = array<i64: 1, 128>}, {transform_indices = @transform_5, window_bounds = array<i64: 1, 12, 128>}, {transform_indices = @transform_6, window_bounds = array<i64: 1, 12, 128>}]} {
    %c0 = arith.constant 0 : index
    %c0_0 = arith.constant 0 : index
    %c0_1 = arith.constant 0 : index
    %0 = vector.load %arg1[%c0, %c0_0, %c0_1] : memref<1x40x128xbf16, #tpu.memory_space<vmem>>, vector<1x12x128xbf16>
    %1 = vector.shape_cast %0 : vector<1x12x128xbf16> to vector<12x128xbf16>
    %c0_2 = arith.constant 0 : index
    %c0_3 = arith.constant 0 : index
    %c0_4 = arith.constant 0 : index
    %c0_5 = arith.constant 0 : index
    %2 = vector.load %arg2[%c0_2, %c0_3, %c0_4, %c0_5] : memref<3x3x128x128xbf16, #tpu.memory_space<vmem>>, vector<1x1x128x128xbf16>
    %3 = vector.shape_cast %2 : vector<1x1x128x128xbf16> to vector<128x128xbf16>
    %cst = arith.constant dense<0.000000e+00> : vector<12x128xf32>
    %4 = tpu.matmul %1, %3, %cst {dimension_numbers = #tpu.dot_dimension_numbers<[1], [0], [0], [1], [0, 0, 1, 1], [], []>} : vector<12x128xbf16>, vector<128x128xbf16>, vector<12x128xf32> -> vector<12x128xf32>
    %c0_6 = arith.constant 0 : index
    %c2 = arith.constant 2 : index
    %c0_7 = arith.constant 0 : index
    %5 = vector.load %arg1[%c0_6, %c2, %c0_7] : memref<1x40x128xbf16, #tpu.memory_space<vmem>>, vector<1x12x128xbf16>
    %6 = vector.shape_cast %5 : vector<1x12x128xbf16> to vector<12x128xbf16>
    %c0_8 = arith.constant 0 : index
    %c1 = arith.constant 1 : index
    %c0_9 = arith.constant 0 : index
    %c0_10 = arith.constant 0 : index
    %7 = vector.load %arg2[%c0_8, %c1, %c0_9, %c0_10] : memref<3x3x128x128xbf16, #tpu.memory_space<vmem>>, vector<1x1x128x128xbf16>
    %8 = vector.shape_cast %7 : vector<1x1x128x128xbf16> to vector<128x128xbf16>
    %cst_11 = arith.constant dense<0.000000e+00> : vector<12x128xf32>
    %9 = tpu.matmul %6, %8, %cst_11 {dimension_numbers = #tpu.dot_dimension_numbers<[1], [0], [0], [1], [0, 0, 1, 1], [], []>} : vector<12x128xbf16>, vector<128x128xbf16>, vector<12x128xf32> -> vector<12x128xf32>
    %10 = arith.addf %4, %9 : vector<12x128xf32>
    %c0_12 = arith.constant 0 : index
    %c4 = arith.constant 4 : index
    %c0_13 = arith.constant 0 : index
    %11 = vector.load %arg1[%c0_12, %c4, %c0_13] : memref<1x40x128xbf16, #tpu.memory_space<vmem>>, vector<1x12x128xbf16>
    %12 = vector.shape_cast %11 : vector<1x12x128xbf16> to vector<12x128xbf16>
    %c0_14 = arith.constant 0 : index
    %c2_15 = arith.constant 2 : index
    %c0_16 = arith.constant 0 : index
    %c0_17 = arith.constant 0 : index
    %13 = vector.load %arg2[%c0_14, %c2_15, %c0_16, %c0_17] : memref<3x3x128x128xbf16, #tpu.memory_space<vmem>>, vector<1x1x128x128xbf16>
    %14 = vector.shape_cast %13 : vector<1x1x128x128xbf16> to vector<128x128xbf16>
    %cst_18 = arith.constant dense<0.000000e+00> : vector<12x128xf32>
    %15 = tpu.matmul %12, %14, %cst_18 {dimension_numbers = #tpu.dot_dimension_numbers<[1], [0], [0], [1], [0, 0, 1, 1], [], []>} : vector<12x128xbf16>, vector<128x128xbf16>, vector<12x128xf32> -> vector<12x128xf32>
    %16 = arith.addf %10, %15 : vector<12x128xf32>
    %c0_19 = arith.constant 0 : index
    %c12 = arith.constant 12 : index
    %c0_20 = arith.constant 0 : index
    %17 = vector.load %arg1[%c0_19, %c12, %c0_20] : memref<1x40x128xbf16, #tpu.memory_space<vmem>>, vector<1x12x128xbf16>
    %18 = vector.shape_cast %17 : vector<1x12x128xbf16> to vector<12x128xbf16>
    %c1_21 = arith.constant 1 : index
    %c0_22 = arith.constant 0 : index
    %c0_23 = arith.constant 0 : index
    %c0_24 = arith.constant 0 : index
    %19 = vector.load %arg2[%c1_21, %c0_22, %c0_23, %c0_24] : memref<3x3x128x128xbf16, #tpu.memory_space<vmem>>, vector<1x1x128x128xbf16>
    %20 = vector.shape_cast %19 : vector<1x1x128x128xbf16> to vector<128x128xbf16>
    %cst_25 = arith.constant dense<0.000000e+00> : vector<12x128xf32>
    %21 = tpu.matmul %18, %20, %cst_25 {dimension_numbers = #tpu.dot_dimension_numbers<[1], [0], [0], [1], [0, 0, 1, 1], [], []>} : vector<12x128xbf16>, vector<128x128xbf16>, vector<12x128xf32> -> vector<12x128xf32>
    %22 = arith.addf %16, %21 : vector<12x128xf32>
    %c0_26 = arith.constant 0 : index
    %c14 = arith.constant 14 : index
    %c0_27 = arith.constant 0 : index
    %23 = vector.load %arg1[%c0_26, %c14, %c0_27] : memref<1x40x128xbf16, #tpu.memory_space<vmem>>, vector<1x12x128xbf16>
    %24 = vector.shape_cast %23 : vector<1x12x128xbf16> to vector<12x128xbf16>
    %c1_28 = arith.constant 1 : index
    %c1_29 = arith.constant 1 : index
    %c0_30 = arith.constant 0 : index
    %c0_31 = arith.constant 0 : index
    %25 = vector.load %arg2[%c1_28, %c1_29, %c0_30, %c0_31] : memref<3x3x128x128xbf16, #tpu.memory_space<vmem>>, vector<1x1x128x128xbf16>
    %26 = vector.shape_cast %25 : vector<1x1x128x128xbf16> to vector<128x128xbf16>
    %cst_32 = arith.constant dense<0.000000e+00> : vector<12x128xf32>
    %27 = tpu.matmul %24, %26, %cst_32 {dimension_numbers = #tpu.dot_dimension_numbers<[1], [0], [0], [1], [0, 0, 1, 1], [], []>} : vector<12x128xbf16>, vector<128x128xbf16>, vector<12x128xf32> -> vector<12x128xf32>
    %28 = arith.addf %22, %27 : vector<12x128xf32>
    %c0_33 = arith.constant 0 : index
    %c16 = arith.constant 16 : index
    %c0_34 = arith.constant 0 : index
    %29 = vector.load %arg1[%c0_33, %c16, %c0_34] : memref<1x40x128xbf16, #tpu.memory_space<vmem>>, vector<1x12x128xbf16>
    %30 = vector.shape_cast %29 : vector<1x12x128xbf16> to vector<12x128xbf16>
    %c1_35 = arith.constant 1 : index
    %c2_36 = arith.constant 2 : index
    %c0_37 = arith.constant 0 : index
    %c0_38 = arith.constant 0 : index
    %31 = vector.load %arg2[%c1_35, %c2_36, %c0_37, %c0_38] : memref<3x3x128x128xbf16, #tpu.memory_space<vmem>>, vector<1x1x128x128xbf16>
    %32 = vector.shape_cast %31 : vector<1x1x128x128xbf16> to vector<128x128xbf16>
    %cst_39 = arith.constant dense<0.000000e+00> : vector<12x128xf32>
    %33 = tpu.matmul %30, %32, %cst_39 {dimension_numbers = #tpu.dot_dimension_numbers<[1], [0], [0], [1], [0, 0, 1, 1], [], []>} : vector<12x128xbf16>, vector<128x128xbf16>, vector<12x128xf32> -> vector<12x128xf32>
    %34 = arith.addf %28, %33 : vector<12x128xf32>
    %c0_40 = arith.constant 0 : index
    %c24 = arith.constant 24 : index
    %c0_41 = arith.constant 0 : index
    %35 = vector.load %arg1[%c0_40, %c24, %c0_41] : memref<1x40x128xbf16, #tpu.memory_space<vmem>>, vector<1x12x128xbf16>
    %36 = vector.shape_cast %35 : vector<1x12x128xbf16> to vector<12x128xbf16>
    %c2_42 = arith.constant 2 : index
    %c0_43 = arith.constant 0 : index
    %c0_44 = arith.constant 0 : index
    %c0_45 = arith.constant 0 : index
    %37 = vector.load %arg2[%c2_42, %c0_43, %c0_44, %c0_45] : memref<3x3x128x128xbf16, #tpu.memory_space<vmem>>, vector<1x1x128x128xbf16>
    %38 = vector.shape_cast %37 : vector<1x1x128x128xbf16> to vector<128x128xbf16>
    %cst_46 = arith.constant dense<0.000000e+00> : vector<12x128xf32>
    %39 = tpu.matmul %36, %38, %cst_46 {dimension_numbers = #tpu.dot_dimension_numbers<[1], [0], [0], [1], [0, 0, 1, 1], [], []>} : vector<12x128xbf16>, vector<128x128xbf16>, vector<12x128xf32> -> vector<12x128xf32>
    %40 = arith.addf %34, %39 : vector<12x128xf32>
    %c0_47 = arith.constant 0 : index
    %c26 = arith.constant 26 : index
    %c0_48 = arith.constant 0 : index
    %41 = vector.load %arg1[%c0_47, %c26, %c0_48] : memref<1x40x128xbf16, #tpu.memory_space<vmem>>, vector<1x12x128xbf16>
    %42 = vector.shape_cast %41 : vector<1x12x128xbf16> to vector<12x128xbf16>
    %c2_49 = arith.constant 2 : index
    %c1_50 = arith.constant 1 : index
    %c0_51 = arith.constant 0 : index
    %c0_52 = arith.constant 0 : index
    %43 = vector.load %arg2[%c2_49, %c1_50, %c0_51, %c0_52] : memref<3x3x128x128xbf16, #tpu.memory_space<vmem>>, vector<1x1x128x128xbf16>
    %44 = vector.shape_cast %43 : vector<1x1x128x128xbf16> to vector<128x128xbf16>
    %cst_53 = arith.constant dense<0.000000e+00> : vector<12x128xf32>
    %45 = tpu.matmul %42, %44, %cst_53 {dimension_numbers = #tpu.dot_dimension_numbers<[1], [0], [0], [1], [0, 0, 1, 1], [], []>} : vector<12x128xbf16>, vector<128x128xbf16>, vector<12x128xf32> -> vector<12x128xf32>
    %46 = arith.addf %40, %45 : vector<12x128xf32>
    %c0_54 = arith.constant 0 : index
    %c28 = arith.constant 28 : index
    %c0_55 = arith.constant 0 : index
    %47 = vector.load %arg1[%c0_54, %c28, %c0_55] : memref<1x40x128xbf16, #tpu.memory_space<vmem>>, vector<1x12x128xbf16>
    %48 = vector.shape_cast %47 : vector<1x12x128xbf16> to vector<12x128xbf16>
    %c2_56 = arith.constant 2 : index
    %c2_57 = arith.constant 2 : index
    %c0_58 = arith.constant 0 : index
    %c0_59 = arith.constant 0 : index
    %49 = vector.load %arg2[%c2_56, %c2_57, %c0_58, %c0_59] : memref<3x3x128x128xbf16, #tpu.memory_space<vmem>>, vector<1x1x128x128xbf16>
    %50 = vector.shape_cast %49 : vector<1x1x128x128xbf16> to vector<128x128xbf16>
    %cst_60 = arith.constant dense<0.000000e+00> : vector<12x128xf32>
    %51 = tpu.matmul %48, %50, %cst_60 {dimension_numbers = #tpu.dot_dimension_numbers<[1], [0], [0], [1], [0, 0, 1, 1], [], []>} : vector<12x128xbf16>, vector<128x128xbf16>, vector<12x128xf32> -> vector<12x128xf32>
    %52 = arith.addf %46, %51 : vector<12x128xf32>
    %c0_61 = arith.constant 0 : index
    %c0_62 = arith.constant 0 : index
    %53 = vector.load %arg3[%c0_61, %c0_62] : memref<1x128xf32, #tpu.memory_space<vmem>>, vector<1x128xf32>
    %54 = vector.broadcast %53 : vector<1x128xf32> to vector<12x128xf32>
    %55 = arith.addf %52, %54 : vector<12x128xf32>
    %cst_63 = arith.constant 0.000000e+00 : f32
    %56 = vector.broadcast %cst_63 : f32 to vector<12x128xf32>
    %57 = arith.maximumf %55, %56 : vector<12x128xf32>
    %58 = arith.truncf %57 : vector<12x128xf32> to vector<12x128xbf16>
    %c0_64 = arith.constant 0 : index
    %c0_65 = arith.constant 0 : index
    %c0_66 = arith.constant 0 : index
    %59 = vector.load %arg6[%c0_64, %c0_65, %c0_66] : memref<1x12x128xbf16, #tpu.memory_space<vmem>>, vector<1x12x128xbf16>
    %60 = vector.shape_cast %59 : vector<1x12x128xbf16> to vector<12x128xbf16>
    %61 = vector.shape_cast %58 : vector<12x128xbf16> to vector<1x12x128xbf16>
    tpu.vector_store %arg6[%c0_64, %c0_65, %c0_66], %61 {strides = array<i32>} : memref<1x12x128xbf16, #tpu.memory_space<vmem>>, vector<1x12x128xbf16>,
    %c0_67 = arith.constant 0 : index
    %c14_68 = arith.constant 14 : index
    %c0_69 = arith.constant 0 : index
    %62 = vector.load %arg1[%c0_67, %c14_68, %c0_69] : memref<1x40x128xbf16, #tpu.memory_space<vmem>>, vector<1x12x128xbf16>
    %63 = vector.shape_cast %62 : vector<1x12x128xbf16> to vector<12x128xbf16>
    %c0_70 = arith.constant 0 : index
    %c0_71 = arith.constant 0 : index
    %c0_72 = arith.constant 0 : index
    %c0_73 = arith.constant 0 : index
    %64 = vector.load %arg4[%c0_70, %c0_71, %c0_72, %c0_73] : memref<1x1x128x128xbf16, #tpu.memory_space<vmem>>, vector<1x1x128x128xbf16>
    %65 = vector.shape_cast %64 : vector<1x1x128x128xbf16> to vector<128x128xbf16>
    %cst_74 = arith.constant dense<0.000000e+00> : vector<12x128xf32>
    %66 = tpu.matmul %63, %65, %cst_74 {dimension_numbers = #tpu.dot_dimension_numbers<[1], [0], [0], [1], [0, 0, 1, 1], [], []>} : vector<12x128xbf16>, vector<128x128xbf16>, vector<12x128xf32> -> vector<12x128xf32>
    %c0_75 = arith.constant 0 : index
    %c0_76 = arith.constant 0 : index
    %67 = vector.load %arg5[%c0_75, %c0_76] : memref<1x128xf32, #tpu.memory_space<vmem>>, vector<1x128xf32>
    %68 = vector.broadcast %67 : vector<1x128xf32> to vector<12x128xf32>
    %69 = arith.addf %66, %68 : vector<12x128xf32>
    %70 = arith.truncf %69 : vector<12x128xf32> to vector<12x128xbf16>
    %c0_77 = arith.constant 0 : index
    %c0_78 = arith.constant 0 : index
    %c0_79 = arith.constant 0 : index
    %71 = vector.load %arg7[%c0_77, %c0_78, %c0_79] : memref<1x12x128xbf16, #tpu.memory_space<vmem>>, vector<1x12x128xbf16>
    %72 = vector.shape_cast %71 : vector<1x12x128xbf16> to vector<12x128xbf16>
    %73 = vector.shape_cast %70 : vector<12x128xbf16> to vector<1x12x128xbf16>
    tpu.vector_store %arg7[%c0_77, %c0_78, %c0_79], %73 {strides = array<i32>} : memref<1x12x128xbf16, #tpu.memory_space<vmem>>, vector<1x12x128xbf16>,
    return
  }
  func.func @transform_0(%arg0: i32) -> (i32, i32, i32) {
    %c0_i32 = arith.constant 0 : i32
    %c0_i32_0 = arith.constant 0 : i32
    %c0_i32_1 = arith.constant 0 : i32
    return %arg0, %c0_i32, %c0_i32_0 : i32, i32, i32
  }
  func.func @transform_1(%arg0: i32) -> (i32, i32, i32, i32) {
    %c0_i32 = arith.constant 0 : i32
    %c0_i32_0 = arith.constant 0 : i32
    %c0_i32_1 = arith.constant 0 : i32
    %c0_i32_2 = arith.constant 0 : i32
    %c0_i32_3 = arith.constant 0 : i32
    return %c0_i32, %c0_i32_0, %c0_i32_1, %c0_i32_2 : i32, i32, i32, i32
  }
  func.func @transform_2(%arg0: i32) -> (i32, i32) {
    %c0_i32 = arith.constant 0 : i32
    %c0_i32_0 = arith.constant 0 : i32
    %c0_i32_1 = arith.constant 0 : i32
    return %c0_i32, %c0_i32_0 : i32, i32
  }
  func.func @transform_3(%arg0: i32) -> (i32, i32, i32, i32) {
    %c0_i32 = arith.constant 0 : i32
    %c0_i32_0 = arith.constant 0 : i32
    %c0_i32_1 = arith.constant 0 : i32
    %c0_i32_2 = arith.constant 0 : i32
    %c0_i32_3 = arith.constant 0 : i32
    return %c0_i32, %c0_i32_0, %c0_i32_1, %c0_i32_2 : i32, i32, i32, i32
  }
  func.func @transform_4(%arg0: i32) -> (i32, i32) {
    %c0_i32 = arith.constant 0 : i32
    %c0_i32_0 = arith.constant 0 : i32
    %c0_i32_1 = arith.constant 0 : i32
    return %c0_i32, %c0_i32_0 : i32, i32
  }
  func.func @transform_5(%arg0: i32) -> (i32, i32, i32) {
    %c0_i32 = arith.constant 0 : i32
    %c0_i32_0 = arith.constant 0 : i32
    %c0_i32_1 = arith.constant 0 : i32
    return %arg0, %c0_i32, %c0_i32_0 : i32, i32, i32
  }
  func.func @transform_6(%arg0: i32) -> (i32, i32, i32) {
    %c0_i32 = arith.constant 0 : i32
    %c0_i32_0 = arith.constant 0 : i32
    %c0_i32_1 = arith.constant 0 : i32
    return %arg0, %c0_i32, %c0_i32_0 : i32, i32, i32
  }
}

module attributes {stable_mosaic.version = 11 : i64} {
  func.func @kernel(%arg0: i32, %arg1: memref<1x40x128xbf16, #tpu.memory_space<vmem>>, %arg2: memref<3x3x128x128xbf16, #tpu.memory_space<vmem>>, %arg3: memref<1x128xf32, #tpu.memory_space<vmem>>, %arg4: memref<1x12x128xbf16, #tpu.memory_space<vmem>>, %arg5: memref<1x12x128xbf16, #tpu.memory_space<vmem>>) attributes {dimension_semantics = [#tpu.dimension_semantics<parallel>], iteration_bounds = array<i64: 2>, scalar_prefetch = 0 : i64, scratch_operands = 0 : i64, tpu.core_type = #tpu.core_type<tc>, window_params = [{transform_indices = @transform_0, window_bounds = array<i64: 1, 40, 128>}, {pipeline_mode = #tpu.pipeline_mode<synchronous>, transform_indices = @transform_1, window_bounds = array<i64: 3, 3, 128, 128>}, {pipeline_mode = #tpu.pipeline_mode<synchronous>, transform_indices = @transform_2, window_bounds = array<i64: 1, 128>}, {transform_indices = @transform_3, window_bounds = array<i64: 1, 12, 128>}, {transform_indices = @transform_4, window_bounds = array<i64: 1, 12, 128>}]} {
    %c0 = arith.constant 0 : index
    %c0_0 = arith.constant 0 : index
    %c0_1 = arith.constant 0 : index
    %0 = vector.load %arg1[%c0, %c0_0, %c0_1] : memref<1x40x128xbf16, #tpu.memory_space<vmem>>, vector<1x12x128xbf16>
    %1 = vector.shape_cast %0 : vector<1x12x128xbf16> to vector<12x128xbf16>
    %c0_2 = arith.constant 0 : index
    %c0_3 = arith.constant 0 : index
    %c0_4 = arith.constant 0 : index
    %c0_5 = arith.constant 0 : index
    %2 = vector.load %arg2[%c0_2, %c0_3, %c0_4, %c0_5] : memref<3x3x128x128xbf16, #tpu.memory_space<vmem>>, vector<1x1x128x128xbf16>
    %3 = vector.shape_cast %2 : vector<1x1x128x128xbf16> to vector<128x128xbf16>
    %cst = arith.constant dense<0.000000e+00> : vector<12x128xf32>
    %4 = tpu.matmul %1, %3, %cst {dimension_numbers = #tpu.dot_dimension_numbers<[1], [0], [0], [1], [0, 0, 1, 1], [], []>} : vector<12x128xbf16>, vector<128x128xbf16>, vector<12x128xf32> -> vector<12x128xf32>
    %c0_6 = arith.constant 0 : index
    %c2 = arith.constant 2 : index
    %c0_7 = arith.constant 0 : index
    %5 = vector.load %arg1[%c0_6, %c2, %c0_7] : memref<1x40x128xbf16, #tpu.memory_space<vmem>>, vector<1x12x128xbf16>
    %6 = vector.shape_cast %5 : vector<1x12x128xbf16> to vector<12x128xbf16>
    %c0_8 = arith.constant 0 : index
    %c1 = arith.constant 1 : index
    %c0_9 = arith.constant 0 : index
    %c0_10 = arith.constant 0 : index
    %7 = vector.load %arg2[%c0_8, %c1, %c0_9, %c0_10] : memref<3x3x128x128xbf16, #tpu.memory_space<vmem>>, vector<1x1x128x128xbf16>
    %8 = vector.shape_cast %7 : vector<1x1x128x128xbf16> to vector<128x128xbf16>
    %cst_11 = arith.constant dense<0.000000e+00> : vector<12x128xf32>
    %9 = tpu.matmul %6, %8, %cst_11 {dimension_numbers = #tpu.dot_dimension_numbers<[1], [0], [0], [1], [0, 0, 1, 1], [], []>} : vector<12x128xbf16>, vector<128x128xbf16>, vector<12x128xf32> -> vector<12x128xf32>
    %10 = arith.addf %4, %9 : vector<12x128xf32>
    %c0_12 = arith.constant 0 : index
    %c4 = arith.constant 4 : index
    %c0_13 = arith.constant 0 : index
    %11 = vector.load %arg1[%c0_12, %c4, %c0_13] : memref<1x40x128xbf16, #tpu.memory_space<vmem>>, vector<1x12x128xbf16>
    %12 = vector.shape_cast %11 : vector<1x12x128xbf16> to vector<12x128xbf16>
    %c0_14 = arith.constant 0 : index
    %c2_15 = arith.constant 2 : index
    %c0_16 = arith.constant 0 : index
    %c0_17 = arith.constant 0 : index
    %13 = vector.load %arg2[%c0_14, %c2_15, %c0_16, %c0_17] : memref<3x3x128x128xbf16, #tpu.memory_space<vmem>>, vector<1x1x128x128xbf16>
    %14 = vector.shape_cast %13 : vector<1x1x128x128xbf16> to vector<128x128xbf16>
    %cst_18 = arith.constant dense<0.000000e+00> : vector<12x128xf32>
    %15 = tpu.matmul %12, %14, %cst_18 {dimension_numbers = #tpu.dot_dimension_numbers<[1], [0], [0], [1], [0, 0, 1, 1], [], []>} : vector<12x128xbf16>, vector<128x128xbf16>, vector<12x128xf32> -> vector<12x128xf32>
    %16 = arith.addf %10, %15 : vector<12x128xf32>
    %c0_19 = arith.constant 0 : index
    %c12 = arith.constant 12 : index
    %c0_20 = arith.constant 0 : index
    %17 = vector.load %arg1[%c0_19, %c12, %c0_20] : memref<1x40x128xbf16, #tpu.memory_space<vmem>>, vector<1x12x128xbf16>
    %18 = vector.shape_cast %17 : vector<1x12x128xbf16> to vector<12x128xbf16>
    %c1_21 = arith.constant 1 : index
    %c0_22 = arith.constant 0 : index
    %c0_23 = arith.constant 0 : index
    %c0_24 = arith.constant 0 : index
    %19 = vector.load %arg2[%c1_21, %c0_22, %c0_23, %c0_24] : memref<3x3x128x128xbf16, #tpu.memory_space<vmem>>, vector<1x1x128x128xbf16>
    %20 = vector.shape_cast %19 : vector<1x1x128x128xbf16> to vector<128x128xbf16>
    %cst_25 = arith.constant dense<0.000000e+00> : vector<12x128xf32>
    %21 = tpu.matmul %18, %20, %cst_25 {dimension_numbers = #tpu.dot_dimension_numbers<[1], [0], [0], [1], [0, 0, 1, 1], [], []>} : vector<12x128xbf16>, vector<128x128xbf16>, vector<12x128xf32> -> vector<12x128xf32>
    %22 = arith.addf %16, %21 : vector<12x128xf32>
    %c0_26 = arith.constant 0 : index
    %c14 = arith.constant 14 : index
    %c0_27 = arith.constant 0 : index
    %23 = vector.load %arg1[%c0_26, %c14, %c0_27] : memref<1x40x128xbf16, #tpu.memory_space<vmem>>, vector<1x12x128xbf16>
    %24 = vector.shape_cast %23 : vector<1x12x128xbf16> to vector<12x128xbf16>
    %c1_28 = arith.constant 1 : index
    %c1_29 = arith.constant 1 : index
    %c0_30 = arith.constant 0 : index
    %c0_31 = arith.constant 0 : index
    %25 = vector.load %arg2[%c1_28, %c1_29, %c0_30, %c0_31] : memref<3x3x128x128xbf16, #tpu.memory_space<vmem>>, vector<1x1x128x128xbf16>
    %26 = vector.shape_cast %25 : vector<1x1x128x128xbf16> to vector<128x128xbf16>
    %cst_32 = arith.constant dense<0.000000e+00> : vector<12x128xf32>
    %27 = tpu.matmul %24, %26, %cst_32 {dimension_numbers = #tpu.dot_dimension_numbers<[1], [0], [0], [1], [0, 0, 1, 1], [], []>} : vector<12x128xbf16>, vector<128x128xbf16>, vector<12x128xf32> -> vector<12x128xf32>
    %28 = arith.addf %22, %27 : vector<12x128xf32>
    %c0_33 = arith.constant 0 : index
    %c16 = arith.constant 16 : index
    %c0_34 = arith.constant 0 : index
    %29 = vector.load %arg1[%c0_33, %c16, %c0_34] : memref<1x40x128xbf16, #tpu.memory_space<vmem>>, vector<1x12x128xbf16>
    %30 = vector.shape_cast %29 : vector<1x12x128xbf16> to vector<12x128xbf16>
    %c1_35 = arith.constant 1 : index
    %c2_36 = arith.constant 2 : index
    %c0_37 = arith.constant 0 : index
    %c0_38 = arith.constant 0 : index
    %31 = vector.load %arg2[%c1_35, %c2_36, %c0_37, %c0_38] : memref<3x3x128x128xbf16, #tpu.memory_space<vmem>>, vector<1x1x128x128xbf16>
    %32 = vector.shape_cast %31 : vector<1x1x128x128xbf16> to vector<128x128xbf16>
    %cst_39 = arith.constant dense<0.000000e+00> : vector<12x128xf32>
    %33 = tpu.matmul %30, %32, %cst_39 {dimension_numbers = #tpu.dot_dimension_numbers<[1], [0], [0], [1], [0, 0, 1, 1], [], []>} : vector<12x128xbf16>, vector<128x128xbf16>, vector<12x128xf32> -> vector<12x128xf32>
    %34 = arith.addf %28, %33 : vector<12x128xf32>
    %c0_40 = arith.constant 0 : index
    %c24 = arith.constant 24 : index
    %c0_41 = arith.constant 0 : index
    %35 = vector.load %arg1[%c0_40, %c24, %c0_41] : memref<1x40x128xbf16, #tpu.memory_space<vmem>>, vector<1x12x128xbf16>
    %36 = vector.shape_cast %35 : vector<1x12x128xbf16> to vector<12x128xbf16>
    %c2_42 = arith.constant 2 : index
    %c0_43 = arith.constant 0 : index
    %c0_44 = arith.constant 0 : index
    %c0_45 = arith.constant 0 : index
    %37 = vector.load %arg2[%c2_42, %c0_43, %c0_44, %c0_45] : memref<3x3x128x128xbf16, #tpu.memory_space<vmem>>, vector<1x1x128x128xbf16>
    %38 = vector.shape_cast %37 : vector<1x1x128x128xbf16> to vector<128x128xbf16>
    %cst_46 = arith.constant dense<0.000000e+00> : vector<12x128xf32>
    %39 = tpu.matmul %36, %38, %cst_46 {dimension_numbers = #tpu.dot_dimension_numbers<[1], [0], [0], [1], [0, 0, 1, 1], [], []>} : vector<12x128xbf16>, vector<128x128xbf16>, vector<12x128xf32> -> vector<12x128xf32>
    %40 = arith.addf %34, %39 : vector<12x128xf32>
    %c0_47 = arith.constant 0 : index
    %c26 = arith.constant 26 : index
    %c0_48 = arith.constant 0 : index
    %41 = vector.load %arg1[%c0_47, %c26, %c0_48] : memref<1x40x128xbf16, #tpu.memory_space<vmem>>, vector<1x12x128xbf16>
    %42 = vector.shape_cast %41 : vector<1x12x128xbf16> to vector<12x128xbf16>
    %c2_49 = arith.constant 2 : index
    %c1_50 = arith.constant 1 : index
    %c0_51 = arith.constant 0 : index
    %c0_52 = arith.constant 0 : index
    %43 = vector.load %arg2[%c2_49, %c1_50, %c0_51, %c0_52] : memref<3x3x128x128xbf16, #tpu.memory_space<vmem>>, vector<1x1x128x128xbf16>
    %44 = vector.shape_cast %43 : vector<1x1x128x128xbf16> to vector<128x128xbf16>
    %cst_53 = arith.constant dense<0.000000e+00> : vector<12x128xf32>
    %45 = tpu.matmul %42, %44, %cst_53 {dimension_numbers = #tpu.dot_dimension_numbers<[1], [0], [0], [1], [0, 0, 1, 1], [], []>} : vector<12x128xbf16>, vector<128x128xbf16>, vector<12x128xf32> -> vector<12x128xf32>
    %46 = arith.addf %40, %45 : vector<12x128xf32>
    %c0_54 = arith.constant 0 : index
    %c28 = arith.constant 28 : index
    %c0_55 = arith.constant 0 : index
    %47 = vector.load %arg1[%c0_54, %c28, %c0_55] : memref<1x40x128xbf16, #tpu.memory_space<vmem>>, vector<1x12x128xbf16>
    %48 = vector.shape_cast %47 : vector<1x12x128xbf16> to vector<12x128xbf16>
    %c2_56 = arith.constant 2 : index
    %c2_57 = arith.constant 2 : index
    %c0_58 = arith.constant 0 : index
    %c0_59 = arith.constant 0 : index
    %49 = vector.load %arg2[%c2_56, %c2_57, %c0_58, %c0_59] : memref<3x3x128x128xbf16, #tpu.memory_space<vmem>>, vector<1x1x128x128xbf16>
    %50 = vector.shape_cast %49 : vector<1x1x128x128xbf16> to vector<128x128xbf16>
    %cst_60 = arith.constant dense<0.000000e+00> : vector<12x128xf32>
    %51 = tpu.matmul %48, %50, %cst_60 {dimension_numbers = #tpu.dot_dimension_numbers<[1], [0], [0], [1], [0, 0, 1, 1], [], []>} : vector<12x128xbf16>, vector<128x128xbf16>, vector<12x128xf32> -> vector<12x128xf32>
    %52 = arith.addf %46, %51 : vector<12x128xf32>
    %c0_61 = arith.constant 0 : index
    %c0_62 = arith.constant 0 : index
    %53 = vector.load %arg3[%c0_61, %c0_62] : memref<1x128xf32, #tpu.memory_space<vmem>>, vector<1x128xf32>
    %54 = vector.broadcast %53 : vector<1x128xf32> to vector<12x128xf32>
    %55 = arith.addf %52, %54 : vector<12x128xf32>
    %c0_63 = arith.constant 0 : index
    %c0_64 = arith.constant 0 : index
    %c0_65 = arith.constant 0 : index
    %56 = vector.load %arg4[%c0_63, %c0_64, %c0_65] : memref<1x12x128xbf16, #tpu.memory_space<vmem>>, vector<1x12x128xbf16>
    %57 = vector.shape_cast %56 : vector<1x12x128xbf16> to vector<12x128xbf16>
    %58 = arith.extf %57 : vector<12x128xbf16> to vector<12x128xf32>
    %59 = arith.addf %55, %58 : vector<12x128xf32>
    %cst_66 = arith.constant 0.000000e+00 : f32
    %60 = vector.broadcast %cst_66 : f32 to vector<12x128xf32>
    %61 = arith.maximumf %59, %60 : vector<12x128xf32>
    %62 = arith.truncf %61 : vector<12x128xf32> to vector<12x128xbf16>
    %c0_67 = arith.constant 0 : index
    %c0_68 = arith.constant 0 : index
    %c0_69 = arith.constant 0 : index
    %63 = vector.load %arg5[%c0_67, %c0_68, %c0_69] : memref<1x12x128xbf16, #tpu.memory_space<vmem>>, vector<1x12x128xbf16>
    %64 = vector.shape_cast %63 : vector<1x12x128xbf16> to vector<12x128xbf16>
    %65 = vector.shape_cast %62 : vector<12x128xbf16> to vector<1x12x128xbf16>
    tpu.vector_store %arg5[%c0_67, %c0_68, %c0_69], %65 {strides = array<i32>} : memref<1x12x128xbf16, #tpu.memory_space<vmem>>, vector<1x12x128xbf16>,
    return
  }
  func.func @transform_0(%arg0: i32) -> (i32, i32, i32) {
    %c0_i32 = arith.constant 0 : i32
    %c0_i32_0 = arith.constant 0 : i32
    %c0_i32_1 = arith.constant 0 : i32
    return %arg0, %c0_i32, %c0_i32_0 : i32, i32, i32
  }
  func.func @transform_1(%arg0: i32) -> (i32, i32, i32, i32) {
    %c0_i32 = arith.constant 0 : i32
    %c0_i32_0 = arith.constant 0 : i32
    %c0_i32_1 = arith.constant 0 : i32
    %c0_i32_2 = arith.constant 0 : i32
    %c0_i32_3 = arith.constant 0 : i32
    return %c0_i32, %c0_i32_0, %c0_i32_1, %c0_i32_2 : i32, i32, i32, i32
  }
  func.func @transform_2(%arg0: i32) -> (i32, i32) {
    %c0_i32 = arith.constant 0 : i32
    %c0_i32_0 = arith.constant 0 : i32
    %c0_i32_1 = arith.constant 0 : i32
    return %c0_i32, %c0_i32_0 : i32, i32
  }
  func.func @transform_3(%arg0: i32) -> (i32, i32, i32) {
    %c0_i32 = arith.constant 0 : i32
    %c0_i32_0 = arith.constant 0 : i32
    %c0_i32_1 = arith.constant 0 : i32
    return %arg0, %c0_i32, %c0_i32_0 : i32, i32, i32
  }
  func.func @transform_4(%arg0: i32) -> (i32, i32, i32) {
    %c0_i32 = arith.constant 0 : i32
    %c0_i32_0 = arith.constant 0 : i32
    %c0_i32_1 = arith.constant 0 : i32
    return %arg0, %c0_i32, %c0_i32_0 : i32, i32, i32
  }
}

module attributes {stable_mosaic.version = 11 : i64} {
  func.func @kernel(%arg0: i32, %arg1: memref<1x108x128xbf16, #tpu.memory_space<vmem>>, %arg2: memref<3x3x128x128xbf16, #tpu.memory_space<vmem>>, %arg3: memref<1x128xf32, #tpu.memory_space<vmem>>, %arg4: memref<1x20x128xbf16, #tpu.memory_space<vmem>>, %arg5: memref<1x20x128xbf16, #tpu.memory_space<vmem>>) attributes {dimension_semantics = [#tpu.dimension_semantics<parallel>], iteration_bounds = array<i64: 2>, scalar_prefetch = 0 : i64, scratch_operands = 0 : i64, tpu.core_type = #tpu.core_type<tc>, window_params = [{transform_indices = @transform_0, window_bounds = array<i64: 1, 108, 128>}, {pipeline_mode = #tpu.pipeline_mode<synchronous>, transform_indices = @transform_1, window_bounds = array<i64: 3, 3, 128, 128>}, {pipeline_mode = #tpu.pipeline_mode<synchronous>, transform_indices = @transform_2, window_bounds = array<i64: 1, 128>}, {transform_indices = @transform_3, window_bounds = array<i64: 1, 20, 128>}, {transform_indices = @transform_4, window_bounds = array<i64: 1, 20, 128>}]} {
    %c0 = arith.constant 0 : index
    %c0_0 = arith.constant 0 : index
    %c0_1 = arith.constant 0 : index
    %0 = vector.load %arg1[%c0, %c0_0, %c0_1] : memref<1x108x128xbf16, #tpu.memory_space<vmem>>, vector<1x20x128xbf16>
    %1 = vector.shape_cast %0 : vector<1x20x128xbf16> to vector<20x128xbf16>
    %c0_2 = arith.constant 0 : index
    %c0_3 = arith.constant 0 : index
    %c0_4 = arith.constant 0 : index
    %c0_5 = arith.constant 0 : index
    %2 = vector.load %arg2[%c0_2, %c0_3, %c0_4, %c0_5] : memref<3x3x128x128xbf16, #tpu.memory_space<vmem>>, vector<1x1x128x128xbf16>
    %3 = vector.shape_cast %2 : vector<1x1x128x128xbf16> to vector<128x128xbf16>
    %cst = arith.constant dense<0.000000e+00> : vector<20x128xf32>
    %4 = tpu.matmul %1, %3, %cst {dimension_numbers = #tpu.dot_dimension_numbers<[1], [0], [0], [1], [0, 0, 1, 1], [], []>} : vector<20x128xbf16>, vector<128x128xbf16>, vector<20x128xf32> -> vector<20x128xf32>
    %c0_6 = arith.constant 0 : index
    %c4 = arith.constant 4 : index
    %c0_7 = arith.constant 0 : index
    %5 = vector.load %arg1[%c0_6, %c4, %c0_7] : memref<1x108x128xbf16, #tpu.memory_space<vmem>>, vector<1x20x128xbf16>
    %6 = vector.shape_cast %5 : vector<1x20x128xbf16> to vector<20x128xbf16>
    %c0_8 = arith.constant 0 : index
    %c1 = arith.constant 1 : index
    %c0_9 = arith.constant 0 : index
    %c0_10 = arith.constant 0 : index
    %7 = vector.load %arg2[%c0_8, %c1, %c0_9, %c0_10] : memref<3x3x128x128xbf16, #tpu.memory_space<vmem>>, vector<1x1x128x128xbf16>
    %8 = vector.shape_cast %7 : vector<1x1x128x128xbf16> to vector<128x128xbf16>
    %cst_11 = arith.constant dense<0.000000e+00> : vector<20x128xf32>
    %9 = tpu.matmul %6, %8, %cst_11 {dimension_numbers = #tpu.dot_dimension_numbers<[1], [0], [0], [1], [0, 0, 1, 1], [], []>} : vector<20x128xbf16>, vector<128x128xbf16>, vector<20x128xf32> -> vector<20x128xf32>
    %10 = arith.addf %4, %9 : vector<20x128xf32>
    %c0_12 = arith.constant 0 : index
    %c8 = arith.constant 8 : index
    %c0_13 = arith.constant 0 : index
    %11 = vector.load %arg1[%c0_12, %c8, %c0_13] : memref<1x108x128xbf16, #tpu.memory_space<vmem>>, vector<1x20x128xbf16>
    %12 = vector.shape_cast %11 : vector<1x20x128xbf16> to vector<20x128xbf16>
    %c0_14 = arith.constant 0 : index
    %c2 = arith.constant 2 : index
    %c0_15 = arith.constant 0 : index
    %c0_16 = arith.constant 0 : index
    %13 = vector.load %arg2[%c0_14, %c2, %c0_15, %c0_16] : memref<3x3x128x128xbf16, #tpu.memory_space<vmem>>, vector<1x1x128x128xbf16>
    %14 = vector.shape_cast %13 : vector<1x1x128x128xbf16> to vector<128x128xbf16>
    %cst_17 = arith.constant dense<0.000000e+00> : vector<20x128xf32>
    %15 = tpu.matmul %12, %14, %cst_17 {dimension_numbers = #tpu.dot_dimension_numbers<[1], [0], [0], [1], [0, 0, 1, 1], [], []>} : vector<20x128xbf16>, vector<128x128xbf16>, vector<20x128xf32> -> vector<20x128xf32>
    %16 = arith.addf %10, %15 : vector<20x128xf32>
    %c0_18 = arith.constant 0 : index
    %c40 = arith.constant 40 : index
    %c0_19 = arith.constant 0 : index
    %17 = vector.load %arg1[%c0_18, %c40, %c0_19] : memref<1x108x128xbf16, #tpu.memory_space<vmem>>, vector<1x20x128xbf16>
    %18 = vector.shape_cast %17 : vector<1x20x128xbf16> to vector<20x128xbf16>
    %c1_20 = arith.constant 1 : index
    %c0_21 = arith.constant 0 : index
    %c0_22 = arith.constant 0 : index
    %c0_23 = arith.constant 0 : index
    %19 = vector.load %arg2[%c1_20, %c0_21, %c0_22, %c0_23] : memref<3x3x128x128xbf16, #tpu.memory_space<vmem>>, vector<1x1x128x128xbf16>
    %20 = vector.shape_cast %19 : vector<1x1x128x128xbf16> to vector<128x128xbf16>
    %cst_24 = arith.constant dense<0.000000e+00> : vector<20x128xf32>
    %21 = tpu.matmul %18, %20, %cst_24 {dimension_numbers = #tpu.dot_dimension_numbers<[1], [0], [0], [1], [0, 0, 1, 1], [], []>} : vector<20x128xbf16>, vector<128x128xbf16>, vector<20x128xf32> -> vector<20x128xf32>
    %22 = arith.addf %16, %21 : vector<20x128xf32>
    %c0_25 = arith.constant 0 : index
    %c44 = arith.constant 44 : index
    %c0_26 = arith.constant 0 : index
    %23 = vector.load %arg1[%c0_25, %c44, %c0_26] : memref<1x108x128xbf16, #tpu.memory_space<vmem>>, vector<1x20x128xbf16>
    %24 = vector.shape_cast %23 : vector<1x20x128xbf16> to vector<20x128xbf16>
    %c1_27 = arith.constant 1 : index
    %c1_28 = arith.constant 1 : index
    %c0_29 = arith.constant 0 : index
    %c0_30 = arith.constant 0 : index
    %25 = vector.load %arg2[%c1_27, %c1_28, %c0_29, %c0_30] : memref<3x3x128x128xbf16, #tpu.memory_space<vmem>>, vector<1x1x128x128xbf16>
    %26 = vector.shape_cast %25 : vector<1x1x128x128xbf16> to vector<128x128xbf16>
    %cst_31 = arith.constant dense<0.000000e+00> : vector<20x128xf32>
    %27 = tpu.matmul %24, %26, %cst_31 {dimension_numbers = #tpu.dot_dimension_numbers<[1], [0], [0], [1], [0, 0, 1, 1], [], []>} : vector<20x128xbf16>, vector<128x128xbf16>, vector<20x128xf32> -> vector<20x128xf32>
    %28 = arith.addf %22, %27 : vector<20x128xf32>
    %c0_32 = arith.constant 0 : index
    %c48 = arith.constant 48 : index
    %c0_33 = arith.constant 0 : index
    %29 = vector.load %arg1[%c0_32, %c48, %c0_33] : memref<1x108x128xbf16, #tpu.memory_space<vmem>>, vector<1x20x128xbf16>
    %30 = vector.shape_cast %29 : vector<1x20x128xbf16> to vector<20x128xbf16>
    %c1_34 = arith.constant 1 : index
    %c2_35 = arith.constant 2 : index
    %c0_36 = arith.constant 0 : index
    %c0_37 = arith.constant 0 : index
    %31 = vector.load %arg2[%c1_34, %c2_35, %c0_36, %c0_37] : memref<3x3x128x128xbf16, #tpu.memory_space<vmem>>, vector<1x1x128x128xbf16>
    %32 = vector.shape_cast %31 : vector<1x1x128x128xbf16> to vector<128x128xbf16>
    %cst_38 = arith.constant dense<0.000000e+00> : vector<20x128xf32>
    %33 = tpu.matmul %30, %32, %cst_38 {dimension_numbers = #tpu.dot_dimension_numbers<[1], [0], [0], [1], [0, 0, 1, 1], [], []>} : vector<20x128xbf16>, vector<128x128xbf16>, vector<20x128xf32> -> vector<20x128xf32>
    %34 = arith.addf %28, %33 : vector<20x128xf32>
    %c0_39 = arith.constant 0 : index
    %c80 = arith.constant 80 : index
    %c0_40 = arith.constant 0 : index
    %35 = vector.load %arg1[%c0_39, %c80, %c0_40] : memref<1x108x128xbf16, #tpu.memory_space<vmem>>, vector<1x20x128xbf16>
    %36 = vector.shape_cast %35 : vector<1x20x128xbf16> to vector<20x128xbf16>
    %c2_41 = arith.constant 2 : index
    %c0_42 = arith.constant 0 : index
    %c0_43 = arith.constant 0 : index
    %c0_44 = arith.constant 0 : index
    %37 = vector.load %arg2[%c2_41, %c0_42, %c0_43, %c0_44] : memref<3x3x128x128xbf16, #tpu.memory_space<vmem>>, vector<1x1x128x128xbf16>
    %38 = vector.shape_cast %37 : vector<1x1x128x128xbf16> to vector<128x128xbf16>
    %cst_45 = arith.constant dense<0.000000e+00> : vector<20x128xf32>
    %39 = tpu.matmul %36, %38, %cst_45 {dimension_numbers = #tpu.dot_dimension_numbers<[1], [0], [0], [1], [0, 0, 1, 1], [], []>} : vector<20x128xbf16>, vector<128x128xbf16>, vector<20x128xf32> -> vector<20x128xf32>
    %40 = arith.addf %34, %39 : vector<20x128xf32>
    %c0_46 = arith.constant 0 : index
    %c84 = arith.constant 84 : index
    %c0_47 = arith.constant 0 : index
    %41 = vector.load %arg1[%c0_46, %c84, %c0_47] : memref<1x108x128xbf16, #tpu.memory_space<vmem>>, vector<1x20x128xbf16>
    %42 = vector.shape_cast %41 : vector<1x20x128xbf16> to vector<20x128xbf16>
    %c2_48 = arith.constant 2 : index
    %c1_49 = arith.constant 1 : index
    %c0_50 = arith.constant 0 : index
    %c0_51 = arith.constant 0 : index
    %43 = vector.load %arg2[%c2_48, %c1_49, %c0_50, %c0_51] : memref<3x3x128x128xbf16, #tpu.memory_space<vmem>>, vector<1x1x128x128xbf16>
    %44 = vector.shape_cast %43 : vector<1x1x128x128xbf16> to vector<128x128xbf16>
    %cst_52 = arith.constant dense<0.000000e+00> : vector<20x128xf32>
    %45 = tpu.matmul %42, %44, %cst_52 {dimension_numbers = #tpu.dot_dimension_numbers<[1], [0], [0], [1], [0, 0, 1, 1], [], []>} : vector<20x128xbf16>, vector<128x128xbf16>, vector<20x128xf32> -> vector<20x128xf32>
    %46 = arith.addf %40, %45 : vector<20x128xf32>
    %c0_53 = arith.constant 0 : index
    %c88 = arith.constant 88 : index
    %c0_54 = arith.constant 0 : index
    %47 = vector.load %arg1[%c0_53, %c88, %c0_54] : memref<1x108x128xbf16, #tpu.memory_space<vmem>>, vector<1x20x128xbf16>
    %48 = vector.shape_cast %47 : vector<1x20x128xbf16> to vector<20x128xbf16>
    %c2_55 = arith.constant 2 : index
    %c2_56 = arith.constant 2 : index
    %c0_57 = arith.constant 0 : index
    %c0_58 = arith.constant 0 : index
    %49 = vector.load %arg2[%c2_55, %c2_56, %c0_57, %c0_58] : memref<3x3x128x128xbf16, #tpu.memory_space<vmem>>, vector<1x1x128x128xbf16>
    %50 = vector.shape_cast %49 : vector<1x1x128x128xbf16> to vector<128x128xbf16>
    %cst_59 = arith.constant dense<0.000000e+00> : vector<20x128xf32>
    %51 = tpu.matmul %48, %50, %cst_59 {dimension_numbers = #tpu.dot_dimension_numbers<[1], [0], [0], [1], [0, 0, 1, 1], [], []>} : vector<20x128xbf16>, vector<128x128xbf16>, vector<20x128xf32> -> vector<20x128xf32>
    %52 = arith.addf %46, %51 : vector<20x128xf32>
    %c0_60 = arith.constant 0 : index
    %c0_61 = arith.constant 0 : index
    %53 = vector.load %arg3[%c0_60, %c0_61] : memref<1x128xf32, #tpu.memory_space<vmem>>, vector<1x128xf32>
    %54 = vector.broadcast %53 : vector<1x128xf32> to vector<20x128xf32>
    %55 = arith.addf %52, %54 : vector<20x128xf32>
    %c0_62 = arith.constant 0 : index
    %c0_63 = arith.constant 0 : index
    %c0_64 = arith.constant 0 : index
    %56 = vector.load %arg4[%c0_62, %c0_63, %c0_64] : memref<1x20x128xbf16, #tpu.memory_space<vmem>>, vector<1x20x128xbf16>
    %57 = vector.shape_cast %56 : vector<1x20x128xbf16> to vector<20x128xbf16>
    %58 = arith.extf %57 : vector<20x128xbf16> to vector<20x128xf32>
    %59 = arith.addf %55, %58 : vector<20x128xf32>
    %cst_65 = arith.constant 0.000000e+00 : f32
    %60 = vector.broadcast %cst_65 : f32 to vector<20x128xf32>
    %61 = arith.maximumf %59, %60 : vector<20x128xf32>
    %62 = arith.truncf %61 : vector<20x128xf32> to vector<20x128xbf16>
    %c0_66 = arith.constant 0 : index
    %c0_67 = arith.constant 0 : index
    %c0_68 = arith.constant 0 : index
    %63 = vector.load %arg5[%c0_66, %c0_67, %c0_68] : memref<1x20x128xbf16, #tpu.memory_space<vmem>>, vector<1x20x128xbf16>
    %64 = vector.shape_cast %63 : vector<1x20x128xbf16> to vector<20x128xbf16>
    %65 = vector.shape_cast %62 : vector<20x128xbf16> to vector<1x20x128xbf16>
    tpu.vector_store %arg5[%c0_66, %c0_67, %c0_68], %65 {strides = array<i32>} : memref<1x20x128xbf16, #tpu.memory_space<vmem>>, vector<1x20x128xbf16>,
    return
  }
  func.func @transform_0(%arg0: i32) -> (i32, i32, i32) {
    %c0_i32 = arith.constant 0 : i32
    %c0_i32_0 = arith.constant 0 : i32
    %c0_i32_1 = arith.constant 0 : i32
    return %arg0, %c0_i32, %c0_i32_0 : i32, i32, i32
  }
  func.func @transform_1(%arg0: i32) -> (i32, i32, i32, i32) {
    %c0_i32 = arith.constant 0 : i32
    %c0_i32_0 = arith.constant 0 : i32
    %c0_i32_1 = arith.constant 0 : i32
    %c0_i32_2 = arith.constant 0 : i32
    %c0_i32_3 = arith.constant 0 : i32
    return %c0_i32, %c0_i32_0, %c0_i32_1, %c0_i32_2 : i32, i32, i32, i32
  }
  func.func @transform_2(%arg0: i32) -> (i32, i32) {
    %c0_i32 = arith.constant 0 : i32
    %c0_i32_0 = arith.constant 0 : i32
    %c0_i32_1 = arith.constant 0 : i32
    return %c0_i32, %c0_i32_0 : i32, i32
  }
  func.func @transform_3(%arg0: i32) -> (i32, i32, i32) {
    %c0_i32 = arith.constant 0 : i32
    %c0_i32_0 = arith.constant 0 : i32
    %c0_i32_1 = arith.constant 0 : i32
    return %arg0, %c0_i32, %c0_i32_0 : i32, i32, i32
  }
  func.func @transform_4(%arg0: i32) -> (i32, i32, i32) {
    %c0_i32 = arith.constant 0 : i32
    %c0_i32_0 = arith.constant 0 : i32
    %c0_i32_1 = arith.constant 0 : i32
    return %arg0, %c0_i32, %c0_i32_0 : i32, i32, i32
  }
}

</mosaic_0001>

<bundles_post_ra>
// kernel: resnet_encoder_forward.13
= control target key start
LH: loop header
LB: loop body
LE: loop exit
PB: predicated region body
PF: predicated region fallthrough
CT: control target
= control target key end

     0   :  { %s1567_s12 = smov 0   ;;  %s1922_s0 = inlined_call_operand.vmem [shape: bf16[2,102,32], index: 0, kind: input, shape index: {}]   ;;  %s1923_s1 = inlined_call_operand.vmem [shape: bf16[3,3,32,32], index: 1, kind: input, shape index: {}]   ;;  %s1924_s2 = inlined_call_operand.vmem [shape: f32[1,32], index: 2, kind: input, shape index: {}]   ;;  %s1925_s3 = inlined_call_operand.vmem [shape: bf16[2,80,32], index: 3, kind: output, shape index: {}]  }
   0x1 LB: > { %s1279_s13 = sadd.s32 4294967295, %s1545_s12   ;;  %p1283_p0 = scmp.ge.s32.totalorder %s1545_s12, 1  ;;  %s1545_s12 = sphi %s1567_s12, %s13_s12  }
   0x2   : > { %p137_p1 = scmp.lt.s32.totalorder %s1545_s12, 3 }
   0x4   : > { %p138_p2 = pnand %p1283_p0, %p137_p1 }
   0x5   : > { %p161_p3 = scmp.lt.s32.totalorder (!%p138_p2), %s1279_s13, 1 }
   0x6   : > { %141 = sbr.rel (%p138_p2) target bundleno = 352 (0x160), region = 32 }
   0xb   : > { %v1492_v0 = vld [vmem:[%s1923_s1 + $0x18] sm:$0xff]  ;;  %v1491_v1 = vld [vmem:[%s1923_s1 + $0x10] sm:$0xff]  ;;  %s1927_s13 = smov (!%p161_p3, %s1279_s13), 1  ;;  %v1494_v2 = vld [vmem:[%s1923_s1 + $0x28] sm:$0xff]  ;;  %vm220_vm0 = vsmask.f32 7424 }
   0xc   : > { %1522 = vmatpush.bf16.msra.mxu1 %v1492_v0  ;;  %1523 = vmatpush.bf16.msra.mxu2 %v1492_v0  ;;  %s1528_s20 = smul.u32 52, %s1927_s13  ;;  %v1490_v3 = vld [vmem:[%s1923_s1 + $0x8] sm:$0xff]  ;;  %v1500_v4 = vld [vmem:[%s1923_s1 + $0x38] sm:$0xff]  ;;  %v1489_v6 = vld [vmem:[%s1923_s1] sm:$0xff]  ;;  %vm277_vm1 = vcmask 261120   ;;  %vm392_vm2 = vcmask 1046528  }
   0xd   : > { %1524 = vmatpush.bf16.msra.mxu3 %v1492_v0  ;;  %299 = vmatpush.bf16.msra.mxu0 %v1492_v0  ;;  %v1502_v5 = vld [vmem:[%s1923_s1 + $0x48] sm:$0xff]  ;;  %v1493_v7 = vld [vmem:[%s1923_s1 + $0x20] sm:$0xff]  ;;  %v1499_v13 = vld [vmem:[%s1923_s1 + $0x30] sm:$0xff]  ;;  %vm610_vm3 = vsmask.f32 6400  ;;  %vm744_vm4 = vcmask 1045504  }
   0xe   : > { %s1599_s29 = scalar_lea.vmem %s1922_s0, %s1528_s20  ;;  %v1501_v19 = vld [vmem:[%s1923_s1 + $0x40] sm:$0xff]  ;;  %v1510_v44 = vld [vmem:[%s1923_s1 + $0x68] sm:$0xff]  ;;  %v1512_v45 = vld [vmem:[%s1923_s1 + $0x78] sm:$0xff]  ;;  %vm962_vm5 = vsmask.f32 5376  ;;  %vm1096_vm6 = vcmask 1044480  }
   0xf   : > { %v1608_v8 = vld [vmem:[%s1599_s29 + $0x8] sm:$0xff]  ;;  %v1611_v9 = vld [vmem:[%s1599_s29 + $0x10] sm:$0xff]  ;;  %v1614_v10 = vld [vmem:[%s1599_s29 + $0x18] sm:$0xff]  ;;  %s1529_s4 = smul.u32 40, %s1927_s13  ;;  %vm1213_vm7 = vcmask 257024  }
  0x10   : > { %1525 = vmatpush.bf16.msra.mxu1 %v1491_v1  ;;  %1526 = vmatpush.bf16.msra.mxu2 %v1491_v1  ;;  %v1617_v11 = vld [vmem:[%s1599_s29 + $0x20] sm:$0xff]  ;;  %v186_v12 = vld [vmem:[%s1599_s29 + $0x28] sm:$0x1]  ;;  %v229_v14 = vshll.u32 %v1608_v8, 16  ;;  %v233_v15 = vshrl.u32 %v1608_v8, 16  ;;  %v237_v16 = vshll.u32 %v1611_v9, 16 }
  0x11   : > { %1527 = vmatpush.bf16.msra.mxu3 %v1491_v1  ;;  %300 = vmatpush.bf16.msra.mxu0 %v1491_v1  ;;  %v241_v17 = vshrl.u32 %v1611_v9, 16  ;;  %v1628_v18 = vld [vmem:[%s1599_s29] sm:$0xff]   ;;  %v245_v20 = vshll.u32 %v1614_v10, 16  ;;  %v213_v21 = vunpack.c.l.b16 %v186_v12  ;;  %v253_v22 = vshll.u32 %v1617_v11, 16  ;;  %v1639_v28 = vld [vmem:[%s1599_s29 + $0x8] sm:$0xff]   ;;  %v1504_v46 = vld [vmem:[%s1923_s1 + $0x58] sm:$0xff]  ;;  %s1880_s7 = scalar_lea.vmem %s1925_s3, %s1529_s4 }
  0x12   : > { %v257_v23 = vshrl.u32 %v1617_v11, 16  ;;  %v475_v24 = vld [vmem:[%s1599_s29 + $0x4] sm:$0xe]  ;;  %v231_v25 = vrot.slane %v229_v14, 1  ;;  %v239_v26 = vrot.slane %v237_v16, 1  ;;  %v222_v27 = vshrl.u32 %v1628_v18, 16 }
  0x13   : > { %v247_v29 = vrot.slane %v245_v20, 1  ;;  %v1641_v30 = vpack.c.b16 %v213_v21, %v213_v21  ;;  %v255_v31 = vrot.slane %v253_v22, 1  ;;  %v224_v32 = vshll.u32 %v1628_v18, 16  ;;  %v1662_v49 = vld [vmem:[%s1599_s29 + $0xc] sm:$0xff] }
  0x14   : > { %437 = vmatpush.bf16.msrb.mxu2 %v1494_v2  ;;  %355 = vmatpush.bf16.msrb.mxu1 %v1490_v3  ;;  %v235_v33 = vor.u32 %v233_v15, %v231_v25  ;;  %v243_v34 = vor.u32 %v241_v17, %v239_v26  ;;  %v502_v35 = vunpack.c.l.b16 %v475_v24  ;;  %v503_v39 = vunpack.c.l.b16 %v1639_v28  ;;  %v1514_v51 = vld [vmem:[%s1923_s1 + $0x88] sm:$0xff]  ;;  %v1509_v24 = vld [vmem:[%s1923_s1 + $0x60] sm:$0xff] }
  0x15   : > { %563 = vmatpush.bf16.msrb.mxu3 %v1500_v4  ;;  %697 = vmatpush.bf16.msrb.mxu0 %v1502_v5  ;;  %v259_v36 = vor.u32 %v257_v23, %v255_v31  ;;  %v261_v37 = vshll.u32 %v1641_v30, 16  ;;  %v226_v38 = vrot.slane %v224_v32, 1  ;;  %v620_v54 = vshrl.u32 %v1662_v49, 16  ;;  %v1519_v5 = vld [vmem:[%s1599_s29] sm:$0xf0] }
  0x16   : > { %v240_v40 = vsel %vm220_vm0, %v235_v33, %v239_v26  ;;  %v248_v41 = vsel %vm220_vm0, %v243_v34, %v247_v29  ;;  %v513_v50 = vpack.c.b16 %v503_v39, %v502_v35  ;;  %v623_v55 = vshll.u32 %v1662_v49, 16  ;;  %v1503_v26 = vld [vmem:[%s1923_s1 + $0x50] sm:$0xff] }
  0x17   : > { %1315 = vmatmul.msk.bf16.vlgmr.msra.gmra.mxu1 %vm277_vm1, %v240_v40  ;;  %1316 = vmatmul.msk.bf16.vlgmr.msra.gmra.mxu2 %vm277_vm1, %v248_v41  ;;  %v263_v42 = vrot.slane %v261_v37, 1  ;;  %v227_v43 = vor.u32 %v226_v38, %v222_v27  ;;  %v249_v56 = vshrl.u32 %v1614_v10, 16  ;;  %v622_v59 = vrot.slane %v620_v54, 1  ;;  %v1513_v40 = vld [vmem:[%s1923_s1 + $0x80] sm:$0xff] }
  0x18   : > { %438 = vmatpush.bf16.msrb.mxu2 %v1493_v7  ;;  %356 = vmatpush.bf16.msrb.mxu1 %v1489_v6  ;;  %v612_v52 = vshrl.u32 %v513_v50, 16  ;;  %v615_v53 = vshll.u32 %v513_v50, 16  ;;  %v625_v60 = vrot.slane %v623_v55, 2  ;;  %v519_v62 = vrot.slane %v513_v50, 1  ;;  %v1520_v6 = vld [vmem:[%s1599_s29] sm:$0xe] }
  0x19   : > { %564 = vmatpush.bf16.msrb.mxu3 %v1499_v13  ;;  %698 = vmatpush.bf16.msrb.mxu0 %v1501_v19  ;;  %v264_v47 = vsel %vm220_vm0, %v259_v36, %v263_v42  ;;  %v232_v48 = vsel %vm220_vm0, %v227_v43, %v231_v25  ;;  %v251_v61 = vor.u32 %v249_v56, %v247_v29  ;;  %v520_v63 = vrot.slane %v1662_v49, 1  ;;  %v1684_v7 = vld [vmem:[%s1599_s29 + $0x14] sm:$0xff]  ;;  %v1702_v25 = vld [vmem:[%s1599_s29 + $0x1c] sm:$0xff]  ;;  %v1726_v41 = vld [vmem:[%s1599_s29 + $0x24] sm:$0xff] }
  0x1a   : > { %1318 = vmatmul.msk.bf16.vlgmr.msra.gmra.mxu3 %vm277_vm1, %v264_v47  ;;  %1314 = vmatmul.msk.bf16.vlgmr.msra.gmra.mxu0 %vm277_vm1, %v232_v48  ;;  %v614_v57 = vrot.slane %v612_v52, 1  ;;  %v617_v58 = vrot.slane %v615_v53, 2  ;;  %v626_v1 = vor.u32 %v625_v60, %v622_v59  ;;  %v629_v12 = vshrl.u32 %v1684_v7, 16  ;;  %v735_v48 = vld [vmem:[%s1599_s29 + $0x4] sm:$0xc] }
  0x1b   : > { %v256_v2 = vsel %vm220_vm0, %v251_v61, %v255_v31  ;;  %v521_v3 = vsel %vm392_vm2, %v519_v62, %v520_v63  ;;  %v632_v13 = vshll.u32 %v1684_v7, 16  ;;  %v1521_v14 = vor.u32 %v1520_v6, %v1519_v5  ;;  %v601_v52 = vld [vmem:[%s1599_s29 + $0x2c] sm:$0x3]  ;;  %v827_v5 = vld [vmem:[%s1599_s29 + $0x8] sm:$0xc] }
  0x1c   : > { %915 = vmatpush.bf16.msra.mxu2 %v1510_v44  ;;  %789 = vmatpush.bf16.msra.mxu1 %v1504_v46  ;;  %v618_v0 = vor.u32 %v617_v58, %v614_v57  ;;  %v631_v15 = vrot.slane %v629_v12, 1  ;;  %v522_v19 = vrot.slane %v1684_v7, 1  ;;  %v638_v27 = vshrl.u32 %v1702_v25, 16  ;;  %v485_v62 = vld [vmem:[%s1599_s29 + $0x2c] sm:$0x1] }
  0x1d   : > { %1049 = vmatpush.bf16.msra.mxu3 %v1512_v45  ;;  %1141 = vmatpush.bf16.msra.mxu0 %v1514_v51  ;;  %v634_v16 = vrot.slane %v632_v13, 2  ;;  %v393_v17 = vrot.slane %v1521_v14, 1  ;;  %v641_v29 = vshll.u32 %v1702_v25, 16  ;;  %v396_v33 = vrot.slane %v1611_v9, 1 }
  0x1e   : > { %v627_v4 = vsel %vm610_vm3, %v618_v0, %v626_v1  ;;  %v523_v22 = vsel %vm392_vm2, %v520_v63, %v522_v19  ;;  %v640_v31 = vrot.slane %v638_v27, 1  ;;  %v524_v34 = vrot.slane %v1702_v25, 1 }
  0x1f   : > { %v635_v20 = vor.u32 %v634_v16, %v631_v15  ;;  %v643_v32 = vrot.slane %v641_v29, 2  ;;  %v402_v42 = vrot.slane %v1641_v30, 1  ;;  %v647_v43 = vshrl.u32 %v1726_v41, 16  ;;  %v1505_v16 = vld [vmem:[%s1599_s29 + $0x10] sm:$0xff] }
  0x20   : > { %916 = vmatpush.bf16.msra.mxu2 %v1509_v24  ;;  %790 = vmatpush.bf16.msra.mxu1 %v1503_v26  ;;  %v525_v37 = vsel %vm392_vm2, %v522_v19, %v524_v34  ;;  %v650_v44 = vshll.u32 %v1726_v41, 16  ;;  %v398_v50 = vrot.slane %v1614_v10, 1  ;;  %v742_v51 = vunpack.c.l.b16 %v735_v48 }
  0x21   : > { %v636_v23 = vsel %vm610_vm3, %v626_v1, %v635_v20  ;;  %v644_v35 = vor.u32 %v643_v32, %v640_v31  ;;  %1142 = vmatpush.bf16.msra.mxu0 %v1513_v40  ;;  %v649_v46 = vrot.slane %v647_v43, 1  ;;  %v526_v30 = vrot.slane %v1726_v41, 1 }
  0x22   : > { %v652_v47 = vrot.slane %v650_v44, 2  ;;  %v743_v53 = vpack.c.b16 %v503_v39, %v742_v51  ;;  %v608_v55 = vunpack.c.l.b16 %v601_v52  ;;  %v399_v56 = vsel %vm392_vm2, %v396_v33, %v398_v50  ;;  %v1788_v51 = vld [vmem:[%s1599_s29 + $0x20] sm:$0xff] }
  0x23   : > { %v645_v38 = vsel %vm610_vm3, %v635_v20, %v644_v35  ;;  %v746_v58 = vrot.slane %v1662_v49, 2  ;;  %v527_v39 = vsel %vm392_vm2, %v524_v34, %v526_v30  ;;  %v748_v49 = vrot.slane %v1684_v7, 2  ;;  %v1087_v20 = vld [vmem:[%s1599_s29 + $0x8] sm:$0x8] }
  0x24   : > { %v653_v54 = vor.u32 %v652_v47, %v649_v46  ;;  %v745_v57 = vrot.slane %v743_v53, 2  ;;  %v1751_v61 = vpack.c.b16 %v608_v55, %v608_v55  ;;  %v512_v63 = vunpack.c.l.b16 %v485_v62 }
  0x25   : > { %v749_v1 = vsel %vm744_vm4, %v746_v58, %v748_v49  ;;  %v854_v13 = vunpack.c.l.b16 %v827_v5  ;;  %v855_v14 = vunpack.c.h.b16 %v1639_v28  ;;  %v1094_v24 = vunpack.c.l.b16 %v1087_v20 }
  0x26   : > { %v747_v59 = vsel %vm744_vm4, %v745_v57, %v746_v58  ;;  %v654_v60 = vsel %vm610_vm3, %v644_v35, %v653_v54  ;;  %v659_v0 = vshll.u32 %v1751_v61, 16  ;;  %v1098_v34 = vrot.slane %v1505_v16, 3 }
  0x27   : > { %1317 = vmatmul.msk.bf16.gmra.mxu2 %vm277_vm1, %v256_v2  ;;  %1327 = vmatmul.msk.bf16.vlgmr.msrb.gmra.mxu1 %vm277_vm1, %v1628_v18  ;;  %v394_v18 = vrot.slane %v1608_v8, 1  ;;  %v518_v2 = vpack.c.b16 %v512_v63, %v512_v63  ;;  %v865_v19 = vpack.c.b16 %v855_v14, %v854_v13  ;;  %v1095_v29 = vpack.c.b16 %v855_v14, %v1094_v24  ;;  %v953_v13 = vld [vmem:[%s1599_s29 + $0x30] sm:$0x7] }
  0x28   : > { %v872_v44 = vrot.slane %v1505_v16, 2  ;;  %v990_v52 = vshrl.u32 %v1788_v51, 16  ;;  %v993_v53 = vshll.u32 %v1788_v51, 16  ;;  %v750_v55 = vrot.slane %v1702_v25, 2 }
  0x29   : > { %v395_v21 = vsel %vm392_vm2, %v393_v17, %v394_v18  ;;  %v397_v36 = vsel %vm392_vm2, %v394_v18, %v396_v33  ;;  %v528_v6 = vrot.slane %v518_v2, 1  ;;  %v964_v28 = vshrl.u32 %v865_v19, 16 }
  0x2a   : > { %1377 = vmatmul.msk.bf16.vlgmr.msrb.gmra.mxu3 %vm277_vm1, %v521_v3  ;;  %1394 = vmatmul.msk.bf16.vlgmr.msrb.gmra.mxu0 %vm277_vm1, %v627_v4  ;;  %v661_v4 = vrot.slane %v659_v0, 2  ;;  %v1097_v33 = vrot.slane %v1095_v29, 3  ;;  %v871_v43 = vrot.slane %v865_v19, 2  ;;  %v1102_v58 = vrot.slane %v1788_v51, 3 }
  0x2b   : > { %v529_v17 = vsel %vm392_vm2, %v526_v30, %v528_v6  ;;  %v992_v30 = vrot.slane %v990_v52, 2  ;;  %v752_v6 = vrot.slane %v1726_v41, 2 }
  0x2c   : > { %v873_v47 = vsel %vm744_vm4, %v871_v43, %v872_v44 }
  0x37   : > { %1328 = vmatmul.msk.bf16.gmra.mxu1 %vm277_vm1, %v1608_v8  ;;  %1344 = vmatmul.msk.bf16.vlgmr.msrb.gmra.mxu2 %vm277_vm1, %v395_v21  ;;  %v1511_v8 = vld [vmem:[%s1923_s1 + $0x70] sm:$0xff]  ;;  %v972_v21 = vshrl.u32 %v1505_v16, 16 }
  0x38   : > { %1050 = vmatpush.bf16.msra.mxu3 %v1511_v8 }
  0x39   : > { %v974_v8 = vrot.slane %v972_v21, 2 }
  0x3a   : > { %1378 = vmatmul.msk.bf16.gmra.mxu3 %vm277_vm1, %v523_v22  ;;  %1395 = vmatmul.msk.bf16.gmra.mxu0 %vm277_vm1, %v636_v23  ;;  %v967_v22 = vshll.u32 %v865_v19, 16  ;;  %v975_v23 = vshll.u32 %v1505_v16, 16  ;;  %v753_v19 = vsel %vm744_vm4, %v750_v55, %v752_v6 }
  0x3c   : > { %v969_v26 = vrot.slane %v967_v22, 3  ;;  %v977_v27 = vrot.slane %v975_v23, 3 }
  0x3e   : > { %v978_v32 = vor.u32 %v977_v27, %v974_v8 }
  0x47   : > { %1329 = vmatmul.msk.bf16.gmra.mxu1 %vm277_vm1, %v1611_v9  ;;  %1345 = vmatmul.msk.bf16.gmra.mxu2 %vm277_vm1, %v397_v36  ;;  %v400_v9 = vrot.slane %v1617_v11, 1  ;;  %v1099_v36 = vsel %vm1096_vm6, %v1097_v33, %v1098_v34 }
  0x49   : > { %v1735_v45 = vsel %vm392_vm2, %v400_v9, %v402_v42  ;;  %v401_v15 = vsel %vm392_vm2, %v398_v50, %v400_v9 }
  0x4a   : > { %1379 = vmatmul.msk.bf16.gmra.mxu3 %vm277_vm1, %v525_v37  ;;  %1396 = vmatmul.msk.bf16.gmra.mxu0 %vm277_vm1, %v645_v38  ;;  %v1506_v37 = vld [vmem:[%s1599_s29 + $0x18] sm:$0xff] }
  0x4b   : > { %v981_v38 = vshrl.u32 %v1506_v37, 16  ;;  %v984_v40 = vshll.u32 %v1506_v37, 16 }
  0x4d   : > { %v983_v9 = vrot.slane %v981_v38, 2  ;;  %v986_v42 = vrot.slane %v984_v40, 3 }
  0x4f   : > { %v987_v46 = vor.u32 %v986_v42, %v983_v9 }
  0x51   : > { %v988_v48 = vsel %vm962_vm5, %v978_v32, %v987_v46 }
  0x57   : > { %1330 = vmatmul.msk.bf16.gmra.mxu1 %vm277_vm1, %v1614_v10  ;;  %1346 = vmatmul.msk.bf16.gmra.mxu2 %vm277_vm1, %v399_v56  ;;  %v656_v10 = vshrl.u32 %v1751_v61, 16  ;;  %v874_v56 = vrot.slane %v1506_v37, 2 }
  0x59   : > { %v658_v3 = vrot.slane %v656_v10, 1  ;;  %v1805_v10 = vld [vmem:[%s1599_s29 + $0x28] sm:$0xff] }
  0x5a   : > { %1380 = vmatmul.msk.bf16.gmra.mxu3 %vm277_vm1, %v527_v39  ;;  %1397 = vmatmul.msk.bf16.gmra.mxu0 %vm277_vm1, %v654_v60  ;;  %v751_v39 = vsel %vm744_vm4, %v748_v49, %v750_v55  ;;  %v875_v60 = vsel %vm744_vm4, %v872_v44, %v874_v56  ;;  %v999_v7 = vshrl.u32 %v1805_v10, 16  ;;  %v1002_v49 = vshll.u32 %v1805_v10, 16 }
  0x5b   : > { %v662_v12 = vor.u32 %v661_v4, %v658_v3  ;;  %v1104_v16 = vrot.slane %v1805_v10, 3 }
  0x5c   : > { %v1001_v4 = vrot.slane %v999_v7, 2  ;;  %v1004_v5 = vrot.slane %v1002_v49, 3 }
  0x5d   : > { %v663_v18 = vsel %vm610_vm3, %v653_v54, %v662_v12  ;;  %v995_v54 = vrot.slane %v993_v53, 3  ;;  %v876_v12 = vrot.slane %v1788_v51, 2  ;;  %v1105_v23 = vsel %vm1096_vm6, %v1102_v58, %v1104_v16 }
  0x5f   : > { %v996_v57 = vor.u32 %v995_v54, %v992_v30  ;;  %v877_v20 = vsel %vm744_vm4, %v874_v56, %v876_v12 }
  0x61   : > { %v997_v62 = vsel %vm962_vm5, %v987_v46, %v996_v57 }
  0x67   : > { %1331 = vmatmul.msk.bf16.gmra.mxu1 %vm277_vm1, %v1617_v11  ;;  %1347 = vmatmul.msk.bf16.gmra.mxu2 %vm277_vm1, %v401_v15  ;;  %v966_v11 = vrot.slane %v964_v28, 2  ;;  %v1005_v15 = vor.u32 %v1004_v5, %v1001_v4 }
  0x69   : > { %v970_v31 = vor.u32 %v969_v26, %v966_v11  ;;  %v1006_v41 = vsel %vm962_vm5, %v996_v57, %v1005_v15 }
  0x6a   : > { %1381 = vmatmul.msk.bf16.gmra.mxu3 %vm277_vm1, %v529_v17  ;;  %1398 = vmatmul.msk.bf16.gmra.mxu0 %vm277_vm1, %v663_v18  ;;  %v960_v17 = vunpack.c.l.b16 %v953_v13 }
  0x6b   : > { %v979_v35 = vsel %vm962_vm5, %v970_v31, %v978_v32 }
  0x6c   : > { %v961_v24 = vpack.c.b16 %v960_v17, %v960_v17 }
  0x6e   : > { %v1008_v11 = vshrl.u32 %v961_v24, 16  ;;  %v1011_v26 = vshll.u32 %v961_v24, 16  ;;  %v1106_v40 = vrot.slane %v961_v24, 3 }
  0x70   : > { %v1010_v33 = vrot.slane %v1008_v11, 2 }
  0x77   : > { %1348 = vmatmul.msk.bf16.gmra.mxu2 %vm277_vm1, %v1735_v45  ;;  %1411 = vmatmul.msk.bf16.vlgmr.msra.gmra.mxu1 %vm277_vm1, %v747_v59  ;;  %v1100_v45 = vrot.slane %v1506_v37, 3 }
  0x79   : > { %v1101_v50 = vsel %vm1096_vm6, %v1098_v34, %v1100_v45  ;;  %v1103_v25 = vsel %vm1096_vm6, %v1100_v45, %v1102_v58  ;;  %v1013_v34 = vrot.slane %v1011_v26, 3  ;;  %v837_v45 = vld [vmem:[%s1599_s29 + $0x30] sm:$0x3] }
  0x7a   : > { %1461 = vmatmul.msk.bf16.vlgmr.msra.gmra.mxu3 %vm277_vm1, %v979_v35  ;;  %1478 = vmatmul.msk.bf16.vlgmr.msra.gmra.mxu0 %vm277_vm1, %v1099_v36  ;;  %v754_v35 = vrot.slane %v1751_v61, 2  ;;  %v878_v36 = vrot.slane %v1805_v10, 2 }
  0x7b   : > { %v1014_v38 = vor.u32 %v1013_v34, %v1010_v33 }
  0x7c   : > { %v755_v42 = vsel %vm744_vm4, %v752_v6, %v754_v35  ;;  %v879_v43 = vsel %vm744_vm4, %v876_v12, %v878_v36 }
  0x87   : > { %1412 = vmatmul.msk.bf16.gmra.mxu1 %vm277_vm1, %v749_v1  ;;  %1444 = vmatmul.msk.bf16.vlgmr.msra.gmra.mxu2 %vm277_vm1, %v873_v47  ;;  %v1015_v47 = vsel %vm962_vm5, %v1005_v15, %v1014_v38 }
  0x8a   : > { %1462 = vmatmul.msk.bf16.gmra.mxu3 %vm277_vm1, %v988_v48  ;;  %1479 = vmatmul.msk.bf16.gmra.mxu0 %vm277_vm1, %v1101_v50  ;;  %v1107_v48 = vsel %vm1096_vm6, %v1104_v16, %v1106_v40  ;;  %v864_v50 = vunpack.c.l.b16 %v837_v45 }
  0x8c   : > { %v870_v30 = vpack.c.b16 %v864_v50, %v864_v50 }
  0x94   : > { %v307_v59 = vpop.f32.mrf.mxu1 }
  0x97   : > { %1413 = vmatmul.msk.bf16.gmra.mxu1 %vm277_vm1, %v751_v39  ;;  %1445 = vmatmul.msk.bf16.gmra.mxu2 %vm277_vm1, %v875_v60  ;;  %v302_v63 = vpop.f32.mrf.mxu0 }
  0x9a   : > { %v1807_v0 = vpop.f32.mrf.mxu2  ;;  %1463 = vmatmul.msk.bf16.gmra.mxu3 %vm277_vm1, %v997_v62  ;;  %1480 = vmatmul.msk.bf16.gmra.mxu0 %vm277_vm1, %v1103_v25 }
  0x9c   : > { %v309_v1 = vpop.f32.mrf.mxu1 }
  0x9d   : > { %v1813_v2 = vpop.f32.mrf.mxu3 }
  0x9f   : > { %v304_v3 = vpop.f32.mrf.mxu0 }
  0xa2   : > { %v1818_v14 = vpop.f32.mrf.mxu2 }
  0xa4   : > { %v358_v18 = vpop.f32.mrf.mxu1 }
  0xa5   : > { %v359_v21 = vadd.f32 %v358_v18, %v302_v63  ;;  %v1823_v28 = vpop.f32.mrf.mxu3 }
  0xa7   : > { %1414 = vmatmul.msk.bf16.gmra.mxu1 %vm277_vm1, %v753_v19  ;;  %1446 = vmatmul.msk.bf16.gmra.mxu2 %vm277_vm1, %v877_v20  ;;  %v700_v22 = vpop.f32.mrf.mxu0 }
  0xaa   : > { %v317_v8 = vpop.f32.mrf.mxu2  ;;  %1464 = vmatmul.msk.bf16.gmra.mxu3 %vm277_vm1, %v1006_v41  ;;  %1481 = vmatmul.msk.bf16.gmra.mxu0 %vm277_vm1, %v1105_v23 }
  0xac   : > { %v360_v27 = vpop.f32.mrf.mxu1 }
  0xad   : > { %v361_v29 = vadd.f32 %v360_v27, %v304_v3  ;;  %v566_v31 = vpop.f32.mrf.mxu3 }
  0xaf   : > { %v702_v32 = vpop.f32.mrf.mxu0 }
  0xb2   : > { %v319_v37 = vpop.f32.mrf.mxu2 }
  0xb4   : > { %v363_v9 = vpop.f32.mrf.mxu1 }
  0xb5   : > { %v364_v44 = vadd.f32 %v363_v9, %v307_v59  ;;  %v568_v46 = vpop.f32.mrf.mxu3  ;;  %v880_v59 = vrot.slane %v870_v30, 2 }
  0xb7   : > { %1415 = vmatmul.msk.bf16.gmra.mxu1 %vm277_vm1, %v755_v42  ;;  %1447 = vmatmul.msk.bf16.gmra.mxu2 %vm277_vm1, %v879_v43  ;;  %v705_v61 = vpop.f32.mrf.mxu0  ;;  %v881_v63 = vsel %vm744_vm4, %v878_v36, %v880_v59 }
  0xba   : > { %v440_v51 = vpop.f32.mrf.mxu2  ;;  %1465 = vmatmul.msk.bf16.gmra.mxu3 %vm277_vm1, %v1015_v47  ;;  %1482 = vmatmul.msk.bf16.gmra.mxu0 %vm277_vm1, %v1107_v48 }
  0xbb   : > { %v465_v52 = vadd.f32 %v440_v51, %v359_v21 }
  0xbc   : > { %v365_v53 = vpop.f32.mrf.mxu1 }
  0xbd   : > { %v591_v54 = vadd.f32 %v566_v31, %v465_v52  ;;  %v366_v55 = vadd.f32 %v365_v53, %v309_v1  ;;  %v571_v56 = vpop.f32.mrf.mxu3 }
  0xbf   : > { %v707_v57 = vpop.f32.mrf.mxu0  ;;  %v1842_v58 = vadd.f32 %v700_v22, %v591_v54 }
  0xc2   : > { %v442_v39 = vpop.f32.mrf.mxu2 }
  0xc3   : > { %v466_v60 = vadd.f32 %v442_v39, %v361_v29 }
  0xc4   : > { %v368_v62 = vpop.f32.mrf.mxu1 }
  0xc5   : > { %v592_v25 = vadd.f32 %v568_v46, %v466_v60  ;;  %v369_v10 = vadd.f32 %v368_v62, %v1807_v0  ;;  %v573_v7 = vpop.f32.mrf.mxu3 }
  0xc7   : > { %1448 = vmatmul.msk.bf16.gmra.mxu2 %vm277_vm1, %v881_v63  ;;  %v710_v49 = vpop.f32.mrf.mxu0  ;;  %v1847_v3 = vadd.f32 %v702_v32, %v592_v25 }
  0xca   : > { %v445_v1 = vpop.f32.mrf.mxu2 }
  0xcb   : > { %v467_v4 = vadd.f32 %v445_v1, %v364_v44 }
  0xcc   : > { %v370_v5 = vpop.f32.mrf.mxu1 }
  0xcd   : > { %v593_v6 = vadd.f32 %v571_v56, %v467_v4  ;;  %v371_v12 = vadd.f32 %v370_v5, %v1818_v14  ;;  %v576_v13 = vpop.f32.mrf.mxu3  ;;  %v1872_v5 = vld [vmem:[%s1924_s2] ss:$0 sm:$0xff] }
  0xcf   : > { %v712_v15 = vpop.f32.mrf.mxu0  ;;  %v1850_v16 = vadd.f32 %v705_v61, %v593_v6 }
  0xd2   : > { %v447_v17 = vpop.f32.mrf.mxu2 }
  0xd3   : > { %v468_v18 = vadd.f32 %v447_v17, %v366_v55 }
  0xd4   : > { %v373_v19 = vpop.f32.mrf.mxu1 }
  0xd5   : > { %v594_v0 = vadd.f32 %v573_v7, %v468_v18  ;;  %v374_v20 = vadd.f32 %v373_v19, %v317_v8  ;;  %v578_v21 = vpop.f32.mrf.mxu3 }
  0xd7   : > { %v715_v41 = vpop.f32.mrf.mxu0  ;;  %v1852_v22 = vadd.f32 %v707_v57, %v594_v0 }
  0xda   : > { %v450_v23 = vpop.f32.mrf.mxu2 }
  0xdb   : > { %v469_v24 = vadd.f32 %v450_v23, %v369_v10 }
  0xdc   : > { %v375_v11 = vpop.f32.mrf.mxu1 }
  0xdd   : > { %v595_v26 = vadd.f32 %v576_v13, %v469_v24  ;;  %v376_v27 = vadd.f32 %v375_v11, %v319_v37  ;;  %v581_v29 = vpop.f32.mrf.mxu3 }
  0xdf   : > { %v717_v14 = vpop.f32.mrf.mxu0  ;;  %v1854_v31 = vadd.f32 %v710_v49, %v595_v26 }
  0xe2   : > { %v452_v32 = vpop.f32.mrf.mxu2 }
  0xe3   : > { %v470_v33 = vadd.f32 %v452_v32, %v371_v12 }
  0xe4   : > { %v378_v34 = vpop.f32.mrf.mxu1 }
  0xe5   : > { %v596_v35 = vadd.f32 %v578_v21, %v470_v33  ;;  %v379_v36 = vadd.f32 %v378_v34, %v1813_v2  ;;  %v583_v8 = vpop.f32.mrf.mxu3 }
  0xe7   : > { %v1857_v38 = vadd.f32 %v712_v15, %v596_v35  ;;  %v720_v40 = vpop.f32.mrf.mxu0 }
  0xea   : > { %v455_v9 = vpop.f32.mrf.mxu2 }
  0xeb   : > { %v471_v42 = vadd.f32 %v455_v9, %v374_v20 }
  0xec   : > { %v380_v43 = vpop.f32.mrf.mxu1 }
  0xed   : > { %v597_v44 = vadd.f32 %v581_v29, %v471_v42  ;;  %v381_v37 = vadd.f32 %v380_v43, %v1823_v28  ;;  %v586_v46 = vpop.f32.mrf.mxu3 }
  0xef   : > { %v1860_v45 = vadd.f32 %v715_v41, %v597_v44  ;;  %v722_v61 = vpop.f32.mrf.mxu0 }
  0xf2   : > { %v457_v47 = vpop.f32.mrf.mxu2 }
  0xf3   : > { %v472_v48 = vadd.f32 %v457_v47, %v376_v27 }
  0xf4   : > { %v792_v50 = vpop.f32.mrf.mxu1 }
  0xf5   : > { %v598_v51 = vadd.f32 %v583_v8, %v472_v48  ;;  %v588_v52 = vpop.f32.mrf.mxu3  ;;  %v817_v7 = vadd.f32 %v792_v50, %v1842_v58 }
  0xf7   : > { %v1862_v2 = vadd.f32 %v717_v14, %v598_v51  ;;  %v1144_v54 = vpop.f32.mrf.mxu0 }
  0xfa   : > { %v460_v53 = vpop.f32.mrf.mxu2 }
  0xfb   : > { %v473_v30 = vadd.f32 %v460_v53, %v379_v36 }
  0xfc   : > { %v794_v57 = vpop.f32.mrf.mxu1 }
  0xfd   : > { %v599_v55 = vadd.f32 %v586_v46, %v473_v30  ;;  %v1052_v56 = vpop.f32.mrf.mxu3  ;;  %v818_v15 = vadd.f32 %v794_v57, %v1847_v3 }
  0xff   : > { %v1864_v59 = vadd.f32 %v720_v40, %v599_v55  ;;  %v1146_v63 = vpop.f32.mrf.mxu0 }
 0x102   : > { %v462_v28 = vpop.f32.mrf.mxu2 }
 0x103   : > { %v474_v39 = vadd.f32 %v462_v28, %v381_v37 }
 0x104   : > { %v797_v10 = vpop.f32.mrf.mxu1 }
 0x105   : > { %v600_v60 = vadd.f32 %v588_v52, %v474_v39  ;;  %v1054_v62 = vpop.f32.mrf.mxu3  ;;  %v819_v23 = vadd.f32 %v797_v10, %v1850_v16 }
 0x107   : > { %v1866_v25 = vadd.f32 %v722_v61, %v600_v60  ;;  %v1149_v13 = vpop.f32.mrf.mxu0 }
 0x10a   : > { %v918_v49 = vpop.f32.mrf.mxu2 }
 0x10b   : > { %v943_v1 = vadd.f32 %v918_v49, %v817_v7 }
 0x10c   : > { %v799_v18 = vpop.f32.mrf.mxu1 }
 0x10d   : > { %v1077_v4 = vadd.f32 %v1052_v56, %v943_v1  ;;  %v1057_v6 = vpop.f32.mrf.mxu3  ;;  %v820_v35 = vadd.f32 %v799_v18, %v1852_v22 }
 0x10f   : > { %v1169_v12 = vadd.f32 %v1144_v54, %v1077_v4  ;;  %v1151_v26 = vpop.f32.mrf.mxu0 }
 0x111   : > { %v1183_v17 = vadd.f32 %v1872_v5, %v1169_v12 }
 0x112   : > { %v920_v19 = vpop.f32.mrf.mxu2 }
 0x113   : > { %v1193_v0 = vmax.f32 %v1183_v17, 0.0  ;;  %v944_v58 = vadd.f32 %v920_v19, %v818_v15 }
 0x114   : > { %v802_v14 = vpop.f32.mrf.mxu1 }
 0x115   : > { %v1203_v20 = vpack.c.bf16 %v1193_v0, %v1193_v0  ;;  %v1078_v21 = vadd.f32 %v1054_v62, %v944_v58  ;;  %v1059_v3 = vpop.f32.mrf.mxu3  ;;  %v821_v47 = vadd.f32 %v802_v14, %v1854_v31 }
 0x117   : > { %1214 = vst.msk [vmem:[%s1880_s7] sm:$0xf] %vm1213_vm7, %v1203_v20  ;;  %v1170_v41 = vadd.f32 %v1146_v63, %v1078_v21  ;;  %v1154_v42 = vpop.f32.mrf.mxu0 }
 0x119   : > { %v1184_v24 = vadd.f32 %v1872_v5, %v1170_v41 }
 0x11a   : > { %v923_v11 = vpop.f32.mrf.mxu2 }
 0x11b   : > { %v1194_v27 = vmax.f32 %v1184_v24, 0.0  ;;  %v945_v29 = vadd.f32 %v923_v11, %v819_v23 }
 0x11c   : > { %v804_v37 = vpop.f32.mrf.mxu1 }
 0x11d   : > { %v1204_v32 = vpack.c.bf16 %v1194_v27, %v1194_v27  ;;  %v1079_v33 = vadd.f32 %v1057_v6, %v945_v29  ;;  %v1062_v40 = vpop.f32.mrf.mxu3  ;;  %v822_v56 = vadd.f32 %v804_v37, %v1857_v38 }
 0x11f   : > { %1215 = vst.msk [vmem:[%s1880_s7 + $0x4] sm:$0xf] %vm1213_vm7, %v1204_v32  ;;  %v1171_v34 = vadd.f32 %v1149_v13, %v1079_v33  ;;  %v1156_v30 = vpop.f32.mrf.mxu0 }
 0x121   : > { %v1185_v36 = vadd.f32 %v1872_v5, %v1171_v34 }
 0x122   : > { %v925_v8 = vpop.f32.mrf.mxu2 }
 0x123   : > { %v1195_v16 = vmax.f32 %v1185_v36, 0.0  ;;  %v946_v9 = vadd.f32 %v925_v8, %v820_v35 }
 0x124   : > { %v807_v55 = vpop.f32.mrf.mxu1 }
 0x125   : > { %v1205_v43 = vpack.c.bf16 %v1195_v16, %v1195_v16  ;;  %v1080_v44 = vadd.f32 %v1059_v3, %v946_v9  ;;  %v1064_v51 = vpop.f32.mrf.mxu3  ;;  %v823_v49 = vadd.f32 %v807_v55, %v1860_v45 }
 0x127   : > { %1216 = vst.msk [vmem:[%s1880_s7 + $0x8] sm:$0xf] %vm1213_vm7, %v1205_v43  ;;  %v1172_v46 = vadd.f32 %v1151_v26, %v1080_v44  ;;  %v1159_v7 = vpop.f32.mrf.mxu0 }
 0x129   : > { %v1186_v61 = vadd.f32 %v1872_v5, %v1172_v46 }
 0x12a   : > { %v928_v48 = vpop.f32.mrf.mxu2 }
 0x12b   : > { %v1196_v22 = vmax.f32 %v1186_v61, 0.0  ;;  %v947_v50 = vadd.f32 %v928_v48, %v821_v47 }
 0x12c   : > { %v809_v4 = vpop.f32.mrf.mxu1 }
 0x12d   : > { %v1206_v52 = vpack.c.bf16 %v1196_v22, %v1196_v22  ;;  %v1081_v53 = vadd.f32 %v1062_v40, %v947_v50  ;;  %v1067_v63 = vpop.f32.mrf.mxu3  ;;  %v824_v19 = vadd.f32 %v809_v4, %v1862_v2 }
 0x12f   : > { %1217 = vst.msk [vmem:[%s1880_s7 + $0xc] sm:$0xf] %vm1213_vm7, %v1206_v52  ;;  %v1173_v54 = vadd.f32 %v1154_v42, %v1081_v53  ;;  %v1161_v58 = vpop.f32.mrf.mxu0 }
 0x131   : > { %v1187_v57 = vadd.f32 %v1872_v5, %v1173_v54 }
 0x132   : > { %v930_v28 = vpop.f32.mrf.mxu2 }
 0x133   : > { %v1197_v31 = vmax.f32 %v1187_v57, 0.0  ;;  %v948_v39 = vadd.f32 %v930_v28, %v822_v56 }
 0x134   : > { %v812_v41 = vpop.f32.mrf.mxu1 }
 0x135   : > { %v1207_v60 = vpack.c.bf16 %v1197_v31, %v1197_v31  ;;  %v1082_v62 = vadd.f32 %v1064_v51, %v948_v39  ;;  %v1069_v18 = vpop.f32.mrf.mxu3  ;;  %v825_v11 = vadd.f32 %v812_v41, %v1864_v59 }
 0x137   : > { %1218 = vst.msk [vmem:[%s1880_s7 + $0x10] sm:$0xf] %vm1213_vm7, %v1207_v60  ;;  %v1174_v10 = vadd.f32 %v1156_v30, %v1082_v62  ;;  %v1164_v32 = vpop.f32.mrf.mxu0 }
 0x139   : > { %v1188_v1 = vadd.f32 %v1872_v5, %v1174_v10 }
 0x13a   : > { %v933_v6 = vpop.f32.mrf.mxu2 }
 0x13b   : > { %v1198_v38 = vmax.f32 %v1188_v1, 0.0  ;;  %v949_v12 = vadd.f32 %v933_v6, %v823_v49 }
 0x13c   : > { %v814_v35 = vpop.f32.mrf.mxu1 }
 0x13d   : > { %v1208_v13 = vpack.c.bf16 %v1198_v38, %v1198_v38  ;;  %v1083_v15 = vadd.f32 %v1067_v63, %v949_v12  ;;  %v1072_v27 = vpop.f32.mrf.mxu3  ;;  %v826_v8 = vadd.f32 %v814_v35, %v1866_v25 }
 0x13f   : > { %1219 = vst.msk [vmem:[%s1880_s7 + $0x14] sm:$0xf] %vm1213_vm7, %v1208_v13  ;;  %v1175_v17 = vadd.f32 %v1159_v7, %v1083_v15  ;;  %v1166_v37 = vpop.f32.mrf.mxu0 }
 0x141   : > { %v1189_v0 = vadd.f32 %v1872_v5, %v1175_v17 }
 0x142   : > { %v935_v20 = vpop.f32.mrf.mxu2 }
 0x143   : > { %v1199_v45 = vmax.f32 %v1189_v0, 0.0  ;;  %v950_v21 = vadd.f32 %v935_v20, %v824_v19 }
 0x145   : > { %v1209_v3 = vpack.c.bf16 %v1199_v45, %v1199_v45  ;;  %v1084_v23 = vadd.f32 %v1069_v18, %v950_v21  ;;  %v1074_v42 = vpop.f32.mrf.mxu3 }
 0x147   : > { %1220 = vst.msk [vmem:[%s1880_s7 + $0x18] sm:$0xf] %vm1213_vm7, %v1209_v3  ;;  %v1176_v24 = vadd.f32 %v1161_v58, %v1084_v23 }
 0x149   : > { %v1190_v26 = vadd.f32 %v1872_v5, %v1176_v24 }
 0x14a   : > { %v938_v29 = vpop.f32.mrf.mxu2 }
 0x14b   : > { %v1200_v2 = vmax.f32 %v1190_v26, 0.0  ;;  %v951_v14 = vadd.f32 %v938_v29, %v825_v11 }
 0x14d   : > { %v1210_v33 = vpack.c.bf16 %v1200_v2, %v1200_v2  ;;  %v1085_v34 = vadd.f32 %v1072_v27, %v951_v14 }
 0x14f   : > { %1221 = vst.msk [vmem:[%s1880_s7 + $0x1c] sm:$0xf] %vm1213_vm7, %v1210_v33  ;;  %v1177_v36 = vadd.f32 %v1164_v32, %v1085_v34 }
 0x151   : > { %v1191_v40 = vadd.f32 %v1872_v5, %v1177_v36 }
 0x152   : > { %v940_v59 = vpop.f32.mrf.mxu2 }
 0x153   : > { %v1201_v16 = vmax.f32 %v1191_v40, 0.0  ;;  %v952_v9 = vadd.f32 %v940_v59, %v826_v8 }
 0x155   : > { %v1211_v43 = vpack.c.bf16 %v1201_v16, %v1201_v16  ;;  %v1086_v44 = vadd.f32 %v1074_v42, %v952_v9 }
 0x157   : > { %1222 = vst.msk [vmem:[%s1880_s7 + $0x20] sm:$0xf] %vm1213_vm7, %v1211_v43  ;;  %v1178_v46 = vadd.f32 %v1166_v37, %v1086_v44 }
 0x159   : > { %v1192_v47 = vadd.f32 %v1872_v5, %v1178_v46 }
 0x15b   : > { %v1202_v61 = vmax.f32 %v1192_v47, 0.0 }
 0x15d   : > { %v1212_v48 = vpack.c.bf16 %v1202_v61, %v1202_v61 }
 0x15f   : > { %1223 = vst.msk [vmem:[%s1880_s7 + $0x24] sm:$0xf] %vm1213_vm7, %v1212_v48 }
 0x160 PF: > { %s13_s12 = sadd.s32 1, %s1545_s12  }
 0x161   : > { %p10_p4 = scmp.ge.s32.totalorder %s13_s12, 4  }
 0x163   :  { %12 = sbr.rel (!%p10_p4) target bundleno = 1 (0x1), region = 70 }

// kernel: resnet_encoder_forward.14
= control target key start
LH: loop header
LB: loop body
LE: loop exit
PB: predicated region body
PF: predicated region fallthrough
CT: control target
= control target key end

     0   :  { %s1567_s12 = smov 0   ;;  %s1922_s0 = inlined_call_operand.vmem [shape: bf16[2,102,32], index: 0, kind: input, shape index: {}]   ;;  %s1923_s1 = inlined_call_operand.vmem [shape: bf16[3,3,32,64], index: 1, kind: input, shape index: {}]   ;;  %s1924_s2 = inlined_call_operand.vmem [shape: f32[1,64], index: 2, kind: input, shape index: {}]   ;;  %s1925_s3 = inlined_call_operand.vmem [shape: bf16[2,80,64], index: 3, kind: output, shape index: {}]  }
   0x1 LB: > { %s1279_s13 = sadd.s32 4294967295, %s1545_s12   ;;  %p1283_p0 = scmp.ge.s32.totalorder %s1545_s12, 1  ;;  %s1545_s12 = sphi %s1567_s12, %s13_s12  }
   0x2   : > { %p137_p1 = scmp.lt.s32.totalorder %s1545_s12, 3 }
   0x4   : > { %p138_p2 = pnand %p1283_p0, %p137_p1 }
   0x5   : > { %p161_p3 = scmp.lt.s32.totalorder (!%p138_p2), %s1279_s13, 1 }
   0x6   : > { %141 = sbr.rel (%p138_p2) target bundleno = 352 (0x160), region = 32 }
   0xb   : > { %v1492_v0 = vld [vmem:[%s1923_s1 + $0x18] sm:$0xff]  ;;  %v1491_v1 = vld [vmem:[%s1923_s1 + $0x10] sm:$0xff]  ;;  %s1927_s13 = smov (!%p161_p3, %s1279_s13), 1  ;;  %v1494_v2 = vld [vmem:[%s1923_s1 + $0x28] sm:$0xff]  ;;  %vm220_vm0 = vsmask.f32 7424 }
   0xc   : > { %1522 = vmatpush.bf16.msra.mxu1 %v1492_v0  ;;  %1523 = vmatpush.bf16.msra.mxu2 %v1492_v0  ;;  %s1528_s20 = smul.u32 52, %s1927_s13  ;;  %v1490_v3 = vld [vmem:[%s1923_s1 + $0x8] sm:$0xff]  ;;  %v1500_v4 = vld [vmem:[%s1923_s1 + $0x38] sm:$0xff]  ;;  %v1489_v6 = vld [vmem:[%s1923_s1] sm:$0xff]  ;;  %vm277_vm1 = vcmask 261120   ;;  %vm392_vm2 = vcmask 1046528  }
   0xd   : > { %1524 = vmatpush.bf16.msra.mxu3 %v1492_v0  ;;  %299 = vmatpush.bf16.msra.mxu0 %v1492_v0  ;;  %v1502_v5 = vld [vmem:[%s1923_s1 + $0x48] sm:$0xff]  ;;  %v1493_v7 = vld [vmem:[%s1923_s1 + $0x20] sm:$0xff]  ;;  %v1499_v13 = vld [vmem:[%s1923_s1 + $0x30] sm:$0xff]  ;;  %vm610_vm3 = vsmask.f32 6400  ;;  %vm744_vm4 = vcmask 1045504  }
   0xe   : > { %s1599_s29 = scalar_lea.vmem %s1922_s0, %s1528_s20  ;;  %v1501_v19 = vld [vmem:[%s1923_s1 + $0x40] sm:$0xff]  ;;  %v1510_v44 = vld [vmem:[%s1923_s1 + $0x68] sm:$0xff]  ;;  %v1512_v45 = vld [vmem:[%s1923_s1 + $0x78] sm:$0xff]  ;;  %vm962_vm5 = vsmask.f32 5376  ;;  %vm1096_vm6 = vcmask 1044480  }
   0xf   : > { %v1608_v8 = vld [vmem:[%s1599_s29 + $0x8] sm:$0xff]  ;;  %v1611_v9 = vld [vmem:[%s1599_s29 + $0x10] sm:$0xff]  ;;  %v1614_v10 = vld [vmem:[%s1599_s29 + $0x18] sm:$0xff]  ;;  %s1529_s4 = smul.u32 40, %s1927_s13  ;;  %vm1213_vm7 = vcmask 519168  }
  0x10   : > { %1525 = vmatpush.bf16.msra.mxu1 %v1491_v1  ;;  %1526 = vmatpush.bf16.msra.mxu2 %v1491_v1  ;;  %v1617_v11 = vld [vmem:[%s1599_s29 + $0x20] sm:$0xff]  ;;  %v186_v12 = vld [vmem:[%s1599_s29 + $0x28] sm:$0x1]  ;;  %v229_v14 = vshll.u32 %v1608_v8, 16  ;;  %v233_v15 = vshrl.u32 %v1608_v8, 16  ;;  %v237_v16 = vshll.u32 %v1611_v9, 16 }
  0x11   : > { %1527 = vmatpush.bf16.msra.mxu3 %v1491_v1  ;;  %300 = vmatpush.bf16.msra.mxu0 %v1491_v1  ;;  %v241_v17 = vshrl.u32 %v1611_v9, 16  ;;  %v1628_v18 = vld [vmem:[%s1599_s29] sm:$0xff]   ;;  %v245_v20 = vshll.u32 %v1614_v10, 16  ;;  %v213_v21 = vunpack.c.l.b16 %v186_v12  ;;  %v253_v22 = vshll.u32 %v1617_v11, 16  ;;  %v1639_v28 = vld [vmem:[%s1599_s29 + $0x8] sm:$0xff]   ;;  %v1504_v46 = vld [vmem:[%s1923_s1 + $0x58] sm:$0xff]  ;;  %s1880_s7 = scalar_lea.vmem %s1925_s3, %s1529_s4 }
  0x12   : > { %v257_v23 = vshrl.u32 %v1617_v11, 16  ;;  %v475_v24 = vld [vmem:[%s1599_s29 + $0x4] sm:$0xe]  ;;  %v231_v25 = vrot.slane %v229_v14, 1  ;;  %v239_v26 = vrot.slane %v237_v16, 1  ;;  %v222_v27 = vshrl.u32 %v1628_v18, 16 }
  0x13   : > { %v247_v29 = vrot.slane %v245_v20, 1  ;;  %v1641_v30 = vpack.c.b16 %v213_v21, %v213_v21  ;;  %v255_v31 = vrot.slane %v253_v22, 1  ;;  %v224_v32 = vshll.u32 %v1628_v18, 16  ;;  %v1662_v49 = vld [vmem:[%s1599_s29 + $0xc] sm:$0xff] }
  0x14   : > { %437 = vmatpush.bf16.msrb.mxu2 %v1494_v2  ;;  %355 = vmatpush.bf16.msrb.mxu1 %v1490_v3  ;;  %v235_v33 = vor.u32 %v233_v15, %v231_v25  ;;  %v243_v34 = vor.u32 %v241_v17, %v239_v26  ;;  %v502_v35 = vunpack.c.l.b16 %v475_v24  ;;  %v503_v39 = vunpack.c.l.b16 %v1639_v28  ;;  %v1514_v51 = vld [vmem:[%s1923_s1 + $0x88] sm:$0xff]  ;;  %v1509_v24 = vld [vmem:[%s1923_s1 + $0x60] sm:$0xff] }
  0x15   : > { %563 = vmatpush.bf16.msrb.mxu3 %v1500_v4  ;;  %697 = vmatpush.bf16.msrb.mxu0 %v1502_v5  ;;  %v259_v36 = vor.u32 %v257_v23, %v255_v31  ;;  %v261_v37 = vshll.u32 %v1641_v30, 16  ;;  %v226_v38 = vrot.slane %v224_v32, 1  ;;  %v620_v54 = vshrl.u32 %v1662_v49, 16  ;;  %v1519_v5 = vld [vmem:[%s1599_s29] sm:$0xf0] }
  0x16   : > { %v240_v40 = vsel %vm220_vm0, %v235_v33, %v239_v26  ;;  %v248_v41 = vsel %vm220_vm0, %v243_v34, %v247_v29  ;;  %v513_v50 = vpack.c.b16 %v503_v39, %v502_v35  ;;  %v623_v55 = vshll.u32 %v1662_v49, 16  ;;  %v1503_v26 = vld [vmem:[%s1923_s1 + $0x50] sm:$0xff] }
  0x17   : > { %1315 = vmatmul.msk.bf16.vlgmr.msra.gmra.mxu1 %vm277_vm1, %v240_v40  ;;  %1316 = vmatmul.msk.bf16.vlgmr.msra.gmra.mxu2 %vm277_vm1, %v248_v41  ;;  %v263_v42 = vrot.slane %v261_v37, 1  ;;  %v227_v43 = vor.u32 %v226_v38, %v222_v27  ;;  %v249_v56 = vshrl.u32 %v1614_v10, 16  ;;  %v622_v59 = vrot.slane %v620_v54, 1  ;;  %v1513_v40 = vld [vmem:[%s1923_s1 + $0x80] sm:$0xff] }
  0x18   : > { %438 = vmatpush.bf16.msrb.mxu2 %v1493_v7  ;;  %356 = vmatpush.bf16.msrb.mxu1 %v1489_v6  ;;  %v612_v52 = vshrl.u32 %v513_v50, 16  ;;  %v615_v53 = vshll.u32 %v513_v50, 16  ;;  %v625_v60 = vrot.slane %v623_v55, 2  ;;  %v519_v62 = vrot.slane %v513_v50, 1  ;;  %v1520_v6 = vld [vmem:[%s1599_s29] sm:$0xe] }
  0x19   : > { %564 = vmatpush.bf16.msrb.mxu3 %v1499_v13  ;;  %698 = vmatpush.bf16.msrb.mxu0 %v1501_v19  ;;  %v264_v47 = vsel %vm220_vm0, %v259_v36, %v263_v42  ;;  %v232_v48 = vsel %vm220_vm0, %v227_v43, %v231_v25  ;;  %v251_v61 = vor.u32 %v249_v56, %v247_v29  ;;  %v520_v63 = vrot.slane %v1662_v49, 1  ;;  %v1684_v7 = vld [vmem:[%s1599_s29 + $0x14] sm:$0xff]  ;;  %v1702_v25 = vld [vmem:[%s1599_s29 + $0x1c] sm:$0xff]  ;;  %v1726_v41 = vld [vmem:[%s1599_s29 + $0x24] sm:$0xff] }
  0x1a   : > { %1318 = vmatmul.msk.bf16.vlgmr.msra.gmra.mxu3 %vm277_vm1, %v264_v47  ;;  %1314 = vmatmul.msk.bf16.vlgmr.msra.gmra.mxu0 %vm277_vm1, %v232_v48  ;;  %v614_v57 = vrot.slane %v612_v52, 1  ;;  %v617_v58 = vrot.slane %v615_v53, 2  ;;  %v626_v1 = vor.u32 %v625_v60, %v622_v59  ;;  %v629_v12 = vshrl.u32 %v1684_v7, 16  ;;  %v735_v48 = vld [vmem:[%s1599_s29 + $0x4] sm:$0xc] }
  0x1b   : > { %v256_v2 = vsel %vm220_vm0, %v251_v61, %v255_v31  ;;  %v521_v3 = vsel %vm392_vm2, %v519_v62, %v520_v63  ;;  %v632_v13 = vshll.u32 %v1684_v7, 16  ;;  %v1521_v14 = vor.u32 %v1520_v6, %v1519_v5  ;;  %v601_v52 = vld [vmem:[%s1599_s29 + $0x2c] sm:$0x3]  ;;  %v827_v5 = vld [vmem:[%s1599_s29 + $0x8] sm:$0xc] }
  0x1c   : > { %915 = vmatpush.bf16.msra.mxu2 %v1510_v44  ;;  %789 = vmatpush.bf16.msra.mxu1 %v1504_v46  ;;  %v618_v0 = vor.u32 %v617_v58, %v614_v57  ;;  %v631_v15 = vrot.slane %v629_v12, 1  ;;  %v522_v19 = vrot.slane %v1684_v7, 1  ;;  %v638_v27 = vshrl.u32 %v1702_v25, 16  ;;  %v485_v62 = vld [vmem:[%s1599_s29 + $0x2c] sm:$0x1] }
  0x1d   : > { %1049 = vmatpush.bf16.msra.mxu3 %v1512_v45  ;;  %1141 = vmatpush.bf16.msra.mxu0 %v1514_v51  ;;  %v634_v16 = vrot.slane %v632_v13, 2  ;;  %v393_v17 = vrot.slane %v1521_v14, 1  ;;  %v641_v29 = vshll.u32 %v1702_v25, 16  ;;  %v396_v33 = vrot.slane %v1611_v9, 1 }
  0x1e   : > { %v627_v4 = vsel %vm610_vm3, %v618_v0, %v626_v1  ;;  %v523_v22 = vsel %vm392_vm2, %v520_v63, %v522_v19  ;;  %v640_v31 = vrot.slane %v638_v27, 1  ;;  %v524_v34 = vrot.slane %v1702_v25, 1 }
  0x1f   : > { %v635_v20 = vor.u32 %v634_v16, %v631_v15  ;;  %v643_v32 = vrot.slane %v641_v29, 2  ;;  %v402_v42 = vrot.slane %v1641_v30, 1  ;;  %v647_v43 = vshrl.u32 %v1726_v41, 16  ;;  %v1505_v16 = vld [vmem:[%s1599_s29 + $0x10] sm:$0xff] }
  0x20   : > { %916 = vmatpush.bf16.msra.mxu2 %v1509_v24  ;;  %790 = vmatpush.bf16.msra.mxu1 %v1503_v26  ;;  %v525_v37 = vsel %vm392_vm2, %v522_v19, %v524_v34  ;;  %v650_v44 = vshll.u32 %v1726_v41, 16  ;;  %v398_v50 = vrot.slane %v1614_v10, 1  ;;  %v742_v51 = vunpack.c.l.b16 %v735_v48 }
  0x21   : > { %v636_v23 = vsel %vm610_vm3, %v626_v1, %v635_v20  ;;  %v644_v35 = vor.u32 %v643_v32, %v640_v31  ;;  %1142 = vmatpush.bf16.msra.mxu0 %v1513_v40  ;;  %v649_v46 = vrot.slane %v647_v43, 1  ;;  %v526_v30 = vrot.slane %v1726_v41, 1 }
  0x22   : > { %v652_v47 = vrot.slane %v650_v44, 2  ;;  %v743_v53 = vpack.c.b16 %v503_v39, %v742_v51  ;;  %v608_v55 = vunpack.c.l.b16 %v601_v52  ;;  %v399_v56 = vsel %vm392_vm2, %v396_v33, %v398_v50  ;;  %v1788_v51 = vld [vmem:[%s1599_s29 + $0x20] sm:$0xff] }
  0x23   : > { %v645_v38 = vsel %vm610_vm3, %v635_v20, %v644_v35  ;;  %v746_v58 = vrot.slane %v1662_v49, 2  ;;  %v527_v39 = vsel %vm392_vm2, %v524_v34, %v526_v30  ;;  %v748_v49 = vrot.slane %v1684_v7, 2  ;;  %v1087_v20 = vld [vmem:[%s1599_s29 + $0x8] sm:$0x8] }
  0x24   : > { %v653_v54 = vor.u32 %v652_v47, %v649_v46  ;;  %v745_v57 = vrot.slane %v743_v53, 2  ;;  %v1751_v61 = vpack.c.b16 %v608_v55, %v608_v55  ;;  %v512_v63 = vunpack.c.l.b16 %v485_v62 }
  0x25   : > { %v749_v1 = vsel %vm744_vm4, %v746_v58, %v748_v49  ;;  %v854_v13 = vunpack.c.l.b16 %v827_v5  ;;  %v855_v14 = vunpack.c.h.b16 %v1639_v28  ;;  %v1094_v24 = vunpack.c.l.b16 %v1087_v20 }
  0x26   : > { %v747_v59 = vsel %vm744_vm4, %v745_v57, %v746_v58  ;;  %v654_v60 = vsel %vm610_vm3, %v644_v35, %v653_v54  ;;  %v659_v0 = vshll.u32 %v1751_v61, 16  ;;  %v1098_v34 = vrot.slane %v1505_v16, 3 }
  0x27   : > { %1317 = vmatmul.msk.bf16.gmra.mxu2 %vm277_vm1, %v256_v2  ;;  %1327 = vmatmul.msk.bf16.vlgmr.msrb.gmra.mxu1 %vm277_vm1, %v1628_v18  ;;  %v394_v18 = vrot.slane %v1608_v8, 1  ;;  %v518_v2 = vpack.c.b16 %v512_v63, %v512_v63  ;;  %v865_v19 = vpack.c.b16 %v855_v14, %v854_v13  ;;  %v1095_v29 = vpack.c.b16 %v855_v14, %v1094_v24  ;;  %v953_v13 = vld [vmem:[%s1599_s29 + $0x30] sm:$0x7] }
  0x28   : > { %v872_v44 = vrot.slane %v1505_v16, 2  ;;  %v990_v52 = vshrl.u32 %v1788_v51, 16  ;;  %v993_v53 = vshll.u32 %v1788_v51, 16  ;;  %v750_v55 = vrot.slane %v1702_v25, 2 }
  0x29   : > { %v395_v21 = vsel %vm392_vm2, %v393_v17, %v394_v18  ;;  %v397_v36 = vsel %vm392_vm2, %v394_v18, %v396_v33  ;;  %v528_v6 = vrot.slane %v518_v2, 1  ;;  %v964_v28 = vshrl.u32 %v865_v19, 16 }
  0x2a   : > { %1377 = vmatmul.msk.bf16.vlgmr.msrb.gmra.mxu3 %vm277_vm1, %v521_v3  ;;  %1394 = vmatmul.msk.bf16.vlgmr.msrb.gmra.mxu0 %vm277_vm1, %v627_v4  ;;  %v661_v4 = vrot.slane %v659_v0, 2  ;;  %v1097_v33 = vrot.slane %v1095_v29, 3  ;;  %v871_v43 = vrot.slane %v865_v19, 2  ;;  %v1102_v58 = vrot.slane %v1788_v51, 3 }
  0x2b   : > { %v529_v17 = vsel %vm392_vm2, %v526_v30, %v528_v6  ;;  %v992_v30 = vrot.slane %v990_v52, 2  ;;  %v752_v6 = vrot.slane %v1726_v41, 2 }
  0x2c   : > { %v873_v47 = vsel %vm744_vm4, %v871_v43, %v872_v44 }
  0x37   : > { %1328 = vmatmul.msk.bf16.gmra.mxu1 %vm277_vm1, %v1608_v8  ;;  %1344 = vmatmul.msk.bf16.vlgmr.msrb.gmra.mxu2 %vm277_vm1, %v395_v21  ;;  %v1511_v8 = vld [vmem:[%s1923_s1 + $0x70] sm:$0xff]  ;;  %v972_v21 = vshrl.u32 %v1505_v16, 16 }
  0x38   : > { %1050 = vmatpush.bf16.msra.mxu3 %v1511_v8 }
  0x39   : > { %v974_v8 = vrot.slane %v972_v21, 2 }
  0x3a   : > { %1378 = vmatmul.msk.bf16.gmra.mxu3 %vm277_vm1, %v523_v22  ;;  %1395 = vmatmul.msk.bf16.gmra.mxu0 %vm277_vm1, %v636_v23  ;;  %v967_v22 = vshll.u32 %v865_v19, 16  ;;  %v975_v23 = vshll.u32 %v1505_v16, 16  ;;  %v753_v19 = vsel %vm744_vm4, %v750_v55, %v752_v6 }
  0x3c   : > { %v969_v26 = vrot.slane %v967_v22, 3  ;;  %v977_v27 = vrot.slane %v975_v23, 3 }
  0x3e   : > { %v978_v32 = vor.u32 %v977_v27, %v974_v8 }
  0x47   : > { %1329 = vmatmul.msk.bf16.gmra.mxu1 %vm277_vm1, %v1611_v9  ;;  %1345 = vmatmul.msk.bf16.gmra.mxu2 %vm277_vm1, %v397_v36  ;;  %v400_v9 = vrot.slane %v1617_v11, 1  ;;  %v1099_v36 = vsel %vm1096_vm6, %v1097_v33, %v1098_v34 }
  0x49   : > { %v1735_v45 = vsel %vm392_vm2, %v400_v9, %v402_v42  ;;  %v401_v15 = vsel %vm392_vm2, %v398_v50, %v400_v9 }
  0x4a   : > { %1379 = vmatmul.msk.bf16.gmra.mxu3 %vm277_vm1, %v525_v37  ;;  %1396 = vmatmul.msk.bf16.gmra.mxu0 %vm277_vm1, %v645_v38  ;;  %v1506_v37 = vld [vmem:[%s1599_s29 + $0x18] sm:$0xff] }
  0x4b   : > { %v981_v38 = vshrl.u32 %v1506_v37, 16  ;;  %v984_v40 = vshll.u32 %v1506_v37, 16 }
  0x4d   : > { %v983_v9 = vrot.slane %v981_v38, 2  ;;  %v986_v42 = vrot.slane %v984_v40, 3 }
  0x4f   : > { %v987_v46 = vor.u32 %v986_v42, %v983_v9 }
  0x51   : > { %v988_v48 = vsel %vm962_vm5, %v978_v32, %v987_v46 }
  0x57   : > { %1330 = vmatmul.msk.bf16.gmra.mxu1 %vm277_vm1, %v1614_v10  ;;  %1346 = vmatmul.msk.bf16.gmra.mxu2 %vm277_vm1, %v399_v56  ;;  %v656_v10 = vshrl.u32 %v1751_v61, 16  ;;  %v874_v56 = vrot.slane %v1506_v37, 2 }
  0x59   : > { %v658_v3 = vrot.slane %v656_v10, 1  ;;  %v1805_v10 = vld [vmem:[%s1599_s29 + $0x28] sm:$0xff] }
  0x5a   : > { %1380 = vmatmul.msk.bf16.gmra.mxu3 %vm277_vm1, %v527_v39  ;;  %1397 = vmatmul.msk.bf16.gmra.mxu0 %vm277_vm1, %v654_v60  ;;  %v751_v39 = vsel %vm744_vm4, %v748_v49, %v750_v55  ;;  %v875_v60 = vsel %vm744_vm4, %v872_v44, %v874_v56  ;;  %v999_v7 = vshrl.u32 %v1805_v10, 16  ;;  %v1002_v49 = vshll.u32 %v1805_v10, 16 }
  0x5b   : > { %v662_v12 = vor.u32 %v661_v4, %v658_v3  ;;  %v1104_v16 = vrot.slane %v1805_v10, 3 }
  0x5c   : > { %v1001_v4 = vrot.slane %v999_v7, 2  ;;  %v1004_v5 = vrot.slane %v1002_v49, 3 }
  0x5d   : > { %v663_v18 = vsel %vm610_vm3, %v653_v54, %v662_v12  ;;  %v995_v54 = vrot.slane %v993_v53, 3  ;;  %v876_v12 = vrot.slane %v1788_v51, 2  ;;  %v1105_v23 = vsel %vm1096_vm6, %v1102_v58, %v1104_v16 }
  0x5f   : > { %v996_v57 = vor.u32 %v995_v54, %v992_v30  ;;  %v877_v20 = vsel %vm744_vm4, %v874_v56, %v876_v12 }
  0x61   : > { %v997_v62 = vsel %vm962_vm5, %v987_v46, %v996_v57 }
  0x67   : > { %1331 = vmatmul.msk.bf16.gmra.mxu1 %vm277_vm1, %v1617_v11  ;;  %1347 = vmatmul.msk.bf16.gmra.mxu2 %vm277_vm1, %v401_v15  ;;  %v966_v11 = vrot.slane %v964_v28, 2  ;;  %v1005_v15 = vor.u32 %v1004_v5, %v1001_v4 }
  0x69   : > { %v970_v31 = vor.u32 %v969_v26, %v966_v11  ;;  %v1006_v41 = vsel %vm962_vm5, %v996_v57, %v1005_v15 }
  0x6a   : > { %1381 = vmatmul.msk.bf16.gmra.mxu3 %vm277_vm1, %v529_v17  ;;  %1398 = vmatmul.msk.bf16.gmra.mxu0 %vm277_vm1, %v663_v18  ;;  %v960_v17 = vunpack.c.l.b16 %v953_v13 }
  0x6b   : > { %v979_v35 = vsel %vm962_vm5, %v970_v31, %v978_v32 }
  0x6c   : > { %v961_v24 = vpack.c.b16 %v960_v17, %v960_v17 }
  0x6e   : > { %v1008_v11 = vshrl.u32 %v961_v24, 16  ;;  %v1011_v26 = vshll.u32 %v961_v24, 16  ;;  %v1106_v40 = vrot.slane %v961_v24, 3 }
  0x70   : > { %v1010_v33 = vrot.slane %v1008_v11, 2 }
  0x77   : > { %1348 = vmatmul.msk.bf16.gmra.mxu2 %vm277_vm1, %v1735_v45  ;;  %1411 = vmatmul.msk.bf16.vlgmr.msra.gmra.mxu1 %vm277_vm1, %v747_v59  ;;  %v1100_v45 = vrot.slane %v1506_v37, 3 }
  0x79   : > { %v1101_v50 = vsel %vm1096_vm6, %v1098_v34, %v1100_v45  ;;  %v1103_v25 = vsel %vm1096_vm6, %v1100_v45, %v1102_v58  ;;  %v1013_v34 = vrot.slane %v1011_v26, 3  ;;  %v837_v45 = vld [vmem:[%s1599_s29 + $0x30] sm:$0x3] }
  0x7a   : > { %1461 = vmatmul.msk.bf16.vlgmr.msra.gmra.mxu3 %vm277_vm1, %v979_v35  ;;  %1478 = vmatmul.msk.bf16.vlgmr.msra.gmra.mxu0 %vm277_vm1, %v1099_v36  ;;  %v754_v35 = vrot.slane %v1751_v61, 2  ;;  %v878_v36 = vrot.slane %v1805_v10, 2 }
  0x7b   : > { %v1014_v38 = vor.u32 %v1013_v34, %v1010_v33 }
  0x7c   : > { %v755_v42 = vsel %vm744_vm4, %v752_v6, %v754_v35  ;;  %v879_v43 = vsel %vm744_vm4, %v876_v12, %v878_v36 }
  0x87   : > { %1412 = vmatmul.msk.bf16.gmra.mxu1 %vm277_vm1, %v749_v1  ;;  %1444 = vmatmul.msk.bf16.vlgmr.msra.gmra.mxu2 %vm277_vm1, %v873_v47  ;;  %v1015_v47 = vsel %vm962_vm5, %v1005_v15, %v1014_v38 }
  0x8a   : > { %1462 = vmatmul.msk.bf16.gmra.mxu3 %vm277_vm1, %v988_v48  ;;  %1479 = vmatmul.msk.bf16.gmra.mxu0 %vm277_vm1, %v1101_v50  ;;  %v1107_v48 = vsel %vm1096_vm6, %v1104_v16, %v1106_v40  ;;  %v864_v50 = vunpack.c.l.b16 %v837_v45 }
  0x8c   : > { %v870_v30 = vpack.c.b16 %v864_v50, %v864_v50 }
  0x94   : > { %v307_v59 = vpop.f32.mrf.mxu1 }
  0x97   : > { %1413 = vmatmul.msk.bf16.gmra.mxu1 %vm277_vm1, %v751_v39  ;;  %1445 = vmatmul.msk.bf16.gmra.mxu2 %vm277_vm1, %v875_v60  ;;  %v302_v63 = vpop.f32.mrf.mxu0 }
  0x9a   : > { %v1807_v0 = vpop.f32.mrf.mxu2  ;;  %1463 = vmatmul.msk.bf16.gmra.mxu3 %vm277_vm1, %v997_v62  ;;  %1480 = vmatmul.msk.bf16.gmra.mxu0 %vm277_vm1, %v1103_v25 }
  0x9c   : > { %v309_v1 = vpop.f32.mrf.mxu1 }
  0x9d   : > { %v1813_v2 = vpop.f32.mrf.mxu3 }
  0x9f   : > { %v304_v3 = vpop.f32.mrf.mxu0 }
  0xa2   : > { %v1818_v14 = vpop.f32.mrf.mxu2 }
  0xa4   : > { %v358_v18 = vpop.f32.mrf.mxu1 }
  0xa5   : > { %v359_v21 = vadd.f32 %v358_v18, %v302_v63  ;;  %v1823_v28 = vpop.f32.mrf.mxu3 }
  0xa7   : > { %1414 = vmatmul.msk.bf16.gmra.mxu1 %vm277_vm1, %v753_v19  ;;  %1446 = vmatmul.msk.bf16.gmra.mxu2 %vm277_vm1, %v877_v20  ;;  %v700_v22 = vpop.f32.mrf.mxu0 }
  0xaa   : > { %v317_v8 = vpop.f32.mrf.mxu2  ;;  %1464 = vmatmul.msk.bf16.gmra.mxu3 %vm277_vm1, %v1006_v41  ;;  %1481 = vmatmul.msk.bf16.gmra.mxu0 %vm277_vm1, %v1105_v23 }
  0xac   : > { %v360_v27 = vpop.f32.mrf.mxu1 }
  0xad   : > { %v361_v29 = vadd.f32 %v360_v27, %v304_v3  ;;  %v566_v31 = vpop.f32.mrf.mxu3 }
  0xaf   : > { %v702_v32 = vpop.f32.mrf.mxu0 }
  0xb2   : > { %v319_v37 = vpop.f32.mrf.mxu2 }
  0xb4   : > { %v363_v9 = vpop.f32.mrf.mxu1 }
  0xb5   : > { %v364_v44 = vadd.f32 %v363_v9, %v307_v59  ;;  %v568_v46 = vpop.f32.mrf.mxu3  ;;  %v880_v59 = vrot.slane %v870_v30, 2 }
  0xb7   : > { %1415 = vmatmul.msk.bf16.gmra.mxu1 %vm277_vm1, %v755_v42  ;;  %1447 = vmatmul.msk.bf16.gmra.mxu2 %vm277_vm1, %v879_v43  ;;  %v705_v61 = vpop.f32.mrf.mxu0  ;;  %v881_v63 = vsel %vm744_vm4, %v878_v36, %v880_v59 }
  0xba   : > { %v440_v51 = vpop.f32.mrf.mxu2  ;;  %1465 = vmatmul.msk.bf16.gmra.mxu3 %vm277_vm1, %v1015_v47  ;;  %1482 = vmatmul.msk.bf16.gmra.mxu0 %vm277_vm1, %v1107_v48 }
  0xbb   : > { %v465_v52 = vadd.f32 %v440_v51, %v359_v21 }
  0xbc   : > { %v365_v53 = vpop.f32.mrf.mxu1 }
  0xbd   : > { %v591_v54 = vadd.f32 %v566_v31, %v465_v52  ;;  %v366_v55 = vadd.f32 %v365_v53, %v309_v1  ;;  %v571_v56 = vpop.f32.mrf.mxu3 }
  0xbf   : > { %v707_v57 = vpop.f32.mrf.mxu0  ;;  %v1842_v58 = vadd.f32 %v700_v22, %v591_v54 }
  0xc2   : > { %v442_v39 = vpop.f32.mrf.mxu2 }
  0xc3   : > { %v466_v60 = vadd.f32 %v442_v39, %v361_v29 }
  0xc4   : > { %v368_v62 = vpop.f32.mrf.mxu1 }
  0xc5   : > { %v592_v25 = vadd.f32 %v568_v46, %v466_v60  ;;  %v369_v10 = vadd.f32 %v368_v62, %v1807_v0  ;;  %v573_v7 = vpop.f32.mrf.mxu3 }
  0xc7   : > { %1448 = vmatmul.msk.bf16.gmra.mxu2 %vm277_vm1, %v881_v63  ;;  %v710_v49 = vpop.f32.mrf.mxu0  ;;  %v1847_v3 = vadd.f32 %v702_v32, %v592_v25 }
  0xca   : > { %v445_v1 = vpop.f32.mrf.mxu2 }
  0xcb   : > { %v467_v4 = vadd.f32 %v445_v1, %v364_v44 }
  0xcc   : > { %v370_v5 = vpop.f32.mrf.mxu1 }
  0xcd   : > { %v593_v6 = vadd.f32 %v571_v56, %v467_v4  ;;  %v371_v12 = vadd.f32 %v370_v5, %v1818_v14  ;;  %v576_v13 = vpop.f32.mrf.mxu3  ;;  %v1872_v5 = vld [vmem:[%s1924_s2] ss:$0 sm:$0xff] }
  0xcf   : > { %v712_v15 = vpop.f32.mrf.mxu0  ;;  %v1850_v16 = vadd.f32 %v705_v61, %v593_v6 }
  0xd2   : > { %v447_v17 = vpop.f32.mrf.mxu2 }
  0xd3   : > { %v468_v18 = vadd.f32 %v447_v17, %v366_v55 }
  0xd4   : > { %v373_v19 = vpop.f32.mrf.mxu1 }
  0xd5   : > { %v594_v0 = vadd.f32 %v573_v7, %v468_v18  ;;  %v374_v20 = vadd.f32 %v373_v19, %v317_v8  ;;  %v578_v21 = vpop.f32.mrf.mxu3 }
  0xd7   : > { %v715_v41 = vpop.f32.mrf.mxu0  ;;  %v1852_v22 = vadd.f32 %v707_v57, %v594_v0 }
  0xda   : > { %v450_v23 = vpop.f32.mrf.mxu2 }
  0xdb   : > { %v469_v24 = vadd.f32 %v450_v23, %v369_v10 }
  0xdc   : > { %v375_v11 = vpop.f32.mrf.mxu1 }
  0xdd   : > { %v595_v26 = vadd.f32 %v576_v13, %v469_v24  ;;  %v376_v27 = vadd.f32 %v375_v11, %v319_v37  ;;  %v581_v29 = vpop.f32.mrf.mxu3 }
  0xdf   : > { %v717_v14 = vpop.f32.mrf.mxu0  ;;  %v1854_v31 = vadd.f32 %v710_v49, %v595_v26 }
  0xe2   : > { %v452_v32 = vpop.f32.mrf.mxu2 }
  0xe3   : > { %v470_v33 = vadd.f32 %v452_v32, %v371_v12 }
  0xe4   : > { %v378_v34 = vpop.f32.mrf.mxu1 }
  0xe5   : > { %v596_v35 = vadd.f32 %v578_v21, %v470_v33  ;;  %v379_v36 = vadd.f32 %v378_v34, %v1813_v2  ;;  %v583_v8 = vpop.f32.mrf.mxu3 }
  0xe7   : > { %v1857_v38 = vadd.f32 %v712_v15, %v596_v35  ;;  %v720_v40 = vpop.f32.mrf.mxu0 }
  0xea   : > { %v455_v9 = vpop.f32.mrf.mxu2 }
  0xeb   : > { %v471_v42 = vadd.f32 %v455_v9, %v374_v20 }
  0xec   : > { %v380_v43 = vpop.f32.mrf.mxu1 }
  0xed   : > { %v597_v44 = vadd.f32 %v581_v29, %v471_v42  ;;  %v381_v37 = vadd.f32 %v380_v43, %v1823_v28  ;;  %v586_v46 = vpop.f32.mrf.mxu3 }
  0xef   : > { %v1860_v45 = vadd.f32 %v715_v41, %v597_v44  ;;  %v722_v61 = vpop.f32.mrf.mxu0 }
  0xf2   : > { %v457_v47 = vpop.f32.mrf.mxu2 }
  0xf3   : > { %v472_v48 = vadd.f32 %v457_v47, %v376_v27 }
  0xf4   : > { %v792_v50 = vpop.f32.mrf.mxu1 }
  0xf5   : > { %v598_v51 = vadd.f32 %v583_v8, %v472_v48  ;;  %v588_v52 = vpop.f32.mrf.mxu3  ;;  %v817_v7 = vadd.f32 %v792_v50, %v1842_v58 }
  0xf7   : > { %v1862_v2 = vadd.f32 %v717_v14, %v598_v51  ;;  %v1144_v54 = vpop.f32.mrf.mxu0 }
  0xfa   : > { %v460_v53 = vpop.f32.mrf.mxu2 }
  0xfb   : > { %v473_v30 = vadd.f32 %v460_v53, %v379_v36 }
  0xfc   : > { %v794_v57 = vpop.f32.mrf.mxu1 }
  0xfd   : > { %v599_v55 = vadd.f32 %v586_v46, %v473_v30  ;;  %v1052_v56 = vpop.f32.mrf.mxu3  ;;  %v818_v15 = vadd.f32 %v794_v57, %v1847_v3 }
  0xff   : > { %v1864_v59 = vadd.f32 %v720_v40, %v599_v55  ;;  %v1146_v63 = vpop.f32.mrf.mxu0 }
 0x102   : > { %v462_v28 = vpop.f32.mrf.mxu2 }
 0x103   : > { %v474_v39 = vadd.f32 %v462_v28, %v381_v37 }
 0x104   : > { %v797_v10 = vpop.f32.mrf.mxu1 }
 0x105   : > { %v600_v60 = vadd.f32 %v588_v52, %v474_v39  ;;  %v1054_v62 = vpop.f32.mrf.mxu3  ;;  %v819_v23 = vadd.f32 %v797_v10, %v1850_v16 }
 0x107   : > { %v1866_v25 = vadd.f32 %v722_v61, %v600_v60  ;;  %v1149_v13 = vpop.f32.mrf.mxu0 }
 0x10a   : > { %v918_v49 = vpop.f32.mrf.mxu2 }
 0x10b   : > { %v943_v1 = vadd.f32 %v918_v49, %v817_v7 }
 0x10c   : > { %v799_v18 = vpop.f32.mrf.mxu1 }
 0x10d   : > { %v1077_v4 = vadd.f32 %v1052_v56, %v943_v1  ;;  %v1057_v6 = vpop.f32.mrf.mxu3  ;;  %v820_v35 = vadd.f32 %v799_v18, %v1852_v22 }
 0x10f   : > { %v1169_v12 = vadd.f32 %v1144_v54, %v1077_v4  ;;  %v1151_v26 = vpop.f32.mrf.mxu0 }
 0x111   : > { %v1183_v17 = vadd.f32 %v1872_v5, %v1169_v12 }
 0x112   : > { %v920_v19 = vpop.f32.mrf.mxu2 }
 0x113   : > { %v1193_v0 = vmax.f32 %v1183_v17, 0.0  ;;  %v944_v58 = vadd.f32 %v920_v19, %v818_v15 }
 0x114   : > { %v802_v14 = vpop.f32.mrf.mxu1 }
 0x115   : > { %v1203_v20 = vpack.c.bf16 %v1193_v0, %v1193_v0  ;;  %v1078_v21 = vadd.f32 %v1054_v62, %v944_v58  ;;  %v1059_v3 = vpop.f32.mrf.mxu3  ;;  %v821_v47 = vadd.f32 %v802_v14, %v1854_v31 }
 0x117   : > { %1214 = vst.msk [vmem:[%s1880_s7] sm:$0xf] %vm1213_vm7, %v1203_v20  ;;  %v1170_v41 = vadd.f32 %v1146_v63, %v1078_v21  ;;  %v1154_v42 = vpop.f32.mrf.mxu0 }
 0x119   : > { %v1184_v24 = vadd.f32 %v1872_v5, %v1170_v41 }
 0x11a   : > { %v923_v11 = vpop.f32.mrf.mxu2 }
 0x11b   : > { %v1194_v27 = vmax.f32 %v1184_v24, 0.0  ;;  %v945_v29 = vadd.f32 %v923_v11, %v819_v23 }
 0x11c   : > { %v804_v37 = vpop.f32.mrf.mxu1 }
 0x11d   : > { %v1204_v32 = vpack.c.bf16 %v1194_v27, %v1194_v27  ;;  %v1079_v33 = vadd.f32 %v1057_v6, %v945_v29  ;;  %v1062_v40 = vpop.f32.mrf.mxu3  ;;  %v822_v56 = vadd.f32 %v804_v37, %v1857_v38 }
 0x11f   : > { %1215 = vst.msk [vmem:[%s1880_s7 + $0x4] sm:$0xf] %vm1213_vm7, %v1204_v32  ;;  %v1171_v34 = vadd.f32 %v1149_v13, %v1079_v33  ;;  %v1156_v30 = vpop.f32.mrf.mxu0 }
 0x121   : > { %v1185_v36 = vadd.f32 %v1872_v5, %v1171_v34 }
 0x122   : > { %v925_v8 = vpop.f32.mrf.mxu2 }
 0x123   : > { %v1195_v16 = vmax.f32 %v1185_v36, 0.0  ;;  %v946_v9 = vadd.f32 %v925_v8, %v820_v35 }
 0x124   : > { %v807_v55 = vpop.f32.mrf.mxu1 }
 0x125   : > { %v1205_v43 = vpack.c.bf16 %v1195_v16, %v1195_v16  ;;  %v1080_v44 = vadd.f32 %v1059_v3, %v946_v9  ;;  %v1064_v51 = vpop.f32.mrf.mxu3  ;;  %v823_v49 = vadd.f32 %v807_v55, %v1860_v45 }
 0x127   : > { %1216 = vst.msk [vmem:[%s1880_s7 + $0x8] sm:$0xf] %vm1213_vm7, %v1205_v43  ;;  %v1172_v46 = vadd.f32 %v1151_v26, %v1080_v44  ;;  %v1159_v7 = vpop.f32.mrf.mxu0 }
 0x129   : > { %v1186_v61 = vadd.f32 %v1872_v5, %v1172_v46 }
 0x12a   : > { %v928_v48 = vpop.f32.mrf.mxu2 }
 0x12b   : > { %v1196_v22 = vmax.f32 %v1186_v61, 0.0  ;;  %v947_v50 = vadd.f32 %v928_v48, %v821_v47 }
 0x12c   : > { %v809_v4 = vpop.f32.mrf.mxu1 }
 0x12d   : > { %v1206_v52 = vpack.c.bf16 %v1196_v22, %v1196_v22  ;;  %v1081_v53 = vadd.f32 %v1062_v40, %v947_v50  ;;  %v1067_v63 = vpop.f32.mrf.mxu3  ;;  %v824_v19 = vadd.f32 %v809_v4, %v1862_v2 }
 0x12f   : > { %1217 = vst.msk [vmem:[%s1880_s7 + $0xc] sm:$0xf] %vm1213_vm7, %v1206_v52  ;;  %v1173_v54 = vadd.f32 %v1154_v42, %v1081_v53  ;;  %v1161_v58 = vpop.f32.mrf.mxu0 }
 0x131   : > { %v1187_v57 = vadd.f32 %v1872_v5, %v1173_v54 }
 0x132   : > { %v930_v28 = vpop.f32.mrf.mxu2 }
 0x133   : > { %v1197_v31 = vmax.f32 %v1187_v57, 0.0  ;;  %v948_v39 = vadd.f32 %v930_v28, %v822_v56 }
 0x134   : > { %v812_v41 = vpop.f32.mrf.mxu1 }
 0x135   : > { %v1207_v60 = vpack.c.bf16 %v1197_v31, %v1197_v31  ;;  %v1082_v62 = vadd.f32 %v1064_v51, %v948_v39  ;;  %v1069_v18 = vpop.f32.mrf.mxu3  ;;  %v825_v11 = vadd.f32 %v812_v41, %v1864_v59 }
 0x137   : > { %1218 = vst.msk [vmem:[%s1880_s7 + $0x10] sm:$0xf] %vm1213_vm7, %v1207_v60  ;;  %v1174_v10 = vadd.f32 %v1156_v30, %v1082_v62  ;;  %v1164_v32 = vpop.f32.mrf.mxu0 }
 0x139   : > { %v1188_v1 = vadd.f32 %v1872_v5, %v1174_v10 }
 0x13a   : > { %v933_v6 = vpop.f32.mrf.mxu2 }
 0x13b   : > { %v1198_v38 = vmax.f32 %v1188_v1, 0.0  ;;  %v949_v12 = vadd.f32 %v933_v6, %v823_v49 }
 0x13c   : > { %v814_v35 = vpop.f32.mrf.mxu1 }
 0x13d   : > { %v1208_v13 = vpack.c.bf16 %v1198_v38, %v1198_v38  ;;  %v1083_v15 = vadd.f32 %v1067_v63, %v949_v12  ;;  %v1072_v27 = vpop.f32.mrf.mxu3  ;;  %v826_v8 = vadd.f32 %v814_v35, %v1866_v25 }
 0x13f   : > { %1219 = vst.msk [vmem:[%s1880_s7 + $0x14] sm:$0xf] %vm1213_vm7, %v1208_v13  ;;  %v1175_v17 = vadd.f32 %v1159_v7, %v1083_v15  ;;  %v1166_v37 = vpop.f32.mrf.mxu0 }
 0x141   : > { %v1189_v0 = vadd.f32 %v1872_v5, %v1175_v17 }
 0x142   : > { %v935_v20 = vpop.f32.mrf.mxu2 }
 0x143   : > { %v1199_v45 = vmax.f32 %v1189_v0, 0.0  ;;  %v950_v21 = vadd.f32 %v935_v20, %v824_v19 }
 0x145   : > { %v1209_v3 = vpack.c.bf16 %v1199_v45, %v1199_v45  ;;  %v1084_v23 = vadd.f32 %v1069_v18, %v950_v21  ;;  %v1074_v42 = vpop.f32.mrf.mxu3 }
 0x147   : > { %1220 = vst.msk [vmem:[%s1880_s7 + $0x18] sm:$0xf] %vm1213_vm7, %v1209_v3  ;;  %v1176_v24 = vadd.f32 %v1161_v58, %v1084_v23 }
 0x149   : > { %v1190_v26 = vadd.f32 %v1872_v5, %v1176_v24 }
 0x14a   : > { %v938_v29 = vpop.f32.mrf.mxu2 }
 0x14b   : > { %v1200_v2 = vmax.f32 %v1190_v26, 0.0  ;;  %v951_v14 = vadd.f32 %v938_v29, %v825_v11 }
 0x14d   : > { %v1210_v33 = vpack.c.bf16 %v1200_v2, %v1200_v2  ;;  %v1085_v34 = vadd.f32 %v1072_v27, %v951_v14 }
 0x14f   : > { %1221 = vst.msk [vmem:[%s1880_s7 + $0x1c] sm:$0xf] %vm1213_vm7, %v1210_v33  ;;  %v1177_v36 = vadd.f32 %v1164_v32, %v1085_v34 }
 0x151   : > { %v1191_v40 = vadd.f32 %v1872_v5, %v1177_v36 }
 0x152   : > { %v940_v59 = vpop.f32.mrf.mxu2 }
 0x153   : > { %v1201_v16 = vmax.f32 %v1191_v40, 0.0  ;;  %v952_v9 = vadd.f32 %v940_v59, %v826_v8 }
 0x155   : > { %v1211_v43 = vpack.c.bf16 %v1201_v16, %v1201_v16  ;;  %v1086_v44 = vadd.f32 %v1074_v42, %v952_v9 }
 0x157   : > { %1222 = vst.msk [vmem:[%s1880_s7 + $0x20] sm:$0xf] %vm1213_vm7, %v1211_v43  ;;  %v1178_v46 = vadd.f32 %v1166_v37, %v1086_v44 }
 0x159   : > { %v1192_v47 = vadd.f32 %v1872_v5, %v1178_v46 }
 0x15b   : > { %v1202_v61 = vmax.f32 %v1192_v47, 0.0 }
 0x15d   : > { %v1212_v48 = vpack.c.bf16 %v1202_v61, %v1202_v61 }
 0x15f   : > { %1223 = vst.msk [vmem:[%s1880_s7 + $0x24] sm:$0xf] %vm1213_vm7, %v1212_v48 }
 0x160 PF: > { %s13_s12 = sadd.s32 1, %s1545_s12  }
 0x161   : > { %p10_p4 = scmp.ge.s32.totalorder %s13_s12, 4  }
 0x163   :  { %12 = sbr.rel (!%p10_p4) target bundleno = 1 (0x1), region = 70 }

// kernel: resnet_encoder_forward.12
= control target key start
LH: loop header
LB: loop body
LE: loop exit
PB: predicated region body
PF: predicated region fallthrough
CT: control target
= control target key end

     0   :  { %s2569_s15 = smov 0   ;;  %s3165_s0 = inlined_call_operand.vmem [shape: bf16[2,163,8], index: 0, kind: input, shape index: {}]   ;;  %s3166_s1 = inlined_call_operand.vmem [shape: bf16[2,162,8], index: 1, kind: input, shape index: {}]   ;;  %s3167_s2 = inlined_call_operand.vmem [shape: bf16[3,3,8,32], index: 2, kind: input, shape index: {}]   ;;  %s3168_s3 = inlined_call_operand.vmem [shape: f32[1,32], index: 3, kind: input, shape index: {}]   ;;  %s3169_s4 = inlined_call_operand.vmem [shape: bf16[2,144,32], index: 4, kind: output, shape index: {}]  }
   0x1 LB: > { %s2110_s16 = sadd.s32 4294967295, %s2542_s15   ;;  %p2114_p0 = scmp.ge.s32.totalorder %s2542_s15, 1  ;;  %s2542_s15 = sphi %s2569_s15, %s14_s15  }
   0x2   : > { %p172_p1 = scmp.lt.s32.totalorder %s2542_s15, 3 }
   0x4   : > { %p173_p2 = pnand %p2114_p0, %p172_p1 }
   0x5   : > { %p203_p3 = scmp.lt.s32.totalorder (!%p173_p2), %s2110_s16, 1 }
   0x6   : > { %176 = sbr.rel (%p173_p2) target bundleno = 492 (0x1ec), region = 36 }
   0xb   : > { %v2118_v0 = vld [vmem:[%s3167_s2 + $0x4] sm:$0xf]  ;;  %vm331_vm0 = vcmask 1043456   ;;  %v2209_v2 = vld [vmem:[%s3167_s2 + $0x8] sm:$0xf]  ;;  %s3171_s16 = smov (!%p203_p3, %s2110_s16), 1 }
   0xc   : > { %v333_v1 = vsel %vm331_vm0, %v2118_v0, 0  ;;  %v237_v3 = vld [vmem:[%s3167_s2] sm:$0xf]  ;;  %v692_v4 = vsel %vm331_vm0, %v2209_v2, 0  ;;  %v2255_v6 = vld [vmem:[%s3167_s2 + $0xc] sm:$0xf] }
   0xd   : > { %2519 = vmatpush.bf16.msra.mxu1 %v333_v1  ;;  %2520 = vmatpush.bf16.msra.mxu2 %v333_v1  ;;  %v462_v5 = vsel %vm331_vm0, %v237_v3, 0  ;;  %v939_v7 = vsel %vm331_vm0, %v2255_v6, 0  ;;  %s2522_s25 = smul.u32 84, %s3171_s16  ;;  %vm303_vm1 = vcmask 64512   ;;  %v2297_v12 = vld [vmem:[%s3167_s2 + $0x10] sm:$0xf] }
   0xe   : > { %2521 = vmatpush.bf16.msra.mxu3 %v333_v1  ;;  %342 = vmatpush.bf16.msra.mxu0 %v333_v1  ;;  %v1186_v13 = vsel %vm331_vm0, %v2297_v12, 0  ;;  %v2353_v26 = vld [vmem:[%s3167_s2 + $0x18] sm:$0xf]  ;;  %v2399_v28 = vld [vmem:[%s3167_s2 + $0x1c] sm:$0xf]  ;;  %vm1266_vm4 = vcmask 1046528  }
   0xf   : > { %s2599_s28 = scalar_lea.vmem %s3166_s1, %s2522_s25  ;;  %s2616_s7 = scalar_lea.vmem %s3165_s0, %s2522_s25  ;;  %vm587_vm2 = vsmask.f32 7424  ;;  %v1504_v29 = vsel %vm331_vm0, %v2353_v26, 0  ;;  %v1694_v30 = vsel %vm331_vm0, %v2399_v28, 0  ;;  %v2343_v31 = vld [vmem:[%s3167_s2 + $0x14] sm:$0xf] }
  0x10   : > { %v2467_v8 = vld [vmem:[%s2599_s28 + $0x8] sm:$0xff]  ;;  %v2470_v9 = vld [vmem:[%s2599_s28 + $0x20] sm:$0xff]  ;;  %v2473_v10 = vld [vmem:[%s2599_s28 + $0x38] sm:$0xff]  ;;  %v1314_v35 = vsel %vm331_vm0, %v2343_v31, 0  ;;  %vm1774_vm3 = vsmask.f32 6400 }
  0x11   : > { %701 = vmatpush.bf16.msrb.mxu2 %v692_v4  ;;  %471 = vmatpush.bf16.msrb.mxu1 %v462_v5  ;;  %v2466_v11 = vld [vmem:[%s2599_s28] sm:$0xff]  ;;  %v2620_v15 = vld [vmem:[%s2616_s7 + $0x4] sm:$0xf0]  ;;  %v2493_v17 = vld [vmem:[%s2599_s28 + $0xc] sm:$0xff]  ;;  %s2523_s20 = smul.u32 72, %s3171_s16  ;;  %vm2024_vm5 = vcmask 257024  }
  0x12   : > { %948 = vmatpush.bf16.msrb.mxu3 %v939_v7  ;;  %2156 = vmatmul.msk.bf16.vlgmr.msra.gmra.mxu1 %vm303_vm1, %v2467_v8  ;;  %v766_v14 = vld [vmem:[%s2616_s7 + $0x4] sm:$0xff]   ;;  %v2468_v19 = vld [vmem:[%s2599_s28 + $0x10] sm:$0xff]  ;;  %v1090_v24 = vshll.u32 %v2493_v17, 16  ;;  %v2445_v36 = vld [vmem:[%s3167_s2 + $0x20] sm:$0xf]  ;;  %v1094_v47 = vshrl.u32 %v2493_v17, 16 }
  0x13   : > { %2159 = vmatmul.msk.bf16.vlgmr.msra.gmra.mxu2 %vm303_vm1, %v2470_v9  ;;  %2162 = vmatmul.msk.bf16.vlgmr.msra.gmra.mxu3 %vm303_vm1, %v2473_v10  ;;  %v2492_v16 = vld [vmem:[%s2599_s28 + $0x4] sm:$0xff]  ;;  %v2642_v32 = vld [vmem:[%s2616_s7 + $0xc] sm:$0xff]  ;;  %v838_v33 = vshll.u32 %v766_v14, 16  ;;  %v1892_v37 = vsel %vm331_vm0, %v2445_v36, 0  ;;  %v836_v38 = vshrl.u32 %v766_v14, 16  ;;  %v2494_v43 = vld [vmem:[%s2599_s28 + $0x14] sm:$0xff]  ;;  %s3091_s23 = scalar_lea.vmem %s3169_s4, %s2523_s20 }
  0x14   : > { %2155 = vmatmul.msk.bf16.vlgmr.msra.gmra.mxu0 %vm303_vm1, %v2466_v11  ;;  %v1085_v18 = vshll.u32 %v2492_v16, 16  ;;  %v2471_v20 = vld [vmem:[%s2599_s28 + $0x28] sm:$0xff]  ;;  %v2474_v21 = vld [vmem:[%s2599_s28 + $0x40] sm:$0xff]  ;;  %v1083_v22 = vshrl.u32 %v2492_v16, 16  ;;  %v1092_v27 = vrot.slane %v1090_v24, 1  ;;  %v843_v40 = vshll.u32 %v2642_v32, 16 }
  0x15   : > { %1195 = vmatpush.bf16.msrb.mxu0 %v1186_v13  ;;  %1513 = vmatpush.bf16.msra.mxu2 %v1504_v29  ;;  %v840_v39 = vrot.slane %v838_v33, 1  ;;  %v2469_v44 = vld [vmem:[%s2599_s28 + $0x18] sm:$0xff]  ;;  %v2472_v45 = vld [vmem:[%s2599_s28 + $0x30] sm:$0xff]  ;;  %v2475_v46 = vld [vmem:[%s2616_s7] sm:$0xff]  ;;  %v1098_v48 = vshll.u32 %v2494_v43, 16  ;;  %v847_v59 = vshrl.u32 %v2642_v32, 16 }
  0x16   : > { %v1087_v23 = vrot.slane %v1085_v18, 1  ;;  %1703 = vmatpush.bf16.msra.mxu3 %v1694_v30  ;;  %1323 = vmatpush.bf16.msra.mxu1 %v1314_v35  ;;  %v845_v42 = vrot.slane %v843_v40, 1  ;;  %v1096_v50 = vor.u32 %v1094_v47, %v1092_v27  ;;  %v2476_v52 = vld [vmem:[%s2616_s7 + $0x8] sm:$0xff]  ;;  %v591_v53 = vshll.u32 %v2475_v46, 16  ;;  %v2663_v55 = vld [vmem:[%s2616_s7 + $0x14] sm:$0xff]  ;;  %v2495_v1 = vld [vmem:[%s2599_s28 + $0x1c] sm:$0xff] }
  0x17   : > { %v841_v41 = vor.u32 %v840_v39, %v836_v38  ;;  %v1100_v51 = vrot.slane %v1098_v48, 1  ;;  %v589_v56 = vshrl.u32 %v2475_v46, 16  ;;  %v596_v58 = vshll.u32 %v2476_v52, 16  ;;  %v2457_v2 = vld [vmem:[%s2616_s7] sm:$0xff]  ;;  %v2477_v9 = vld [vmem:[%s2616_s7 + $0x10] sm:$0xff]  ;;  %v2478_v29 = vld [vmem:[%s2616_s7 + $0x18] sm:$0xff] }
  0x18   : > { %v1088_v25 = vor.u32 %v1087_v23, %v1083_v22  ;;  %v593_v57 = vrot.slane %v591_v53, 1  ;;  %v851_v60 = vshll.u32 %v2663_v55, 16  ;;  %v849_v63 = vor.u32 %v847_v59, %v845_v42  ;;  %v2678_v11 = vld [vmem:[%s2616_s7 + $0x1c] sm:$0xff]  ;;  %v2458_v22 = vld [vmem:[%s2616_s7 + $0x8] sm:$0xff] }
  0x19   : > { %1901 = vmatpush.bf16.msra.mxu0 %v1892_v37  ;;  %v846_v49 = vsel %vm587_vm2, %v841_v41, %v845_v42  ;;  %v1101_v54 = vsel %vm587_vm2, %v1096_v50, %v1100_v51  ;;  %v598_v62 = vrot.slane %v596_v58, 1  ;;  %v1102_v4 = vshrl.u32 %v2494_v43, 16  ;;  %v2693_v31 = vld [vmem:[%s2616_s7 + $0x24] sm:$0xff]  ;;  %v2497_v41 = vld [vmem:[%s2599_s28 + $0x2c] sm:$0xff] }
  0x1a   : > { %v1093_v34 = vsel %vm587_vm2, %v1088_v25, %v1092_v27  ;;  %v594_v61 = vor.u32 %v593_v57, %v589_v56  ;;  %v853_v0 = vrot.slane %v851_v60, 1  ;;  %v1106_v5 = vshll.u32 %v2495_v1, 16  ;;  %v2459_v42 = vld [vmem:[%s2616_s7 + $0x10] sm:$0xff] }
  0x1b   : > { %v1104_v7 = vor.u32 %v1102_v4, %v1100_v51  ;;  %v600_v12 = vshrl.u32 %v2476_v52, 16  ;;  %v604_v13 = vshll.u32 %v2477_v9, 16  ;;  %v855_v14 = vshrl.u32 %v2663_v55, 16  ;;  %v2708_v51 = vld [vmem:[%s2616_s7 + $0x2c] sm:$0xff] }
  0x1c   : > { %v599_v3 = vsel %vm587_vm2, %v594_v61, %v598_v62  ;;  %v854_v6 = vsel %vm587_vm2, %v849_v63, %v853_v0  ;;  %v1108_v8 = vrot.slane %v1106_v5, 1  ;;  %v859_v16 = vshll.u32 %v2678_v11, 16  ;;  %v2498_v61 = vld [vmem:[%s2599_s28 + $0x34] sm:$0xff]  ;;  %v2480_v5 = vld [vmem:[%s2616_s7 + $0x28] sm:$0xff] }
  0x1d   : > { %v602_v17 = vor.u32 %v600_v12, %v598_v62  ;;  %v606_v18 = vrot.slane %v604_v13, 1  ;;  %v1110_v24 = vshrl.u32 %v2495_v1, 16  ;;  %v608_v33 = vshrl.u32 %v2477_v9, 16  ;;  %v2460_v62 = vld [vmem:[%s2616_s7 + $0x18] sm:$0xff] }
  0x1e   : > { %v1109_v10 = vsel %vm587_vm2, %v1104_v7, %v1108_v8  ;;  %v863_v35 = vshrl.u32 %v2678_v11, 16  ;;  %v867_v36 = vshll.u32 %v2693_v31, 16  ;;  %v616_v52 = vshrl.u32 %v2478_v29, 16  ;;  %v2723_v7 = vld [vmem:[%s2616_s7 + $0x34] sm:$0xff] }
  0x1f   : > { %v607_v23 = vsel %vm587_vm2, %v602_v17, %v606_v18  ;;  %v1112_v27 = vor.u32 %v1110_v24, %v1108_v8  ;;  %v610_v37 = vor.u32 %v608_v33, %v606_v18  ;;  %v875_v56 = vshll.u32 %v2708_v51, 16  ;;  %v2499_v18 = vld [vmem:[%s2599_s28 + $0x3c] sm:$0xff] }
  0x20   : > { %v869_v40 = vrot.slane %v867_v36, 1  ;;  %v1130_v1 = vshll.u32 %v2498_v61, 16  ;;  %v628_v9 = vshll.u32 %v2480_v5, 16  ;;  %v883_v12 = vshll.u32 %v2723_v7, 16 }
  0x21   : > { %v877_v60 = vrot.slane %v875_v56, 1  ;;  %v887_v33 = vshrl.u32 %v2723_v7, 16 }
  0x22   : > { %2157 = vmatmul.msk.bf16.gmra.mxu1 %vm303_vm1, %v2468_v19  ;;  %v857_v19 = vor.u32 %v855_v14, %v853_v0  ;;  %v1126_v0 = vshrl.u32 %v2497_v41, 16  ;;  %v1132_v4 = vrot.slane %v1130_v1, 1  ;;  %v630_v14 = vrot.slane %v628_v9, 1 }
  0x23   : > { %2160 = vmatmul.msk.bf16.gmra.mxu2 %vm303_vm1, %v2471_v20  ;;  %2163 = vmatmul.msk.bf16.gmra.mxu3 %vm303_vm1, %v2474_v21  ;;  %v861_v20 = vrot.slane %v859_v16, 1  ;;  %v2496_v21 = vld [vmem:[%s2599_s28 + $0x24] sm:$0xff]  ;;  %v885_v17 = vrot.slane %v883_v12, 1 }
  0x24   : > { %2334 = vmatmul.msk.bf16.vlgmr.msrb.gmra.mxu0 %vm303_vm1, %v1093_v34  ;;  %v1114_v25 = vshll.u32 %v2496_v21, 16  ;;  %v612_v34 = vshll.u32 %v2478_v29, 16  ;;  %v632_v29 = vshrl.u32 %v2480_v5, 16 }
  0x25   : > { %v862_v26 = vsel %vm587_vm2, %v857_v19, %v861_v20  ;;  %v865_v39 = vor.u32 %v863_v35, %v861_v20  ;;  %v2461_v19 = vld [vmem:[%s2616_s7 + $0x20] sm:$0xff] }
  0x26   : > { %v1116_v28 = vrot.slane %v1114_v25, 1  ;;  %v614_v38 = vrot.slane %v612_v34, 1  ;;  %v634_v35 = vor.u32 %v632_v29, %v630_v14 }
  0x27   : > { %v870_v46 = vsel %vm587_vm2, %v865_v39, %v869_v40  ;;  %v2500_v39 = vld [vmem:[%s2599_s28 + $0x44] sm:$0xff] }
  0x28   : > { %v1117_v30 = vsel %vm587_vm2, %v1112_v27, %v1116_v28  ;;  %v615_v43 = vsel %vm587_vm2, %v610_v37, %v614_v38  ;;  %v618_v57 = vor.u32 %v616_v52, %v614_v38  ;;  %v889_v37 = vor.u32 %v887_v33, %v885_v17  ;;  %v2757_v52 = vld [vmem:[%s2616_s7 + $0x44] sm:$0xff] }
  0x32   : > { %2158 = vmatmul.msk.bf16.gmra.mxu1 %vm303_vm1, %v2469_v44  ;;  %v1118_v44 = vshrl.u32 %v2496_v21, 16  ;;  %v1134_v21 = vshrl.u32 %v2498_v61, 16 }
  0x33   : > { %2161 = vmatmul.msk.bf16.gmra.mxu2 %vm303_vm1, %v2472_v45  ;;  %2288 = vmatmul.msk.bf16.vlgmr.msrb.gmra.mxu3 %vm303_vm1, %v846_v49  ;;  %v1122_v45 = vshll.u32 %v2497_v41, 16  ;;  %v2479_v49 = vld [vmem:[%s2616_s7 + $0x20] sm:$0xff] }
  0x34   : > { %2335 = vmatmul.msk.bf16.gmra.mxu0 %vm303_vm1, %v1101_v54  ;;  %v1120_v47 = vor.u32 %v1118_v44, %v1116_v28  ;;  %v620_v53 = vshll.u32 %v2479_v49, 16  ;;  %v871_v54 = vshrl.u32 %v2693_v31, 16  ;;  %v624_v8 = vshrl.u32 %v2479_v49, 16  ;;  %v2738_v28 = vld [vmem:[%s2616_s7 + $0x3c] sm:$0xff] }
  0x35   : > { %v1124_v48 = vrot.slane %v1122_v45, 1  ;;  %v1136_v24 = vor.u32 %v1134_v21, %v1132_v4  ;;  %v891_v34 = vshll.u32 %v2738_v28, 16  ;;  %v1146_v44 = vshll.u32 %v2500_v39, 16  ;;  %v2482_v49 = vld [vmem:[%s2616_s7 + $0x38] sm:$0xff]  ;;  %v2483_v21 = vld [vmem:[%s2616_s7 + $0x40] sm:$0xff] }
  0x36   : > { %v622_v58 = vrot.slane %v620_v53, 1  ;;  %v873_v59 = vor.u32 %v871_v54, %v869_v40  ;;  %v2462_v40 = vld [vmem:[%s2616_s7 + $0x28] sm:$0xff]  ;;  %v652_v29 = vshll.u32 %v2483_v21, 16 }
  0x37   : > { %v1125_v50 = vsel %vm587_vm2, %v1120_v47, %v1124_v48  ;;  %v893_v38 = vrot.slane %v891_v34, 1 }
  0x38   : > { %v623_v63 = vsel %vm587_vm2, %v618_v57, %v622_v58  ;;  %v626_v13 = vor.u32 %v624_v8, %v622_v58  ;;  %v644_v58 = vshll.u32 %v2482_v49, 16  ;;  %v2463_v8 = vld [vmem:[%s2616_s7 + $0x30] sm:$0xff] }
  0x39   : > { %v894_v45 = vsel %vm587_vm2, %v889_v37, %v893_v38  ;;  %v2501_v37 = vld [vmem:[%s2616_s7 + $0x8] sm:$0xf0] }
  0x3a   : > { %v631_v20 = vsel %vm587_vm2, %v626_v13, %v630_v14  ;;  %v1150_v14 = vshrl.u32 %v2500_v39, 16 }
  0x42   : > { %2200 = vmatmul.msk.bf16.vlgmr.msrb.gmra.mxu1 %vm303_vm1, %v2457_v2  ;;  %v878_v2 = vsel %vm587_vm2, %v873_v59, %v877_v60  ;;  %v895_v59 = vshrl.u32 %v2738_v28, 16 }
  0x43   : > { %2246 = vmatmul.msk.bf16.vlgmr.msrb.gmra.mxu2 %vm303_vm1, %v599_v3  ;;  %2289 = vmatmul.msk.bf16.gmra.mxu3 %vm303_vm1, %v854_v6  ;;  %v1128_v3 = vor.u32 %v1126_v0, %v1124_v48  ;;  %v1148_v48 = vrot.slane %v1146_v44, 1  ;;  %v646_v0 = vrot.slane %v644_v58, 1  ;;  %v536_v44 = vld [vmem:[%s2616_s7 + $0x48] sm:$0x1] }
  0x44   : > { %2336 = vmatmul.msk.bf16.gmra.mxu0 %vm303_vm1, %v1109_v10  ;;  %v879_v10 = vshrl.u32 %v2708_v51, 16 }
  0x45   : > { %v1133_v6 = vsel %vm587_vm2, %v1128_v3, %v1132_v4  ;;  %v784_v4 = vld [vmem:[%s2616_s7 + $0x4c] sm:$0x1] }
  0x46   : > { %v881_v16 = vor.u32 %v879_v10, %v877_v60  ;;  %v899_v60 = vshll.u32 %v2757_v52, 16  ;;  %v824_v13 = vunpack.c.l.b16 %v784_v4 }
  0x48   : > { %v901_v3 = vrot.slane %v899_v60, 1 }
  0x52   : > { %2201 = vmatmul.msk.bf16.gmra.mxu1 %vm303_vm1, %v2458_v22  ;;  %v1138_v22 = vshll.u32 %v2499_v18, 16 }
  0x53   : > { %2247 = vmatmul.msk.bf16.gmra.mxu2 %vm303_vm1, %v607_v23  ;;  %2290 = vmatmul.msk.bf16.gmra.mxu3 %vm303_vm1, %v862_v26  ;;  %v886_v23 = vsel %vm587_vm2, %v881_v16, %v885_v17  ;;  %v2481_v26 = vld [vmem:[%s2616_s7 + $0x30] sm:$0xff] }
  0x54   : > { %2337 = vmatmul.msk.bf16.gmra.mxu0 %vm303_vm1, %v1117_v30  ;;  %v1140_v25 = vrot.slane %v1138_v22, 1  ;;  %v636_v30 = vshll.u32 %v2481_v26, 16  ;;  %v640_v57 = vshrl.u32 %v2481_v26, 16  ;;  %v2787_v22 = vpack.c.b16 %v824_v13, %v824_v13 }
  0x55   : > { %v648_v26 = vshrl.u32 %v2482_v49, 16 }
  0x56   : > { %v1141_v27 = vsel %vm587_vm2, %v1136_v24, %v1140_v25  ;;  %v638_v36 = vrot.slane %v636_v30, 1  ;;  %v903_v30 = vshrl.u32 %v2757_v52, 16  ;;  %v907_v33 = vshll.u32 %v2787_v22, 16 }
  0x57   : > { %v650_v34 = vor.u32 %v648_v26, %v646_v0 }
  0x58   : > { %v905_v39 = vor.u32 %v903_v30, %v901_v3 }
  0x62   : > { %2202 = vmatmul.msk.bf16.gmra.mxu1 %vm303_vm1, %v2459_v42  ;;  %v639_v42 = vsel %vm587_vm2, %v634_v35, %v638_v36 }
  0x63   : > { %2248 = vmatmul.msk.bf16.gmra.mxu2 %vm303_vm1, %v615_v43  ;;  %2291 = vmatmul.msk.bf16.gmra.mxu3 %vm303_vm1, %v870_v46  ;;  %v1142_v43 = vshrl.u32 %v2499_v18, 16  ;;  %v1152_v18 = vor.u32 %v1150_v14, %v1148_v48 }
  0x64   : > { %2338 = vmatmul.msk.bf16.gmra.mxu0 %vm303_vm1, %v1125_v50 }
  0x65   : > { %v1144_v47 = vor.u32 %v1142_v43, %v1140_v25 }
  0x67   : > { %v1149_v50 = vsel %vm587_vm2, %v1144_v47, %v1148_v48 }
  0x72   : > { %2203 = vmatmul.msk.bf16.gmra.mxu1 %vm303_vm1, %v2460_v62  ;;  %v1031_v62 = vld [vmem:[%s2599_s28 + $0x4c] sm:$0x1] }
  0x73   : > { %2249 = vmatmul.msk.bf16.gmra.mxu2 %vm303_vm1, %v623_v63  ;;  %2292 = vmatmul.msk.bf16.gmra.mxu3 %vm303_vm1, %v878_v2  ;;  %v642_v63 = vor.u32 %v640_v57, %v638_v36  ;;  %v1071_v1 = vunpack.c.l.b16 %v1031_v62  ;;  %v897_v2 = vor.u32 %v895_v59, %v893_v38  ;;  %v2356_v36 = vld [vmem:[%s2616_s7 + $0x8] sm:$0xe]  ;;  %v654_v38 = vrot.slane %v652_v29, 1  ;;  %v2511_v29 = vld [vmem:[%s2599_s28 + $0x10] sm:$0xff] }
  0x74   : > { %2339 = vmatmul.msk.bf16.gmra.mxu0 %vm303_vm1, %v1133_v6  ;;  %v2806_v43 = vor.u32 %v2501_v37, %v2356_v36  ;;  %v2839_v37 = vld [vmem:[%s2616_s7 + $0x18] sm:$0xff] }
  0x75   : > { %v1081_v6 = vpack.c.b16 %v1071_v1, %v1071_v1  ;;  %v647_v12 = vsel %vm587_vm2, %v642_v63, %v646_v0  ;;  %v902_v17 = vsel %vm587_vm2, %v897_v2, %v901_v3  ;;  %v655_v60 = vsel %vm587_vm2, %v650_v34, %v654_v38 }
  0x76   : > { %v1776_v47 = vshrl.u32 %v2806_v43, 16  ;;  %v1779_v48 = vshll.u32 %v2806_v43, 16  ;;  %v576_v63 = vunpack.c.l.b16 %v536_v44 }
  0x77   : > { %v1154_v16 = vshll.u32 %v1081_v6, 16 }
  0x78   : > { %v1778_v0 = vrot.slane %v1776_v47, 1  ;;  %v1781_v1 = vrot.slane %v1779_v48, 2  ;;  %v1793_v47 = vshrl.u32 %v2839_v37, 16  ;;  %v1796_v48 = vshll.u32 %v2839_v37, 16 }
  0x7a   : > { %v1782_v6 = vor.u32 %v1781_v1, %v1778_v0  ;;  %v2534_v0 = vld [vmem:[%s2616_s7 + $0x4] sm:$0xe] }
  0x82   : > { %2204 = vmatmul.msk.bf16.gmra.mxu1 %vm303_vm1, %v2461_v19  ;;  %v1156_v19 = vrot.slane %v1154_v16, 1  ;;  %v2402_v16 = vld [vmem:[%s2599_s28 + $0x8] sm:$0xe] }
  0x83   : > { %2250 = vmatmul.msk.bf16.gmra.mxu2 %vm303_vm1, %v631_v20  ;;  %2293 = vmatmul.msk.bf16.gmra.mxu3 %vm303_vm1, %v886_v23 }
  0x84   : > { %2340 = vmatmul.msk.bf16.gmra.mxu0 %vm303_vm1, %v1141_v27  ;;  %v1157_v23 = vsel %vm587_vm2, %v1152_v18, %v1156_v19 }
  0x8f   : > { %v2745_v41 = vpop.f32.mrf.mxu1 }
  0x91   : > { %v2749_v46 = vpop.f32.mrf.mxu0 }
  0x92   : > { %2205 = vmatmul.msk.bf16.gmra.mxu1 %vm303_vm1, %v2462_v40  ;;  %v909_v40 = vrot.slane %v907_v33, 1 }
  0x93   : > { %2251 = vmatmul.msk.bf16.gmra.mxu2 %vm303_vm1, %v639_v42  ;;  %2294 = vmatmul.msk.bf16.gmra.mxu3 %vm303_vm1, %v894_v45  ;;  %v2804_v42 = vld [vmem:[%s2616_s7 + $0x10] sm:$0xff] }
  0x94   : > { %2341 = vmatmul.msk.bf16.gmra.mxu0 %vm303_vm1, %v1149_v50  ;;  %v1784_v49 = vshrl.u32 %v2804_v42, 16  ;;  %v2464_v50 = vld [vmem:[%s2616_s7 + $0x38] sm:$0xff]  ;;  %v1787_v58 = vshll.u32 %v2804_v42, 16  ;;  %v910_v62 = vsel %vm587_vm2, %v905_v39, %v909_v40  ;;  %v1648_v40 = vrot.slane %v2511_v29, 1 }
  0x96   : > { %v2759_v53 = vpop.f32.mrf.mxu2  ;;  %v2762_v54 = vpop.f32.mrf.mxu3  ;;  %v1786_v2 = vrot.slane %v1784_v49, 1  ;;  %v1789_v3 = vrot.slane %v1787_v58, 2 }
  0x97   : > { %v2764_v56 = vpop.f32.mrf.mxu1 }
  0x99   : > { %v2768_v61 = vpop.f32.mrf.mxu0 }
  0x9e   : > { %v2772_v5 = vpop.f32.mrf.mxu2  ;;  %v2775_v9 = vpop.f32.mrf.mxu3 }
  0x9f   : > { %v2777_v10 = vpop.f32.mrf.mxu1 }
  0xa1   : > { %v2783_v20 = vpop.f32.mrf.mxu0 }
  0xa2   : > { %2206 = vmatmul.msk.bf16.gmra.mxu1 %vm303_vm1, %v2463_v8  ;;  %v1790_v8 = vor.u32 %v1789_v3, %v1786_v2 }
  0xa3   : > { %2252 = vmatmul.msk.bf16.gmra.mxu2 %vm303_vm1, %v647_v12  ;;  %2295 = vmatmul.msk.bf16.gmra.mxu3 %vm303_vm1, %v902_v17  ;;  %v586_v12 = vpack.c.b16 %v576_v63, %v576_v63  ;;  %v2510_v17 = vld [vmem:[%s2599_s28 + $0x8] sm:$0xf0] }
  0xa4   : > { %2342 = vmatmul.msk.bf16.gmra.mxu0 %vm303_vm1, %v1157_v23  ;;  %v1791_v13 = vsel %vm1774_vm3, %v1782_v6, %v1790_v8  ;;  %v656_v23 = vshrl.u32 %v2483_v21, 16  ;;  %v2403_v30 = vor.u32 %v2510_v17, %v2402_v16  ;;  %v2465_v21 = vld [vmem:[%s2616_s7 + $0x40] sm:$0xff]  ;;  %v2535_v16 = vor.u32 %v2534_v0, %v2620_v15 }
  0xa5   : > { %v660_v26 = vshll.u32 %v586_v12, 16 }
  0xa6   : > { %v2790_v24 = vpop.f32.mrf.mxu2  ;;  %v2793_v25 = vpop.f32.mrf.mxu3  ;;  %v658_v34 = vor.u32 %v656_v23, %v654_v38  ;;  %v1647_v39 = vrot.slane %v2403_v30, 1  ;;  %v1798_v38 = vrot.slane %v1796_v48, 2 }
  0xa7   : > { %v2795_v27 = vpop.f32.mrf.mxu1  ;;  %v662_v36 = vrot.slane %v660_v26, 1  ;;  %v2512_v26 = vld [vmem:[%s2599_s28 + $0x18] sm:$0xff] }
  0xa8   : > { %v1649_v63 = vsel %vm1266_vm4, %v1647_v39, %v1648_v40  ;;  %v1458_v39 = vrot.slane %v2804_v42, 1  ;;  %v1650_v48 = vrot.slane %v2512_v26, 1 }
  0xa9   : > { %v2799_v35 = vpop.f32.mrf.mxu0  ;;  %v663_v58 = vsel %vm587_vm2, %v658_v34, %v662_v36  ;;  %v1267_v34 = vrot.slane %v2535_v16, 1  ;;  %v1457_v36 = vrot.slane %v2806_v43, 1 }
  0xae   : > { %v2809_v45 = vpop.f32.mrf.mxu2  ;;  %v2815_v57 = vpop.f32.mrf.mxu3 }
  0xaf   : > { %v2818_v59 = vpop.f32.mrf.mxu1 }
  0xb1   : > { %v2824_v4 = vpop.f32.mrf.mxu0 }
  0xb2   : > { %2207 = vmatmul.msk.bf16.gmra.mxu1 %vm303_vm1, %v2464_v50 }
  0xb3   : > { %2253 = vmatmul.msk.bf16.gmra.mxu2 %vm303_vm1, %v655_v60  ;;  %2296 = vmatmul.msk.bf16.gmra.mxu3 %vm303_vm1, %v910_v62  ;;  %v1795_v60 = vrot.slane %v1793_v47, 1  ;;  %v2869_v47 = vld [vmem:[%s2616_s7 + $0x20] sm:$0xff] }
  0xb4   : > { %2446 = vmatmul.msk.bf16.vlgmr.msra.gmra.mxu0 %vm303_vm1, %v1791_v13 }
  0xb5   : > { %v1799_v1 = vor.u32 %v1798_v38, %v1795_v60  ;;  %v1459_v60 = vsel %vm1266_vm4, %v1457_v36, %v1458_v39 }
  0xb6   : > { %v2828_v14 = vpop.f32.mrf.mxu2  ;;  %v950_v18 = vpop.f32.mrf.mxu3 }
  0xb7   : > { %v2833_v19 = vpop.f32.mrf.mxu1  ;;  %v1800_v3 = vsel %vm1774_vm3, %v1790_v8, %v1799_v1  ;;  %v1268_v8 = vrot.slane %v2642_v32, 1 }
  0xb9   : > { %v2836_v33 = vpop.f32.mrf.mxu0 }
  0xbe   : > { %v2841_v44 = vpop.f32.mrf.mxu2  ;;  %v952_v49 = vpop.f32.mrf.mxu3 }
  0xbf   : > { %v473_v50 = vpop.f32.mrf.mxu1 }
  0xc0   : > { %v474_v62 = vadd.f32 %v473_v50, %v2749_v46 }
  0xc1   : > { %v2852_v2 = vpop.f32.mrf.mxu0 }
  0xc2   : > { %2208 = vmatmul.msk.bf16.gmra.mxu1 %vm303_vm1, %v2465_v21 }
  0xc3   : > { %2254 = vmatmul.msk.bf16.gmra.mxu2 %vm303_vm1, %v663_v58  ;;  %2436 = vmatmul.msk.bf16.vlgmr.msra.gmra.mxu3 %vm303_vm1, %v1649_v63 }
  0xc4   : > { %2447 = vmatmul.msk.bf16.gmra.mxu0 %vm303_vm1, %v1800_v3 }
  0xc6   : > { %v703_v6 = vpop.f32.mrf.mxu2  ;;  %v955_v12 = vpop.f32.mrf.mxu3 }
  0xc7   : > { %v748_v46 = vadd.f32 %v703_v6, %v474_v62  ;;  %v475_v13 = vpop.f32.mrf.mxu1  ;;  %v1651_v62 = vsel %vm1266_vm4, %v1648_v40, %v1650_v48 }
  0xc8   : > { %v476_v23 = vadd.f32 %v475_v13, %v2768_v61  ;;  %v1805_v61 = vshll.u32 %v2869_v47, 16 }
  0xc9   : > { %v995_v17 = vadd.f32 %v950_v18, %v748_v46  ;;  %v2860_v29 = vpop.f32.mrf.mxu0  ;;  %v1802_v18 = vshrl.u32 %v2869_v47, 16 }
  0xca   : > { %v1807_v38 = vrot.slane %v1805_v61, 2 }
  0xcb   : > { %v2863_v30 = vadd.f32 %v2783_v20, %v995_v17  ;;  %v1269_v20 = vsel %vm1266_vm4, %v1267_v34, %v1268_v8  ;;  %v1804_v32 = vrot.slane %v1802_v18, 1  ;;  %v2513_v17 = vld [vmem:[%s2599_s28 + $0x20] sm:$0xff]  ;;  %v1460_v34 = vrot.slane %v2839_v37, 1 }
  0xcc   : > { %v1652_v36 = vrot.slane %v2513_v17, 1 }
  0xcd   : > { %v1808_v63 = vor.u32 %v1807_v38, %v1804_v32 }
  0xce   : > { %v705_v15 = vpop.f32.mrf.mxu2  ;;  %v957_v50 = vpop.f32.mrf.mxu3  ;;  %v1653_v32 = vsel %vm1266_vm4, %v1650_v48, %v1652_v36 }
  0xcf   : > { %v749_v21 = vadd.f32 %v705_v15, %v476_v23  ;;  %v478_v58 = vpop.f32.mrf.mxu1 }
  0xd0   : > { %v479_v42 = vadd.f32 %v478_v58, %v2745_v41 }
  0xd1   : > { %v996_v43 = vadd.f32 %v952_v49, %v749_v21  ;;  %v2879_v0 = vpop.f32.mrf.mxu0  ;;  %v1809_v49 = vsel %vm1774_vm3, %v1799_v1, %v1808_v63  ;;  %v2897_v1 = vld [vmem:[%s2616_s7 + $0x28] sm:$0xff] }
  0xd2   : > { %2344 = vmatmul.msk.bf16.vlgmr.msra.gmra.mxu1 %vm303_vm1, %v1269_v20  ;;  %v1811_v18 = vshrl.u32 %v2897_v1, 16 }
  0xd3   : > { %2390 = vmatmul.msk.bf16.vlgmr.msra.gmra.mxu2 %vm303_vm1, %v1459_v60  ;;  %v2882_v3 = vadd.f32 %v2799_v35, %v996_v43  ;;  %2437 = vmatmul.msk.bf16.gmra.mxu3 %vm303_vm1, %v1651_v62  ;;  %v1270_v35 = vrot.slane %v2663_v55, 1 }
  0xd4   : > { %2448 = vmatmul.msk.bf16.gmra.mxu0 %vm303_vm1, %v1809_v49  ;;  %v1813_v20 = vrot.slane %v1811_v18, 1 }
  0xd5   : > { %v1271_v58 = vsel %vm1266_vm4, %v1268_v8, %v1270_v35 }
  0xd6   : > { %v708_v6 = vpop.f32.mrf.mxu2  ;;  %v960_v40 = vpop.f32.mrf.mxu3 }
  0xd7   : > { %v750_v41 = vadd.f32 %v708_v6, %v479_v42  ;;  %v480_v46 = vpop.f32.mrf.mxu1  ;;  %v2514_v6 = vld [vmem:[%s2599_s28 + $0x28] sm:$0xff] }
  0xd8   : > { %v481_v16 = vadd.f32 %v480_v46, %v2764_v56 }
  0xd9   : > { %v997_v13 = vadd.f32 %v955_v12, %v750_v41  ;;  %v2889_v23 = vpop.f32.mrf.mxu0  ;;  %v1814_v12 = vshll.u32 %v2897_v1, 16 }
  0xdb   : > { %v2892_v26 = vadd.f32 %v2824_v4, %v997_v13  ;;  %v1461_v4 = vsel %vm1266_vm4, %v1458_v39, %v1460_v34  ;;  %v1816_v60 = vrot.slane %v1814_v12, 2  ;;  %v1462_v13 = vrot.slane %v2869_v47, 1 }
  0xdd   : > { %v1817_v38 = vor.u32 %v1816_v60, %v1813_v20 }
  0xde   : > { %v710_v15 = vpop.f32.mrf.mxu2  ;;  %v962_v56 = vpop.f32.mrf.mxu3 }
  0xdf   : > { %v751_v61 = vadd.f32 %v710_v15, %v481_v16  ;;  %v483_v21 = vpop.f32.mrf.mxu1  ;;  %v1818_v39 = vsel %vm1774_vm3, %v1808_v63, %v1817_v38  ;;  %v2925_v63 = vld [vmem:[%s2616_s7 + $0x30] sm:$0xff]  ;;  %v1654_v16 = vrot.slane %v2514_v6, 1 }
  0xe0   : > { %v484_v37 = vadd.f32 %v483_v21, %v2777_v10  ;;  %v1820_v15 = vshrl.u32 %v2925_v63, 16 }
  0xe1   : > { %v998_v55 = vadd.f32 %v957_v50, %v751_v61  ;;  %v2907_v43 = vpop.f32.mrf.mxu0 }
  0xe2   : > { %2345 = vmatmul.msk.bf16.gmra.mxu1 %vm303_vm1, %v1271_v58  ;;  %v1822_v21 = vrot.slane %v1820_v15, 1 }
  0xe3   : > { %2391 = vmatmul.msk.bf16.gmra.mxu2 %vm303_vm1, %v1461_v4  ;;  %v2910_v8 = vadd.f32 %v2836_v33, %v998_v55  ;;  %2438 = vmatmul.msk.bf16.gmra.mxu3 %vm303_vm1, %v1653_v32  ;;  %v1272_v33 = vrot.slane %v2678_v11, 1  ;;  %v1655_v4 = vsel %vm1266_vm4, %v1652_v36, %v1654_v16 }
  0xe4   : > { %2449 = vmatmul.msk.bf16.gmra.mxu0 %vm303_vm1, %v1818_v39  ;;  %v2515_v39 = vld [vmem:[%s2599_s28 + $0x30] sm:$0xff] }
  0xe5   : > { %v1273_v61 = vsel %vm1266_vm4, %v1270_v35, %v1272_v33 }
  0xe6   : > { %v713_v50 = vpop.f32.mrf.mxu2  ;;  %v965_v48 = vpop.f32.mrf.mxu3 }
  0xe7   : > { %v752_v10 = vadd.f32 %v713_v50, %v484_v37  ;;  %v485_v42 = vpop.f32.mrf.mxu1 }
  0xe8   : > { %v486_v49 = vadd.f32 %v485_v42, %v2795_v27  ;;  %v1464_v42 = vrot.slane %v2897_v1, 1 }
  0xe9   : > { %v999_v62 = vadd.f32 %v960_v40, %v752_v10  ;;  %v2917_v41 = vpop.f32.mrf.mxu0  ;;  %v1823_v40 = vshll.u32 %v2925_v63, 16 }
  0xeb   : > { %v2920_v46 = vadd.f32 %v2852_v2, %v999_v62  ;;  %v1463_v2 = vsel %vm1266_vm4, %v1460_v34, %v1462_v13  ;;  %v1825_v58 = vrot.slane %v1823_v40, 2  ;;  %v1656_v62 = vrot.slane %v2515_v39, 1 }
  0xed   : > { %v1826_v20 = vor.u32 %v1825_v58, %v1822_v21  ;;  %v1657_v1 = vsel %vm1266_vm4, %v1654_v16, %v1656_v62 }
  0xee   : > { %v715_v17 = vpop.f32.mrf.mxu2  ;;  %v967_v27 = vpop.f32.mrf.mxu3 }
  0xef   : > { %v753_v18 = vadd.f32 %v715_v17, %v486_v49  ;;  %v488_v12 = vpop.f32.mrf.mxu1  ;;  %v1827_v34 = vsel %vm1774_vm3, %v1817_v38, %v1826_v20  ;;  %v2953_v38 = vld [vmem:[%s2616_s7 + $0x38] sm:$0xff] }
  0xf0   : > { %v489_v47 = vadd.f32 %v488_v12, %v2818_v59  ;;  %v1829_v6 = vshrl.u32 %v2953_v38, 16 }
  0xf1   : > { %v1000_v11 = vadd.f32 %v962_v56, %v753_v18  ;;  %v2935_v60 = vpop.f32.mrf.mxu0 }
  0xf2   : > { %2346 = vmatmul.msk.bf16.gmra.mxu1 %vm303_vm1, %v1273_v61  ;;  %v1831_v18 = vrot.slane %v1829_v6, 1 }
  0xf3   : > { %2392 = vmatmul.msk.bf16.gmra.mxu2 %vm303_vm1, %v1463_v2  ;;  %v2938_v35 = vadd.f32 %v2860_v29, %v1000_v11  ;;  %2439 = vmatmul.msk.bf16.gmra.mxu3 %vm303_vm1, %v1655_v4  ;;  %v1274_v29 = vrot.slane %v2693_v31, 1  ;;  %v2516_v4 = vld [vmem:[%s2599_s28 + $0x38] sm:$0xff] }
  0xf4   : > { %2450 = vmatmul.msk.bf16.gmra.mxu0 %vm303_vm1, %v1827_v34 }
  0xf5   : > { %v1275_v40 = vsel %vm1266_vm4, %v1272_v33, %v1274_v29 }
  0xf6   : > { %v718_v56 = vpop.f32.mrf.mxu2  ;;  %v970_v36 = vpop.f32.mrf.mxu3 }
  0xf7   : > { %v754_v59 = vadd.f32 %v718_v56, %v489_v47  ;;  %v490_v55 = vpop.f32.mrf.mxu1 }
  0xf8   : > { %v491_v32 = vadd.f32 %v490_v55, %v2833_v19  ;;  %v1658_v55 = vrot.slane %v2516_v4, 1 }
  0xf9   : > { %v1001_v37 = vadd.f32 %v965_v48, %v754_v59  ;;  %v2945_v50 = vpop.f32.mrf.mxu0  ;;  %v1832_v48 = vshll.u32 %v2953_v38, 16  ;;  %v1466_v59 = vrot.slane %v2925_v63, 1 }
  0xfb   : > { %v2948_v10 = vadd.f32 %v2879_v0, %v1001_v37  ;;  %v1465_v0 = vsel %vm1266_vm4, %v1462_v13, %v1464_v42  ;;  %v1834_v12 = vrot.slane %v1832_v48, 2  ;;  %v1467_v48 = vsel %vm1266_vm4, %v1464_v42, %v1466_v59 }
  0xfd   : > { %v1835_v61 = vor.u32 %v1834_v12, %v1831_v18 }
  0xfe   : > { %v720_v49 = vpop.f32.mrf.mxu2  ;;  %v972_v19 = vpop.f32.mrf.mxu3 }
  0xff   : > { %v755_v17 = vadd.f32 %v720_v49, %v491_v32  ;;  %v493_v15 = vpop.f32.mrf.mxu1  ;;  %v1836_v33 = vsel %vm1774_vm3, %v1826_v20, %v1835_v61  ;;  %v2980_v20 = vld [vmem:[%s2616_s7 + $0x40] sm:$0xff] }
 0x100   : > { %v494_v13 = vadd.f32 %v493_v15, %v2759_v53  ;;  %v1838_v32 = vshrl.u32 %v2980_v20, 16  ;;  %v1659_v15 = vsel %vm1266_vm4, %v1656_v62, %v1658_v55 }
 0x101   : > { %v1002_v31 = vadd.f32 %v967_v27, %v755_v17  ;;  %v2962_v2 = vpop.f32.mrf.mxu0 }
 0x102   : > { %2347 = vmatmul.msk.bf16.gmra.mxu1 %vm303_vm1, %v1275_v40 }
 0x103   : > { %2393 = vmatmul.msk.bf16.gmra.mxu2 %vm303_vm1, %v1465_v0  ;;  %v2965_v21 = vadd.f32 %v2889_v23, %v1002_v31  ;;  %2440 = vmatmul.msk.bf16.gmra.mxu3 %vm303_vm1, %v1657_v1  ;;  %v1276_v23 = vrot.slane %v2708_v51, 1  ;;  %v1840_v51 = vrot.slane %v1838_v32, 1  ;;  %v2517_v1 = vld [vmem:[%s2599_s28 + $0x40] sm:$0xff] }
 0x104   : > { %2451 = vmatmul.msk.bf16.gmra.mxu0 %vm303_vm1, %v1836_v33 }
 0x106   : > { %v723_v27 = vpop.f32.mrf.mxu2  ;;  %v975_v58 = vpop.f32.mrf.mxu3 }
 0x107   : > { %v756_v16 = vadd.f32 %v723_v27, %v494_v13  ;;  %v495_v11 = vpop.f32.mrf.mxu1  ;;  %v1468_v27 = vrot.slane %v2953_v38, 1 }
 0x108   : > { %v496_v53 = vadd.f32 %v495_v11, %v2772_v5 }
 0x109   : > { %v1003_v47 = vadd.f32 %v970_v36, %v756_v16  ;;  %v2972_v34 = vpop.f32.mrf.mxu0  ;;  %v1841_v36 = vshll.u32 %v2980_v20, 16  ;;  %v1660_v16 = vrot.slane %v2517_v1, 1  ;;  %v1469_v32 = vsel %vm1266_vm4, %v1466_v59, %v1468_v27 }
 0x10b   : > { %v2975_v56 = vadd.f32 %v2907_v43, %v1003_v47  ;;  %v1277_v43 = vsel %vm1266_vm4, %v1274_v29, %v1276_v23  ;;  %v1843_v17 = vrot.slane %v1841_v36, 2 }
 0x10d   : > { %v1844_v5 = vor.u32 %v1843_v17, %v1840_v51 }
 0x10e   : > { %v725_v37 = vpop.f32.mrf.mxu2  ;;  %v977_v49 = vpop.f32.mrf.mxu3 }
 0x10f   : > { %v757_v39 = vadd.f32 %v725_v37, %v496_v53  ;;  %v498_v6 = vpop.f32.mrf.mxu1  ;;  %v1845_v29 = vsel %vm1774_vm3, %v1835_v61, %v1844_v5  ;;  %v3008_v61 = vld [vmem:[%s2616_s7 + $0x48] sm:$0xff] }
 0x110   : > { %v499_v42 = vadd.f32 %v498_v6, %v2790_v24  ;;  %v1847_v47 = vshrl.u32 %v3008_v61, 16 }
 0x111   : > { %v1004_v63 = vadd.f32 %v972_v19, %v757_v39  ;;  %v2990_v40 = vpop.f32.mrf.mxu0  ;;  %v1661_v39 = vsel %vm1266_vm4, %v1658_v55, %v1660_v16 }
 0x112   : > { %2348 = vmatmul.msk.bf16.gmra.mxu1 %vm303_vm1, %v1277_v43 }
 0x113   : > { %2394 = vmatmul.msk.bf16.gmra.mxu2 %vm303_vm1, %v1467_v48  ;;  %v2993_v0 = vadd.f32 %v2917_v41, %v1004_v63  ;;  %2441 = vmatmul.msk.bf16.gmra.mxu3 %vm303_vm1, %v1659_v15  ;;  %v1278_v41 = vrot.slane %v2723_v7, 1  ;;  %v1849_v7 = vrot.slane %v1847_v47, 1  ;;  %v2518_v63 = vld [vmem:[%s2599_s28 + $0x48] sm:$0xff]  ;;  %v1768_v15 = vld [vmem:[%s2616_s7 + $0x50] sm:$0x3] }
 0x114   : > { %2452 = vmatmul.msk.bf16.gmra.mxu0 %vm303_vm1, %v1845_v29  ;;  %v1772_v29 = vunpack.c.l.b16 %v1768_v15 }
 0x116   : > { %v728_v19 = vpop.f32.mrf.mxu2  ;;  %v980_v18 = vpop.f32.mrf.mxu3 }
 0x117   : > { %v758_v62 = vadd.f32 %v728_v19, %v499_v42  ;;  %v500_v12 = vpop.f32.mrf.mxu1  ;;  %v1280_v42 = vrot.slane %v2738_v28, 1  ;;  %v1470_v19 = vrot.slane %v2980_v20, 1 }
 0x118   : > { %v501_v24 = vadd.f32 %v500_v12, %v2809_v45 }
 0x119   : > { %v1005_v31 = vadd.f32 %v975_v58, %v758_v62  ;;  %v3000_v33 = vpop.f32.mrf.mxu0  ;;  %v1850_v58 = vshll.u32 %v3008_v61, 16  ;;  %v1662_v62 = vrot.slane %v2518_v63, 1 }
 0x11b   : > { %v3003_v13 = vadd.f32 %v2935_v60, %v1005_v31  ;;  %v1279_v60 = vsel %vm1266_vm4, %v1276_v23, %v1278_v41  ;;  %v1852_v36 = vrot.slane %v1850_v58, 2  ;;  %v1471_v58 = vsel %vm1266_vm4, %v1468_v27, %v1470_v19 }
 0x11d   : > { %v1853_v45 = vor.u32 %v1852_v36, %v1849_v7 }
 0x11e   : > { %v730_v11 = vpop.f32.mrf.mxu2  ;;  %v982_v53 = vpop.f32.mrf.mxu3 }
 0x11f   : > { %v759_v4 = vadd.f32 %v730_v11, %v501_v24  ;;  %v503_v37 = vpop.f32.mrf.mxu1  ;;  %v1854_v59 = vsel %vm1774_vm3, %v1844_v5, %v1853_v45  ;;  %v1773_v5 = vpack.c.b16 %v1772_v29, %v1772_v29 }
 0x121   : > { %v1006_v38 = vadd.f32 %v977_v49, %v759_v4  ;;  %v3022_v23 = vpop.f32.mrf.mxu0  ;;  %v504_v49 = vadd.f32 %v503_v37, %v2828_v14  ;;  %v1856_v1 = vshrl.u32 %v1773_v5, 16  ;;  %v1663_v37 = vsel %vm1266_vm4, %v1660_v16, %v1662_v62 }
 0x122   : > { %2349 = vmatmul.msk.bf16.gmra.mxu1 %vm303_vm1, %v1279_v60  ;;  %v1596_v60 = vld [vmem:[%s2599_s28 + $0x50] sm:$0x1] }
 0x123   : > { %2395 = vmatmul.msk.bf16.gmra.mxu2 %vm303_vm1, %v1469_v32  ;;  %v3019_v6 = vadd.f32 %v2945_v50, %v1006_v38  ;;  %2442 = vmatmul.msk.bf16.gmra.mxu3 %vm303_vm1, %v1661_v39  ;;  %v1858_v28 = vrot.slane %v1856_v1, 1  ;;  %v1636_v7 = vunpack.c.l.b16 %v1596_v60 }
 0x124   : > { %2453 = vmatmul.msk.bf16.gmra.mxu0 %vm303_vm1, %v1854_v59 }
 0x126   : > { %v733_v43 = vpop.f32.mrf.mxu2  ;;  %v985_v48 = vpop.f32.mrf.mxu3 }
 0x127   : > { %v760_v55 = vadd.f32 %v733_v43, %v504_v49  ;;  %v505_v51 = vpop.f32.mrf.mxu1  ;;  %v1646_v49 = vpack.c.b16 %v1636_v7, %v1636_v7  ;;  %v1282_v43 = vrot.slane %v2757_v52, 1 }
 0x128   : > { %v506_v14 = vadd.f32 %v505_v51, %v2841_v44 }
 0x129   : > { %v1007_v17 = vadd.f32 %v980_v18, %v760_v55  ;;  %v3035_v31 = vpop.f32.mrf.mxu0  ;;  %v1859_v18 = vshll.u32 %v1773_v5, 16  ;;  %v1664_v55 = vrot.slane %v1646_v49, 1  ;;  %v1283_v29 = vsel %vm1266_vm4, %v1280_v42, %v1282_v43 }
 0x12b   : > { %v3030_v50 = vadd.f32 %v2962_v2, %v1007_v17  ;;  %v1281_v2 = vsel %vm1266_vm4, %v1278_v41, %v1280_v42  ;;  %v1861_v4 = vrot.slane %v1859_v18, 2 }
 0x12d   : > { %v1862_v44 = vor.u32 %v1861_v4, %v1858_v28 }
 0x12e   : > { %v735_v12 = vpop.f32.mrf.mxu2  ;;  %v987_v11 = vpop.f32.mrf.mxu3 }
 0x12f   : > { %v761_v24 = vadd.f32 %v735_v12, %v506_v14  ;;  %v508_v47 = vpop.f32.mrf.mxu1  ;;  %v1863_v41 = vsel %vm1774_vm3, %v1853_v45, %v1862_v44  ;;  %v1472_v45 = vrot.slane %v3008_v61, 1  ;;  %v1665_v14 = vsel %vm1266_vm4, %v1662_v62, %v1664_v55 }
 0x130   : > { %v509_v27 = vadd.f32 %v508_v47, %v2762_v54  ;;  %v1284_v47 = vrot.slane %v2787_v22, 1 }
 0x131   : > { %v1008_v20 = vadd.f32 %v982_v53, %v761_v24  ;;  %v1903_v39 = vpop.f32.mrf.mxu0  ;;  %v1473_v5 = vsel %vm1266_vm4, %v1470_v19, %v1472_v45 }
 0x132   : > { %2350 = vmatmul.msk.bf16.gmra.mxu1 %vm303_vm1, %v1281_v2 }
 0x133   : > { %2396 = vmatmul.msk.bf16.gmra.mxu2 %vm303_vm1, %v1471_v58  ;;  %v3044_v32 = vadd.f32 %v2972_v34, %v1008_v20  ;;  %2443 = vmatmul.msk.bf16.gmra.mxu3 %vm303_vm1, %v1663_v37 }
 0x134   : > { %2454 = vmatmul.msk.bf16.gmra.mxu0 %vm303_vm1, %v1863_v41 }
 0x136   : > { %v738_v36 = vpop.f32.mrf.mxu2  ;;  %v990_v53 = vpop.f32.mrf.mxu3 }
 0x137   : > { %v762_v16 = vadd.f32 %v738_v36, %v509_v27  ;;  %v510_v38 = vpop.f32.mrf.mxu1 }
 0x138   : > { %v511_v54 = vadd.f32 %v510_v38, %v2775_v9 }
 0x139   : > { %v1009_v59 = vadd.f32 %v985_v48, %v762_v16  ;;  %v1905_v12 = vpop.f32.mrf.mxu0 }
 0x13b   : > { %v3051_v34 = vadd.f32 %v2990_v40, %v1009_v59  ;;  %v1406_v40 = vld [vmem:[%s2616_s7 + $0x50] sm:$0x1] }
 0x13c   : > { %v1446_v9 = vunpack.c.l.b16 %v1406_v40 }
 0x13e   : > { %v740_v51 = vpop.f32.mrf.mxu2  ;;  %v992_v63 = vpop.f32.mrf.mxu3  ;;  %v1456_v24 = vpack.c.b16 %v1446_v9, %v1446_v9 }
 0x13f   : > { %v763_v17 = vadd.f32 %v740_v51, %v511_v54  ;;  %v513_v15 = vpop.f32.mrf.mxu1 }
 0x140   : > { %v514_v61 = vadd.f32 %v513_v15, %v2793_v25  ;;  %v1474_v2 = vrot.slane %v1456_v24, 1  ;;  %v1285_v25 = vsel %vm1266_vm4, %v1282_v43, %v1284_v47 }
 0x141   : > { %v1010_v48 = vadd.f32 %v987_v11, %v763_v17  ;;  %v1908_v58 = vpop.f32.mrf.mxu0 }
 0x142   : > { %2351 = vmatmul.msk.bf16.gmra.mxu1 %vm303_vm1, %v1283_v29  ;;  %v1475_v60 = vsel %vm1266_vm4, %v1472_v45, %v1474_v2 }
 0x143   : > { %2397 = vmatmul.msk.bf16.gmra.mxu2 %vm303_vm1, %v1473_v5  ;;  %v3063_v52 = vadd.f32 %v3000_v33, %v1010_v48  ;;  %2444 = vmatmul.msk.bf16.gmra.mxu3 %vm303_vm1, %v1665_v14 }
 0x146   : > { %v743_v42 = vpop.f32.mrf.mxu2  ;;  %v1705_v19 = vpop.f32.mrf.mxu3 }
 0x147   : > { %v764_v1 = vadd.f32 %v743_v42, %v514_v61  ;;  %v515_v18 = vpop.f32.mrf.mxu1 }
 0x148   : > { %v516_v33 = vadd.f32 %v515_v18, %v2815_v57 }
 0x149   : > { %v1011_v62 = vadd.f32 %v990_v53, %v764_v1  ;;  %v1910_v41 = vpop.f32.mrf.mxu0  ;;  %v3083_v53 = vld [vmem:[%s3168_s3] ss:$0 sm:$0xff] }
 0x14b   : > { %v3068_v11 = vadd.f32 %v3022_v23, %v1011_v62 }
 0x14e   : > { %v745_v28 = vpop.f32.mrf.mxu2  ;;  %v1707_v20 = vpop.f32.mrf.mxu3 }
 0x14f   : > { %v765_v4 = vadd.f32 %v745_v28, %v516_v33  ;;  %v1325_v37 = vpop.f32.mrf.mxu1 }
 0x150   : > { %v1370_v23 = vadd.f32 %v1325_v37, %v2863_v30 }
 0x151   : > { %v1012_v44 = vadd.f32 %v992_v63, %v765_v4  ;;  %v1913_v55 = vpop.f32.mrf.mxu0 }
 0x152   : > { %2352 = vmatmul.msk.bf16.gmra.mxu1 %vm303_vm1, %v1285_v25 }
 0x153   : > { %2398 = vmatmul.msk.bf16.gmra.mxu2 %vm303_vm1, %v1475_v60  ;;  %v3077_v22 = vadd.f32 %v3035_v31, %v1012_v44 }
 0x156   : > { %v1515_v57 = vpop.f32.mrf.mxu2  ;;  %v1710_v7 = vpop.f32.mrf.mxu3 }
 0x157   : > { %v1560_v27 = vadd.f32 %v1515_v57, %v1370_v23  ;;  %v1327_v36 = vpop.f32.mrf.mxu1 }
 0x158   : > { %v1371_v31 = vadd.f32 %v1327_v36, %v2882_v3 }
 0x159   : > { %v1750_v16 = vadd.f32 %v1705_v19, %v1560_v27  ;;  %v1915_v61 = vpop.f32.mrf.mxu0 }
 0x15b   : > { %v1948_v38 = vadd.f32 %v1903_v39, %v1750_v16 }
 0x15d   : > { %v1970_v59 = vadd.f32 %v3083_v53, %v1948_v38 }
 0x15e   : > { %v1517_v49 = vpop.f32.mrf.mxu2  ;;  %v1712_v45 = vpop.f32.mrf.mxu3 }
 0x15f   : > { %v1988_v43 = vmax.f32 %v1970_v59, 0.0  ;;  %v1561_v30 = vadd.f32 %v1517_v49, %v1371_v31  ;;  %v1330_v54 = vpop.f32.mrf.mxu1 }
 0x160   : > { %v1372_v63 = vadd.f32 %v1330_v54, %v2892_v26 }
 0x161   : > { %v2006_v39 = vpack.c.bf16 %v1988_v43, %v1988_v43  ;;  %v1751_v51 = vadd.f32 %v1707_v20, %v1561_v30  ;;  %v1918_v28 = vpop.f32.mrf.mxu0 }
 0x163   : > { %2025 = vst.msk [vmem:[%s3091_s23] sm:$0xf] %vm2024_vm5, %v2006_v39  ;;  %v1949_v17 = vadd.f32 %v1905_v12, %v1751_v51 }
 0x165   : > { %v1971_v3 = vadd.f32 %v3083_v53, %v1949_v17 }
 0x166   : > { %v1520_v15 = vpop.f32.mrf.mxu2  ;;  %v1715_v48 = vpop.f32.mrf.mxu3 }
 0x167   : > { %v1989_v29 = vmax.f32 %v1971_v3, 0.0  ;;  %v1562_v5 = vadd.f32 %v1520_v15, %v1372_v63  ;;  %v1332_v14 = vpop.f32.mrf.mxu1 }
 0x168   : > { %v1373_v12 = vadd.f32 %v1332_v14, %v2910_v8 }
 0x169   : > { %v2007_v40 = vpack.c.bf16 %v1989_v29, %v1989_v29  ;;  %v1752_v9 = vadd.f32 %v1710_v7, %v1562_v5  ;;  %v1920_v36 = vpop.f32.mrf.mxu0 }
 0x16b   : > { %2026 = vst.msk [vmem:[%s3091_s23 + $0x4] sm:$0xf] %vm2024_vm5, %v2007_v40  ;;  %v1950_v42 = vadd.f32 %v1908_v58, %v1752_v9 }
 0x16d   : > { %v1972_v1 = vadd.f32 %v3083_v53, %v1950_v42 }
 0x16e   : > { %v1522_v19 = vpop.f32.mrf.mxu2  ;;  %v1717_v26 = vpop.f32.mrf.mxu3 }
 0x16f   : > { %v1990_v18 = vmax.f32 %v1972_v1, 0.0  ;;  %v1563_v24 = vadd.f32 %v1522_v19, %v1373_v12  ;;  %v1335_v62 = vpop.f32.mrf.mxu1 }
 0x170   : > { %v1374_v58 = vadd.f32 %v1335_v62, %v2920_v46 }
 0x171   : > { %v2008_v47 = vpack.c.bf16 %v1990_v18, %v1990_v18  ;;  %v1753_v2 = vadd.f32 %v1712_v45, %v1563_v24  ;;  %v1923_v17 = vpop.f32.mrf.mxu0 }
 0x173   : > { %2027 = vst.msk [vmem:[%s3091_s23 + $0x8] sm:$0xf] %vm2024_vm5, %v2008_v47  ;;  %v1951_v33 = vadd.f32 %v1910_v41, %v1753_v2 }
 0x175   : > { %v1973_v4 = vadd.f32 %v3083_v53, %v1951_v33 }
 0x176   : > { %v1525_v20 = vpop.f32.mrf.mxu2  ;;  %v1720_v8 = vpop.f32.mrf.mxu3 }
 0x177   : > { %v1991_v37 = vmax.f32 %v1973_v4, 0.0  ;;  %v1564_v25 = vadd.f32 %v1525_v20, %v1374_v58  ;;  %v1337_v60 = vpop.f32.mrf.mxu1 }
 0x178   : > { %v1375_v41 = vadd.f32 %v1337_v60, %v2938_v35 }
 0x179   : > { %v2009_v44 = vpack.c.bf16 %v1991_v37, %v1991_v37  ;;  %v1754_v23 = vadd.f32 %v1715_v48, %v1564_v25  ;;  %v1925_v1 = vpop.f32.mrf.mxu0 }
 0x17b   : > { %2028 = vst.msk [vmem:[%s3091_s23 + $0xc] sm:$0xf] %vm2024_vm5, %v2009_v44  ;;  %v1952_v57 = vadd.f32 %v1913_v55, %v1754_v23 }
 0x17d   : > { %v1974_v27 = vadd.f32 %v3083_v53, %v1952_v57 }
 0x17e   : > { %v1527_v7 = vpop.f32.mrf.mxu2  ;;  %v1722_v46 = vpop.f32.mrf.mxu3 }
 0x17f   : > { %v1992_v16 = vmax.f32 %v1974_v27, 0.0  ;;  %v1565_v38 = vadd.f32 %v1527_v7, %v1375_v41  ;;  %v1340_v59 = vpop.f32.mrf.mxu1 }
 0x180   : > { %v1376_v45 = vadd.f32 %v1340_v59, %v2948_v10 }
 0x181   : > { %v2010_v31 = vpack.c.bf16 %v1992_v16, %v1992_v16  ;;  %v1755_v49 = vadd.f32 %v1717_v26, %v1565_v38  ;;  %v1928_v4 = vpop.f32.mrf.mxu0 }
 0x183   : > { %2029 = vst.msk [vmem:[%s3091_s23 + $0x10] sm:$0xf] %vm2024_vm5, %v2010_v31  ;;  %v1953_v43 = vadd.f32 %v1915_v61, %v1755_v49 }
 0x185   : > { %v1975_v30 = vadd.f32 %v3083_v53, %v1953_v43 }
 0x186   : > { %v1530_v54 = vpop.f32.mrf.mxu2  ;;  %v1725_v35 = vpop.f32.mrf.mxu3 }
 0x187   : > { %v1993_v55 = vmax.f32 %v1975_v30, 0.0  ;;  %v1566_v39 = vadd.f32 %v1530_v54, %v1376_v45  ;;  %v1342_v51 = vpop.f32.mrf.mxu1 }
 0x188   : > { %v1377_v5 = vadd.f32 %v1342_v51, %v2965_v21 }
 0x189   : > { %v2011_v3 = vpack.c.bf16 %v1993_v55, %v1993_v55  ;;  %v1756_v63 = vadd.f32 %v1720_v8, %v1566_v39 }
 0x18b   : > { %2030 = vst.msk [vmem:[%s3091_s23 + $0x14] sm:$0xf] %vm2024_vm5, %v2011_v3  ;;  %v1954_v15 = vadd.f32 %v1918_v28, %v1756_v63 }
 0x18d   : > { %v1976_v29 = vadd.f32 %v3083_v53, %v1954_v15 }
 0x18e   : > { %v1532_v48 = vpop.f32.mrf.mxu2  ;;  %v1727_v9 = vpop.f32.mrf.mxu3 }
 0x18f   : > { %v1994_v14 = vmax.f32 %v1976_v29, 0.0  ;;  %v1567_v40 = vadd.f32 %v1532_v48, %v1377_v5  ;;  %v1345_v10 = vpop.f32.mrf.mxu1 }
 0x190   : > { %v1378_v18 = vadd.f32 %v1345_v10, %v2975_v56 }
 0x191   : > { %v2012_v61 = vpack.c.bf16 %v1994_v14, %v1994_v14  ;;  %v1757_v42 = vadd.f32 %v1722_v46, %v1567_v40 }
 0x193   : > { %2031 = vst.msk [vmem:[%s3091_s23 + $0x18] sm:$0xf] %vm2024_vm5, %v2012_v61  ;;  %v1955_v12 = vadd.f32 %v1920_v36, %v1757_v42  ;;  %v1930_v36 = vpop.f32.mrf.mxu0 }
 0x195   : > { %v1977_v19 = vadd.f32 %v3083_v53, %v1955_v12 }
 0x196   : > { %v1535_v24 = vpop.f32.mrf.mxu2  ;;  %v1730_v33 = vpop.f32.mrf.mxu3 }
 0x197   : > { %v1995_v26 = vmax.f32 %v1977_v19, 0.0  ;;  %v1568_v62 = vadd.f32 %v1535_v24, %v1378_v18  ;;  %v1347_v21 = vpop.f32.mrf.mxu1 }
 0x198   : > { %v1379_v20 = vadd.f32 %v1347_v21, %v2993_v0 }
 0x199   : > { %v2013_v47 = vpack.c.bf16 %v1995_v26, %v1995_v26  ;;  %v1758_v2 = vadd.f32 %v1725_v35, %v1568_v62 }
 0x19b   : > { %2032 = vst.msk [vmem:[%s3091_s23 + $0x1c] sm:$0xf] %vm2024_vm5, %v2013_v47  ;;  %v1956_v28 = vadd.f32 %v1923_v17, %v1758_v2  ;;  %v1933_v39 = vpop.f32.mrf.mxu0 }
 0x19d   : > { %v1978_v58 = vadd.f32 %v3083_v53, %v1956_v28 }
 0x19e   : > { %v1537_v37 = vpop.f32.mrf.mxu2  ;;  %v1732_v57 = vpop.f32.mrf.mxu3 }
 0x19f   : > { %v1996_v25 = vmax.f32 %v1978_v58, 0.0  ;;  %v1569_v8 = vadd.f32 %v1537_v37, %v1379_v20  ;;  %v1350_v56 = vpop.f32.mrf.mxu1 }
 0x1a0   : > { %v1380_v41 = vadd.f32 %v1350_v56, %v3003_v13 }
 0x1a1   : > { %v2014_v60 = vpack.c.bf16 %v1996_v25, %v1996_v25  ;;  %v1759_v44 = vadd.f32 %v1727_v9, %v1569_v8 }
 0x1a3   : > { %2033 = vst.msk [vmem:[%s3091_s23 + $0x20] sm:$0xf] %vm2024_vm5, %v2014_v60  ;;  %v1957_v23 = vadd.f32 %v1925_v1, %v1759_v44  ;;  %v1935_v10 = vpop.f32.mrf.mxu0 }
 0x1a5   : > { %v1979_v27 = vadd.f32 %v3083_v53, %v1957_v23 }
 0x1a6   : > { %v1540_v7 = vpop.f32.mrf.mxu2  ;;  %v1735_v45 = vpop.f32.mrf.mxu3 }
 0x1a7   : > { %v1997_v16 = vmax.f32 %v1979_v27, 0.0  ;;  %v1570_v38 = vadd.f32 %v1540_v7, %v1380_v41  ;;  %v1352_v0 = vpop.f32.mrf.mxu1 }
 0x1a8   : > { %v1381_v43 = vadd.f32 %v1352_v0, %v3019_v6 }
 0x1a9   : > { %v2015_v46 = vpack.c.bf16 %v1997_v16, %v1997_v16  ;;  %v1760_v59 = vadd.f32 %v1730_v33, %v1570_v38 }
 0x1ab   : > { %2034 = vst.msk [vmem:[%s3091_s23 + $0x24] sm:$0xf] %vm2024_vm5, %v2015_v46  ;;  %v1958_v31 = vadd.f32 %v1928_v4, %v1760_v59  ;;  %v1938_v21 = vpop.f32.mrf.mxu0 }
 0x1ad   : > { %v1980_v49 = vadd.f32 %v3083_v53, %v1958_v31 }
 0x1ae   : > { %v1542_v30 = vpop.f32.mrf.mxu2  ;;  %v1737_v48 = vpop.f32.mrf.mxu3 }
 0x1af   : > { %v1998_v54 = vmax.f32 %v1980_v49, 0.0  ;;  %v1571_v55 = vadd.f32 %v1542_v30, %v1381_v43  ;;  %v1355_v13 = vpop.f32.mrf.mxu1 }
 0x1b0   : > { %v1382_v63 = vadd.f32 %v1355_v13, %v3030_v50 }
 0x1b1   : > { %v2016_v35 = vpack.c.bf16 %v1998_v54, %v1998_v54  ;;  %v1761_v51 = vadd.f32 %v1732_v57, %v1571_v55 }
 0x1b3   : > { %2035 = vst.msk [vmem:[%s3091_s23 + $0x28] sm:$0xf] %vm2024_vm5, %v2016_v35  ;;  %v1959_v17 = vadd.f32 %v1930_v36, %v1761_v51  ;;  %v1940_v60 = vpop.f32.mrf.mxu0 }
 0x1b5   : > { %v1981_v3 = vadd.f32 %v3083_v53, %v1959_v17 }
 0x1b6   : > { %v1545_v15 = vpop.f32.mrf.mxu2  ;;  %v1740_v26 = vpop.f32.mrf.mxu3 }
 0x1b7   : > { %v1999_v29 = vmax.f32 %v1981_v3, 0.0  ;;  %v1572_v5 = vadd.f32 %v1545_v15, %v1382_v63  ;;  %v1357_v6 = vpop.f32.mrf.mxu1 }
 0x1b8   : > { %v1383_v42 = vadd.f32 %v1357_v6, %v3044_v32 }
 0x1b9   : > { %v2017_v14 = vpack.c.bf16 %v1999_v29, %v1999_v29  ;;  %v1762_v40 = vadd.f32 %v1735_v45, %v1572_v5 }
 0x1bb   : > { %2036 = vst.msk [vmem:[%s3091_s23 + $0x2c] sm:$0xf] %vm2024_vm5, %v2017_v14  ;;  %v1960_v9 = vadd.f32 %v1933_v39, %v1762_v40 }
 0x1bd   : > { %v1982_v61 = vadd.f32 %v3083_v53, %v1960_v9 }
 0x1be   : > { %v1547_v1 = vpop.f32.mrf.mxu2  ;;  %v1742_v25 = vpop.f32.mrf.mxu3 }
 0x1bf   : > { %v2000_v12 = vmax.f32 %v1982_v61, 0.0  ;;  %v1573_v19 = vadd.f32 %v1547_v1, %v1383_v42  ;;  %v1360_v50 = vpop.f32.mrf.mxu1 }
 0x1c0   : > { %v1384_v2 = vadd.f32 %v1360_v50, %v3051_v34 }
 0x1c1   : > { %v2018_v18 = vpack.c.bf16 %v2000_v12, %v2000_v12  ;;  %v1763_v24 = vadd.f32 %v1737_v48, %v1573_v19 }
 0x1c3   : > { %2037 = vst.msk [vmem:[%s3091_s23 + $0x30] sm:$0xf] %vm2024_vm5, %v2018_v18  ;;  %v1961_v62 = vadd.f32 %v1935_v10, %v1763_v24 }
 0x1c5   : > { %v1983_v47 = vadd.f32 %v3083_v53, %v1961_v62 }
 0x1c6   : > { %v1550_v33 = vpop.f32.mrf.mxu2  ;;  %v1745_v38 = vpop.f32.mrf.mxu3 }
 0x1c7   : > { %v2001_v28 = vmax.f32 %v1983_v47, 0.0  ;;  %v1574_v4 = vadd.f32 %v1550_v33, %v1384_v2  ;;  %v1362_v32 = vpop.f32.mrf.mxu1 }
 0x1c8   : > { %v1385_v56 = vadd.f32 %v1362_v32, %v3063_v52  ;;  %v1943_v52 = vpop.f32.mrf.mxu0 }
 0x1c9   : > { %v2019_v58 = vpack.c.bf16 %v2001_v28, %v2001_v28  ;;  %v1764_v20 = vadd.f32 %v1740_v26, %v1574_v4 }
 0x1cb   : > { %2038 = vst.msk [vmem:[%s3091_s23 + $0x34] sm:$0xf] %vm2024_vm5, %v2019_v58  ;;  %v1962_v37 = vadd.f32 %v1938_v21, %v1764_v20 }
 0x1cd   : > { %v1984_v8 = vadd.f32 %v3083_v53, %v1962_v37 }
 0x1ce   : > { %v1552_v44 = vpop.f32.mrf.mxu2  ;;  %v1747_v39 = vpop.f32.mrf.mxu3 }
 0x1cf   : > { %v2002_v23 = vmax.f32 %v1984_v8, 0.0  ;;  %v1575_v57 = vadd.f32 %v1552_v44, %v1385_v56  ;;  %v1365_v34 = vpop.f32.mrf.mxu1 }
 0x1d0   : > { %v1386_v16 = vadd.f32 %v1365_v34, %v3068_v11  ;;  %v1945_v17 = vpop.f32.mrf.mxu0 }
 0x1d1   : > { %v2020_v27 = vpack.c.bf16 %v2002_v23, %v2002_v23  ;;  %v1765_v41 = vadd.f32 %v1742_v25, %v1575_v57 }
 0x1d3   : > { %2039 = vst.msk [vmem:[%s3091_s23 + $0x38] sm:$0xf] %vm2024_vm5, %v2020_v27  ;;  %v1963_v7 = vadd.f32 %v1940_v60, %v1765_v41 }
 0x1d5   : > { %v1985_v36 = vadd.f32 %v3083_v53, %v1963_v7 }
 0x1d6   : > { %v1555_v0 = vpop.f32.mrf.mxu2 }
 0x1d7   : > { %v2003_v46 = vmax.f32 %v1985_v36, 0.0  ;;  %v1576_v59 = vadd.f32 %v1555_v0, %v1386_v16  ;;  %v1367_v43 = vpop.f32.mrf.mxu1 }
 0x1d8   : > { %v1387_v54 = vadd.f32 %v1367_v43, %v3077_v22 }
 0x1d9   : > { %v2021_v31 = vpack.c.bf16 %v2003_v46, %v2003_v46  ;;  %v1766_v49 = vadd.f32 %v1745_v38, %v1576_v59 }
 0x1db   : > { %2040 = vst.msk [vmem:[%s3091_s23 + $0x3c] sm:$0xf] %vm2024_vm5, %v2021_v31  ;;  %v1964_v30 = vadd.f32 %v1943_v52, %v1766_v49 }
 0x1dd   : > { %v1986_v45 = vadd.f32 %v3083_v53, %v1964_v30 }
 0x1de   : > { %v1557_v55 = vpop.f32.mrf.mxu2 }
 0x1df   : > { %v2004_v13 = vmax.f32 %v1986_v45, 0.0  ;;  %v1577_v11 = vadd.f32 %v1557_v55, %v1387_v54 }
 0x1e1   : > { %v2022_v35 = vpack.c.bf16 %v2004_v13, %v2004_v13  ;;  %v1767_v51 = vadd.f32 %v1747_v39, %v1577_v11 }
 0x1e3   : > { %2041 = vst.msk [vmem:[%s3091_s23 + $0x40] sm:$0xf] %vm2024_vm5, %v2022_v35  ;;  %v1965_v3 = vadd.f32 %v1945_v17, %v1767_v51 }
 0x1e5   : > { %v1987_v63 = vadd.f32 %v3083_v53, %v1965_v3 }
 0x1e7   : > { %v2005_v15 = vmax.f32 %v1987_v63, 0.0 }
 0x1e9   : > { %v2023_v29 = vpack.c.bf16 %v2005_v15, %v2005_v15 }
 0x1eb   : > { %2042 = vst.msk [vmem:[%s3091_s23 + $0x44] sm:$0xf] %vm2024_vm5, %v2023_v29 }
 0x1ec PF: > { %s14_s15 = sadd.s32 1, %s2542_s15  }
 0x1ed   : > { %p11_p4 = scmp.ge.s32.totalorder %s14_s15, 4  }
 0x1ef   :  { %13 = sbr.rel (!%p11_p4) target bundleno = 1 (0x1), region = 77 }

// kernel: resnet_encoder_forward.15
= control target key start
LH: loop header
LB: loop body
LE: loop exit
PB: predicated region body
PF: predicated region fallthrough
CT: control target
= control target key end

     0   :  { %s598_s9 = smov 0   ;;  %s734_s0 = inlined_call_operand.vmem [shape: bf16[2,51,64], index: 0, kind: input, shape index: {}]   ;;  %s735_s1 = inlined_call_operand.vmem [shape: bf16[2,50,64], index: 1, kind: input, shape index: {}]   ;;  %s736_s2 = inlined_call_operand.vmem [shape: bf16[2,40,64], index: 2, kind: output, shape index: {}]  }
   0x1 LB: > { %s537_s10 = sadd.s32 4294967295, %s581_s9   ;;  %p541_p0 = scmp.ge.s32.totalorder %s581_s9, 1  ;;  %s581_s9 = sphi %s598_s9, %s12_s9  }
   0x2   : > { %p122_p1 = scmp.lt.s32.totalorder %s581_s9, 3 }
   0x4   : > { %p123_p2 = pnand %p541_p0, %p122_p1 }
   0x5   : > { %p149_p3 = scmp.lt.s32.totalorder (!%p123_p2), %s537_s10, 1 }
   0x6   : > { %126 = sbr.rel (%p123_p2) target bundleno = 62 (0x3e), region = 28 }
   0xb   : > { %s738_s10 = smov (!%p149_p3, %s537_s10), 1  ;;  %vm207_vm0 = vcmask 1046528   ;;  %vm245_vm1 = vcmask 1042432   ;;  %vm321_vm2 = vcmask 1041408   ;;  %vm362_vm3 = vcmask 1045504  }
   0xc   : > { %s565_s11 = smul.u32 28, %s738_s10  ;;  %vm437_vm4 = vcmask 1044480   ;;  %vm464_vm5 = vcmask 519168  }
   0xd   : > { %s566_s18 = smul.u32 20, %s738_s10 }
   0xe   : > { %s612_s14 = scalar_lea.vmem %s734_s0, %s565_s11  ;;  %s617_s17 = scalar_lea.vmem %s735_s1, %s565_s11 }
   0xf   : > { %v548_v0 = vld [vmem:[%s612_s14] sm:$0xff]   ;;  %v563_v7 = vld [vmem:[%s612_s14 + $0x8] sm:$0xff]   ;;  %v658_v59 = vld [vmem:[%s612_s14 + $0x10] sm:$0xff]   ;;  %s682_s21 = scalar_lea.vmem %s736_s2, %s566_s18 }
  0x10   : > { %v556_v1 = vld [vmem:[%s617_s17] sm:$0xff]   ;;  %v549_v2 = vunpack.c.l.bf16 %v548_v0  ;;  %v621_v3 = vunpack.c.h.bf16 %v548_v0  ;;  %v564_v13 = vld [vmem:[%s617_s17 + $0x8] sm:$0xff]   ;;  %v632_v23 = vunpack.c.l.bf16 %v563_v7  ;;  %v641_v41 = vunpack.c.h.bf16 %v563_v7  ;;  %v173_v0 = vld [vmem:[%s617_s17 + $0x10] sm:$0xff]  }
  0x11   : > { %v557_v4 = vunpack.c.l.bf16 %v556_v1  ;;  %v234_v5 = vld [vmem:[%s612_s14] sm:$0xc]  ;;  %v558_v8 = vunpack.c.h.bf16 %v556_v1  ;;  %v348_v12 = vld [vmem:[%s612_s14 + $0x4] sm:$0xe]  ;;  %v561_v27 = vunpack.c.l.bf16 %v564_v13  ;;  %v644_v44 = vunpack.c.h.bf16 %v564_v13 }
  0x12   : > { %v272_v6 = vld [vmem:[%s617_s17] sm:$0xc]  ;;  %v241_v9 = vunpack.c.l.bf16 %v234_v5  ;;  %v208_v15 = vrot.slane %v549_v2, 1  ;;  %v209_v16 = vrot.slane %v621_v3, 1  ;;  %v247_v17 = vrot.slane %v621_v3, 5 }
  0x13   : > { %v279_v10 = vunpack.c.l.bf16 %v272_v6  ;;  %v313_v11 = vld [vmem:[%s612_s14] sm:$0x8]  ;;  %v184_v14 = vmax.f32 %v549_v2, %v557_v4  ;;  %v288_v20 = vrot.slane %v558_v8, 5  ;;  %v389_v22 = vld [vmem:[%s617_s17 + $0x4] sm:$0xe]  ;;  %v323_v25 = vrot.slane %v621_v3, 6 }
  0x14   : > { %v246_v18 = vrot.slane %v241_v9, 5  ;;  %v319_v21 = vunpack.c.l.bf16 %v313_v11  ;;  %v210_v24 = vsel %vm207_vm0, %v208_v15, %v209_v16  ;;  %v356_v26 = vunpack.c.l.bf16 %v348_v12 }
  0x15   : > { %v287_v19 = vrot.slane %v279_v10, 5  ;;  %v224_v28 = vmax.f32 %v184_v14, %v210_v24  ;;  %v364_v33 = vrot.slane %v632_v23, 2  ;;  %v397_v34 = vunpack.c.l.bf16 %v389_v22 }
  0x16   : > { %v248_v29 = vsel %vm245_vm1, %v246_v18, %v247_v17  ;;  %v322_v30 = vrot.slane %v319_v21, 6  ;;  %v363_v32 = vrot.slane %v356_v26, 2  ;;  %v404_v37 = vrot.slane %v561_v27, 2 }
  0x17   : > { %v289_v31 = vsel %vm245_vm1, %v287_v19, %v288_v20  ;;  %v262_v35 = vmax.f32 %v224_v28, %v248_v29  ;;  %v438_v38 = vrot.slane %v356_v26, 3  ;;  %v403_v39 = vrot.slane %v397_v34, 2 }
  0x18   : > { %v324_v36 = vsel %vm321_vm2, %v322_v30, %v323_v25  ;;  %v439_v40 = vrot.slane %v632_v23, 3  ;;  %v185_v42 = vmax.f32 %v621_v3, %v558_v8  ;;  %v211_v45 = vrot.slane %v632_v23, 1 }
  0x19   : > { %v303_v43 = vmax.f32 %v262_v35, %v289_v31  ;;  %v249_v46 = vrot.slane %v632_v23, 5  ;;  %v365_v47 = vsel %vm362_vm3, %v363_v32, %v364_v33  ;;  %v290_v48 = vrot.slane %v561_v27, 5 }
  0x1a   : > { %v325_v49 = vrot.slane %v632_v23, 6  ;;  %v366_v50 = vrot.slane %v641_v41, 2  ;;  %v212_v52 = vsel %vm207_vm0, %v209_v16, %v211_v45  ;;  %v406_v54 = vrot.slane %v644_v44, 2 }
  0x1b   : > { %v338_v51 = vmax.f32 %v303_v43, %v324_v36  ;;  %v250_v53 = vsel %vm245_vm1, %v247_v17, %v249_v46  ;;  %v405_v55 = vsel %vm362_vm3, %v403_v39, %v404_v37  ;;  %v440_v56 = vsel %vm437_vm4, %v438_v38, %v439_v40 }
  0x1c   : > { %v225_v57 = vmax.f32 %v185_v42, %v212_v52  ;;  %v291_v58 = vsel %vm245_vm1, %v288_v20, %v290_v48  ;;  %v326_v61 = vsel %vm321_vm2, %v323_v25, %v325_v49  ;;  %v367_v62 = vsel %vm362_vm3, %v364_v33, %v366_v50  ;;  %v350_v52 = vld [vmem:[%s612_s14 + $0x18] sm:$0x1] }
  0x1d   : > { %v379_v60 = vmax.f32 %v338_v51, %v365_v47  ;;  %v407_v63 = vsel %vm362_vm3, %v404_v37, %v406_v54  ;;  %v441_v2 = vrot.slane %v641_v41, 3  ;;  %v186_v3 = vmax.f32 %v632_v23, %v561_v27  ;;  %v194_v37 = vld [vmem:[%s612_s14 + $0x14] sm:$0x1] }
  0x1e   : > { %v263_v1 = vmax.f32 %v225_v57, %v250_v53  ;;  %v213_v4 = vrot.slane %v641_v41, 1  ;;  %v669_v6 = vunpack.c.l.bf16 %v658_v59  ;;  %v251_v7 = vrot.slane %v641_v41, 5  ;;  %v273_v51 = vld [vmem:[%s617_s17 + $0x14] sm:$0x7]  ;;  %v391_v53 = vld [vmem:[%s617_s17 + $0x18] sm:$0x1] }
  0x1f   : > { %v419_v5 = vmax.f32 %v379_v60, %v405_v55  ;;  %v292_v8 = vrot.slane %v644_v44, 5  ;;  %v673_v10 = vunpack.c.l.bf16 %v173_v0  ;;  %v327_v12 = vrot.slane %v641_v41, 6 }
  0x20   : > { %v304_v9 = vmax.f32 %v263_v1, %v291_v58  ;;  %v214_v11 = vsel %vm207_vm0, %v211_v45, %v213_v4  ;;  %v252_v15 = vsel %vm245_vm1, %v249_v46, %v251_v7  ;;  %v368_v16 = vrot.slane %v669_v6, 2  ;;  %v235_v46 = vld [vmem:[%s612_s14 + $0x14] sm:$0x7] }
  0x21   : > { %v454_v13 = vmax.f32 %v419_v5, %v440_v56  ;;  %v226_v14 = vmax.f32 %v186_v3, %v214_v11  ;;  %v442_v18 = vsel %vm437_vm4, %v439_v40, %v441_v2  ;;  %v293_v19 = vsel %vm245_vm1, %v290_v48, %v292_v8 }
  0x22   : > { %v339_v17 = vmax.f32 %v304_v9, %v326_v61  ;;  %v408_v20 = vrot.slane %v673_v10, 2  ;;  %v443_v23 = vrot.slane %v669_v6, 3  ;;  %v187_v24 = vmax.f32 %v641_v41, %v644_v44 }
  0x23   : > { %v459_v21 = vpack.c.bf16 %v454_v13, %v454_v13  ;;  %v264_v22 = vmax.f32 %v226_v14, %v252_v15  ;;  %v328_v26 = vsel %vm321_vm2, %v325_v49, %v327_v12  ;;  %v215_v27 = vrot.slane %v669_v6, 1 }
  0x24   : > { %v380_v25 = vmax.f32 %v339_v17, %v367_v62  ;;  %v253_v28 = vrot.slane %v669_v6, 5  ;;  %v369_v30 = vsel %vm362_vm3, %v366_v50, %v368_v16  ;;  %v294_v31 = vrot.slane %v673_v10, 5 }
  0x25   : > { %465 = vst.msk [vmem:[%s682_s21] sm:$0xf] %vm464_vm5, %v459_v21  ;;  %v305_v29 = vmax.f32 %v264_v22, %v293_v19  ;;  %v329_v32 = vrot.slane %v669_v6, 6  ;;  %v216_v34 = vsel %vm207_vm0, %v213_v4, %v215_v27  ;;  %v357_v36 = vunpack.c.h.bf16 %v658_v59 }
  0x26   : > { %v420_v33 = vmax.f32 %v380_v25, %v407_v63  ;;  %v254_v35 = vsel %vm245_vm1, %v251_v7, %v253_v28  ;;  %v409_v39 = vsel %vm362_vm3, %v406_v54, %v408_v20  ;;  %v444_v40 = vsel %vm437_vm4, %v441_v2, %v443_v23 }
  0x27   : > { %v340_v38 = vmax.f32 %v305_v29, %v328_v26  ;;  %v227_v41 = vmax.f32 %v187_v24, %v216_v34  ;;  %v295_v43 = vsel %vm245_vm1, %v292_v8, %v294_v31  ;;  %v370_v44 = vrot.slane %v357_v36, 2 }
  0x28   : > { %v455_v42 = vmax.f32 %v420_v33, %v442_v18  ;;  %v398_v45 = vunpack.c.h.bf16 %v173_v0  ;;  %v330_v49 = vsel %vm321_vm2, %v327_v12, %v329_v32  ;;  %v200_v50 = vunpack.c.l.bf16 %v194_v37 }
  0x29   : > { %v381_v47 = vmax.f32 %v340_v38, %v369_v30  ;;  %v265_v48 = vmax.f32 %v227_v41, %v254_v35  ;;  %v445_v56 = vrot.slane %v357_v36, 3  ;;  %v188_v57 = vmax.f32 %v669_v6, %v673_v10  ;;  %v429_v10 = vld [vmem:[%s612_s14 + $0x18] sm:$0x3] }
  0x2a   : > { %v460_v55 = vpack.c.bf16 %v455_v42, %v455_v42  ;;  %v410_v54 = vrot.slane %v398_v45, 2  ;;  %v217_v60 = vrot.slane %v200_v50, 1  ;;  %v242_v61 = vunpack.c.l.bf16 %v235_v46 }
  0x2b   : > { %v421_v58 = vmax.f32 %v381_v47, %v409_v39  ;;  %v306_v59 = vmax.f32 %v265_v48, %v295_v43  ;;  %v371_v62 = vsel %vm362_vm3, %v368_v16, %v370_v44  ;;  %v280_v63 = vunpack.c.l.bf16 %v273_v51 }
  0x2c   : > { %466 = vst.msk [vmem:[%s682_s21 + $0x4] sm:$0xf] %vm464_vm5, %v460_v55  ;;  %v358_v0 = vunpack.c.l.bf16 %v350_v52  ;;  %v399_v1 = vunpack.c.l.bf16 %v391_v53  ;;  %v218_v4 = vsel %vm207_vm0, %v215_v27, %v217_v60  ;;  %v255_v5 = vrot.slane %v242_v61, 5 }
  0x2d   : > { %v456_v2 = vmax.f32 %v421_v58, %v444_v40  ;;  %v341_v3 = vmax.f32 %v306_v59, %v330_v49  ;;  %v411_v6 = vsel %vm362_vm3, %v408_v20, %v410_v54  ;;  %v228_v7 = vmax.f32 %v188_v57, %v218_v4 }
  0x2e   : > { %v296_v8 = vrot.slane %v280_v63, 5  ;;  %v331_v9 = vrot.slane %v242_v61, 6  ;;  %v256_v13 = vsel %vm245_vm1, %v253_v28, %v255_v5  ;;  %v372_v14 = vrot.slane %v358_v0, 2 }
  0x2f   : > { %v461_v11 = vpack.c.bf16 %v456_v2, %v456_v2  ;;  %v382_v12 = vmax.f32 %v341_v3, %v371_v62  ;;  %v446_v15 = vsel %vm437_vm4, %v443_v23, %v445_v56  ;;  %v266_v16 = vmax.f32 %v228_v7, %v256_v13 }
  0x30   : > { %v297_v17 = vsel %vm245_vm1, %v294_v31, %v296_v8  ;;  %v332_v19 = vsel %vm321_vm2, %v329_v32, %v331_v9  ;;  %v412_v20 = vrot.slane %v399_v1, 2  ;;  %v435_v21 = vunpack.c.l.bf16 %v429_v10 }
  0x31   : > { %467 = vst.msk [vmem:[%s682_s21 + $0x8] sm:$0xf] %vm464_vm5, %v461_v11  ;;  %v422_v18 = vmax.f32 %v382_v12, %v411_v6  ;;  %v307_v22 = vmax.f32 %v266_v16, %v297_v17  ;;  %v373_v25 = vsel %vm362_vm3, %v370_v44, %v372_v14 }
  0x32   : > { %v447_v26 = vrot.slane %v435_v21, 3  ;;  %v413_v23 = vsel %vm362_vm3, %v410_v54, %v412_v20 }
  0x33   : > { %v457_v24 = vmax.f32 %v422_v18, %v446_v15  ;;  %v342_v27 = vmax.f32 %v307_v22, %v332_v19 }
  0x34   : > { %v448_v30 = vsel %vm437_vm4, %v445_v56, %v447_v26 }
  0x35   : > { %v462_v28 = vpack.c.bf16 %v457_v24, %v457_v24  ;;  %v383_v29 = vmax.f32 %v342_v27, %v373_v25 }
  0x37   : > { %468 = vst.msk [vmem:[%s682_s21 + $0xc] sm:$0xf] %vm464_vm5, %v462_v28  ;;  %v423_v31 = vmax.f32 %v383_v29, %v413_v23 }
  0x39   : > { %v458_v33 = vmax.f32 %v423_v31, %v448_v30 }
  0x3b   : > { %v463_v32 = vpack.c.bf16 %v458_v33, %v458_v33 }
  0x3d   : > { %469 = vst.msk [vmem:[%s682_s21 + $0x10] sm:$0xf] %vm464_vm5, %v463_v32 }
  0x3e PF: > { %s12_s9 = sadd.s32 1, %s581_s9  }
  0x3f   : > { %p9_p4 = scmp.ge.s32.totalorder %s12_s9, 4  }
  0x41   :  { %11 = sbr.rel (!%p9_p4) target bundleno = 1 (0x1), region = 61 }

// kernel: resnet_encoder_forward.16
= control target key start
LH: loop header
LB: loop body
LE: loop exit
PB: predicated region body
PF: predicated region fallthrough
CT: control target
= control target key end

     0   :  { %s1222_s12 = smov 0   ;;  %s1438_s0 = inlined_call_operand.vmem [shape: bf16[2,38,64], index: 0, kind: input, shape index: {}]   ;;  %s1439_s1 = inlined_call_operand.vmem [shape: bf16[3,3,64,64], index: 1, kind: input, shape index: {}]   ;;  %s1440_s2 = inlined_call_operand.vmem [shape: f32[1,64], index: 2, kind: input, shape index: {}]   ;;  %s1441_s3 = inlined_call_operand.vmem [shape: bf16[2,24,64], index: 3, kind: output, shape index: {}]  }
   0x1 LB: > { %s899_s13 = sadd.s32 4294967295, %s1200_s12   ;;  %p903_p0 = scmp.ge.s32.totalorder %s1200_s12, 1  ;;  %s1200_s12 = sphi %s1222_s12, %s13_s12  }
   0x2   : > { %p137_p1 = scmp.lt.s32.totalorder %s1200_s12, 3 }
   0x4   : > { %p138_p2 = pnand %p903_p0, %p137_p1 }
   0x5   : > { %p161_p3 = scmp.lt.s32.totalorder (!%p138_p2), %s899_s13, 1 }
   0x6   : > { %141 = sbr.rel (%p138_p2) target bundleno = 233 (0xe9), region = 32 }
   0xb   : > { %v1141_v0 = vld [vmem:[%s1439_s1 + $0x38] sm:$0xff]  ;;  %v1140_v3 = vld [vmem:[%s1439_s1 + $0x30] sm:$0xff]  ;;  %s1443_s13 = smov (!%p161_p3, %s899_s13), 1  ;;  %v1139_v6 = vld [vmem:[%s1439_s1 + $0x28] sm:$0xff]  ;;  %vm329_vm0 = vcmask 1046528   ;;  %vm243_vm2 = vcmask 523264  }
   0xc   : > { %v1145_v1 = vld [vmem:[%s1439_s1 + $0x58] sm:$0xff]  ;;  %254 = vmatpush.bf16.msra.mxu0 %v1141_v0  ;;  %1179 = vmatpush.bf16.msra.mxu1 %v1141_v0  ;;  %v1144_v4 = vld [vmem:[%s1439_s1 + $0x50] sm:$0xff]  ;;  %s1183_s26 = smul.u32 20, %s1443_s13  ;;  %v1143_v7 = vld [vmem:[%s1439_s1 + $0x48] sm:$0xff]  ;;  %vm203_vm1 = vsmask.f32 7424 }
   0xd   : > { %v1149_v2 = vld [vmem:[%s1439_s1 + $0x78] sm:$0xff]  ;;  %367 = vmatpush.bf16.msra.mxu2 %v1145_v1  ;;  %v1148_v5 = vld [vmem:[%s1439_s1 + $0x70] sm:$0xff]  ;;  %v1147_v8 = vld [vmem:[%s1439_s1 + $0x68] sm:$0xff]  ;;  %vm401_vm3 = vcmask 1044480   ;;  %vm469_vm4 = vsmask.f32 4352 }
   0xe   : > { %439 = vmatpush.bf16.msra.mxu3 %v1149_v2  ;;  %s1263_s8 = scalar_lea.vmem %s1438_s0, %s1183_s26  ;;  %v1138_v22 = vld [vmem:[%s1439_s1 + $0x20] sm:$0xff]  ;;  %v1137_v27 = vld [vmem:[%s1439_s1 + $0x18] sm:$0xff]  ;;  %v1136_v42 = vld [vmem:[%s1439_s1 + $0x10] sm:$0xff]  ;;  %vm623_vm5 = vcmask 1045504   ;;  %vm691_vm6 = vsmask.f32 5376 }
   0xf   : > { %v1266_v9 = vld [vmem:[%s1263_s8] sm:$0xff]   ;;  %v1269_v10 = vld [vmem:[%s1263_s8 + $0x8] sm:$0xff]   ;;  %v1153_v34 = vld [vmem:[%s1439_s1 + $0x98] sm:$0xff]  ;;  %s1184_s18 = smul.u32 12, %s1443_s13  ;;  %vm840_vm7 = vcmask 519168  }
  0x10   : > { %255 = vmatpush.bf16.msra.mxu0 %v1140_v3  ;;  %1180 = vmatpush.bf16.msra.mxu1 %v1140_v3  ;;  %v183_v11 = vld [vmem:[%s1263_s8 + $0xc] sm:$0x1]  ;;  %v1273_v12 = vunpack.c.l.b16 %v1269_v10  ;;  %v205_v14 = vshrl.u32 %v1266_v9, 16  ;;  %v207_v15 = vshll.u32 %v1266_v9, 16  ;;  %v316_v16 = vld [vmem:[%s1263_s8] sm:$0xe]  ;;  %v1280_v18 = vunpack.c.h.b16 %v1266_v9 }
  0x11   : > { %368 = vmatpush.bf16.msra.mxu2 %v1144_v4  ;;  %v200_v13 = vunpack.c.l.b16 %v183_v11  ;;  %v384_v17 = vld [vmem:[%s1263_s8] sm:$0x8]  ;;  %v327_v19 = vunpack.c.l.b16 %v316_v16  ;;  %v385_v20 = vld [vmem:[%s1263_s8 + $0xc] sm:$0x7]  ;;  %v467_v26 = vunpack.c.h.b16 %v1269_v10  ;;  %v1161_v40 = vld [vmem:[%s1439_s1 + $0xd8] sm:$0xff]  ;;  %v479_v53 = vshrl.u32 %v1269_v10, 16  ;;  %s170_s21 = scalar_lea.vmem %s1441_s3, %s1184_s18 }
  0x12   : > { %440 = vmatpush.bf16.msra.mxu3 %v1148_v5  ;;  %v397_v21 = vunpack.c.l.b16 %v384_v17  ;;  %v209_v24 = vrot.slane %v207_v15, 1  ;;  %v398_v25 = vunpack.c.l.b16 %v385_v20  ;;  %v1142_v28 = vld [vmem:[%s1439_s1 + $0x40] sm:$0xff]  ;;  %v1152_v47 = vld [vmem:[%s1439_s1 + $0x90] sm:$0xff]  ;;  %v1165_v48 = vld [vmem:[%s1439_s1 + $0xf8] sm:$0xff]  ;;  %v482_v54 = vshll.u32 %v1269_v10, 16 }
  0x13   : > { %v1287_v23 = vpack.c.b16 %v200_v13, %v1273_v12  ;;  %v328_v29 = vpack.c.b16 %v1280_v18, %v327_v19  ;;  %v1146_v35 = vld [vmem:[%s1439_s1 + $0x60] sm:$0xff]  ;;  %v1160_v50 = vld [vmem:[%s1439_s1 + $0xd0] sm:$0xff]  ;;  %v1135_v55 = vld [vmem:[%s1439_s1 + $0x8] sm:$0xff]  ;;  %v481_v61 = vrot.slane %v479_v53, 3  ;;  %v548_v53 = vpack.c.b16 %v467_v26, %v467_v26 }
  0x14   : > { %256 = vmatpush.bf16.msra.mxu0 %v1139_v6  ;;  %1181 = vmatpush.bf16.msra.mxu1 %v1139_v6  ;;  %v399_v30 = vpack.c.b16 %v1280_v18, %v397_v21  ;;  %v210_v31 = vor.u32 %v209_v24, %v205_v14  ;;  %v1308_v38 = vpack.c.b16 %v398_v25, %v1273_v12  ;;  %v1151_v56 = vld [vmem:[%s1439_s1 + $0x88] sm:$0xff]  ;;  %v1164_v57 = vld [vmem:[%s1439_s1 + $0xf0] sm:$0xff]  ;;  %v484_v62 = vrot.slane %v482_v54, 4  ;;  %v1134_v63 = vld [vmem:[%s1439_s1] sm:$0xff] }
  0x15   : > { %369 = vmatpush.bf16.msra.mxu2 %v1143_v7  ;;  %v212_v32 = vshll.u32 %v1287_v23, 16  ;;  %v216_v33 = vshrl.u32 %v1287_v23, 16  ;;  %v331_v36 = vrot.slane %v1287_v23, 1  ;;  %v330_v37 = vrot.slane %v328_v29, 1  ;;  %v1159_v58 = vld [vmem:[%s1439_s1 + $0xc8] sm:$0xff]  ;;  %v1150_v0 = vld [vmem:[%s1439_s1 + $0x80] sm:$0xff] }
  0x16   : > { %441 = vmatpush.bf16.msra.mxu3 %v1147_v8  ;;  %v402_v39 = vrot.slane %v399_v30, 3  ;;  %v403_v44 = vrot.slane %v1308_v38, 3  ;;  %v471_v51 = vshrl.u32 %v399_v30, 16  ;;  %v474_v52 = vshll.u32 %v399_v30, 16  ;;  %v1157_v1 = vld [vmem:[%s1439_s1 + $0xb8] sm:$0xff]  ;;  %v1163_v3 = vld [vmem:[%s1439_s1 + $0xe8] sm:$0xff] }
  0x17   : > { %v214_v41 = vrot.slane %v212_v32, 1  ;;  %v332_v43 = vsel %vm329_vm0, %v330_v37, %v331_v36  ;;  %v1169_v2 = vld [vmem:[%s1439_s1 + $0x118] sm:$0xff]  ;;  %v600_v4 = vld [vmem:[%s1263_s8 + $0x4] sm:$0xc]  ;;  %v1367_v5 = vld [vmem:[%s1263_s8 + $0x8] sm:$0xff]   ;;  %v485_v8 = vor.u32 %v484_v62, %v481_v61 }
  0x18   : > { %257 = vmatpush.bf16.msra.mxu0 %v1138_v22  ;;  %1182 = vmatpush.bf16.msra.mxu1 %v1138_v22  ;;  %v404_v49 = vsel %vm401_vm3, %v402_v39, %v403_v44  ;;  %v473_v59 = vrot.slane %v471_v51, 3  ;;  %v476_v60 = vrot.slane %v474_v52, 4  ;;  %v678_v6 = vld [vmem:[%s1263_s8 + $0x10] sm:$0x7]  ;;  %v1158_v11 = vld [vmem:[%s1439_s1 + $0xc0] sm:$0xff]  ;;  %v1176_v14 = vunpack.c.l.b16 %v1367_v5  ;;  %v1155_v22 = vld [vmem:[%s1439_s1 + $0xa8] sm:$0xff] }
  0x19   : > { %370 = vmatpush.bf16.msra.mxu2 %v1142_v28  ;;  %v215_v45 = vsel %vm203_vm1, %v210_v31, %v214_v41  ;;  %v218_v46 = vor.u32 %v216_v33, %v214_v41  ;;  %v1156_v13 = vld [vmem:[%s1439_s1 + $0xb0] sm:$0xff]  ;;  %v1177_v15 = vunpack.c.h.b16 %v1367_v5  ;;  %v617_v16 = vunpack.c.l.b16 %v600_v4  ;;  %v1162_v19 = vld [vmem:[%s1439_s1 + $0xe0] sm:$0xff]  ;;  %v1167_v29 = vld [vmem:[%s1439_s1 + $0x108] sm:$0xff] }
  0x1a   : > { %442 = vmatpush.bf16.msra.mxu3 %v1146_v35  ;;  %v477_v7 = vor.u32 %v476_v60, %v473_v59  ;;  %v689_v17 = vunpack.c.l.b16 %v678_v6  ;;  %v1168_v21 = vld [vmem:[%s1439_s1 + $0x110] sm:$0xff]  ;;  %v547_v51 = vpack.c.b16 %v1273_v12, %v1280_v18 }
  0x1b   : > { %930 = vmatmul.msk.bf16.vlgmr.msra.gmra.mxu0 %vm243_vm2, %v215_v45  ;;  %931 = vmatmul.msk.bf16.vlgmr.msra.gmra.mxu1 %vm243_vm2, %v218_v46  ;;  %v603_v24 = vld [vmem:[%s1263_s8 + $0x10] sm:$0x3]  ;;  %v621_v25 = vpack.c.b16 %v1176_v14, %v617_v16  ;;  %v760_v45 = vld [vmem:[%s1263_s8 + $0x4] sm:$0x8] }
  0x1c   : > { %302 = vmatpush.bf16.msrb.mxu1 %v1137_v27  ;;  %521 = vmatpush.bf16.msrb.mxu0 %v1153_v34  ;;  %v486_v20 = vsel %vm469_vm4, %v477_v7, %v485_v8  ;;  %v690_v27 = vpack.c.b16 %v689_v17, %v1177_v15  ;;  %v620_v28 = vunpack.c.l.b16 %v603_v24  ;;  %v1166_v34 = vld [vmem:[%s1439_s1 + $0x100] sm:$0xff] }
  0x1d   : > { %661 = vmatpush.bf16.msrb.mxu2 %v1161_v40  ;;  %1000 = vmatmul.msk.bf16.vlgmr.msra.gmra.mxu3 %vm243_vm2, %v404_v49  ;;  %v693_v30 = vshrl.u32 %v621_v25, 16  ;;  %v696_v31 = vshll.u32 %v621_v25, 16  ;;  %v624_v39 = vrot.slane %v621_v25, 2 }
  0x1e   : > { %974 = vmatmul.msk.bf16.vlgmr.msra.gmra.mxu2 %vm243_vm2, %v332_v43  ;;  %743 = vmatpush.bf16.msrb.mxu3 %v1165_v48  ;;  %v701_v32 = vshrl.u32 %v690_v27, 16  ;;  %v704_v33 = vshll.u32 %v690_v27, 16  ;;  %v622_v23 = vpack.c.b16 %v620_v28, %v1177_v15  ;;  %v268_v43 = vpack.c.b16 %v1273_v12, %v1273_v12 }
  0x1f   : > { %v695_v35 = vrot.slane %v693_v30, 2 }
  0x20   : > { %303 = vmatpush.bf16.msrb.mxu1 %v1136_v42  ;;  %522 = vmatpush.bf16.msrb.mxu0 %v1152_v47  ;;  %v703_v37 = vrot.slane %v701_v32, 2  ;;  %v706_v38 = vrot.slane %v704_v33, 3  ;;  %v625_v40 = vrot.slane %v622_v23, 2  ;;  %v771_v47 = vunpack.c.l.b16 %v760_v45 }
  0x21   : > { %662 = vmatpush.bf16.msrb.mxu2 %v1160_v50  ;;  %v774_v50 = vrot.slane %v690_v27, 3 }
  0x22   : > { %744 = vmatpush.bf16.msrb.mxu3 %v1164_v57  ;;  %v707_v42 = vor.u32 %v706_v38, %v703_v37  ;;  %v772_v48 = vpack.c.b16 %v1176_v14, %v771_v47 }
  0x24   : > { %304 = vmatpush.bf16.msrb.mxu1 %v1135_v55  ;;  %523 = vmatpush.bf16.msrb.mxu0 %v1151_v56  ;;  %v773_v49 = vrot.slane %v772_v48, 3 }
  0x25   : > { %663 = vmatpush.bf16.msrb.mxu2 %v1159_v58 }
  0x26   : > { %745 = vmatpush.bf16.msrb.mxu3 %v1163_v3  ;;  %v775_v52 = vsel %vm401_vm3, %v773_v49, %v774_v50 }
  0x28   : > { %305 = vmatpush.bf16.msrb.mxu1 %v1134_v63  ;;  %524 = vmatpush.bf16.msrb.mxu0 %v1150_v0 }
  0x29   : > { %664 = vmatpush.bf16.msrb.mxu2 %v1158_v11 }
  0x2a   : > { %746 = vmatpush.bf16.msrb.mxu3 %v1162_v19 }
  0x2b   : > { %1026 = vmatmul.msk.bf16.vlgmr.msrb.gmra.mxu0 %vm243_vm2, %v486_v20  ;;  %948 = vmatmul.msk.bf16.vlgmr.msrb.gmra.mxu1 %vm243_vm2, %v1266_v9  ;;  %v1154_v9 = vld [vmem:[%s1439_s1 + $0xa0] sm:$0xff] }
  0x2c   : > { %583 = vmatpush.bf16.msra.mxu1 %v1157_v1  ;;  %810 = vmatpush.bf16.msra.mxu0 %v1169_v2 }
  0x2d   : > { %1001 = vmatmul.msk.bf16.gmra.mxu3 %vm243_vm2, %v403_v44  ;;  %v626_v44 = vsel %vm623_vm5, %v624_v39, %v625_v40 }
  0x2e   : > { %975 = vmatmul.msk.bf16.gmra.mxu2 %vm243_vm2, %v331_v36  ;;  %v698_v36 = vrot.slane %v696_v31, 3 }
  0x30   : > { %584 = vmatpush.bf16.msra.mxu1 %v1156_v13  ;;  %811 = vmatpush.bf16.msra.mxu0 %v1168_v21  ;;  %v699_v41 = vor.u32 %v698_v36, %v695_v35 }
  0x32   : > { %v708_v46 = vsel %vm691_vm6, %v699_v41, %v707_v42 }
  0x34   : > { %585 = vmatpush.bf16.msra.mxu1 %v1155_v22  ;;  %812 = vmatpush.bf16.msra.mxu0 %v1167_v29  ;;  %v1193_v29 = vld [vmem:[%s1440_s2] ss:$0 sm:$0xff] }
  0x38   : > { %586 = vmatpush.bf16.msra.mxu1 %v1154_v9  ;;  %813 = vmatpush.bf16.msra.mxu0 %v1166_v34 }
  0x3b   : > { %1027 = vmatmul.msk.bf16.gmra.mxu0 %vm243_vm2, %v485_v8  ;;  %949 = vmatmul.msk.bf16.gmra.mxu1 %vm243_vm2, %v268_v43 }
  0x3d   : > { %1104 = vmatmul.msk.bf16.vlgmr.msrb.gmra.mxu3 %vm243_vm2, %v708_v46 }
  0x3e   : > { %1078 = vmatmul.msk.bf16.vlgmr.msrb.gmra.mxu2 %vm243_vm2, %v626_v44 }
  0x4b   : > { %1130 = vmatmul.msk.bf16.vlgmr.msra.gmra.mxu0 %vm243_vm2, %v775_v52  ;;  %1052 = vmatmul.msk.bf16.vlgmr.msra.gmra.mxu1 %vm243_vm2, %v547_v51 }
  0x4d   : > { %1105 = vmatmul.msk.bf16.gmra.mxu3 %vm243_vm2, %v707_v42 }
  0x4e   : > { %1079 = vmatmul.msk.bf16.gmra.mxu2 %vm243_vm2, %v625_v40 }
  0x5b   : > { %1131 = vmatmul.msk.bf16.gmra.mxu0 %vm243_vm2, %v774_v50  ;;  %1053 = vmatmul.msk.bf16.gmra.mxu1 %vm243_vm2, %v548_v53 }
  0x98   : > { %v259_v54 = vpop.f32.mrf.mxu0  ;;  %v264_v12 = vpop.f32.mrf.mxu1 }
  0xa0   : > { %v261_v55 = vpop.f32.mrf.mxu0  ;;  %v444_v56 = vpop.f32.mrf.mxu3 }
  0xa1   : > { %v372_v18 = vpop.f32.mrf.mxu2  ;;  %v266_v57 = vpop.f32.mrf.mxu1 }
  0xa8   : > { %v526_v59 = vpop.f32.mrf.mxu0  ;;  %v446_v60 = vpop.f32.mrf.mxu3 }
  0xa9   : > { %v374_v58 = vpop.f32.mrf.mxu2  ;;  %v307_v61 = vpop.f32.mrf.mxu1 }
  0xaa   : > { %v308_v4 = vadd.f32 %v307_v61, %v259_v54 }
  0xac   : > { %v381_v6 = vadd.f32 %v372_v18, %v308_v4 }
  0xae   : > { %v453_v13 = vadd.f32 %v444_v56, %v381_v6 }
  0xb0   : > { %v528_v63 = vpop.f32.mrf.mxu0  ;;  %v449_v0 = vpop.f32.mrf.mxu3  ;;  %v535_v16 = vadd.f32 %v526_v59, %v453_v13 }
  0xb1   : > { %v377_v62 = vpop.f32.mrf.mxu2  ;;  %v309_v10 = vpop.f32.mrf.mxu1 }
  0xb2   : > { %v310_v14 = vadd.f32 %v309_v10, %v261_v55 }
  0xb4   : > { %v382_v17 = vadd.f32 %v374_v58, %v310_v14 }
  0xb6   : > { %v454_v24 = vadd.f32 %v446_v60, %v382_v17 }
  0xb8   : > { %v531_v26 = vpop.f32.mrf.mxu0  ;;  %v451_v2 = vpop.f32.mrf.mxu3  ;;  %v536_v31 = vadd.f32 %v528_v63, %v454_v24 }
  0xb9   : > { %v379_v1 = vpop.f32.mrf.mxu2  ;;  %v312_v3 = vpop.f32.mrf.mxu1 }
  0xba   : > { %v313_v25 = vadd.f32 %v312_v3, %v264_v12 }
  0xbc   : > { %v383_v32 = vadd.f32 %v377_v62, %v313_v25 }
  0xbe   : > { %v455_v37 = vadd.f32 %v449_v0, %v383_v32 }
  0xc0   : > { %v533_v7 = vpop.f32.mrf.mxu0  ;;  %v748_v8 = vpop.f32.mrf.mxu3  ;;  %v537_v43 = vadd.f32 %v531_v26, %v455_v37 }
  0xc1   : > { %v666_v5 = vpop.f32.mrf.mxu2  ;;  %v314_v11 = vpop.f32.mrf.mxu1 }
  0xc8   : > { %v815_v19 = vpop.f32.mrf.mxu0  ;;  %v750_v20 = vpop.f32.mrf.mxu3 }
  0xc9   : > { %v668_v15 = vpop.f32.mrf.mxu2  ;;  %v588_v21 = vpop.f32.mrf.mxu1 }
  0xca   : > { %v597_v22 = vadd.f32 %v588_v21, %v535_v16 }
  0xcc   : > { %v675_v27 = vadd.f32 %v666_v5, %v597_v22 }
  0xce   : > { %v757_v28 = vadd.f32 %v748_v8, %v675_v27 }
  0xd0   : > { %v824_v33 = vadd.f32 %v815_v19, %v757_v28  ;;  %v817_v9 = vpop.f32.mrf.mxu0  ;;  %v753_v23 = vpop.f32.mrf.mxu3 }
  0xd1   : > { %v671_v30 = vpop.f32.mrf.mxu2  ;;  %v590_v34 = vpop.f32.mrf.mxu1 }
  0xd2   : > { %v831_v35 = vadd.f32 %v1193_v29, %v824_v33  ;;  %v598_v36 = vadd.f32 %v590_v34, %v536_v31 }
  0xd4   : > { %v834_v38 = vmax.f32 %v831_v35, 0.0  ;;  %v676_v39 = vadd.f32 %v668_v15, %v598_v36 }
  0xd6   : > { %v837_v40 = vpack.c.bf16 %v834_v38, %v834_v38  ;;  %v758_v41 = vadd.f32 %v750_v20, %v676_v39 }
  0xd8   : > { %841 = vst.msk [vmem:[%s170_s21] sm:$0xf] %vm840_vm7, %v837_v40  ;;  %v825_v44 = vadd.f32 %v817_v9, %v758_v41  ;;  %v820_v45 = vpop.f32.mrf.mxu0  ;;  %v755_v46 = vpop.f32.mrf.mxu3 }
  0xd9   : > { %v673_v42 = vpop.f32.mrf.mxu2  ;;  %v593_v47 = vpop.f32.mrf.mxu1 }
  0xda   : > { %v832_v48 = vadd.f32 %v1193_v29, %v825_v44  ;;  %v599_v49 = vadd.f32 %v593_v47, %v537_v43 }
  0xdc   : > { %v835_v50 = vmax.f32 %v832_v48, 0.0  ;;  %v677_v51 = vadd.f32 %v671_v30, %v599_v49 }
  0xde   : > { %v838_v52 = vpack.c.bf16 %v835_v50, %v835_v50  ;;  %v759_v53 = vadd.f32 %v753_v23, %v677_v51 }
  0xe0   : > { %842 = vst.msk [vmem:[%s170_s21 + $0x4] sm:$0xf] %vm840_vm7, %v838_v52  ;;  %v826_v54 = vadd.f32 %v820_v45, %v759_v53  ;;  %v822_v12 = vpop.f32.mrf.mxu0 }
  0xe1   : > { %v595_v18 = vpop.f32.mrf.mxu1 }
  0xe2   : > { %v833_v55 = vadd.f32 %v1193_v29, %v826_v54 }
  0xe4   : > { %v836_v56 = vmax.f32 %v833_v55, 0.0 }
  0xe6   : > { %v839_v57 = vpack.c.bf16 %v836_v56, %v836_v56 }
  0xe8   : > { %843 = vst.msk [vmem:[%s170_s21 + $0x8] sm:$0xf] %vm840_vm7, %v839_v57 }
  0xe9 PF: > { %s13_s12 = sadd.s32 1, %s1200_s12  }
  0xea   : > { %p10_p4 = scmp.ge.s32.totalorder %s13_s12, 4  }
  0xec   :  { %12 = sbr.rel (!%p10_p4) target bundleno = 1 (0x1), region = 70 }

// kernel: resnet_encoder_forward.17
= control target key start
LH: loop header
LB: loop body
LE: loop exit
PB: predicated region body
PF: predicated region fallthrough
CT: control target
= control target key end

     0   :  { %s1300_s15 = smov 0   ;;  %s1527_s0 = inlined_call_operand.vmem [shape: bf16[2,38,64], index: 0, kind: input, shape index: {}]   ;;  %s1528_s1 = inlined_call_operand.vmem [shape: bf16[3,3,64,64], index: 1, kind: input, shape index: {}]   ;;  %s1529_s2 = inlined_call_operand.vmem [shape: f32[1,64], index: 2, kind: input, shape index: {}]   ;;  %s1530_s3 = inlined_call_operand.vmem [shape: bf16[2,24,64], index: 3, kind: input, shape index: {}]   ;;  %s1531_s4 = inlined_call_operand.vmem [shape: bf16[2,24,64], index: 4, kind: output, shape index: {}]  }
   0x1 LB: > { %s967_s16 = sadd.s32 4294967295, %s1273_s15   ;;  %p971_p0 = scmp.ge.s32.totalorder %s1273_s15, 1  ;;  %s1273_s15 = sphi %s1300_s15, %s14_s15  }
   0x2   : > { %p172_p1 = scmp.lt.s32.totalorder %s1273_s15, 3 }
   0x4   : > { %p173_p2 = pnand %p971_p0, %p172_p1 }
   0x5   : > { %p203_p3 = scmp.lt.s32.totalorder (!%p173_p2), %s967_s16, 1 }
   0x6   : > { %176 = sbr.rel (%p173_p2) target bundleno = 235 (0xeb), region = 36 }
   0xb   : > { %v1210_v0 = vld [vmem:[%s1528_s1 + $0x38] sm:$0xff]  ;;  %v1209_v3 = vld [vmem:[%s1528_s1 + $0x30] sm:$0xff]  ;;  %s1533_s16 = smov (!%p203_p3, %s967_s16), 1  ;;  %v1208_v6 = vld [vmem:[%s1528_s1 + $0x28] sm:$0xff]  ;;  %vm376_vm0 = vcmask 1046528   ;;  %vm290_vm2 = vcmask 523264  }
   0xc   : > { %v1214_v1 = vld [vmem:[%s1528_s1 + $0x58] sm:$0xff]  ;;  %301 = vmatpush.bf16.msra.mxu0 %v1210_v0  ;;  %1252 = vmatpush.bf16.msra.mxu1 %v1210_v0  ;;  %v1213_v4 = vld [vmem:[%s1528_s1 + $0x50] sm:$0xff]  ;;  %s1256_s29 = smul.u32 20, %s1533_s16  ;;  %v1212_v7 = vld [vmem:[%s1528_s1 + $0x48] sm:$0xff]  ;;  %vm250_vm1 = vsmask.f32 7424 }
   0xd   : > { %v1218_v2 = vld [vmem:[%s1528_s1 + $0x78] sm:$0xff]  ;;  %414 = vmatpush.bf16.msra.mxu2 %v1214_v1  ;;  %v1217_v5 = vld [vmem:[%s1528_s1 + $0x70] sm:$0xff]  ;;  %v1216_v8 = vld [vmem:[%s1528_s1 + $0x68] sm:$0xff]  ;;  %vm448_vm3 = vcmask 1044480   ;;  %vm516_vm4 = vsmask.f32 4352 }
   0xe   : > { %486 = vmatpush.bf16.msra.mxu3 %v1218_v2  ;;  %s1341_s12 = scalar_lea.vmem %s1527_s0, %s1256_s29  ;;  %v1207_v22 = vld [vmem:[%s1528_s1 + $0x20] sm:$0xff]  ;;  %v1206_v27 = vld [vmem:[%s1528_s1 + $0x18] sm:$0xff]  ;;  %v1205_v42 = vld [vmem:[%s1528_s1 + $0x10] sm:$0xff]  ;;  %vm670_vm5 = vcmask 1045504   ;;  %vm738_vm6 = vsmask.f32 5376 }
   0xf   : > { %v1344_v9 = vld [vmem:[%s1341_s12] sm:$0xff]   ;;  %v1347_v10 = vld [vmem:[%s1341_s12 + $0x8] sm:$0xff]   ;;  %v1222_v34 = vld [vmem:[%s1528_s1 + $0x98] sm:$0xff]  ;;  %vm896_vm7 = vcmask 519168  }
  0x10   : > { %302 = vmatpush.bf16.msra.mxu0 %v1209_v3  ;;  %1253 = vmatpush.bf16.msra.mxu1 %v1209_v3  ;;  %v230_v11 = vld [vmem:[%s1341_s12 + $0xc] sm:$0x1]  ;;  %v1351_v12 = vunpack.c.l.b16 %v1347_v10  ;;  %v252_v14 = vshrl.u32 %v1344_v9, 16  ;;  %v254_v15 = vshll.u32 %v1344_v9, 16  ;;  %v363_v16 = vld [vmem:[%s1341_s12] sm:$0xe]  ;;  %v1358_v18 = vunpack.c.h.b16 %v1344_v9 }
  0x11   : > { %415 = vmatpush.bf16.msra.mxu2 %v1213_v4  ;;  %v247_v13 = vunpack.c.l.b16 %v230_v11  ;;  %v431_v17 = vld [vmem:[%s1341_s12] sm:$0x8]  ;;  %v374_v19 = vunpack.c.l.b16 %v363_v16  ;;  %v432_v20 = vld [vmem:[%s1341_s12 + $0xc] sm:$0x7]  ;;  %v514_v26 = vunpack.c.h.b16 %v1347_v10  ;;  %v1230_v40 = vld [vmem:[%s1528_s1 + $0xd8] sm:$0xff]  ;;  %v526_v53 = vshrl.u32 %v1347_v10, 16 }
  0x12   : > { %487 = vmatpush.bf16.msra.mxu3 %v1217_v5  ;;  %v444_v21 = vunpack.c.l.b16 %v431_v17  ;;  %v256_v24 = vrot.slane %v254_v15, 1  ;;  %v445_v25 = vunpack.c.l.b16 %v432_v20  ;;  %v1211_v28 = vld [vmem:[%s1528_s1 + $0x40] sm:$0xff]  ;;  %v1221_v47 = vld [vmem:[%s1528_s1 + $0x90] sm:$0xff]  ;;  %v1234_v48 = vld [vmem:[%s1528_s1 + $0xf8] sm:$0xff]  ;;  %v529_v54 = vshll.u32 %v1347_v10, 16 }
  0x13   : > { %v1365_v23 = vpack.c.b16 %v247_v13, %v1351_v12  ;;  %v375_v29 = vpack.c.b16 %v1358_v18, %v374_v19  ;;  %v1215_v35 = vld [vmem:[%s1528_s1 + $0x60] sm:$0xff]  ;;  %v1229_v50 = vld [vmem:[%s1528_s1 + $0xd0] sm:$0xff]  ;;  %v1204_v55 = vld [vmem:[%s1528_s1 + $0x8] sm:$0xff]  ;;  %v528_v61 = vrot.slane %v526_v53, 3  ;;  %v595_v53 = vpack.c.b16 %v514_v26, %v514_v26 }
  0x14   : > { %303 = vmatpush.bf16.msra.mxu0 %v1208_v6  ;;  %1254 = vmatpush.bf16.msra.mxu1 %v1208_v6  ;;  %v446_v30 = vpack.c.b16 %v1358_v18, %v444_v21  ;;  %v257_v31 = vor.u32 %v256_v24, %v252_v14  ;;  %v1386_v38 = vpack.c.b16 %v445_v25, %v1351_v12  ;;  %v1220_v56 = vld [vmem:[%s1528_s1 + $0x88] sm:$0xff]  ;;  %v1233_v57 = vld [vmem:[%s1528_s1 + $0xf0] sm:$0xff]  ;;  %v531_v62 = vrot.slane %v529_v54, 4  ;;  %v1203_v63 = vld [vmem:[%s1528_s1] sm:$0xff] }
  0x15   : > { %416 = vmatpush.bf16.msra.mxu2 %v1212_v7  ;;  %v259_v32 = vshll.u32 %v1365_v23, 16  ;;  %v263_v33 = vshrl.u32 %v1365_v23, 16  ;;  %v378_v36 = vrot.slane %v1365_v23, 1  ;;  %v377_v37 = vrot.slane %v375_v29, 1  ;;  %v1228_v58 = vld [vmem:[%s1528_s1 + $0xc8] sm:$0xff]  ;;  %v1219_v0 = vld [vmem:[%s1528_s1 + $0x80] sm:$0xff] }
  0x16   : > { %488 = vmatpush.bf16.msra.mxu3 %v1216_v8  ;;  %v449_v39 = vrot.slane %v446_v30, 3  ;;  %v450_v44 = vrot.slane %v1386_v38, 3  ;;  %v518_v51 = vshrl.u32 %v446_v30, 16  ;;  %v521_v52 = vshll.u32 %v446_v30, 16  ;;  %v1226_v1 = vld [vmem:[%s1528_s1 + $0xb8] sm:$0xff]  ;;  %v1232_v3 = vld [vmem:[%s1528_s1 + $0xe8] sm:$0xff] }
  0x17   : > { %v261_v41 = vrot.slane %v259_v32, 1  ;;  %v379_v43 = vsel %vm376_vm0, %v377_v37, %v378_v36  ;;  %v1238_v2 = vld [vmem:[%s1528_s1 + $0x118] sm:$0xff]  ;;  %v647_v4 = vld [vmem:[%s1341_s12 + $0x4] sm:$0xc]  ;;  %v1445_v5 = vld [vmem:[%s1341_s12 + $0x8] sm:$0xff]   ;;  %v532_v8 = vor.u32 %v531_v62, %v528_v61 }
  0x18   : > { %304 = vmatpush.bf16.msra.mxu0 %v1207_v22  ;;  %1255 = vmatpush.bf16.msra.mxu1 %v1207_v22  ;;  %v451_v49 = vsel %vm448_vm3, %v449_v39, %v450_v44  ;;  %v520_v59 = vrot.slane %v518_v51, 3  ;;  %v523_v60 = vrot.slane %v521_v52, 4  ;;  %v725_v6 = vld [vmem:[%s1341_s12 + $0x10] sm:$0x7]  ;;  %v1227_v11 = vld [vmem:[%s1528_s1 + $0xc0] sm:$0xff]  ;;  %v1245_v14 = vunpack.c.l.b16 %v1445_v5  ;;  %v1224_v22 = vld [vmem:[%s1528_s1 + $0xa8] sm:$0xff] }
  0x19   : > { %417 = vmatpush.bf16.msra.mxu2 %v1211_v28  ;;  %v262_v45 = vsel %vm250_vm1, %v257_v31, %v261_v41  ;;  %v265_v46 = vor.u32 %v263_v33, %v261_v41  ;;  %v1225_v13 = vld [vmem:[%s1528_s1 + $0xb0] sm:$0xff]  ;;  %v1246_v15 = vunpack.c.h.b16 %v1445_v5  ;;  %v664_v16 = vunpack.c.l.b16 %v647_v4  ;;  %v1231_v19 = vld [vmem:[%s1528_s1 + $0xe0] sm:$0xff]  ;;  %v1236_v29 = vld [vmem:[%s1528_s1 + $0x108] sm:$0xff] }
  0x1a   : > { %489 = vmatpush.bf16.msra.mxu3 %v1215_v35  ;;  %v524_v7 = vor.u32 %v523_v60, %v520_v59  ;;  %v736_v17 = vunpack.c.l.b16 %v725_v6  ;;  %v1237_v21 = vld [vmem:[%s1528_s1 + $0x110] sm:$0xff]  ;;  %v594_v51 = vpack.c.b16 %v1351_v12, %v1358_v18 }
  0x1b   : > { %999 = vmatmul.msk.bf16.vlgmr.msra.gmra.mxu0 %vm290_vm2, %v262_v45  ;;  %1000 = vmatmul.msk.bf16.vlgmr.msra.gmra.mxu1 %vm290_vm2, %v265_v46  ;;  %v650_v24 = vld [vmem:[%s1341_s12 + $0x10] sm:$0x3]  ;;  %v668_v25 = vpack.c.b16 %v1245_v14, %v664_v16  ;;  %v807_v45 = vld [vmem:[%s1341_s12 + $0x4] sm:$0x8]  ;;  %s1257_s12 = smul.u32 12, %s1533_s16 }
  0x1c   : > { %349 = vmatpush.bf16.msrb.mxu1 %v1206_v27  ;;  %568 = vmatpush.bf16.msrb.mxu0 %v1222_v34  ;;  %v533_v20 = vsel %vm516_vm4, %v524_v7, %v532_v8  ;;  %v737_v27 = vpack.c.b16 %v736_v17, %v1246_v15  ;;  %v667_v28 = vunpack.c.l.b16 %v650_v24  ;;  %v1235_v34 = vld [vmem:[%s1528_s1 + $0x100] sm:$0xff] }
  0x1d   : > { %708 = vmatpush.bf16.msrb.mxu2 %v1230_v40  ;;  %1069 = vmatmul.msk.bf16.vlgmr.msra.gmra.mxu3 %vm290_vm2, %v451_v49  ;;  %v740_v30 = vshrl.u32 %v668_v25, 16  ;;  %v743_v31 = vshll.u32 %v668_v25, 16  ;;  %v671_v39 = vrot.slane %v668_v25, 2  ;;  %s1509_s25 = scalar_lea.vmem %s1530_s3, %s1257_s12  ;;  %s217_s30 = scalar_lea.vmem %s1531_s4, %s1257_s12 }
  0x1e   : > { %1043 = vmatmul.msk.bf16.vlgmr.msra.gmra.mxu2 %vm290_vm2, %v379_v43  ;;  %790 = vmatpush.bf16.msrb.mxu3 %v1234_v48  ;;  %v748_v32 = vshrl.u32 %v737_v27, 16  ;;  %v751_v33 = vshll.u32 %v737_v27, 16  ;;  %v669_v23 = vpack.c.b16 %v667_v28, %v1246_v15  ;;  %v315_v43 = vpack.c.b16 %v1351_v12, %v1351_v12  ;;  %v1248_v28 = vld [vmem:[%s1509_s25] sm:$0xff]  }
  0x1f   : > { %v742_v35 = vrot.slane %v740_v30, 2  ;;  %v1266_v30 = vld [vmem:[%s1529_s2] ss:$0 sm:$0xff] }
  0x20   : > { %350 = vmatpush.bf16.msrb.mxu1 %v1205_v42  ;;  %569 = vmatpush.bf16.msrb.mxu0 %v1221_v47  ;;  %v750_v37 = vrot.slane %v748_v32, 2  ;;  %v753_v38 = vrot.slane %v751_v33, 3  ;;  %v672_v40 = vrot.slane %v669_v23, 2  ;;  %v818_v47 = vunpack.c.l.b16 %v807_v45 }
  0x21   : > { %709 = vmatpush.bf16.msrb.mxu2 %v1229_v50  ;;  %v821_v50 = vrot.slane %v737_v27, 3  ;;  %v1249_v23 = vunpack.c.l.bf16 %v1248_v28 }
  0x22   : > { %791 = vmatpush.bf16.msrb.mxu3 %v1233_v57  ;;  %v754_v42 = vor.u32 %v753_v38, %v750_v37  ;;  %v819_v48 = vpack.c.b16 %v1245_v14, %v818_v47 }
  0x24   : > { %351 = vmatpush.bf16.msrb.mxu1 %v1204_v55  ;;  %570 = vmatpush.bf16.msrb.mxu0 %v1220_v56  ;;  %v820_v49 = vrot.slane %v819_v48, 3  ;;  %v1250_v48 = vunpack.c.h.bf16 %v1248_v28 }
  0x25   : > { %710 = vmatpush.bf16.msrb.mxu2 %v1228_v58 }
  0x26   : > { %792 = vmatpush.bf16.msrb.mxu3 %v1232_v3  ;;  %v822_v52 = vsel %vm448_vm3, %v820_v49, %v821_v50 }
  0x28   : > { %352 = vmatpush.bf16.msrb.mxu1 %v1203_v63  ;;  %571 = vmatpush.bf16.msrb.mxu0 %v1219_v0 }
  0x29   : > { %711 = vmatpush.bf16.msrb.mxu2 %v1227_v11 }
  0x2a   : > { %793 = vmatpush.bf16.msrb.mxu3 %v1231_v19 }
  0x2b   : > { %1095 = vmatmul.msk.bf16.vlgmr.msrb.gmra.mxu0 %vm290_vm2, %v533_v20  ;;  %1017 = vmatmul.msk.bf16.vlgmr.msrb.gmra.mxu1 %vm290_vm2, %v1344_v9  ;;  %v1223_v9 = vld [vmem:[%s1528_s1 + $0xa0] sm:$0xff] }
  0x2c   : > { %630 = vmatpush.bf16.msra.mxu1 %v1226_v1  ;;  %857 = vmatpush.bf16.msra.mxu0 %v1238_v2 }
  0x2d   : > { %1070 = vmatmul.msk.bf16.gmra.mxu3 %vm290_vm2, %v450_v44  ;;  %v673_v44 = vsel %vm670_vm5, %v671_v39, %v672_v40 }
  0x2e   : > { %1044 = vmatmul.msk.bf16.gmra.mxu2 %vm290_vm2, %v378_v36  ;;  %v745_v36 = vrot.slane %v743_v31, 3 }
  0x30   : > { %631 = vmatpush.bf16.msra.mxu1 %v1225_v13  ;;  %858 = vmatpush.bf16.msra.mxu0 %v1237_v21  ;;  %v746_v41 = vor.u32 %v745_v36, %v742_v35 }
  0x32   : > { %v755_v46 = vsel %vm738_vm6, %v746_v41, %v754_v42 }
  0x34   : > { %632 = vmatpush.bf16.msra.mxu1 %v1224_v22  ;;  %859 = vmatpush.bf16.msra.mxu0 %v1236_v29 }
  0x38   : > { %633 = vmatpush.bf16.msra.mxu1 %v1223_v9  ;;  %860 = vmatpush.bf16.msra.mxu0 %v1235_v34 }
  0x3b   : > { %1096 = vmatmul.msk.bf16.gmra.mxu0 %vm290_vm2, %v532_v8  ;;  %1018 = vmatmul.msk.bf16.gmra.mxu1 %vm290_vm2, %v315_v43 }
  0x3d   : > { %1173 = vmatmul.msk.bf16.vlgmr.msrb.gmra.mxu3 %vm290_vm2, %v755_v46 }
  0x3e   : > { %1147 = vmatmul.msk.bf16.vlgmr.msrb.gmra.mxu2 %vm290_vm2, %v673_v44 }
  0x4b   : > { %1199 = vmatmul.msk.bf16.vlgmr.msra.gmra.mxu0 %vm290_vm2, %v822_v52  ;;  %1121 = vmatmul.msk.bf16.vlgmr.msra.gmra.mxu1 %vm290_vm2, %v594_v51 }
  0x4d   : > { %1174 = vmatmul.msk.bf16.gmra.mxu3 %vm290_vm2, %v754_v42 }
  0x4e   : > { %1148 = vmatmul.msk.bf16.gmra.mxu2 %vm290_vm2, %v672_v40 }
  0x5b   : > { %1200 = vmatmul.msk.bf16.gmra.mxu0 %vm290_vm2, %v821_v50  ;;  %1122 = vmatmul.msk.bf16.gmra.mxu1 %vm290_vm2, %v595_v53 }
  0x98   : > { %v306_v54 = vpop.f32.mrf.mxu0  ;;  %v311_v12 = vpop.f32.mrf.mxu1 }
  0xa0   : > { %v308_v55 = vpop.f32.mrf.mxu0  ;;  %v491_v56 = vpop.f32.mrf.mxu3 }
  0xa1   : > { %v419_v18 = vpop.f32.mrf.mxu2  ;;  %v313_v57 = vpop.f32.mrf.mxu1 }
  0xa8   : > { %v573_v59 = vpop.f32.mrf.mxu0  ;;  %v493_v60 = vpop.f32.mrf.mxu3 }
  0xa9   : > { %v421_v58 = vpop.f32.mrf.mxu2  ;;  %v354_v61 = vpop.f32.mrf.mxu1 }
  0xaa   : > { %v355_v4 = vadd.f32 %v354_v61, %v306_v54 }
  0xac   : > { %v428_v6 = vadd.f32 %v419_v18, %v355_v4  ;;  %v883_v18 = vld [vmem:[%s1509_s25 + $0x8] sm:$0xf] }
  0xae   : > { %v500_v13 = vadd.f32 %v491_v56, %v428_v6 }
  0xb0   : > { %v575_v63 = vpop.f32.mrf.mxu0  ;;  %v496_v10 = vpop.f32.mrf.mxu3  ;;  %v582_v16 = vadd.f32 %v573_v59, %v500_v13  ;;  %v886_v59 = vunpack.c.l.bf16 %v883_v18 }
  0xb1   : > { %v424_v62 = vpop.f32.mrf.mxu2  ;;  %v356_v0 = vpop.f32.mrf.mxu1 }
  0xb2   : > { %v357_v14 = vadd.f32 %v356_v0, %v308_v55 }
  0xb4   : > { %v429_v17 = vadd.f32 %v421_v58, %v357_v14 }
  0xb6   : > { %v501_v24 = vadd.f32 %v493_v60, %v429_v17 }
  0xb8   : > { %v578_v1 = vpop.f32.mrf.mxu0  ;;  %v498_v2 = vpop.f32.mrf.mxu3  ;;  %v583_v32 = vadd.f32 %v575_v63, %v501_v24 }
  0xb9   : > { %v426_v26 = vpop.f32.mrf.mxu2  ;;  %v359_v3 = vpop.f32.mrf.mxu1 }
  0xba   : > { %v360_v25 = vadd.f32 %v359_v3, %v311_v12 }
  0xbc   : > { %v430_v33 = vadd.f32 %v424_v62, %v360_v25 }
  0xbe   : > { %v502_v39 = vadd.f32 %v496_v10, %v430_v33 }
  0xc0   : > { %v580_v7 = vpop.f32.mrf.mxu0  ;;  %v795_v8 = vpop.f32.mrf.mxu3  ;;  %v584_v45 = vadd.f32 %v578_v1, %v502_v39 }
  0xc1   : > { %v713_v5 = vpop.f32.mrf.mxu2  ;;  %v361_v11 = vpop.f32.mrf.mxu1 }
  0xc8   : > { %v862_v19 = vpop.f32.mrf.mxu0  ;;  %v797_v20 = vpop.f32.mrf.mxu3 }
  0xc9   : > { %v715_v15 = vpop.f32.mrf.mxu2  ;;  %v635_v21 = vpop.f32.mrf.mxu1 }
  0xca   : > { %v644_v22 = vadd.f32 %v635_v21, %v582_v16 }
  0xcc   : > { %v722_v27 = vadd.f32 %v713_v5, %v644_v22 }
  0xce   : > { %v804_v29 = vadd.f32 %v795_v8, %v722_v27 }
  0xd0   : > { %v871_v9 = vadd.f32 %v862_v19, %v804_v29  ;;  %v864_v34 = vpop.f32.mrf.mxu0  ;;  %v800_v35 = vpop.f32.mrf.mxu3 }
  0xd1   : > { %v718_v31 = vpop.f32.mrf.mxu2  ;;  %v637_v36 = vpop.f32.mrf.mxu1 }
  0xd2   : > { %v878_v37 = vadd.f32 %v1266_v30, %v871_v9  ;;  %v645_v38 = vadd.f32 %v637_v36, %v583_v32 }
  0xd4   : > { %v887_v40 = vadd.f32 %v1249_v23, %v878_v37  ;;  %v723_v41 = vadd.f32 %v715_v15, %v645_v38 }
  0xd6   : > { %v890_v42 = vmax.f32 %v887_v40, 0.0  ;;  %v805_v43 = vadd.f32 %v797_v20, %v723_v41 }
  0xd8   : > { %v893_v46 = vpack.c.bf16 %v890_v42, %v890_v42  ;;  %v872_v47 = vadd.f32 %v864_v34, %v805_v43  ;;  %v867_v49 = vpop.f32.mrf.mxu0  ;;  %v802_v50 = vpop.f32.mrf.mxu3 }
  0xd9   : > { %v720_v44 = vpop.f32.mrf.mxu2  ;;  %v640_v51 = vpop.f32.mrf.mxu1 }
  0xda   : > { %897 = vst.msk [vmem:[%s217_s30] sm:$0xf] %vm896_vm7, %v893_v46  ;;  %v879_v52 = vadd.f32 %v1266_v30, %v872_v47  ;;  %v646_v53 = vadd.f32 %v640_v51, %v584_v45 }
  0xdc   : > { %v888_v54 = vadd.f32 %v1250_v48, %v879_v52  ;;  %v724_v12 = vadd.f32 %v718_v31, %v646_v53 }
  0xde   : > { %v891_v55 = vmax.f32 %v888_v54, 0.0  ;;  %v806_v56 = vadd.f32 %v800_v35, %v724_v12 }
  0xe0   : > { %v894_v57 = vpack.c.bf16 %v891_v55, %v891_v55  ;;  %v873_v58 = vadd.f32 %v867_v49, %v806_v56  ;;  %v869_v60 = vpop.f32.mrf.mxu0 }
  0xe1   : > { %v642_v61 = vpop.f32.mrf.mxu1 }
  0xe2   : > { %898 = vst.msk [vmem:[%s217_s30 + $0x4] sm:$0xf] %vm896_vm7, %v894_v57  ;;  %v880_v62 = vadd.f32 %v1266_v30, %v873_v58 }
  0xe4   : > { %v889_v63 = vadd.f32 %v886_v59, %v880_v62 }
  0xe6   : > { %v892_v10 = vmax.f32 %v889_v63, 0.0 }
  0xe8   : > { %v895_v0 = vpack.c.bf16 %v892_v10, %v892_v10 }
  0xea   : > { %899 = vst.msk [vmem:[%s217_s30 + $0x8] sm:$0xf] %vm896_vm7, %v895_v0 }
  0xeb PF: > { %s14_s15 = sadd.s32 1, %s1273_s15  }
  0xec   : > { %p11_p4 = scmp.ge.s32.totalorder %s14_s15, 4  }
  0xee   :  { %13 = sbr.rel (!%p11_p4) target bundleno = 1 (0x1), region = 77 }

// kernel: resnet_encoder_forward.18
= control target key start
LH: loop header
LB: loop body
LE: loop exit
PB: predicated region body
PF: predicated region fallthrough
CT: control target
= control target key end

     0   :  { %s1445_s24 = smov 0   ;;  %s1638_s0 = inlined_call_operand.vmem [shape: bf16[2,19,64], index: 0, kind: input, shape index: {}]   ;;  %s1639_s1 = inlined_call_operand.vmem [shape: bf16[2,18,64], index: 1, kind: input, shape index: {}]   ;;  %s1640_s2 = inlined_call_operand.vmem [shape: bf16[3,3,64,128], index: 2, kind: input, shape index: {}]   ;;  %s1641_s3 = inlined_call_operand.vmem [shape: f32[1,128], index: 3, kind: input, shape index: {}]   ;;  %s1642_s4 = inlined_call_operand.vmem [shape: bf16[1,1,64,128], index: 4, kind: input, shape index: {}]   ;;  %s1643_s5 = inlined_call_operand.vmem [shape: f32[1,128], index: 5, kind: input, shape index: {}]   ;;  %s1644_s6 = inlined_call_operand.vmem [shape: bf16[2,12,128], index: 6, kind: output, shape index: {0}]   ;;  %s1645_s7 = inlined_call_operand.vmem [shape: bf16[2,12,128], index: 7, kind: output, shape index: {1}]  }
   0x1 LB: > { %s1072_s25 = sadd.s32 4294967295, %s1403_s24   ;;  %p1076_p0 = scmp.ge.s32.totalorder %s1403_s24, 1  ;;  %s1403_s24 = sphi %s1445_s24, %s18_s24  }
   0x2   : > { %p250_p1 = scmp.lt.s32.totalorder %s1403_s24, 3 }
   0x4   : > { %p251_p2 = pnand %p1076_p0, %p250_p1 }
   0x5   : > { %p292_p3 = scmp.lt.s32.totalorder (!%p251_p2), %s1072_s25, 1 }
   0x6   : > { %254 = sbr.rel (%p251_p2) target bundleno = 202 (0xca), region = 44 }
   0xb   : > { %v1349_v0 = vld [vmem:[%s1640_s2 + $0x38] sm:$0xff]  ;;  %v1348_v4 = vld [vmem:[%s1640_s2 + $0x30] sm:$0xff]  ;;  %s1647_s25 = smov (!%p292_p3, %s1072_s25), 1  ;;  %v1347_v8 = vld [vmem:[%s1640_s2 + $0x28] sm:$0xff]  ;;  %vm363_vm0 = vcmask 523264   ;;  %vm701_vm1 = vcmask 1044480  }
   0xc   : > { %v1344_v1 = vld [vmem:[%s1640_s2 + $0x18] sm:$0xff]  ;;  %371 = vmatpush.bf16.msra.mxu0 %v1349_v0  ;;  %v1343_v5 = vld [vmem:[%s1640_s2 + $0x10] sm:$0xff]  ;;  %s1386_s19 = smul.u32 12, %s1647_s25  ;;  %v1342_v9 = vld [vmem:[%s1640_s2 + $0x8] sm:$0xff]  ;;  %vm827_vm2 = vsmask.f32 4352 }
   0xd   : > { %v1353_v2 = vld [vmem:[%s1640_s2 + $0x58] sm:$0xff]  ;;  %417 = vmatpush.bf16.msra.mxu1 %v1344_v1  ;;  %v1352_v6 = vld [vmem:[%s1640_s2 + $0x50] sm:$0xff]  ;;  %v1351_v10 = vld [vmem:[%s1640_s2 + $0x48] sm:$0xff]  ;;  %s1339_s13 = sshll.u32 %s1647_s25, 3 }
   0xe   : > { %v1357_v3 = vld [vmem:[%s1640_s2 + $0x78] sm:$0xff]  ;;  %478 = vmatpush.bf16.msra.mxu2 %v1353_v2  ;;  %v1356_v7 = vld [vmem:[%s1640_s2 + $0x70] sm:$0xff]  ;;  %s1489_s28 = scalar_lea.vmem %s1638_s0, %s1386_s19  ;;  %s1494_s8 = scalar_lea.vmem %s1639_s1, %s1386_s19  ;;  %v1355_v11 = vld [vmem:[%s1640_s2 + $0x68] sm:$0xff] }
   0xf   : > { %545 = vmatpush.bf16.msra.mxu3 %v1357_v3  ;;  %v1503_v12 = vld [vmem:[%s1489_s28] sm:$0xff]   ;;  %v1362_v31 = vld [vmem:[%s1640_s2 + $0x98] sm:$0xff]  ;;  %v1361_v44 = vld [vmem:[%s1640_s2 + $0x90] sm:$0xff]  ;;  %s311_s16 = scalar_lea.vmem %s1645_s7, %s1339_s13  ;;  %s306_s19 = scalar_lea.vmem %s1644_s6, %s1339_s13 }
  0x10   : > { %372 = vmatpush.bf16.msra.mxu0 %v1348_v4  ;;  %v314_v13 = vld [vmem:[%s1489_s28 + $0x4] sm:$0x3]  ;;  %v383_v14 = vunpack.c.l.b16 %v1503_v12  ;;  %v490_v16 = vld [vmem:[%s1489_s28] sm:$0xe]  ;;  %v504_v17 = vunpack.c.h.b16 %v1503_v12  ;;  %v1366_v32 = vld [vmem:[%s1640_s2 + $0xb8] sm:$0xff] }
  0x11   : > { %418 = vmatpush.bf16.msra.mxu1 %v1343_v5  ;;  %v427_v15 = vld [vmem:[%s1489_s28 + $0x4] sm:$0x7]  ;;  %v1093_v18 = vld [vmem:[%s1494_s8] sm:$0xf]  ;;  %v384_v20 = vunpack.c.l.b16 %v314_v13  ;;  %v503_v22 = vunpack.c.l.b16 %v490_v16  ;;  %v1371_v39 = vld [vmem:[%s1640_s2 + $0xd8] sm:$0xff] }
  0x12   : > { %479 = vmatpush.bf16.msra.mxu2 %v1352_v6  ;;  %v1345_v19 = vld [vmem:[%s1494_s8] sm:$0x30]  ;;  %v438_v21 = vunpack.c.l.b16 %v427_v15  ;;  %v1189_v33 = vld [vmem:[%s1494_s8] sm:$0xe]  ;;  %v1376_v40 = vld [vmem:[%s1640_s2 + $0xf8] sm:$0xff] }
  0x13   : > { %546 = vmatpush.bf16.msra.mxu3 %v1356_v7  ;;  %v1346_v23 = vld [vmem:[%s1640_s2 + $0x20] sm:$0xff]  ;;  %v505_v28 = vpack.c.b16 %v504_v17, %v503_v22  ;;  %v1094_v29 = vor.u32 %v1345_v19, %v1093_v18  ;;  %v385_v30 = vpack.c.b16 %v384_v20, %v383_v14  ;;  %v1365_v45 = vld [vmem:[%s1640_s2 + $0xb0] sm:$0xff]  ;;  %v683_v49 = vld [vmem:[%s1489_s28 + $0x8] sm:$0x1] }
  0x14   : > { %373 = vmatpush.bf16.msra.mxu0 %v1347_v8  ;;  %v1341_v24 = vld [vmem:[%s1640_s2] sm:$0xff]  ;;  %v439_v27 = vpack.c.b16 %v438_v21, %v383_v14  ;;  %v750_v50 = vld [vmem:[%s1494_s8 + $0x8] sm:$0x1]  ;;  %v1370_v51 = vld [vmem:[%s1640_s2 + $0xd0] sm:$0xff]  ;;  %v698_v60 = vunpack.c.l.b16 %v683_v49 }
  0x15   : > { %419 = vmatpush.bf16.msra.mxu1 %v1342_v9  ;;  %v1350_v25 = vld [vmem:[%s1640_s2 + $0x40] sm:$0xff]  ;;  %v507_v36 = vshrl.u32 %v505_v28, 16  ;;  %v510_v37 = vshll.u32 %v505_v28, 16  ;;  %v1375_v52 = vld [vmem:[%s1640_s2 + $0xf0] sm:$0xff]  ;;  %v1360_v54 = vld [vmem:[%s1640_s2 + $0x88] sm:$0xff]  ;;  %v765_v62 = vunpack.c.l.b16 %v750_v50 }
  0x16   : > { %480 = vmatpush.bf16.msra.mxu2 %v1351_v10  ;;  %v1354_v26 = vld [vmem:[%s1640_s2 + $0x60] sm:$0xff]  ;;  %v441_v34 = vshrl.u32 %v439_v27, 16  ;;  %v443_v35 = vshll.u32 %v439_v27, 16  ;;  %v1364_v55 = vld [vmem:[%s1640_s2 + $0xa8] sm:$0xff]  ;;  %v700_v7 = vpack.c.b16 %v698_v60, %v698_v60  ;;  %v1380_v14 = vld [vmem:[%s1640_s2 + $0x118] sm:$0xff] }
  0x17   : > { %547 = vmatpush.bf16.msra.mxu3 %v1355_v11  ;;  %v1358_v38 = vld [vmem:[%s1494_s8] sm:$0xf0]  ;;  %v509_v42 = vrot.slane %v507_v36, 1  ;;  %v512_v43 = vrot.slane %v510_v37, 2  ;;  %v624_v53 = vld [vmem:[%s1489_s28] sm:$0xc]  ;;  %v767_v9 = vpack.c.b16 %v765_v62, %v765_v62 }
  0x18   : > { %374 = vmatpush.bf16.msra.mxu0 %v1346_v23  ;;  %v445_v41 = vrot.slane %v443_v35, 1  ;;  %v1190_v46 = vor.u32 %v1358_v38, %v1189_v33  ;;  %v1243_v56 = vld [vmem:[%s1489_s28] sm:$0x8]  ;;  %v1367_v59 = vld [vmem:[%s1489_s28] sm:$0xf0]  ;;  %v635_v63 = vunpack.c.l.b16 %v624_v53  ;;  %v1369_v1 = vld [vmem:[%s1640_s2 + $0xc8] sm:$0xff] }
  0x19   : > { %420 = vmatpush.bf16.msra.mxu1 %v1341_v24  ;;  %v513_v48 = vor.u32 %v512_v43, %v509_v42  ;;  %v1272_v61 = vld [vmem:[%s1494_s8] sm:$0x8]  ;;  %v1372_v0 = vld [vmem:[%s1494_s8] sm:$0xf0]  ;;  %v1374_v2 = vld [vmem:[%s1640_s2 + $0xe8] sm:$0xff]  ;;  %v1244_v3 = vor.u32 %v1367_v59, %v1243_v56  ;;  %v703_v19 = vrot.slane %v700_v7, 3 }
  0x1a   : > { %481 = vmatpush.bf16.msra.mxu2 %v1350_v25  ;;  %v446_v47 = vor.u32 %v445_v41, %v441_v34  ;;  %v574_v57 = vshrl.u32 %v1190_v46, 16  ;;  %v577_v58 = vshll.u32 %v1190_v46, 16  ;;  %v814_v4 = vld [vmem:[%s1489_s28 + $0x8] sm:$0x3]  ;;  %v1359_v5 = vld [vmem:[%s1640_s2 + $0x80] sm:$0xff]  ;;  %v1273_v8 = vor.u32 %v1372_v0, %v1272_v61  ;;  %v1385_v15 = vld [vmem:[%s1642_s4 + $0x18] sm:$0xff] }
  0x1b   : > { %548 = vmatpush.bf16.msra.mxu3 %v1354_v26  ;;  %1111 = vmatmul.msk.bf16.vlgmr.msra.gmra.mxu0 %vm363_vm0, %v1094_v29  ;;  %v1363_v6 = vld [vmem:[%s1640_s2 + $0xa0] sm:$0xff]  ;;  %v636_v13 = vpack.c.b16 %v504_v17, %v635_v63  ;;  %v825_v12 = vunpack.c.l.b16 %v814_v4  ;;  %v702_v17 = vrot.slane %v1244_v3, 3  ;;  %v769_v21 = vrot.slane %v767_v9, 3  ;;  %v1379_v24 = vld [vmem:[%s1640_s2 + $0x110] sm:$0xff]  ;;  %v1383_v33 = vld [vmem:[%s1642_s4 + $0x8] sm:$0xff] }
  0x1c   : > { %612 = vmatpush.bf16.msrb.mxu0 %v1362_v31  ;;  %1128 = vmatmul.msk.bf16.vlgmr.msra.gmra.mxu1 %vm363_vm0, %v385_v30  ;;  %v576_v10 = vrot.slane %v574_v57, 1  ;;  %v579_v11 = vrot.slane %v577_v58, 2  ;;  %v1368_v16 = vld [vmem:[%s1640_s2 + $0xc0] sm:$0xff]  ;;  %v768_v20 = vrot.slane %v1273_v8, 3  ;;  %v1384_v25 = vld [vmem:[%s1642_s4 + $0x10] sm:$0xff]  ;;  %v829_v34 = vshrl.u32 %v1244_v3, 16 }
  0x1d   : > { %669 = vmatpush.bf16.msrb.mxu1 %v1366_v32  ;;  %1153 = vmatmul.msk.bf16.vlgmr.msra.gmra.mxu2 %vm363_vm0, %v446_v47  ;;  %v1373_v18 = vld [vmem:[%s1640_s2 + $0xe0] sm:$0xff]  ;;  %v637_v23 = vrot.slane %v636_v13, 2  ;;  %v826_v26 = vpack.c.b16 %v825_v12, %v825_v12  ;;  %v704_v29 = vsel %vm701_vm1, %v702_v17, %v703_v19  ;;  %v1378_v32 = vld [vmem:[%s1640_s2 + $0x108] sm:$0xff]  ;;  %v832_v35 = vshll.u32 %v1244_v3, 16 }
  0x1e   : > { %736 = vmatpush.bf16.msrb.mxu2 %v1371_v39  ;;  %1178 = vmatmul.msk.bf16.vlgmr.msra.gmra.mxu3 %vm363_vm0, %v513_v48  ;;  %v580_v22 = vor.u32 %v579_v11, %v576_v10  ;;  %v1318_v27 = vld [vmem:[%s1494_s8] sm:$0xe]  ;;  %v1381_v28 = vld [vmem:[%s1494_s8] sm:$0xf0]  ;;  %v770_v30 = vsel %vm701_vm1, %v768_v20, %v769_v21  ;;  %v831_v42 = vrot.slane %v829_v34, 3 }
  0x1f   : > { %802 = vmatpush.bf16.msrb.mxu3 %v1376_v40  ;;  %v1319_v31 = vor.u32 %v1381_v28, %v1318_v27  ;;  %v837_v36 = vshrl.u32 %v826_v26, 16  ;;  %v840_v37 = vshll.u32 %v826_v26, 16  ;;  %v1377_v40 = vld [vmem:[%s1640_s2 + $0x100] sm:$0xff]  ;;  %v834_v43 = vrot.slane %v832_v35, 4 }
  0x20   : > { %613 = vmatpush.bf16.msrb.mxu0 %v1361_v44  ;;  %v1382_v41 = vld [vmem:[%s1642_s4] sm:$0xff] }
  0x21   : > { %670 = vmatpush.bf16.msrb.mxu1 %v1365_v45  ;;  %v920_v38 = vshrl.u32 %v1319_v31, 16  ;;  %v923_v39 = vshll.u32 %v1319_v31, 16  ;;  %v839_v44 = vrot.slane %v837_v36, 3  ;;  %v842_v45 = vrot.slane %v840_v37, 4  ;;  %v1396_v13 = vld [vmem:[%s1643_s5] ss:$0 sm:$0xff] }
  0x22   : > { %737 = vmatpush.bf16.msrb.mxu2 %v1370_v51  ;;  %v835_v48 = vor.u32 %v834_v43, %v831_v42 }
  0x23   : > { %803 = vmatpush.bf16.msrb.mxu3 %v1375_v52  ;;  %v922_v46 = vrot.slane %v920_v38, 1  ;;  %v925_v47 = vrot.slane %v923_v39, 2  ;;  %v843_v49 = vor.u32 %v842_v45, %v839_v44 }
  0x24   : > { %614 = vmatpush.bf16.msrb.mxu0 %v1360_v54 }
  0x25   : > { %671 = vmatpush.bf16.msrb.mxu1 %v1364_v55  ;;  %v926_v50 = vor.u32 %v925_v47, %v922_v46  ;;  %v844_v51 = vsel %vm827_vm2, %v835_v48, %v843_v49 }
  0x26   : > { %738 = vmatpush.bf16.msrb.mxu2 %v1369_v1 }
  0x27   : > { %804 = vmatpush.bf16.msrb.mxu3 %v1374_v2 }
  0x28   : > { %615 = vmatpush.bf16.msrb.mxu0 %v1359_v5 }
  0x29   : > { %672 = vmatpush.bf16.msrb.mxu1 %v1363_v6 }
  0x2a   : > { %739 = vmatpush.bf16.msrb.mxu2 %v1368_v16  ;;  %v1395_v16 = vld [vmem:[%s1641_s3] ss:$0 sm:$0xff] }
  0x2b   : > { %805 = vmatpush.bf16.msrb.mxu3 %v1373_v18  ;;  %1207 = vmatmul.msk.bf16.vlgmr.msrb.gmra.mxu0 %vm363_vm0, %v580_v22 }
  0x2c   : > { %876 = vmatpush.bf16.msra.mxu0 %v1380_v14  ;;  %1232 = vmatmul.msk.bf16.vlgmr.msrb.gmra.mxu1 %vm363_vm0, %v637_v23 }
  0x2d   : > { %958 = vmatpush.bf16.msra.mxu1 %v1385_v15  ;;  %1261 = vmatmul.msk.bf16.vlgmr.msrb.gmra.mxu2 %vm363_vm0, %v704_v29 }
  0x2e   : > { %1290 = vmatmul.msk.bf16.vlgmr.msrb.gmra.mxu3 %vm363_vm0, %v770_v30 }
  0x30   : > { %877 = vmatpush.bf16.msra.mxu0 %v1379_v24 }
  0x31   : > { %959 = vmatpush.bf16.msra.mxu1 %v1384_v25 }
  0x34   : > { %878 = vmatpush.bf16.msra.mxu0 %v1378_v32 }
  0x35   : > { %960 = vmatpush.bf16.msra.mxu1 %v1383_v33 }
  0x38   : > { %879 = vmatpush.bf16.msra.mxu0 %v1377_v40 }
  0x39   : > { %961 = vmatpush.bf16.msra.mxu1 %v1382_v41 }
  0x3b   : > { %1315 = vmatmul.msk.bf16.vlgmr.msra.gmra.mxu0 %vm363_vm0, %v844_v51 }
  0x3c   : > { %1336 = vmatmul.msk.bf16.vlgmr.msra.gmra.mxu1 %vm363_vm0, %v926_v50 }
  0x98   : > { %v376_v52 = vpop.f32.mrf.mxu0 }
  0x99   : > { %v422_v53 = vpop.f32.mrf.mxu1 }
  0x9a   : > { %v423_v58 = vadd.f32 %v422_v53, %v376_v52 }
  0xa0   : > { %v483_v54 = vpop.f32.mrf.mxu2  ;;  %v378_v56 = vpop.f32.mrf.mxu0 }
  0xa1   : > { %v550_v55 = vpop.f32.mrf.mxu3  ;;  %v424_v57 = vpop.f32.mrf.mxu1  ;;  %v488_v59 = vadd.f32 %v483_v54, %v423_v58 }
  0xa2   : > { %v425_v1 = vadd.f32 %v424_v57, %v378_v56 }
  0xa3   : > { %v555_v0 = vadd.f32 %v550_v55, %v488_v59 }
  0xa8   : > { %v485_v60 = vpop.f32.mrf.mxu2  ;;  %v617_v61 = vpop.f32.mrf.mxu0 }
  0xa9   : > { %v674_v62 = vpop.f32.mrf.mxu1  ;;  %v552_v63 = vpop.f32.mrf.mxu3  ;;  %v622_v2 = vadd.f32 %v617_v61, %v555_v0  ;;  %v489_v3 = vadd.f32 %v485_v60, %v425_v1 }
  0xab   : > { %v679_v7 = vadd.f32 %v674_v62, %v622_v2  ;;  %v556_v8 = vadd.f32 %v552_v63, %v489_v3 }
  0xb0   : > { %v741_v4 = vpop.f32.mrf.mxu2  ;;  %v619_v5 = vpop.f32.mrf.mxu0 }
  0xb1   : > { %v676_v6 = vpop.f32.mrf.mxu1  ;;  %v746_v9 = vadd.f32 %v741_v4, %v679_v7  ;;  %v807_v10 = vpop.f32.mrf.mxu3  ;;  %v623_v11 = vadd.f32 %v619_v5, %v556_v8 }
  0xb3   : > { %v812_v14 = vadd.f32 %v807_v10, %v746_v9  ;;  %v680_v17 = vadd.f32 %v676_v6, %v623_v11 }
  0xb8   : > { %v743_v15 = vpop.f32.mrf.mxu2  ;;  %v881_v18 = vpop.f32.mrf.mxu0 }
  0xb9   : > { %v963_v12 = vpop.f32.mrf.mxu1  ;;  %v886_v19 = vadd.f32 %v881_v18, %v812_v14  ;;  %v747_v21 = vadd.f32 %v743_v15, %v680_v17  ;;  %v809_v25 = vpop.f32.mrf.mxu3 }
  0xba   : > { %v964_v20 = vadd.f32 %v1396_v13, %v963_v12 }
  0xbb   : > { %v892_v22 = vadd.f32 %v1395_v16, %v886_v19  ;;  %v813_v26 = vadd.f32 %v809_v25, %v747_v21 }
  0xbc   : > { %v968_v23 = vpack.c.bf16 %v964_v20, %v964_v20 }
  0xbd   : > { %v894_v24 = vmax.f32 %v892_v22, 0.0 }
  0xbe   : > { %970 = vst [vmem:[%s311_s16] sm:$0xf] %v968_v23 }
  0xbf   : > { %v896_v27 = vpack.c.bf16 %v894_v24, %v894_v24 }
  0xc0   : > { %v883_v28 = vpop.f32.mrf.mxu0 }
  0xc1   : > { %v965_v29 = vpop.f32.mrf.mxu1  ;;  %898 = vst [vmem:[%s306_s19] sm:$0xf] %v896_v27  ;;  %v887_v30 = vadd.f32 %v883_v28, %v813_v26 }
  0xc2   : > { %v966_v31 = vadd.f32 %v1396_v13, %v965_v29 }
  0xc3   : > { %v893_v32 = vadd.f32 %v1395_v16, %v887_v30 }
  0xc4   : > { %v969_v33 = vpack.c.bf16 %v966_v31, %v966_v31 }
  0xc5   : > { %v895_v34 = vmax.f32 %v893_v32, 0.0 }
  0xc6   : > { %971 = vst [vmem:[%s311_s16 + $0x4] sm:$0x3] %v969_v33 }
  0xc7   : > { %v897_v35 = vpack.c.bf16 %v895_v34, %v895_v34 }
  0xc9   : > { %899 = vst [vmem:[%s306_s19 + $0x4] sm:$0x3] %v897_v35 }
  0xca PF: > { %s18_s24 = sadd.s32 1, %s1403_s24  }
  0xcb   : > { %p15_p4 = scmp.ge.s32.totalorder %s18_s24, 4  }
  0xcd   :  { %17 = sbr.rel (!%p15_p4) target bundleno = 1 (0x1), region = 97 }

// kernel: resnet_encoder_forward.20
= control target key start
LH: loop header
LB: loop body
LE: loop exit
PB: predicated region body
PF: predicated region fallthrough
CT: control target
= control target key end

     0   :  { %s1828_s21 = smov 0   ;;  %s2123_s0 = inlined_call_operand.vmem [shape: bf16[2,18,128], index: 0, kind: input, shape index: {}]   ;;  %s2124_s1 = inlined_call_operand.vmem [shape: bf16[3,3,128,128], index: 1, kind: input, shape index: {}]   ;;  %s2125_s2 = inlined_call_operand.vmem [shape: f32[1,128], index: 2, kind: input, shape index: {}]   ;;  %s2126_s3 = inlined_call_operand.vmem [shape: bf16[1,1,128,128], index: 3, kind: input, shape index: {}]   ;;  %s2127_s4 = inlined_call_operand.vmem [shape: f32[1,128], index: 4, kind: input, shape index: {}]   ;;  %s2128_s5 = inlined_call_operand.vmem [shape: bf16[2,8,128], index: 5, kind: output, shape index: {0}]   ;;  %s2129_s6 = inlined_call_operand.vmem [shape: bf16[2,8,128], index: 6, kind: output, shape index: {1}]  }
   0x1 LB: > { %s1231_s22 = sadd.s32 4294967295, %s1791_s21   ;;  %p1235_p0 = scmp.ge.s32.totalorder %s1791_s21, 1  ;;  %s1791_s21 = sphi %s1828_s21, %s17_s21  }
   0x2   : > { %p215_p1 = scmp.lt.s32.totalorder %s1791_s21, 3 }
   0x4   : > { %p216_p2 = pnand %p1235_p0, %p215_p1 }
   0x5   : > { %p248_p3 = scmp.lt.s32.totalorder (!%p216_p2), %s1231_s22, 1 }
   0x6   : > { %219 = sbr.rel (%p216_p2) target bundleno = 242 (0xf2), region = 40 }
   0xb   : > { %v1708_v0 = vld [vmem:[%s2124_s1 + $0x78] sm:$0xff]  ;;  %v1707_v4 = vld [vmem:[%s2124_s1 + $0x70] sm:$0xff]  ;;  %s2131_s22 = smov (!%p248_p3, %s1231_s22), 1  ;;  %v1706_v8 = vld [vmem:[%s2124_s1 + $0x68] sm:$0xff] }
   0xc   : > { %v1700_v1 = vld [vmem:[%s2124_s1 + $0x38] sm:$0xff]  ;;  %357 = vmatpush.bf16.msra.mxu0 %v1708_v0  ;;  %v1699_v5 = vld [vmem:[%s2124_s1 + $0x30] sm:$0xff]  ;;  %v1698_v9 = vld [vmem:[%s2124_s1 + $0x28] sm:$0xff]  ;;  %s1774_s25 = smul.u32 12, %s2131_s22  ;;  %s1237_s18 = sshll.u32 %s2131_s22, 2 }
   0xd   : > { %v1716_v2 = vld [vmem:[%s2124_s1 + $0xb8] sm:$0xff]  ;;  %418 = vmatpush.bf16.msra.mxu1 %v1700_v1  ;;  %v1715_v6 = vld [vmem:[%s2124_s1 + $0xb0] sm:$0xff]  ;;  %v1714_v10 = vld [vmem:[%s2124_s1 + $0xa8] sm:$0xff]  ;;  %s260_s23 = scalar_lea.vmem %s2129_s6, %s1237_s18  ;;  %s256_s26 = scalar_lea.vmem %s2128_s5, %s1237_s18 }
   0xe   : > { %v1724_v3 = vld [vmem:[%s2124_s1 + $0xf8] sm:$0xff]  ;;  %502 = vmatpush.bf16.msra.mxu2 %v1716_v2  ;;  %v1723_v7 = vld [vmem:[%s2124_s1 + $0xf0] sm:$0xff]  ;;  %v1722_v11 = vld [vmem:[%s2124_s1 + $0xe8] sm:$0xff]  ;;  %s1890_s12 = scalar_lea.vmem %s2123_s0, %s1774_s25 }
   0xf   : > { %590 = vmatpush.bf16.msra.mxu3 %v1724_v3  ;;  %v1705_v12 = vld [vmem:[%s2124_s1 + $0x60] sm:$0xff]  ;;  %v1704_v16 = vld [vmem:[%s2124_s1 + $0x58] sm:$0xff]  ;;  %v1703_v23 = vld [vmem:[%s2124_s1 + $0x50] sm:$0xff] }
  0x10   : > { %358 = vmatpush.bf16.msra.mxu0 %v1707_v4  ;;  %v1697_v13 = vld [vmem:[%s2124_s1 + $0x20] sm:$0xff]  ;;  %v1696_v17 = vld [vmem:[%s2124_s1 + $0x18] sm:$0xff]  ;;  %v1695_v24 = vld [vmem:[%s2124_s1 + $0x10] sm:$0xff] }
  0x11   : > { %419 = vmatpush.bf16.msra.mxu1 %v1699_v5  ;;  %v1713_v14 = vld [vmem:[%s2124_s1 + $0xa0] sm:$0xff]  ;;  %v1712_v18 = vld [vmem:[%s2124_s1 + $0x98] sm:$0xff]  ;;  %v1711_v26 = vld [vmem:[%s2124_s1 + $0x90] sm:$0xff] }
  0x12   : > { %503 = vmatpush.bf16.msra.mxu2 %v1715_v6  ;;  %v1721_v15 = vld [vmem:[%s2124_s1 + $0xe0] sm:$0xff]  ;;  %v1720_v19 = vld [vmem:[%s2124_s1 + $0xd8] sm:$0xff]  ;;  %v1719_v27 = vld [vmem:[%s2124_s1 + $0xd0] sm:$0xff] }
  0x13   : > { %591 = vmatpush.bf16.msra.mxu3 %v1723_v7  ;;  %v278_v20 = vld [vmem:[%s1890_s12 + $0x4] sm:$0x1]  ;;  %v261_v22 = vld [vmem:[%s1890_s12] sm:$0xf]  ;;  %v1702_v30 = vld [vmem:[%s2124_s1 + $0x48] sm:$0xff] }
  0x14   : > { %359 = vmatpush.bf16.msra.mxu0 %v1706_v8  ;;  %v299_v21 = vunpack.c.l.b16 %v278_v20  ;;  %v298_v25 = vunpack.c.l.b16 %v261_v22  ;;  %v431_v28 = vld [vmem:[%s1890_s12] sm:$0xe]  ;;  %v1694_v31 = vld [vmem:[%s2124_s1 + $0x8] sm:$0xff]  ;;  %v517_v35 = vld [vmem:[%s1890_s12 + $0x4] sm:$0x3] }
  0x15   : > { %420 = vmatpush.bf16.msra.mxu1 %v1698_v9  ;;  %v450_v32 = vunpack.c.l.b16 %v431_v28  ;;  %v1926_v34 = vld [vmem:[%s1890_s12] sm:$0xc]  ;;  %v1710_v36 = vld [vmem:[%s2124_s1 + $0x88] sm:$0xff]  ;;  %v538_v41 = vunpack.c.l.b16 %v517_v35  ;;  %v1732_v46 = vld [vmem:[%s2124_s1 + $0x138] sm:$0xff] }
  0x16   : > { %504 = vmatpush.bf16.msra.mxu2 %v1714_v10  ;;  %v300_v29 = vpack.c.b16 %v299_v21, %v298_v25  ;;  %v1718_v37 = vld [vmem:[%s2124_s1 + $0xc8] sm:$0xff]  ;;  %v537_v40 = vunpack.c.l.b16 %v1926_v34  ;;  %v1701_v42 = vld [vmem:[%s2124_s1 + $0x40] sm:$0xff]  ;;  %v1740_v47 = vld [vmem:[%s2124_s1 + $0x178] sm:$0xff] }
  0x17   : > { %592 = vmatpush.bf16.msra.mxu3 %v1722_v11  ;;  %v1693_v43 = vld [vmem:[%s2124_s1] sm:$0xff]  ;;  %v451_v44 = vpack.c.b16 %v299_v21, %v450_v32  ;;  %v1748_v48 = vld [vmem:[%s2124_s1 + $0x1b8] sm:$0xff]  ;;  %v1731_v54 = vld [vmem:[%s2124_s1 + $0x130] sm:$0xff] }
  0x18   : > { %360 = vmatpush.bf16.msra.mxu0 %v1705_v12  ;;  %v304_v33 = vshll.u32 %v300_v29, 16  ;;  %v302_v38 = vshrl.u32 %v300_v29, 16  ;;  %v1709_v45 = vld [vmem:[%s2124_s1 + $0x80] sm:$0xff]  ;;  %v539_v51 = vpack.c.b16 %v538_v41, %v537_v40  ;;  %v1756_v52 = vld [vmem:[%s2124_s1 + $0x1f8] sm:$0xff]  ;;  %v1739_v55 = vld [vmem:[%s2124_s1 + $0x170] sm:$0xff] }
  0x19   : > { %421 = vmatpush.bf16.msra.mxu1 %v1697_v13  ;;  %v1717_v49 = vld [vmem:[%s2124_s1 + $0xc0] sm:$0xff]  ;;  %v452_v53 = vrot.slane %v451_v44, 1  ;;  %v1747_v56 = vld [vmem:[%s2124_s1 + $0x1b0] sm:$0xff]  ;;  %v1730_v59 = vld [vmem:[%s2124_s1 + $0x128] sm:$0xff] }
  0x1a   : > { %505 = vmatpush.bf16.msra.mxu2 %v1713_v14  ;;  %v306_v39 = vrot.slane %v304_v33, 1  ;;  %v540_v57 = vrot.slane %v539_v51, 2  ;;  %v1755_v58 = vld [vmem:[%s2124_s1 + $0x1f0] sm:$0xff]  ;;  %v1738_v60 = vld [vmem:[%s2124_s1 + $0x168] sm:$0xff]  ;;  %v1729_v63 = vld [vmem:[%s2124_s1 + $0x120] sm:$0xff] }
  0x1b   : > { %593 = vmatpush.bf16.msra.mxu3 %v1721_v15  ;;  %v1746_v61 = vld [vmem:[%s2124_s1 + $0x1a8] sm:$0xff]  ;;  %v604_v0 = vld [vmem:[%s1890_s12 + $0x4] sm:$0x7]  ;;  %v1728_v5 = vld [vmem:[%s2124_s1 + $0x118] sm:$0xff] }
  0x1c   : > { %361 = vmatpush.bf16.msra.mxu0 %v1704_v16  ;;  %v307_v50 = vor.u32 %v306_v39, %v302_v38  ;;  %v1754_v62 = vld [vmem:[%s2124_s1 + $0x1e8] sm:$0xff]  ;;  %v1737_v1 = vld [vmem:[%s2124_s1 + $0x160] sm:$0xff]  ;;  %v623_v4 = vunpack.c.l.b16 %v604_v0  ;;  %v1736_v8 = vld [vmem:[%s2124_s1 + $0x158] sm:$0xff] }
  0x1d   : > { %422 = vmatpush.bf16.msra.mxu1 %v1696_v17  ;;  %v1745_v2 = vld [vmem:[%s2124_s1 + $0x1a0] sm:$0xff]  ;;  %v2002_v7 = vld [vmem:[%s1890_s12 + $0x8] sm:$0x1]  ;;  %v1744_v9 = vld [vmem:[%s2124_s1 + $0x198] sm:$0xff] }
  0x1e   : > { %506 = vmatpush.bf16.msra.mxu2 %v1712_v18  ;;  %v1753_v3 = vld [vmem:[%s2124_s1 + $0x1e0] sm:$0xff]  ;;  %v624_v10 = vpack.c.b16 %v623_v4, %v537_v40  ;;  %v1752_v11 = vld [vmem:[%s2124_s1 + $0x1d8] sm:$0xff]  ;;  %v883_v13 = vunpack.c.l.b16 %v2002_v7  ;;  %v1727_v14 = vld [vmem:[%s2124_s1 + $0x110] sm:$0xff] }
  0x1f   : > { %594 = vmatpush.bf16.msra.mxu3 %v1720_v19  ;;  %v861_v6 = vld [vmem:[%s1890_s12 + $0x4] sm:$0xf]  ;;  %v1735_v15 = vld [vmem:[%s2124_s1 + $0x150] sm:$0xff]  ;;  %v696_v17 = vld [vmem:[%s1890_s12] sm:$0x8] }
  0x20   : > { %362 = vmatpush.bf16.msra.mxu0 %v1703_v23  ;;  %v882_v12 = vunpack.c.l.b16 %v861_v6  ;;  %v1743_v16 = vld [vmem:[%s2124_s1 + $0x190] sm:$0xff]  ;;  %v626_v19 = vshrl.u32 %v624_v10, 16  ;;  %v629_v20 = vshll.u32 %v624_v10, 16  ;;  %v715_v23 = vunpack.c.l.b16 %v696_v17  ;;  %v1742_v25 = vld [vmem:[%s2124_s1 + $0x188] sm:$0xff]  ;;  %v1733_v32 = vld [vmem:[%s2124_s1 + $0x140] sm:$0xff] }
  0x21   : > { %423 = vmatpush.bf16.msra.mxu1 %v1695_v24  ;;  %v1751_v18 = vld [vmem:[%s2124_s1 + $0x1d0] sm:$0xff]  ;;  %v1734_v24 = vld [vmem:[%s2124_s1 + $0x148] sm:$0xff]  ;;  %v1741_v33 = vld [vmem:[%s2124_s1 + $0x180] sm:$0xff] }
  0x22   : > { %507 = vmatpush.bf16.msra.mxu2 %v1711_v26  ;;  %v884_v21 = vpack.c.b16 %v883_v13, %v882_v12  ;;  %v1750_v26 = vld [vmem:[%s2124_s1 + $0x1c8] sm:$0xff]  ;;  %v631_v28 = vrot.slane %v629_v20, 3  ;;  %v1764_v34 = vld [vmem:[%s2124_s1 + $0x238] sm:$0xff]  ;;  %v781_v41 = vld [vmem:[%s1890_s12 + $0x4] sm:$0xf] }
  0x23   : > { %595 = vmatpush.bf16.msra.mxu3 %v1719_v27  ;;  %v628_v27 = vrot.slane %v626_v19, 2  ;;  %v1773_v35 = vld [vmem:[%s2126_s3 + $0x38] sm:$0xff]  ;;  %v1657_v51 = vld [vmem:[%s1890_s12] sm:$0xc] }
  0x24   : > { %363 = vmatpush.bf16.msra.mxu0 %v1702_v30  ;;  %v888_v29 = vshll.u32 %v884_v21, 16  ;;  %v1725_v30 = vld [vmem:[%s2124_s1 + $0x100] sm:$0xff]  ;;  %v886_v38 = vshrl.u32 %v884_v21, 16 }
  0x25   : > { %424 = vmatpush.bf16.msra.mxu1 %v1694_v31  ;;  %v716_v31 = vpack.c.b16 %v623_v4, %v715_v23 }
  0x26   : > { %508 = vmatpush.bf16.msra.mxu2 %v1710_v36  ;;  %v1749_v36 = vld [vmem:[%s2124_s1 + $0x1c0] sm:$0xff]  ;;  %v890_v39 = vrot.slane %v888_v29, 1 }
  0x27   : > { %596 = vmatpush.bf16.msra.mxu3 %v1718_v37  ;;  %v632_v37 = vor.u32 %v631_v28, %v628_v27  ;;  %v717_v40 = vrot.slane %v716_v31, 3  ;;  %v1784_v27 = vld [vmem:[%s2127_s4] ss:$0 sm:$0xff] }
  0x28   : > { %364 = vmatpush.bf16.msra.mxu0 %v1701_v42  ;;  %v1763_v42 = vld [vmem:[%s2124_s1 + $0x230] sm:$0xff]  ;;  %v891_v44 = vor.u32 %v890_v39, %v886_v38  ;;  %v1783_v29 = vld [vmem:[%s2125_s2] ss:$0 sm:$0xff] }
  0x29   : > { %425 = vmatpush.bf16.msra.mxu1 %v1693_v43  ;;  %v1772_v43 = vld [vmem:[%s2126_s3 + $0x30] sm:$0xff] }
  0x2a   : > { %509 = vmatpush.bf16.msra.mxu2 %v1709_v45  ;;  %v1762_v45 = vld [vmem:[%s2124_s1 + $0x228] sm:$0xff] }
  0x2b   : > { %597 = vmatpush.bf16.msra.mxu3 %v1717_v49  ;;  %365 = vmatmul.bf16.vlgmr.msra.gmra.mxu0 %v307_v50  ;;  %v1760_v49 = vld [vmem:[%s2124_s1 + $0x218] sm:$0xff] }
  0x2c   : > { %682 = vmatpush.bf16.msrb.mxu0 %v1732_v46  ;;  %426 = vmatmul.bf16.vlgmr.msra.gmra.mxu1 %v261_v22  ;;  %v1726_v22 = vld [vmem:[%s2124_s1 + $0x108] sm:$0xff]  ;;  %v1769_v50 = vld [vmem:[%s2126_s3 + $0x18] sm:$0xff] }
  0x2d   : > { %767 = vmatpush.bf16.msrb.mxu1 %v1740_v47  ;;  %510 = vmatmul.bf16.vlgmr.msra.gmra.mxu2 %v452_v53  ;;  %v1771_v46 = vld [vmem:[%s2126_s3 + $0x28] sm:$0xff]  ;;  %v1761_v47 = vld [vmem:[%s2124_s1 + $0x220] sm:$0xff] }
  0x2e   : > { %847 = vmatpush.bf16.msrb.mxu2 %v1748_v48  ;;  %598 = vmatmul.bf16.vlgmr.msra.gmra.mxu3 %v540_v57  ;;  %v1770_v48 = vld [vmem:[%s2126_s3 + $0x20] sm:$0xff] }
  0x2f   : > { %941 = vmatpush.bf16.msrb.mxu3 %v1756_v52  ;;  %v1765_v52 = vld [vmem:[%s1890_s12] sm:$0x70] }
  0x30   : > { %683 = vmatpush.bf16.msrb.mxu0 %v1731_v54  ;;  %v1658_v53 = vor.u32 %v1765_v52, %v1657_v51  ;;  %v1759_v54 = vld [vmem:[%s2124_s1 + $0x210] sm:$0xff] }
  0x31   : > { %768 = vmatpush.bf16.msrb.mxu1 %v1739_v55  ;;  %v1768_v55 = vld [vmem:[%s2126_s3 + $0x10] sm:$0xff] }
  0x32   : > { %848 = vmatpush.bf16.msrb.mxu2 %v1747_v56  ;;  %v955_v56 = vld [vmem:[%s1890_s12 + $0x4] sm:$0xe] }
  0x33   : > { %942 = vmatpush.bf16.msrb.mxu3 %v1755_v58  ;;  %v974_v57 = vunpack.c.l.b16 %v955_v56  ;;  %v1076_v58 = vshrl.u32 %v1658_v53, 16 }
  0x34   : > { %684 = vmatpush.bf16.msrb.mxu0 %v1730_v59  ;;  %v1079_v59 = vshll.u32 %v1658_v53, 16 }
  0x35   : > { %769 = vmatpush.bf16.msrb.mxu1 %v1738_v60  ;;  %v1758_v60 = vld [vmem:[%s2124_s1 + $0x208] sm:$0xff] }
  0x36   : > { %849 = vmatpush.bf16.msrb.mxu2 %v1746_v61  ;;  %v1767_v61 = vld [vmem:[%s2126_s3 + $0x8] sm:$0xff]  ;;  %v1081_v0 = vrot.slane %v1079_v59, 3 }
  0x37   : > { %943 = vmatpush.bf16.msrb.mxu3 %v1754_v62  ;;  %v975_v62 = vpack.c.b16 %v883_v13, %v974_v57 }
  0x38   : > { %685 = vmatpush.bf16.msrb.mxu0 %v1729_v63  ;;  %v1078_v63 = vrot.slane %v1076_v58, 2 }
  0x39   : > { %770 = vmatpush.bf16.msrb.mxu1 %v1737_v1  ;;  %v1757_v1 = vld [vmem:[%s2124_s1 + $0x200] sm:$0xff] }
  0x3a   : > { %850 = vmatpush.bf16.msrb.mxu2 %v1745_v2  ;;  %v1766_v2 = vld [vmem:[%s2126_s3] sm:$0xff]  ;;  %v1082_v4 = vor.u32 %v1081_v0, %v1078_v63 }
  0x3b   : > { %944 = vmatpush.bf16.msrb.mxu3 %v1753_v3  ;;  %v976_v3 = vrot.slane %v975_v62, 1 }
  0x3c   : > { %686 = vmatpush.bf16.msrb.mxu0 %v1728_v5 }
  0x3d   : > { %771 = vmatpush.bf16.msrb.mxu1 %v1736_v8 }
  0x3e   : > { %851 = vmatpush.bf16.msrb.mxu2 %v1744_v9 }
  0x3f   : > { %945 = vmatpush.bf16.msrb.mxu3 %v1752_v11 }
  0x40   : > { %687 = vmatpush.bf16.msrb.mxu0 %v1727_v14 }
  0x41   : > { %772 = vmatpush.bf16.msrb.mxu1 %v1735_v15 }
  0x42   : > { %852 = vmatpush.bf16.msrb.mxu2 %v1743_v16 }
  0x43   : > { %946 = vmatpush.bf16.msrb.mxu3 %v1751_v18 }
  0x44   : > { %688 = vmatpush.bf16.msrb.mxu0 %v1726_v22 }
  0x45   : > { %773 = vmatpush.bf16.msrb.mxu1 %v1734_v24 }
  0x46   : > { %853 = vmatpush.bf16.msrb.mxu2 %v1742_v25 }
  0x47   : > { %947 = vmatpush.bf16.msrb.mxu3 %v1750_v26 }
  0x48   : > { %689 = vmatpush.bf16.msrb.mxu0 %v1725_v30 }
  0x49   : > { %774 = vmatpush.bf16.msrb.mxu1 %v1733_v32 }
  0x4a   : > { %854 = vmatpush.bf16.msrb.mxu2 %v1741_v33 }
  0x4b   : > { %948 = vmatpush.bf16.msrb.mxu3 %v1749_v36  ;;  %690 = vmatmul.bf16.vlgmr.msrb.gmra.mxu0 %v632_v37 }
  0x4c   : > { %1026 = vmatpush.bf16.msra.mxu0 %v1764_v34  ;;  %775 = vmatmul.bf16.vlgmr.msrb.gmra.mxu1 %v717_v40 }
  0x4d   : > { %1132 = vmatpush.bf16.msra.mxu1 %v1773_v35  ;;  %855 = vmatmul.bf16.vlgmr.msrb.gmra.mxu2 %v781_v41 }
  0x4e   : > { %949 = vmatmul.bf16.vlgmr.msrb.gmra.mxu3 %v891_v44 }
  0x50   : > { %1027 = vmatpush.bf16.msra.mxu0 %v1763_v42 }
  0x51   : > { %1133 = vmatpush.bf16.msra.mxu1 %v1772_v43 }
  0x54   : > { %1028 = vmatpush.bf16.msra.mxu0 %v1762_v45 }
  0x55   : > { %1134 = vmatpush.bf16.msra.mxu1 %v1771_v46 }
  0x58   : > { %1029 = vmatpush.bf16.msra.mxu0 %v1761_v47 }
  0x59   : > { %1135 = vmatpush.bf16.msra.mxu1 %v1770_v48 }
  0x5c   : > { %1030 = vmatpush.bf16.msra.mxu0 %v1760_v49 }
  0x5d   : > { %1136 = vmatpush.bf16.msra.mxu1 %v1769_v50 }
  0x60   : > { %1031 = vmatpush.bf16.msra.mxu0 %v1759_v54 }
  0x61   : > { %1137 = vmatpush.bf16.msra.mxu1 %v1768_v55 }
  0x64   : > { %1032 = vmatpush.bf16.msra.mxu0 %v1758_v60 }
  0x65   : > { %1138 = vmatpush.bf16.msra.mxu1 %v1767_v61 }
  0x68   : > { %1033 = vmatpush.bf16.msra.mxu0 %v1757_v1 }
  0x69   : > { %1139 = vmatpush.bf16.msra.mxu1 %v1766_v2 }
  0x6b   : > { %1034 = vmatmul.bf16.vlgmr.msra.gmra.mxu0 %v976_v3 }
  0x6c   : > { %1140 = vmatmul.bf16.vlgmr.msra.gmra.mxu1 %v1082_v4 }
  0xa8   : > { %v366_v5 = vpop.f32.mrf.mxu0 }
  0xa9   : > { %v427_v6 = vpop.f32.mrf.mxu1 }
  0xaa   : > { %v428_v15 = vadd.f32 %v427_v6, %v366_v5 }
  0xb0   : > { %v511_v7 = vpop.f32.mrf.mxu2  ;;  %v368_v8 = vpop.f32.mrf.mxu0 }
  0xb1   : > { %v599_v9 = vpop.f32.mrf.mxu3  ;;  %v429_v10 = vpop.f32.mrf.mxu1  ;;  %v515_v18 = vadd.f32 %v511_v7, %v428_v15 }
  0xb3   : > { %v603_v21 = vadd.f32 %v599_v9, %v515_v18 }
  0xb8   : > { %v513_v11 = vpop.f32.mrf.mxu2 }
  0xb9   : > { %v601_v12 = vpop.f32.mrf.mxu3 }
  0xc8   : > { %v691_v13 = vpop.f32.mrf.mxu0 }
  0xc9   : > { %v776_v14 = vpop.f32.mrf.mxu1  ;;  %v695_v23 = vadd.f32 %v691_v13, %v603_v21 }
  0xcb   : > { %v780_v25 = vadd.f32 %v776_v14, %v695_v23 }
  0xd0   : > { %v856_v16 = vpop.f32.mrf.mxu2  ;;  %v693_v17 = vpop.f32.mrf.mxu0 }
  0xd1   : > { %v778_v19 = vpop.f32.mrf.mxu1  ;;  %v950_v20 = vpop.f32.mrf.mxu3  ;;  %v860_v26 = vadd.f32 %v856_v16, %v780_v25 }
  0xd3   : > { %v954_v28 = vadd.f32 %v950_v20, %v860_v26 }
  0xd8   : > { %v858_v22 = vpop.f32.mrf.mxu2 }
  0xd9   : > { %v952_v24 = vpop.f32.mrf.mxu3 }
  0xe8   : > { %v1035_v30 = vpop.f32.mrf.mxu0 }
  0xe9   : > { %v1141_v31 = vpop.f32.mrf.mxu1  ;;  %v1039_v32 = vadd.f32 %v1035_v30, %v954_v28 }
  0xea   : > { %v1142_v33 = vadd.f32 %v1784_v27, %v1141_v31 }
  0xeb   : > { %v1044_v34 = vadd.f32 %v1783_v29, %v1039_v32 }
  0xec   : > { %v1145_v35 = vpack.c.bf16 %v1142_v33, %v1142_v33 }
  0xed   : > { %v1045_v36 = vmax.f32 %v1044_v34, 0.0 }
  0xee   : > { %1146 = vst [vmem:[%s260_s23] sm:$0xf] %v1145_v35 }
  0xef   : > { %v1046_v37 = vpack.c.bf16 %v1045_v36, %v1045_v36 }
  0xf0   : > { %v1037_v38 = vpop.f32.mrf.mxu0 }
  0xf1   : > { %v1143_v39 = vpop.f32.mrf.mxu1  ;;  %1047 = vst [vmem:[%s256_s26] sm:$0xf] %v1046_v37 }
  0xf2 PF: > { %s17_s21 = sadd.s32 1, %s1791_s21  }
  0xf3   : > { %p14_p4 = scmp.ge.s32.totalorder %s17_s21, 4  }
  0xf5   :  { %16 = sbr.rel (!%p14_p4) target bundleno = 1 (0x1), region = 90 }

// kernel: resnet_encoder_forward.19
= control target key start
LH: loop header
LB: loop body
LE: loop exit
PB: predicated region body
PF: predicated region fallthrough
CT: control target
= control target key end

     0   :  { %s1609_s15 = smov 0   ;;  %s1883_s0 = inlined_call_operand.vmem [shape: bf16[2,18,128], index: 0, kind: input, shape index: {}]   ;;  %s1884_s1 = inlined_call_operand.vmem [shape: bf16[3,3,128,128], index: 1, kind: input, shape index: {}]   ;;  %s1885_s2 = inlined_call_operand.vmem [shape: f32[1,128], index: 2, kind: input, shape index: {}]   ;;  %s1886_s3 = inlined_call_operand.vmem [shape: bf16[2,8,128], index: 3, kind: input, shape index: {}]   ;;  %s1887_s4 = inlined_call_operand.vmem [shape: bf16[2,8,128], index: 4, kind: output, shape index: {}]  }
   0x1 LB: > { %s1068_s16 = sadd.s32 4294967295, %s1582_s15   ;;  %p1072_p0 = scmp.ge.s32.totalorder %s1582_s15, 1  ;;  %s1582_s15 = sphi %s1609_s15, %s14_s15  }
   0x2   : > { %p171_p1 = scmp.lt.s32.totalorder %s1582_s15, 3 }
   0x4   : > { %p172_p2 = pnand %p1072_p0, %p171_p1 }
   0x5   : > { %p200_p3 = scmp.lt.s32.totalorder (!%p172_p2), %s1068_s16, 1 }
   0x6   : > { %175 = sbr.rel (%p172_p2) target bundleno = 244 (0xf4), region = 36 }
   0xb   : > { %v1509_v0 = vld [vmem:[%s1884_s1 + $0x78] sm:$0xff]  ;;  %v1508_v4 = vld [vmem:[%s1884_s1 + $0x70] sm:$0xff]  ;;  %s1889_s16 = smov (!%p200_p3, %s1068_s16), 1  ;;  %v1507_v8 = vld [vmem:[%s1884_s1 + $0x68] sm:$0xff] }
   0xc   : > { %v1517_v1 = vld [vmem:[%s1884_s1 + $0xb8] sm:$0xff]  ;;  %309 = vmatpush.bf16.msra.mxu0 %v1509_v0  ;;  %v1516_v5 = vld [vmem:[%s1884_s1 + $0xb0] sm:$0xff]  ;;  %v1515_v9 = vld [vmem:[%s1884_s1 + $0xa8] sm:$0xff]  ;;  %s1566_s17 = smul.u32 12, %s1889_s16 }
   0xd   : > { %v1525_v2 = vld [vmem:[%s1884_s1 + $0xf8] sm:$0xff]  ;;  %454 = vmatpush.bf16.msra.mxu2 %v1517_v1  ;;  %v1524_v6 = vld [vmem:[%s1884_s1 + $0xf0] sm:$0xff]  ;;  %v1523_v10 = vld [vmem:[%s1884_s1 + $0xe8] sm:$0xff] }
   0xe   : > { %v1501_v3 = vld [vmem:[%s1884_s1 + $0x38] sm:$0xff]  ;;  %542 = vmatpush.bf16.msra.mxu3 %v1525_v2  ;;  %v1500_v7 = vld [vmem:[%s1884_s1 + $0x30] sm:$0xff]  ;;  %v1499_v11 = vld [vmem:[%s1884_s1 + $0x28] sm:$0xff]  ;;  %s1671_s28 = scalar_lea.vmem %s1883_s0, %s1566_s17 }
   0xf   : > { %370 = vmatpush.bf16.msra.mxu1 %v1501_v3  ;;  %v1506_v12 = vld [vmem:[%s1884_s1 + $0x60] sm:$0xff]  ;;  %v1505_v16 = vld [vmem:[%s1884_s1 + $0x58] sm:$0xff]  ;;  %v1504_v23 = vld [vmem:[%s1884_s1 + $0x50] sm:$0xff] }
  0x10   : > { %310 = vmatpush.bf16.msra.mxu0 %v1508_v4  ;;  %v1514_v13 = vld [vmem:[%s1884_s1 + $0xa0] sm:$0xff]  ;;  %v1513_v17 = vld [vmem:[%s1884_s1 + $0x98] sm:$0xff]  ;;  %v1512_v24 = vld [vmem:[%s1884_s1 + $0x90] sm:$0xff] }
  0x11   : > { %455 = vmatpush.bf16.msra.mxu2 %v1516_v5  ;;  %v1522_v14 = vld [vmem:[%s1884_s1 + $0xe0] sm:$0xff]  ;;  %v1521_v18 = vld [vmem:[%s1884_s1 + $0xd8] sm:$0xff]  ;;  %v1520_v26 = vld [vmem:[%s1884_s1 + $0xd0] sm:$0xff] }
  0x12   : > { %543 = vmatpush.bf16.msra.mxu3 %v1524_v6  ;;  %v1498_v15 = vld [vmem:[%s1884_s1 + $0x20] sm:$0xff]  ;;  %v1497_v19 = vld [vmem:[%s1884_s1 + $0x18] sm:$0xff]  ;;  %v1496_v27 = vld [vmem:[%s1884_s1 + $0x10] sm:$0xff] }
  0x13   : > { %371 = vmatpush.bf16.msra.mxu1 %v1500_v7  ;;  %v230_v20 = vld [vmem:[%s1671_s28 + $0x4] sm:$0x1]  ;;  %v1687_v22 = vld [vmem:[%s1671_s28] sm:$0xf]  ;;  %v1503_v32 = vld [vmem:[%s1884_s1 + $0x48] sm:$0xff] }
  0x14   : > { %311 = vmatpush.bf16.msra.mxu0 %v1507_v8  ;;  %v251_v21 = vunpack.c.l.b16 %v230_v20  ;;  %v250_v25 = vunpack.c.l.b16 %v1687_v22  ;;  %v383_v28 = vld [vmem:[%s1671_s28] sm:$0xe]  ;;  %v469_v31 = vld [vmem:[%s1671_s28 + $0x4] sm:$0x3]  ;;  %v1511_v33 = vld [vmem:[%s1884_s1 + $0x88] sm:$0xff] }
  0x15   : > { %456 = vmatpush.bf16.msra.mxu2 %v1515_v9  ;;  %v1704_v30 = vld [vmem:[%s1671_s28] sm:$0xc]  ;;  %v402_v34 = vunpack.c.l.b16 %v383_v28  ;;  %v1519_v36 = vld [vmem:[%s1884_s1 + $0xc8] sm:$0xff]  ;;  %v490_v39 = vunpack.c.l.b16 %v469_v31  ;;  %v1533_v45 = vld [vmem:[%s1884_s1 + $0x138] sm:$0xff] }
  0x16   : > { %544 = vmatpush.bf16.msra.mxu3 %v1523_v10  ;;  %v252_v29 = vpack.c.b16 %v251_v21, %v250_v25  ;;  %v1495_v37 = vld [vmem:[%s1884_s1 + $0x8] sm:$0xff]  ;;  %v489_v38 = vunpack.c.l.b16 %v1704_v30  ;;  %v1502_v40 = vld [vmem:[%s1884_s1 + $0x40] sm:$0xff]  ;;  %v1549_v46 = vld [vmem:[%s1884_s1 + $0x1b8] sm:$0xff] }
  0x17   : > { %372 = vmatpush.bf16.msra.mxu1 %v1499_v11  ;;  %v1510_v41 = vld [vmem:[%s1884_s1 + $0x80] sm:$0xff]  ;;  %v403_v42 = vpack.c.b16 %v251_v21, %v402_v34  ;;  %v1557_v50 = vld [vmem:[%s1884_s1 + $0x1f8] sm:$0xff]  ;;  %v1532_v54 = vld [vmem:[%s1884_s1 + $0x130] sm:$0xff] }
  0x18   : > { %312 = vmatpush.bf16.msra.mxu0 %v1506_v12  ;;  %v256_v35 = vshll.u32 %v252_v29, 16  ;;  %v254_v43 = vshrl.u32 %v252_v29, 16  ;;  %v1518_v47 = vld [vmem:[%s1884_s1 + $0xc0] sm:$0xff]  ;;  %v491_v49 = vpack.c.b16 %v490_v39, %v489_v38  ;;  %v1541_v51 = vld [vmem:[%s1884_s1 + $0x178] sm:$0xff]  ;;  %v1548_v55 = vld [vmem:[%s1884_s1 + $0x1b0] sm:$0xff] }
  0x19   : > { %457 = vmatpush.bf16.msra.mxu2 %v1514_v13  ;;  %v1494_v48 = vld [vmem:[%s1884_s1] sm:$0xff]  ;;  %v404_v52 = vrot.slane %v403_v42, 1  ;;  %v1556_v57 = vld [vmem:[%s1884_s1 + $0x1f0] sm:$0xff]  ;;  %v1531_v59 = vld [vmem:[%s1884_s1 + $0x128] sm:$0xff] }
  0x1a   : > { %545 = vmatpush.bf16.msra.mxu3 %v1522_v14  ;;  %v258_v44 = vrot.slane %v256_v35, 1  ;;  %v492_v56 = vrot.slane %v491_v49, 2  ;;  %v1540_v58 = vld [vmem:[%s1884_s1 + $0x170] sm:$0xff]  ;;  %v1547_v60 = vld [vmem:[%s1884_s1 + $0x1a8] sm:$0xff]  ;;  %v1530_v63 = vld [vmem:[%s1884_s1 + $0x120] sm:$0xff] }
  0x1b   : > { %373 = vmatpush.bf16.msra.mxu1 %v1498_v15  ;;  %v1555_v61 = vld [vmem:[%s1884_s1 + $0x1e8] sm:$0xff]  ;;  %v1546_v0 = vld [vmem:[%s1884_s1 + $0x1a0] sm:$0xff]  ;;  %v1529_v7 = vld [vmem:[%s1884_s1 + $0x118] sm:$0xff] }
  0x1c   : > { %313 = vmatpush.bf16.msra.mxu0 %v1505_v16  ;;  %v259_v53 = vor.u32 %v258_v44, %v254_v43  ;;  %v1539_v62 = vld [vmem:[%s1884_s1 + $0x168] sm:$0xff]  ;;  %v556_v1 = vld [vmem:[%s1671_s28 + $0x4] sm:$0x7]  ;;  %v1545_v8 = vld [vmem:[%s1884_s1 + $0x198] sm:$0xff] }
  0x1d   : > { %458 = vmatpush.bf16.msra.mxu2 %v1513_v17  ;;  %v1554_v2 = vld [vmem:[%s1884_s1 + $0x1e0] sm:$0xff]  ;;  %v1786_v5 = vld [vmem:[%s1671_s28 + $0x8] sm:$0x1]  ;;  %v575_v6 = vunpack.c.l.b16 %v556_v1  ;;  %v1553_v11 = vld [vmem:[%s1884_s1 + $0x1d8] sm:$0xff] }
  0x1e   : > { %546 = vmatpush.bf16.msra.mxu3 %v1521_v18  ;;  %v1538_v3 = vld [vmem:[%s1884_s1 + $0x160] sm:$0xff]  ;;  %v835_v10 = vunpack.c.l.b16 %v1786_v5  ;;  %v1537_v12 = vld [vmem:[%s1884_s1 + $0x158] sm:$0xff]  ;;  %v1528_v14 = vld [vmem:[%s1884_s1 + $0x110] sm:$0xff] }
  0x1f   : > { %374 = vmatpush.bf16.msra.mxu1 %v1497_v19  ;;  %v813_v4 = vld [vmem:[%s1671_s28 + $0x4] sm:$0xf]  ;;  %v576_v13 = vpack.c.b16 %v575_v6, %v489_v38  ;;  %v1544_v15 = vld [vmem:[%s1884_s1 + $0x190] sm:$0xff]  ;;  %v648_v21 = vld [vmem:[%s1671_s28] sm:$0x8] }
  0x20   : > { %314 = vmatpush.bf16.msra.mxu0 %v1504_v23  ;;  %v834_v9 = vunpack.c.l.b16 %v813_v4  ;;  %v1552_v17 = vld [vmem:[%s1884_s1 + $0x1d0] sm:$0xff]  ;;  %v1543_v23 = vld [vmem:[%s1884_s1 + $0x188] sm:$0xff]  ;;  %v1526_v30 = vld [vmem:[%s1884_s1 + $0x100] sm:$0xff] }
  0x21   : > { %459 = vmatpush.bf16.msra.mxu2 %v1512_v24  ;;  %v1536_v18 = vld [vmem:[%s1884_s1 + $0x150] sm:$0xff]  ;;  %v578_v19 = vshrl.u32 %v576_v13, 16  ;;  %v581_v20 = vshll.u32 %v576_v13, 16  ;;  %v1551_v25 = vld [vmem:[%s1884_s1 + $0x1c8] sm:$0xff]  ;;  %v1542_v31 = vld [vmem:[%s1884_s1 + $0x180] sm:$0xff] }
  0x22   : > { %547 = vmatpush.bf16.msra.mxu3 %v1520_v26  ;;  %v836_v16 = vpack.c.b16 %v835_v10, %v834_v9  ;;  %v1535_v26 = vld [vmem:[%s1884_s1 + $0x148] sm:$0xff]  ;;  %v1550_v35 = vld [vmem:[%s1884_s1 + $0x1c0] sm:$0xff] }
  0x23   : > { %375 = vmatpush.bf16.msra.mxu1 %v1496_v27  ;;  %v667_v27 = vunpack.c.l.b16 %v648_v21  ;;  %v580_v28 = vrot.slane %v578_v19, 2  ;;  %v583_v29 = vrot.slane %v581_v20, 3  ;;  %v733_v39 = vld [vmem:[%s1671_s28 + $0x4] sm:$0xf]  ;;  %v1563_v43 = vld [vmem:[%s1884_s1 + $0x228] sm:$0xff] }
  0x24   : > { %315 = vmatpush.bf16.msra.mxu0 %v1503_v32  ;;  %v840_v24 = vshll.u32 %v836_v16, 16  ;;  %v1565_v32 = vld [vmem:[%s1884_s1 + $0x238] sm:$0xff]  ;;  %v1562_v44 = vld [vmem:[%s1884_s1 + $0x220] sm:$0xff]  ;;  %v1559_v49 = vld [vmem:[%s1884_s1 + $0x208] sm:$0xff] }
  0x25   : > { %460 = vmatpush.bf16.msra.mxu2 %v1511_v33  ;;  %v838_v33 = vshrl.u32 %v836_v16, 16  ;;  %v584_v38 = vor.u32 %v583_v29, %v580_v28  ;;  %v1575_v13 = vld [vmem:[%s1885_s2] ss:$0 sm:$0xff] }
  0x26   : > { %548 = vmatpush.bf16.msra.mxu3 %v1519_v36  ;;  %v842_v34 = vrot.slane %v840_v24, 1  ;;  %v1534_v36 = vld [vmem:[%s1884_s1 + $0x140] sm:$0xff] }
  0x27   : > { %376 = vmatpush.bf16.msra.mxu1 %v1495_v37  ;;  %v668_v37 = vpack.c.b16 %v575_v6, %v667_v27 }
  0x28   : > { %316 = vmatpush.bf16.msra.mxu0 %v1502_v40  ;;  %v1564_v40 = vld [vmem:[%s1884_s1 + $0x230] sm:$0xff] }
  0x29   : > { %461 = vmatpush.bf16.msra.mxu2 %v1510_v41  ;;  %v843_v41 = vor.u32 %v842_v34, %v838_v33  ;;  %v669_v42 = vrot.slane %v668_v37, 3 }
  0x2a   : > { %549 = vmatpush.bf16.msra.mxu3 %v1518_v47  ;;  %v907_v47 = vld [vmem:[%s1671_s28 + $0x4] sm:$0xe]  ;;  %s1074_s28 = sshll.u32 %s1889_s16, 2 }
  0x2b   : > { %377 = vmatpush.bf16.msra.mxu1 %v1494_v48  ;;  %317 = vmatmul.bf16.vlgmr.msra.gmra.mxu0 %v259_v53  ;;  %v926_v48 = vunpack.c.l.b16 %v907_v47  ;;  %s208_s27 = scalar_lea.vmem %s1886_s3, %s1074_s28  ;;  %s212_s16 = scalar_lea.vmem %s1887_s4, %s1074_s28 }
  0x2c   : > { %634 = vmatpush.bf16.msrb.mxu0 %v1533_v45  ;;  %462 = vmatmul.bf16.vlgmr.msra.gmra.mxu2 %v404_v52  ;;  %v1561_v45 = vld [vmem:[%s1884_s1 + $0x218] sm:$0xff] }
  0x2d   : > { %799 = vmatpush.bf16.msrb.mxu2 %v1549_v46  ;;  %550 = vmatmul.bf16.vlgmr.msra.gmra.mxu3 %v492_v56  ;;  %v1560_v46 = vld [vmem:[%s1884_s1 + $0x210] sm:$0xff] }
  0x2e   : > { %893 = vmatpush.bf16.msrb.mxu3 %v1557_v50  ;;  %378 = vmatmul.bf16.vlgmr.msra.gmra.mxu1 %v1687_v22  ;;  %v1527_v22 = vld [vmem:[%s1884_s1 + $0x108] sm:$0xff]  ;;  %v927_v50 = vpack.c.b16 %v835_v10, %v926_v48 }
  0x2f   : > { %719 = vmatpush.bf16.msrb.mxu1 %v1541_v51  ;;  %v1558_v51 = vld [vmem:[%s1884_s1 + $0x200] sm:$0xff] }
  0x30   : > { %635 = vmatpush.bf16.msrb.mxu0 %v1532_v54  ;;  %v928_v52 = vrot.slane %v927_v50, 1 }
  0x31   : > { %800 = vmatpush.bf16.msrb.mxu2 %v1548_v55 }
  0x32   : > { %894 = vmatpush.bf16.msrb.mxu3 %v1556_v57 }
  0x33   : > { %720 = vmatpush.bf16.msrb.mxu1 %v1540_v58 }
  0x34   : > { %636 = vmatpush.bf16.msrb.mxu0 %v1531_v59 }
  0x35   : > { %801 = vmatpush.bf16.msrb.mxu2 %v1547_v60 }
  0x36   : > { %895 = vmatpush.bf16.msrb.mxu3 %v1555_v61 }
  0x37   : > { %721 = vmatpush.bf16.msrb.mxu1 %v1539_v62 }
  0x38   : > { %637 = vmatpush.bf16.msrb.mxu0 %v1530_v63 }
  0x39   : > { %802 = vmatpush.bf16.msrb.mxu2 %v1546_v0 }
  0x3a   : > { %896 = vmatpush.bf16.msrb.mxu3 %v1554_v2 }
  0x3b   : > { %722 = vmatpush.bf16.msrb.mxu1 %v1538_v3 }
  0x3c   : > { %638 = vmatpush.bf16.msrb.mxu0 %v1529_v7 }
  0x3d   : > { %803 = vmatpush.bf16.msrb.mxu2 %v1545_v8 }
  0x3e   : > { %897 = vmatpush.bf16.msrb.mxu3 %v1553_v11  ;;  %v997_v11 = vld [vmem:[%s208_s27] sm:$0xf] }
  0x3f   : > { %723 = vmatpush.bf16.msrb.mxu1 %v1537_v12  ;;  %v998_v16 = vunpack.c.l.bf16 %v997_v11 }
  0x40   : > { %639 = vmatpush.bf16.msrb.mxu0 %v1528_v14 }
  0x41   : > { %804 = vmatpush.bf16.msrb.mxu2 %v1544_v15 }
  0x42   : > { %898 = vmatpush.bf16.msrb.mxu3 %v1552_v17 }
  0x43   : > { %724 = vmatpush.bf16.msrb.mxu1 %v1536_v18 }
  0x44   : > { %640 = vmatpush.bf16.msrb.mxu0 %v1527_v22 }
  0x45   : > { %805 = vmatpush.bf16.msrb.mxu2 %v1543_v23 }
  0x46   : > { %899 = vmatpush.bf16.msrb.mxu3 %v1551_v25 }
  0x47   : > { %725 = vmatpush.bf16.msrb.mxu1 %v1535_v26 }
  0x48   : > { %641 = vmatpush.bf16.msrb.mxu0 %v1526_v30 }
  0x49   : > { %806 = vmatpush.bf16.msrb.mxu2 %v1542_v31 }
  0x4a   : > { %900 = vmatpush.bf16.msrb.mxu3 %v1550_v35 }
  0x4b   : > { %726 = vmatpush.bf16.msrb.mxu1 %v1534_v36  ;;  %642 = vmatmul.bf16.vlgmr.msrb.gmra.mxu0 %v584_v38 }
  0x4c   : > { %978 = vmatpush.bf16.msra.mxu0 %v1565_v32  ;;  %807 = vmatmul.bf16.vlgmr.msrb.gmra.mxu2 %v733_v39 }
  0x4d   : > { %901 = vmatmul.bf16.vlgmr.msrb.gmra.mxu3 %v843_v41 }
  0x4e   : > { %727 = vmatmul.bf16.vlgmr.msrb.gmra.mxu1 %v669_v42 }
  0x50   : > { %979 = vmatpush.bf16.msra.mxu0 %v1564_v40 }
  0x54   : > { %980 = vmatpush.bf16.msra.mxu0 %v1563_v43 }
  0x58   : > { %981 = vmatpush.bf16.msra.mxu0 %v1562_v44 }
  0x5c   : > { %982 = vmatpush.bf16.msra.mxu0 %v1561_v45 }
  0x60   : > { %983 = vmatpush.bf16.msra.mxu0 %v1560_v46 }
  0x64   : > { %984 = vmatpush.bf16.msra.mxu0 %v1559_v49 }
  0x68   : > { %985 = vmatpush.bf16.msra.mxu0 %v1558_v51 }
  0x6b   : > { %986 = vmatmul.bf16.vlgmr.msra.gmra.mxu0 %v928_v52 }
  0xa8   : > { %v318_v53 = vpop.f32.mrf.mxu0 }
  0xab   : > { %v379_v54 = vpop.f32.mrf.mxu1 }
  0xac   : > { %v380_v63 = vadd.f32 %v379_v54, %v318_v53 }
  0xaf   : > { %v463_v55 = vpop.f32.mrf.mxu2 }
  0xb0   : > { %v551_v56 = vpop.f32.mrf.mxu3  ;;  %v320_v57 = vpop.f32.mrf.mxu0  ;;  %v467_v1 = vadd.f32 %v463_v55, %v380_v63 }
  0xb2   : > { %v555_v5 = vadd.f32 %v551_v56, %v467_v1 }
  0xb3   : > { %v381_v58 = vpop.f32.mrf.mxu1 }
  0xb7   : > { %v465_v59 = vpop.f32.mrf.mxu2 }
  0xb8   : > { %v553_v60 = vpop.f32.mrf.mxu3 }
  0xc8   : > { %v643_v61 = vpop.f32.mrf.mxu0 }
  0xc9   : > { %v647_v7 = vadd.f32 %v643_v61, %v555_v5 }
  0xcb   : > { %v728_v62 = vpop.f32.mrf.mxu1 }
  0xcc   : > { %v732_v9 = vadd.f32 %v728_v62, %v647_v7 }
  0xcf   : > { %v808_v0 = vpop.f32.mrf.mxu2 }
  0xd0   : > { %v902_v2 = vpop.f32.mrf.mxu3  ;;  %v645_v3 = vpop.f32.mrf.mxu0  ;;  %v812_v10 = vadd.f32 %v808_v0, %v732_v9 }
  0xd2   : > { %v906_v12 = vadd.f32 %v902_v2, %v812_v10 }
  0xd3   : > { %v730_v4 = vpop.f32.mrf.mxu1 }
  0xd7   : > { %v810_v6 = vpop.f32.mrf.mxu2 }
  0xd8   : > { %v904_v8 = vpop.f32.mrf.mxu3 }
  0xe8   : > { %v987_v14 = vpop.f32.mrf.mxu0 }
  0xe9   : > { %v991_v15 = vadd.f32 %v987_v14, %v906_v12 }
  0xeb   : > { %v996_v17 = vadd.f32 %v1575_v13, %v991_v15 }
  0xed   : > { %v999_v18 = vadd.f32 %v998_v16, %v996_v17 }
  0xef   : > { %v1000_v19 = vmax.f32 %v999_v18, 0.0 }
  0xf0   : > { %v989_v20 = vpop.f32.mrf.mxu0 }
  0xf1   : > { %v1001_v21 = vpack.c.bf16 %v1000_v19, %v1000_v19 }
  0xf3   : > { %1002 = vst [vmem:[%s212_s16] sm:$0xf] %v1001_v21 }
  0xf4 PF: > { %s14_s15 = sadd.s32 1, %s1582_s15  }
  0xf5   : > { %p11_p4 = scmp.ge.s32.totalorder %s14_s15, 4  }
  0xf7   :  { %13 = sbr.rel (!%p11_p4) target bundleno = 1 (0x1), region = 77 }

// kernel: resnet_encoder_forward.21
= control target key start
LH: loop header
LB: loop body
LE: loop exit
PB: predicated region body
PF: predicated region fallthrough
CT: control target
= control target key end

     0   :  { %s1689_s15 = smov 0   ;;  %s1956_s0 = inlined_call_operand.vmem [shape: bf16[2,40,128], index: 0, kind: input, shape index: {}]   ;;  %s1957_s1 = inlined_call_operand.vmem [shape: bf16[3,3,128,128], index: 1, kind: input, shape index: {}]   ;;  %s1958_s2 = inlined_call_operand.vmem [shape: f32[1,128], index: 2, kind: input, shape index: {}]   ;;  %s1959_s3 = inlined_call_operand.vmem [shape: bf16[2,12,128], index: 3, kind: input, shape index: {}]   ;;  %s1960_s4 = inlined_call_operand.vmem [shape: bf16[2,12,128], index: 4, kind: output, shape index: {}]  }
   0x1 LB: > { %s1109_s16 = sadd.s32 4294967295, %s1662_s15   ;;  %p1113_p0 = scmp.ge.s32.totalorder %s1662_s15, 1  ;;  %s1662_s15 = sphi %s1689_s15, %s14_s15  }
   0x2   : > { %p172_p1 = scmp.lt.s32.totalorder %s1662_s15, 3 }
   0x4   : > { %p173_p2 = pnand %p1113_p0, %p172_p1 }
   0x5   : > { %p203_p3 = scmp.lt.s32.totalorder (!%p173_p2), %s1109_s16, 1 }
   0x6   : > { %176 = sbr.rel (%p173_p2) target bundleno = 252 (0xfc), region = 36 }
   0xb   : > { %v1584_v0 = vld [vmem:[%s1957_s1 + $0x78] sm:$0xff]  ;;  %v1583_v4 = vld [vmem:[%s1957_s1 + $0x70] sm:$0xff]  ;;  %v1582_v8 = vld [vmem:[%s1957_s1 + $0x68] sm:$0xff]  ;;  %s1962_s16 = smov (!%p203_p3, %s1109_s16), 1  ;;  %vm600_vm0 = vcmask 1044480  }
   0xc   : > { %v1593_v1 = vld [vmem:[%s1957_s1 + $0xb8] sm:$0xff]  ;;  %310 = vmatpush.bf16.msra.mxu0 %v1584_v0  ;;  %v1592_v5 = vld [vmem:[%s1957_s1 + $0xb0] sm:$0xff]  ;;  %v1591_v9 = vld [vmem:[%s1957_s1 + $0xa8] sm:$0xff]  ;;  %s1646_s7 = smul.u32 20, %s1962_s16 }
   0xd   : > { %v1575_v2 = vld [vmem:[%s1957_s1 + $0x38] sm:$0xff]  ;;  %466 = vmatpush.bf16.msra.mxu2 %v1593_v1  ;;  %v1574_v6 = vld [vmem:[%s1957_s1 + $0x30] sm:$0xff]  ;;  %v1573_v10 = vld [vmem:[%s1957_s1 + $0x28] sm:$0xff] }
   0xe   : > { %v1602_v3 = vld [vmem:[%s1957_s1 + $0xf8] sm:$0xff]  ;;  %378 = vmatpush.bf16.msra.mxu1 %v1575_v2  ;;  %v1601_v7 = vld [vmem:[%s1957_s1 + $0xf0] sm:$0xff]  ;;  %v1600_v11 = vld [vmem:[%s1957_s1 + $0xe8] sm:$0xff]  ;;  %s1779_s20 = scalar_lea.vmem %s1956_s0, %s1646_s7 }
   0xf   : > { %556 = vmatpush.bf16.msra.mxu3 %v1602_v3  ;;  %v1581_v12 = vld [vmem:[%s1957_s1 + $0x60] sm:$0xff]  ;;  %v1580_v16 = vld [vmem:[%s1957_s1 + $0x58] sm:$0xff]  ;;  %v1579_v20 = vld [vmem:[%s1957_s1 + $0x50] sm:$0xff] }
  0x10   : > { %311 = vmatpush.bf16.msra.mxu0 %v1583_v4  ;;  %v1590_v13 = vld [vmem:[%s1957_s1 + $0xa0] sm:$0xff]  ;;  %v1589_v17 = vld [vmem:[%s1957_s1 + $0x98] sm:$0xff]  ;;  %v1588_v21 = vld [vmem:[%s1957_s1 + $0x90] sm:$0xff] }
  0x11   : > { %467 = vmatpush.bf16.msra.mxu2 %v1592_v5  ;;  %v1572_v14 = vld [vmem:[%s1957_s1 + $0x20] sm:$0xff]  ;;  %v1571_v18 = vld [vmem:[%s1957_s1 + $0x18] sm:$0xff]  ;;  %v1570_v22 = vld [vmem:[%s1957_s1 + $0x10] sm:$0xff] }
  0x12   : > { %379 = vmatpush.bf16.msra.mxu1 %v1574_v6  ;;  %v1599_v15 = vld [vmem:[%s1957_s1 + $0xe0] sm:$0xff]  ;;  %v1598_v19 = vld [vmem:[%s1957_s1 + $0xd8] sm:$0xff]  ;;  %v1597_v23 = vld [vmem:[%s1957_s1 + $0xd0] sm:$0xff] }
  0x13   : > { %557 = vmatpush.bf16.msra.mxu3 %v1601_v7  ;;  %v1578_v24 = vld [vmem:[%s1957_s1 + $0x48] sm:$0xff]  ;;  %v1137_v28 = vld [vmem:[%s1779_s20] sm:$0xe]  ;;  %v1576_v29 = vld [vmem:[%s1779_s20] sm:$0x70] }
  0x14   : > { %312 = vmatpush.bf16.msra.mxu0 %v1582_v8  ;;  %v1587_v25 = vld [vmem:[%s1957_s1 + $0x88] sm:$0xff]  ;;  %v1225_v30 = vld [vmem:[%s1779_s20] sm:$0xc]  ;;  %v1585_v31 = vld [vmem:[%s1779_s20] sm:$0xf0]  ;;  %v1138_v36 = vor.u32 %v1576_v29, %v1137_v28 }
  0x15   : > { %468 = vmatpush.bf16.msra.mxu2 %v1591_v9  ;;  %v1569_v26 = vld [vmem:[%s1957_s1 + $0x8] sm:$0xff]  ;;  %v1277_v32 = vld [vmem:[%s1779_s20 + $0x4] sm:$0xc]  ;;  %v1226_v37 = vor.u32 %v1585_v31, %v1225_v30  ;;  %v1610_v38 = vld [vmem:[%s1957_s1 + $0x138] sm:$0xff] }
  0x16   : > { %380 = vmatpush.bf16.msra.mxu1 %v1573_v10  ;;  %v1596_v27 = vld [vmem:[%s1957_s1 + $0xc8] sm:$0xff]  ;;  %v1577_v34 = vld [vmem:[%s1957_s1 + $0x40] sm:$0xff]  ;;  %v1627_v39 = vld [vmem:[%s1957_s1 + $0x1b8] sm:$0xff]  ;;  %v260_v47 = vrot.slane %v1138_v36, 1 }
  0x17   : > { %558 = vmatpush.bf16.msra.mxu3 %v1600_v11  ;;  %v1594_v33 = vld [vmem:[%s1779_s20 + $0x4] sm:$0xf0]  ;;  %v1586_v35 = vld [vmem:[%s1957_s1 + $0x80] sm:$0xff]  ;;  %v1618_v42 = vld [vmem:[%s1957_s1 + $0x178] sm:$0xff]  ;;  %v416_v48 = vrot.slane %v1226_v37, 2 }
  0x18   : > { %313 = vmatpush.bf16.msra.mxu0 %v1581_v12  ;;  %v1568_v40 = vld [vmem:[%s1957_s1] sm:$0xff]  ;;  %v1278_v43 = vor.u32 %v1594_v33, %v1277_v32  ;;  %v1636_v44 = vld [vmem:[%s1957_s1 + $0x1f8] sm:$0xff]  ;;  %v1609_v49 = vld [vmem:[%s1957_s1 + $0x130] sm:$0xff] }
  0x19   : > { %469 = vmatpush.bf16.msra.mxu2 %v1590_v13  ;;  %v1595_v41 = vld [vmem:[%s1957_s1 + $0xc0] sm:$0xff]  ;;  %v1626_v50 = vld [vmem:[%s1957_s1 + $0x1b0] sm:$0xff]  ;;  %v1608_v55 = vld [vmem:[%s1957_s1 + $0x128] sm:$0xff] }
  0x1a   : > { %381 = vmatpush.bf16.msra.mxu1 %v1572_v14  ;;  %v1173_v45 = vld [vmem:[%s1779_s20] sm:$0xf]  ;;  %v1567_v46 = vld [vmem:[%s1779_s20] sm:$0x30]  ;;  %v506_v52 = vrot.slane %v1278_v43, 2  ;;  %v1617_v53 = vld [vmem:[%s1957_s1 + $0x170] sm:$0xff] }
  0x1b   : > { %559 = vmatpush.bf16.msra.mxu3 %v1599_v15  ;;  %v1174_v51 = vor.u32 %v1567_v46, %v1173_v45  ;;  %v1635_v54 = vld [vmem:[%s1957_s1 + $0x1f0] sm:$0xff]  ;;  %v1625_v56 = vld [vmem:[%s1957_s1 + $0x1a8] sm:$0xff]  ;;  %v1607_v59 = vld [vmem:[%s1957_s1 + $0x120] sm:$0xff] }
  0x1c   : > { %314 = vmatpush.bf16.msra.mxu0 %v1580_v16  ;;  %v1616_v57 = vld [vmem:[%s1957_s1 + $0x168] sm:$0xff]  ;;  %v1624_v60 = vld [vmem:[%s1957_s1 + $0x1a0] sm:$0xff]  ;;  %v1606_v63 = vld [vmem:[%s1957_s1 + $0x118] sm:$0xff] }
  0x1d   : > { %470 = vmatpush.bf16.msra.mxu2 %v1589_v17  ;;  %v1634_v58 = vld [vmem:[%s1957_s1 + $0x1e8] sm:$0xff]  ;;  %v1615_v61 = vld [vmem:[%s1957_s1 + $0x160] sm:$0xff]  ;;  %v1623_v0 = vld [vmem:[%s1957_s1 + $0x198] sm:$0xff] }
  0x1e   : > { %382 = vmatpush.bf16.msra.mxu1 %v1571_v18  ;;  %v1633_v62 = vld [vmem:[%s1957_s1 + $0x1e0] sm:$0xff]  ;;  %v573_v2 = vld [vmem:[%s1779_s20 + $0x8] sm:$0xf]  ;;  %v574_v3 = vld [vmem:[%s1779_s20 + $0xc] sm:$0x1] }
  0x1f   : > { %560 = vmatpush.bf16.msra.mxu3 %v1598_v19  ;;  %v572_v1 = vld [vmem:[%s1779_s20 + $0x4] sm:$0x8]  ;;  %v1614_v4 = vld [vmem:[%s1957_s1 + $0x158] sm:$0xff]  ;;  %v1605_v6 = vld [vmem:[%s1957_s1 + $0x110] sm:$0xff]  ;;  %v596_v9 = vunpack.c.l.b16 %v573_v2  ;;  %v597_v10 = vunpack.c.l.b16 %v574_v3 }
  0x20   : > { %315 = vmatpush.bf16.msra.mxu0 %v1579_v20  ;;  %v1632_v5 = vld [vmem:[%s1957_s1 + $0x1d8] sm:$0xff]  ;;  %v1622_v7 = vld [vmem:[%s1957_s1 + $0x190] sm:$0xff]  ;;  %v595_v8 = vunpack.c.l.b16 %v572_v1  ;;  %v1604_v13 = vld [vmem:[%s1957_s1 + $0x108] sm:$0xff] }
  0x21   : > { %471 = vmatpush.bf16.msra.mxu2 %v1588_v21  ;;  %v1613_v11 = vld [vmem:[%s1957_s1 + $0x150] sm:$0xff]  ;;  %v1621_v14 = vld [vmem:[%s1957_s1 + $0x188] sm:$0xff]  ;;  %v599_v16 = vpack.c.b16 %v597_v10, %v597_v10  ;;  %v1645_v28 = vld [vmem:[%s1957_s1 + $0x238] sm:$0xff] }
  0x22   : > { %383 = vmatpush.bf16.msra.mxu1 %v1570_v22  ;;  %v1631_v12 = vld [vmem:[%s1957_s1 + $0x1d0] sm:$0xff]  ;;  %v598_v15 = vpack.c.b16 %v596_v9, %v595_v8  ;;  %v1612_v17 = vld [vmem:[%s1957_s1 + $0x148] sm:$0xff]  ;;  %v1603_v22 = vld [vmem:[%s1957_s1 + $0x100] sm:$0xff] }
  0x23   : > { %561 = vmatpush.bf16.msra.mxu3 %v1597_v23  ;;  %v1630_v18 = vld [vmem:[%s1957_s1 + $0x1c8] sm:$0xff]  ;;  %v1628_v21 = vld [vmem:[%s1779_s20 + $0xc] sm:$0x70]  ;;  %v1620_v23 = vld [vmem:[%s1957_s1 + $0x180] sm:$0xff] }
  0x24   : > { %316 = vmatpush.bf16.msra.mxu0 %v1578_v24  ;;  %v669_v19 = vld [vmem:[%s1779_s20 + $0xc] sm:$0x3]  ;;  %v601_v24 = vrot.slane %v598_v15, 3  ;;  %v1611_v31 = vld [vmem:[%s1957_s1 + $0x140] sm:$0xff]  ;;  %v1644_v37 = vld [vmem:[%s1957_s1 + $0x230] sm:$0xff] }
  0x25   : > { %472 = vmatpush.bf16.msra.mxu2 %v1587_v25  ;;  %v1477_v20 = vld [vmem:[%s1779_s20 + $0xc] sm:$0xe]  ;;  %v602_v25 = vrot.slane %v599_v16, 3  ;;  %v688_v29 = vunpack.c.l.b16 %v669_v19  ;;  %v1629_v32 = vld [vmem:[%s1957_s1 + $0x1c0] sm:$0xff] }
  0x26   : > { %384 = vmatpush.bf16.msra.mxu1 %v1569_v26  ;;  %v1425_v26 = vld [vmem:[%s1779_s20 + $0xc] sm:$0xf]  ;;  %v1478_v30 = vor.u32 %v1628_v21, %v1477_v20  ;;  %v1638_v46 = vld [vmem:[%s1957_s1 + $0x200] sm:$0xff] }
  0x27   : > { %562 = vmatpush.bf16.msra.mxu3 %v1596_v27  ;;  %v1619_v27 = vld [vmem:[%s1779_s20 + $0xc] sm:$0x30]  ;;  %v1529_v43 = vld [vmem:[%s1779_s20 + $0xc] sm:$0xc]  ;;  %v1655_v10 = vld [vmem:[%s1958_s2] ss:$0 sm:$0xff] }
  0x28   : > { %317 = vmatpush.bf16.msra.mxu0 %v1577_v34  ;;  %v1426_v33 = vor.u32 %v1619_v27, %v1425_v26  ;;  %v603_v34 = vsel %vm600_vm0, %v601_v24, %v602_v25  ;;  %v868_v36 = vrot.slane %v1478_v30, 1 }
  0x29   : > { %473 = vmatpush.bf16.msra.mxu2 %v1586_v35  ;;  %v689_v35 = vpack.c.b16 %v688_v29, %v596_v9 }
  0x2a   : > { %385 = vmatpush.bf16.msra.mxu1 %v1568_v40  ;;  %v1641_v40 = vld [vmem:[%s1957_s1 + $0x218] sm:$0xff] }
  0x2b   : > { %563 = vmatpush.bf16.msra.mxu3 %v1595_v41  ;;  %318 = vmatmul.bf16.vlgmr.msra.gmra.mxu0 %v260_v47  ;;  %v1640_v41 = vld [vmem:[%s1957_s1 + $0x210] sm:$0xff] }
  0x2c   : > { %653 = vmatpush.bf16.msrb.mxu0 %v1610_v38  ;;  %474 = vmatmul.bf16.vlgmr.msra.gmra.mxu2 %v416_v48  ;;  %v1643_v38 = vld [vmem:[%s1957_s1 + $0x228] sm:$0xff] }
  0x2d   : > { %828 = vmatpush.bf16.msrb.mxu2 %v1627_v39  ;;  %386 = vmatmul.bf16.vlgmr.msra.gmra.mxu1 %v1174_v51  ;;  %v1642_v39 = vld [vmem:[%s1957_s1 + $0x220] sm:$0xff] }
  0x2e   : > { %739 = vmatpush.bf16.msrb.mxu1 %v1618_v42  ;;  %564 = vmatmul.bf16.vlgmr.msra.gmra.mxu3 %v506_v52  ;;  %v1639_v42 = vld [vmem:[%s1957_s1 + $0x208] sm:$0xff] }
  0x2f   : > { %918 = vmatpush.bf16.msrb.mxu3 %v1636_v44  ;;  %v1637_v44 = vld [vmem:[%s1779_s20 + $0xc] sm:$0xf0]  ;;  %s1565_s20 = sshll.u32 %s1962_s16, 3 }
  0x30   : > { %654 = vmatpush.bf16.msrb.mxu0 %v1609_v49  ;;  %v1530_v45 = vor.u32 %v1637_v44, %v1529_v43  ;;  %s212_s27 = scalar_lea.vmem %s1959_s3, %s1565_s20  ;;  %s217_s5 = scalar_lea.vmem %s1960_s4, %s1565_s20 }
  0x31   : > { %829 = vmatpush.bf16.msrb.mxu2 %v1626_v50  ;;  %v1030_v8 = vld [vmem:[%s212_s27] sm:$0xf]  ;;  %v1031_v20 = vld [vmem:[%s212_s27 + $0x4] sm:$0x3] }
  0x32   : > { %740 = vmatpush.bf16.msrb.mxu1 %v1617_v53  ;;  %v958_v47 = vrot.slane %v1530_v45, 2  ;;  %v1032_v15 = vunpack.c.l.bf16 %v1030_v8  ;;  %v1033_v26 = vunpack.c.l.bf16 %v1031_v20 }
  0x33   : > { %919 = vmatpush.bf16.msrb.mxu3 %v1635_v54 }
  0x34   : > { %655 = vmatpush.bf16.msrb.mxu0 %v1608_v55 }
  0x35   : > { %830 = vmatpush.bf16.msrb.mxu2 %v1625_v56 }
  0x36   : > { %741 = vmatpush.bf16.msrb.mxu1 %v1616_v57 }
  0x37   : > { %920 = vmatpush.bf16.msrb.mxu3 %v1634_v58 }
  0x38   : > { %656 = vmatpush.bf16.msrb.mxu0 %v1607_v59 }
  0x39   : > { %831 = vmatpush.bf16.msrb.mxu2 %v1624_v60 }
  0x3a   : > { %742 = vmatpush.bf16.msrb.mxu1 %v1615_v61 }
  0x3b   : > { %921 = vmatpush.bf16.msrb.mxu3 %v1633_v62 }
  0x3c   : > { %657 = vmatpush.bf16.msrb.mxu0 %v1606_v63 }
  0x3d   : > { %832 = vmatpush.bf16.msrb.mxu2 %v1623_v0 }
  0x3e   : > { %743 = vmatpush.bf16.msrb.mxu1 %v1614_v4 }
  0x3f   : > { %922 = vmatpush.bf16.msrb.mxu3 %v1632_v5 }
  0x40   : > { %658 = vmatpush.bf16.msrb.mxu0 %v1605_v6 }
  0x41   : > { %833 = vmatpush.bf16.msrb.mxu2 %v1622_v7 }
  0x42   : > { %744 = vmatpush.bf16.msrb.mxu1 %v1613_v11 }
  0x43   : > { %923 = vmatpush.bf16.msrb.mxu3 %v1631_v12 }
  0x44   : > { %659 = vmatpush.bf16.msrb.mxu0 %v1604_v13 }
  0x45   : > { %834 = vmatpush.bf16.msrb.mxu2 %v1621_v14 }
  0x46   : > { %745 = vmatpush.bf16.msrb.mxu1 %v1612_v17 }
  0x47   : > { %924 = vmatpush.bf16.msrb.mxu3 %v1630_v18 }
  0x48   : > { %660 = vmatpush.bf16.msrb.mxu0 %v1603_v22 }
  0x49   : > { %835 = vmatpush.bf16.msrb.mxu2 %v1620_v23 }
  0x4a   : > { %746 = vmatpush.bf16.msrb.mxu1 %v1611_v31 }
  0x4b   : > { %925 = vmatpush.bf16.msrb.mxu3 %v1629_v32  ;;  %661 = vmatmul.bf16.vlgmr.msrb.gmra.mxu0 %v603_v34 }
  0x4c   : > { %1008 = vmatpush.bf16.msra.mxu0 %v1645_v28  ;;  %836 = vmatmul.bf16.vlgmr.msrb.gmra.mxu2 %v1426_v33 }
  0x4d   : > { %747 = vmatmul.bf16.vlgmr.msrb.gmra.mxu1 %v689_v35 }
  0x4e   : > { %926 = vmatmul.bf16.vlgmr.msrb.gmra.mxu3 %v868_v36 }
  0x50   : > { %1009 = vmatpush.bf16.msra.mxu0 %v1644_v37 }
  0x54   : > { %1010 = vmatpush.bf16.msra.mxu0 %v1643_v38 }
  0x58   : > { %1011 = vmatpush.bf16.msra.mxu0 %v1642_v39 }
  0x5c   : > { %1012 = vmatpush.bf16.msra.mxu0 %v1641_v40 }
  0x60   : > { %1013 = vmatpush.bf16.msra.mxu0 %v1640_v41 }
  0x64   : > { %1014 = vmatpush.bf16.msra.mxu0 %v1639_v42 }
  0x68   : > { %1015 = vmatpush.bf16.msra.mxu0 %v1638_v46 }
  0x6b   : > { %1016 = vmatmul.bf16.vlgmr.msra.gmra.mxu0 %v958_v47 }
  0xa8   : > { %v319_v48 = vpop.f32.mrf.mxu0 }
  0xaa   : > { %v387_v49 = vpop.f32.mrf.mxu1 }
  0xab   : > { %v388_v53 = vadd.f32 %v387_v49, %v319_v48 }
  0xaf   : > { %v475_v50 = vpop.f32.mrf.mxu2 }
  0xb0   : > { %v321_v51 = vpop.f32.mrf.mxu0  ;;  %v480_v55 = vadd.f32 %v475_v50, %v388_v53 }
  0xb1   : > { %v565_v52 = vpop.f32.mrf.mxu3 }
  0xb2   : > { %v389_v54 = vpop.f32.mrf.mxu1  ;;  %v570_v58 = vadd.f32 %v565_v52, %v480_v55 }
  0xb3   : > { %v390_v60 = vadd.f32 %v389_v54, %v321_v51 }
  0xb7   : > { %v477_v56 = vpop.f32.mrf.mxu2 }
  0xb8   : > { %v481_v0 = vadd.f32 %v477_v56, %v390_v60 }
  0xb9   : > { %v567_v59 = vpop.f32.mrf.mxu3 }
  0xba   : > { %v571_v4 = vadd.f32 %v567_v59, %v481_v0 }
  0xc8   : > { %v662_v57 = vpop.f32.mrf.mxu0 }
  0xc9   : > { %v667_v61 = vadd.f32 %v662_v57, %v570_v58 }
  0xca   : > { %v748_v62 = vpop.f32.mrf.mxu1 }
  0xcb   : > { %v753_v1 = vadd.f32 %v748_v62, %v667_v61 }
  0xcf   : > { %v837_v63 = vpop.f32.mrf.mxu2 }
  0xd0   : > { %v664_v2 = vpop.f32.mrf.mxu0  ;;  %v842_v5 = vadd.f32 %v837_v63, %v753_v1 }
  0xd1   : > { %v927_v3 = vpop.f32.mrf.mxu3  ;;  %v668_v6 = vadd.f32 %v664_v2, %v571_v4 }
  0xd2   : > { %v750_v7 = vpop.f32.mrf.mxu1  ;;  %v932_v9 = vadd.f32 %v927_v3, %v842_v5 }
  0xd3   : > { %v754_v13 = vadd.f32 %v750_v7, %v668_v6 }
  0xd7   : > { %v839_v11 = vpop.f32.mrf.mxu2 }
  0xd8   : > { %v843_v16 = vadd.f32 %v839_v11, %v754_v13 }
  0xd9   : > { %v929_v18 = vpop.f32.mrf.mxu3 }
  0xda   : > { %v933_v21 = vadd.f32 %v929_v18, %v843_v16 }
  0xe8   : > { %v1017_v12 = vpop.f32.mrf.mxu0 }
  0xe9   : > { %v1022_v14 = vadd.f32 %v1017_v12, %v932_v9 }
  0xeb   : > { %v1028_v17 = vadd.f32 %v1655_v10, %v1022_v14 }
  0xed   : > { %v1034_v19 = vadd.f32 %v1032_v15, %v1028_v17 }
  0xef   : > { %v1036_v22 = vmax.f32 %v1034_v19, 0.0 }
  0xf0   : > { %v1019_v23 = vpop.f32.mrf.mxu0 }
  0xf1   : > { %v1038_v24 = vpack.c.bf16 %v1036_v22, %v1036_v22  ;;  %v1023_v25 = vadd.f32 %v1019_v23, %v933_v21 }
  0xf3   : > { %1040 = vst [vmem:[%s217_s5] sm:$0xf] %v1038_v24  ;;  %v1029_v27 = vadd.f32 %v1655_v10, %v1023_v25 }
  0xf5   : > { %v1035_v28 = vadd.f32 %v1033_v26, %v1029_v27 }
  0xf7   : > { %v1037_v29 = vmax.f32 %v1035_v28, 0.0 }
  0xf9   : > { %v1039_v30 = vpack.c.bf16 %v1037_v29, %v1037_v29 }
  0xfb   : > { %1041 = vst [vmem:[%s217_s5 + $0x4] sm:$0x3] %v1039_v30 }
  0xfc PF: > { %s14_s15 = sadd.s32 1, %s1662_s15  }
  0xfd   : > { %p11_p4 = scmp.ge.s32.totalorder %s14_s15, 4  }
  0xff   :  { %13 = sbr.rel (!%p11_p4) target bundleno = 1 (0x1), region = 77 }

// kernel: resnet_encoder_forward.22
= control target key start
LH: loop header
LB: loop body
LE: loop exit
PB: predicated region body
PF: predicated region fallthrough
CT: control target
= control target key end

     0   :  { %s1908_s21 = smov 0   ;;  %s2207_s0 = inlined_call_operand.vmem [shape: bf16[2,40,128], index: 0, kind: input, shape index: {}]   ;;  %s2208_s1 = inlined_call_operand.vmem [shape: bf16[3,3,128,128], index: 1, kind: input, shape index: {}]   ;;  %s2209_s2 = inlined_call_operand.vmem [shape: f32[1,128], index: 2, kind: input, shape index: {}]   ;;  %s2210_s3 = inlined_call_operand.vmem [shape: bf16[1,1,128,128], index: 3, kind: input, shape index: {}]   ;;  %s2211_s4 = inlined_call_operand.vmem [shape: f32[1,128], index: 4, kind: input, shape index: {}]   ;;  %s2212_s5 = inlined_call_operand.vmem [shape: bf16[2,12,128], index: 5, kind: output, shape index: {0}]   ;;  %s2213_s6 = inlined_call_operand.vmem [shape: bf16[2,12,128], index: 6, kind: output, shape index: {1}]  }
   0x1 LB: > { %s1272_s22 = sadd.s32 4294967295, %s1871_s21   ;;  %p1276_p0 = scmp.ge.s32.totalorder %s1871_s21, 1  ;;  %s1871_s21 = sphi %s1908_s21, %s17_s21  }
   0x2   : > { %p215_p1 = scmp.lt.s32.totalorder %s1871_s21, 3 }
   0x4   : > { %p216_p2 = pnand %p1276_p0, %p215_p1 }
   0x5   : > { %p250_p3 = scmp.lt.s32.totalorder (!%p216_p2), %s1272_s22, 1 }
   0x6   : > { %219 = sbr.rel (%p216_p2) target bundleno = 250 (0xfa), region = 40 }
   0xb   : > { %v1783_v0 = vld [vmem:[%s2208_s1 + $0x78] sm:$0xff]  ;;  %v1782_v4 = vld [vmem:[%s2208_s1 + $0x70] sm:$0xff]  ;;  %v1781_v8 = vld [vmem:[%s2208_s1 + $0x68] sm:$0xff]  ;;  %s2215_s22 = smov (!%p250_p3, %s1272_s22), 1  ;;  %vm647_vm0 = vcmask 1044480  }
   0xc   : > { %v1774_v1 = vld [vmem:[%s2208_s1 + $0x38] sm:$0xff]  ;;  %357 = vmatpush.bf16.msra.mxu0 %v1783_v0  ;;  %v1773_v5 = vld [vmem:[%s2208_s1 + $0x30] sm:$0xff]  ;;  %v1772_v9 = vld [vmem:[%s2208_s1 + $0x28] sm:$0xff]  ;;  %s1854_s17 = smul.u32 20, %s2215_s22 }
   0xd   : > { %v1792_v2 = vld [vmem:[%s2208_s1 + $0xb8] sm:$0xff]  ;;  %425 = vmatpush.bf16.msra.mxu1 %v1774_v1  ;;  %v1791_v6 = vld [vmem:[%s2208_s1 + $0xb0] sm:$0xff]  ;;  %v1790_v10 = vld [vmem:[%s2208_s1 + $0xa8] sm:$0xff] }
   0xe   : > { %v1801_v3 = vld [vmem:[%s2208_s1 + $0xf8] sm:$0xff]  ;;  %513 = vmatpush.bf16.msra.mxu2 %v1792_v2  ;;  %v1800_v7 = vld [vmem:[%s2208_s1 + $0xf0] sm:$0xff]  ;;  %v1799_v11 = vld [vmem:[%s2208_s1 + $0xe8] sm:$0xff]  ;;  %s1998_s30 = scalar_lea.vmem %s2207_s0, %s1854_s17  ;;  %s1764_s17 = sshll.u32 %s2215_s22, 3 }
   0xf   : > { %603 = vmatpush.bf16.msra.mxu3 %v1801_v3  ;;  %v1780_v12 = vld [vmem:[%s2208_s1 + $0x60] sm:$0xff]  ;;  %v1779_v16 = vld [vmem:[%s2208_s1 + $0x58] sm:$0xff]  ;;  %v1778_v20 = vld [vmem:[%s2208_s1 + $0x50] sm:$0xff]  ;;  %s264_s20 = scalar_lea.vmem %s2213_s6, %s1764_s17  ;;  %s259_s25 = scalar_lea.vmem %s2212_s5, %s1764_s17 }
  0x10   : > { %358 = vmatpush.bf16.msra.mxu0 %v1782_v4  ;;  %v1771_v13 = vld [vmem:[%s2208_s1 + $0x20] sm:$0xff]  ;;  %v1770_v17 = vld [vmem:[%s2208_s1 + $0x18] sm:$0xff]  ;;  %v1769_v21 = vld [vmem:[%s2208_s1 + $0x10] sm:$0xff] }
  0x11   : > { %426 = vmatpush.bf16.msra.mxu1 %v1773_v5  ;;  %v1789_v14 = vld [vmem:[%s2208_s1 + $0xa0] sm:$0xff]  ;;  %v1788_v18 = vld [vmem:[%s2208_s1 + $0x98] sm:$0xff]  ;;  %v1787_v22 = vld [vmem:[%s2208_s1 + $0x90] sm:$0xff] }
  0x12   : > { %514 = vmatpush.bf16.msra.mxu2 %v1791_v6  ;;  %v1798_v15 = vld [vmem:[%s2208_s1 + $0xe0] sm:$0xff]  ;;  %v1797_v19 = vld [vmem:[%s2208_s1 + $0xd8] sm:$0xff]  ;;  %v1796_v23 = vld [vmem:[%s2208_s1 + $0xd0] sm:$0xff] }
  0x13   : > { %604 = vmatpush.bf16.msra.mxu3 %v1800_v7  ;;  %v1777_v24 = vld [vmem:[%s2208_s1 + $0x48] sm:$0xff]  ;;  %v1300_v27 = vld [vmem:[%s1998_s30] sm:$0xe]  ;;  %v1775_v28 = vld [vmem:[%s1998_s30] sm:$0x70] }
  0x14   : > { %359 = vmatpush.bf16.msra.mxu0 %v1781_v8  ;;  %v1768_v25 = vld [vmem:[%s2208_s1 + $0x8] sm:$0xff]  ;;  %v1388_v30 = vld [vmem:[%s1998_s30] sm:$0xc]  ;;  %v1784_v31 = vld [vmem:[%s1998_s30] sm:$0xf0]  ;;  %v1301_v33 = vor.u32 %v1775_v28, %v1300_v27 }
  0x15   : > { %427 = vmatpush.bf16.msra.mxu1 %v1772_v9  ;;  %v1786_v26 = vld [vmem:[%s2208_s1 + $0x88] sm:$0xff]  ;;  %v1776_v32 = vld [vmem:[%s2208_s1 + $0x40] sm:$0xff]  ;;  %v1389_v35 = vor.u32 %v1784_v31, %v1388_v30  ;;  %v1809_v39 = vld [vmem:[%s2208_s1 + $0x138] sm:$0xff] }
  0x16   : > { %515 = vmatpush.bf16.msra.mxu2 %v1790_v10  ;;  %v1795_v29 = vld [vmem:[%s2208_s1 + $0xc8] sm:$0xff]  ;;  %v1767_v34 = vld [vmem:[%s2208_s1] sm:$0xff]  ;;  %v1817_v40 = vld [vmem:[%s2208_s1 + $0x178] sm:$0xff]  ;;  %v307_v45 = vrot.slane %v1301_v33, 1 }
  0x17   : > { %605 = vmatpush.bf16.msra.mxu3 %v1799_v11  ;;  %v1440_v36 = vld [vmem:[%s1998_s30 + $0x4] sm:$0xc]  ;;  %v1793_v37 = vld [vmem:[%s1998_s30 + $0x4] sm:$0xf0]  ;;  %v1826_v41 = vld [vmem:[%s2208_s1 + $0x1b8] sm:$0xff]  ;;  %v463_v48 = vrot.slane %v1389_v35, 2 }
  0x18   : > { %360 = vmatpush.bf16.msra.mxu0 %v1780_v12  ;;  %v1785_v38 = vld [vmem:[%s2208_s1 + $0x80] sm:$0xff]  ;;  %v1441_v46 = vor.u32 %v1793_v37, %v1440_v36  ;;  %v1835_v47 = vld [vmem:[%s2208_s1 + $0x1f8] sm:$0xff]  ;;  %v1808_v49 = vld [vmem:[%s2208_s1 + $0x130] sm:$0xff] }
  0x19   : > { %428 = vmatpush.bf16.msra.mxu1 %v1771_v13  ;;  %v1336_v42 = vld [vmem:[%s1998_s30] sm:$0xf]  ;;  %v1766_v43 = vld [vmem:[%s1998_s30] sm:$0x30]  ;;  %v1816_v51 = vld [vmem:[%s2208_s1 + $0x170] sm:$0xff] }
  0x1a   : > { %516 = vmatpush.bf16.msra.mxu2 %v1789_v14  ;;  %v1794_v44 = vld [vmem:[%s2208_s1 + $0xc0] sm:$0xff]  ;;  %v1337_v50 = vor.u32 %v1766_v43, %v1336_v42  ;;  %v1825_v52 = vld [vmem:[%s2208_s1 + $0x1b0] sm:$0xff]  ;;  %v553_v53 = vrot.slane %v1441_v46, 2  ;;  %v1807_v55 = vld [vmem:[%s2208_s1 + $0x128] sm:$0xff] }
  0x1b   : > { %606 = vmatpush.bf16.msra.mxu3 %v1798_v15  ;;  %v1834_v54 = vld [vmem:[%s2208_s1 + $0x1f0] sm:$0xff]  ;;  %v1815_v56 = vld [vmem:[%s2208_s1 + $0x168] sm:$0xff]  ;;  %v1806_v59 = vld [vmem:[%s2208_s1 + $0x120] sm:$0xff] }
  0x1c   : > { %361 = vmatpush.bf16.msra.mxu0 %v1779_v16  ;;  %v1824_v57 = vld [vmem:[%s2208_s1 + $0x1a8] sm:$0xff]  ;;  %v1814_v60 = vld [vmem:[%s2208_s1 + $0x160] sm:$0xff]  ;;  %v1805_v63 = vld [vmem:[%s2208_s1 + $0x118] sm:$0xff] }
  0x1d   : > { %429 = vmatpush.bf16.msra.mxu1 %v1770_v17  ;;  %v1833_v58 = vld [vmem:[%s2208_s1 + $0x1e8] sm:$0xff]  ;;  %v1823_v61 = vld [vmem:[%s2208_s1 + $0x1a0] sm:$0xff]  ;;  %v1813_v0 = vld [vmem:[%s2208_s1 + $0x158] sm:$0xff] }
  0x1e   : > { %517 = vmatpush.bf16.msra.mxu2 %v1788_v18  ;;  %v1832_v62 = vld [vmem:[%s2208_s1 + $0x1e0] sm:$0xff]  ;;  %v1822_v1 = vld [vmem:[%s2208_s1 + $0x198] sm:$0xff]  ;;  %v620_v3 = vld [vmem:[%s1998_s30 + $0x8] sm:$0xf] }
  0x1f   : > { %607 = vmatpush.bf16.msra.mxu3 %v1797_v19  ;;  %v619_v2 = vld [vmem:[%s1998_s30 + $0x4] sm:$0x8]  ;;  %v621_v4 = vld [vmem:[%s1998_s30 + $0xc] sm:$0x1]  ;;  %v1831_v5 = vld [vmem:[%s2208_s1 + $0x1d8] sm:$0xff]  ;;  %v643_v8 = vunpack.c.l.b16 %v620_v3 }
  0x20   : > { %362 = vmatpush.bf16.msra.mxu0 %v1778_v20  ;;  %v1804_v6 = vld [vmem:[%s2208_s1 + $0x110] sm:$0xff]  ;;  %v642_v7 = vunpack.c.l.b16 %v619_v2  ;;  %v644_v9 = vunpack.c.l.b16 %v621_v4  ;;  %v1803_v13 = vld [vmem:[%s2208_s1 + $0x108] sm:$0xff]  ;;  %v1819_v27 = vld [vmem:[%s2208_s1 + $0x180] sm:$0xff] }
  0x21   : > { %430 = vmatpush.bf16.msra.mxu1 %v1769_v21  ;;  %v1812_v10 = vld [vmem:[%s2208_s1 + $0x150] sm:$0xff]  ;;  %v1811_v16 = vld [vmem:[%s2208_s1 + $0x148] sm:$0xff]  ;;  %v1844_v30 = vld [vmem:[%s2208_s1 + $0x238] sm:$0xff] }
  0x22   : > { %518 = vmatpush.bf16.msra.mxu2 %v1787_v22  ;;  %v1821_v11 = vld [vmem:[%s2208_s1 + $0x190] sm:$0xff]  ;;  %v645_v14 = vpack.c.b16 %v643_v8, %v642_v7  ;;  %v646_v15 = vpack.c.b16 %v644_v9, %v644_v9  ;;  %v1820_v17 = vld [vmem:[%s2208_s1 + $0x188] sm:$0xff]  ;;  %v1802_v22 = vld [vmem:[%s2208_s1 + $0x100] sm:$0xff] }
  0x23   : > { %608 = vmatpush.bf16.msra.mxu3 %v1796_v23  ;;  %v1830_v12 = vld [vmem:[%s2208_s1 + $0x1d0] sm:$0xff]  ;;  %v716_v18 = vld [vmem:[%s1998_s30 + $0xc] sm:$0x3]  ;;  %v1810_v23 = vld [vmem:[%s2208_s1 + $0x140] sm:$0xff] }
  0x24   : > { %363 = vmatpush.bf16.msra.mxu0 %v1777_v24  ;;  %v1829_v19 = vld [vmem:[%s2208_s1 + $0x1c8] sm:$0xff]  ;;  %v1827_v21 = vld [vmem:[%s1998_s30 + $0xc] sm:$0x70]  ;;  %v648_v24 = vrot.slane %v645_v14, 3  ;;  %v1853_v31 = vld [vmem:[%s2210_s3 + $0x38] sm:$0xff] }
  0x25   : > { %431 = vmatpush.bf16.msra.mxu1 %v1768_v25  ;;  %v1640_v20 = vld [vmem:[%s1998_s30 + $0xc] sm:$0xe]  ;;  %v649_v25 = vrot.slane %v646_v15, 3  ;;  %v1828_v33 = vld [vmem:[%s2208_s1 + $0x1c0] sm:$0xff]  ;;  %v1085_v46 = vld [vmem:[%s1998_s30 + $0xc] sm:$0x1] }
  0x26   : > { %519 = vmatpush.bf16.msra.mxu2 %v1786_v26  ;;  %v735_v26 = vunpack.c.l.b16 %v716_v18  ;;  %v1588_v28 = vld [vmem:[%s1998_s30 + $0xc] sm:$0xf]  ;;  %v1841_v42 = vld [vmem:[%s2208_s1 + $0x220] sm:$0xff] }
  0x27   : > { %609 = vmatpush.bf16.msra.mxu3 %v1795_v29  ;;  %v1818_v29 = vld [vmem:[%s1998_s30 + $0xc] sm:$0x30]  ;;  %v1850_v43 = vld [vmem:[%s2210_s3 + $0x20] sm:$0xff] }
  0x28   : > { %364 = vmatpush.bf16.msra.mxu0 %v1776_v32  ;;  %v1641_v32 = vor.u32 %v1827_v21, %v1640_v20  ;;  %v1589_v35 = vor.u32 %v1818_v29, %v1588_v28  ;;  %v736_v36 = vpack.c.b16 %v735_v26, %v643_v8 }
  0x29   : > { %432 = vmatpush.bf16.msra.mxu1 %v1767_v34  ;;  %v650_v34 = vsel %vm647_vm0, %v648_v24, %v649_v25  ;;  %v1864_v25 = vld [vmem:[%s2211_s4] ss:$0 sm:$0xff] }
  0x2a   : > { %520 = vmatpush.bf16.msra.mxu2 %v1785_v38  ;;  %v915_v37 = vrot.slane %v1641_v32, 1  ;;  %v1843_v38 = vld [vmem:[%s2208_s1 + $0x230] sm:$0xff] }
  0x2b   : > { %610 = vmatpush.bf16.msra.mxu3 %v1794_v44  ;;  %365 = vmatmul.bf16.vlgmr.msra.gmra.mxu0 %v307_v45  ;;  %v1840_v44 = vld [vmem:[%s2208_s1 + $0x218] sm:$0xff] }
  0x2c   : > { %700 = vmatpush.bf16.msrb.mxu0 %v1809_v39  ;;  %433 = vmatmul.bf16.vlgmr.msra.gmra.mxu1 %v1337_v50  ;;  %v1852_v39 = vld [vmem:[%s2210_s3 + $0x30] sm:$0xff]  ;;  %v1849_v45 = vld [vmem:[%s2210_s3 + $0x18] sm:$0xff]  ;;  %v1728_v50 = vld [vmem:[%s1998_s30 + $0x4] sm:$0x8] }
  0x2d   : > { %786 = vmatpush.bf16.msrb.mxu1 %v1817_v40  ;;  %521 = vmatmul.bf16.vlgmr.msra.gmra.mxu2 %v463_v48  ;;  %v1842_v40 = vld [vmem:[%s2208_s1 + $0x228] sm:$0xff]  ;;  %v1848_v48 = vld [vmem:[%s2210_s3 + $0x10] sm:$0xff] }
  0x2e   : > { %875 = vmatpush.bf16.msrb.mxu2 %v1826_v41  ;;  %611 = vmatmul.bf16.vlgmr.msra.gmra.mxu3 %v553_v53  ;;  %v1851_v41 = vld [vmem:[%s2210_s3 + $0x28] sm:$0xff] }
  0x2f   : > { %965 = vmatpush.bf16.msrb.mxu3 %v1835_v47  ;;  %v1839_v47 = vld [vmem:[%s2208_s1 + $0x210] sm:$0xff]  ;;  %v1692_v53 = vld [vmem:[%s1998_s30 + $0xc] sm:$0xc] }
  0x30   : > { %701 = vmatpush.bf16.msrb.mxu0 %v1808_v49  ;;  %v1111_v49 = vunpack.c.l.b16 %v1085_v46 }
  0x31   : > { %787 = vmatpush.bf16.msrb.mxu1 %v1816_v51  ;;  %v1845_v51 = vld [vmem:[%s1998_s30 + $0x4] sm:$0xf0] }
  0x32   : > { %876 = vmatpush.bf16.msrb.mxu2 %v1825_v52  ;;  %v1838_v52 = vld [vmem:[%s2208_s1 + $0x208] sm:$0xff] }
  0x33   : > { %966 = vmatpush.bf16.msrb.mxu3 %v1834_v54  ;;  %v1836_v54 = vld [vmem:[%s1998_s30 + $0xc] sm:$0xf0] }
  0x34   : > { %702 = vmatpush.bf16.msrb.mxu0 %v1807_v55  ;;  %v1847_v55 = vld [vmem:[%s2210_s3 + $0x8] sm:$0xff] }
  0x35   : > { %788 = vmatpush.bf16.msrb.mxu1 %v1815_v56  ;;  %v1729_v56 = vor.u32 %v1845_v51, %v1728_v50 }
  0x36   : > { %877 = vmatpush.bf16.msrb.mxu2 %v1824_v57  ;;  %v1113_v57 = vpack.c.b16 %v1111_v49, %v1111_v49 }
  0x37   : > { %967 = vmatpush.bf16.msrb.mxu3 %v1833_v58  ;;  %v1693_v58 = vor.u32 %v1836_v54, %v1692_v53 }
  0x38   : > { %703 = vmatpush.bf16.msrb.mxu0 %v1806_v59  ;;  %v1837_v59 = vld [vmem:[%s2208_s1 + $0x200] sm:$0xff] }
  0x39   : > { %789 = vmatpush.bf16.msrb.mxu1 %v1814_v60  ;;  %v1846_v60 = vld [vmem:[%s2210_s3] sm:$0xff] }
  0x3a   : > { %878 = vmatpush.bf16.msrb.mxu2 %v1823_v61  ;;  %v1114_v61 = vrot.slane %v1729_v56, 3 }
  0x3b   : > { %968 = vmatpush.bf16.msrb.mxu3 %v1832_v62  ;;  %v1115_v62 = vrot.slane %v1113_v57, 3 }
  0x3c   : > { %704 = vmatpush.bf16.msrb.mxu0 %v1805_v63  ;;  %v1005_v63 = vrot.slane %v1693_v58, 2 }
  0x3d   : > { %790 = vmatpush.bf16.msrb.mxu1 %v1813_v0  ;;  %v1116_v0 = vsel %vm647_vm0, %v1114_v61, %v1115_v62 }
  0x3e   : > { %879 = vmatpush.bf16.msrb.mxu2 %v1822_v1 }
  0x3f   : > { %969 = vmatpush.bf16.msrb.mxu3 %v1831_v5 }
  0x40   : > { %705 = vmatpush.bf16.msrb.mxu0 %v1804_v6 }
  0x41   : > { %791 = vmatpush.bf16.msrb.mxu1 %v1812_v10 }
  0x42   : > { %880 = vmatpush.bf16.msrb.mxu2 %v1821_v11 }
  0x43   : > { %970 = vmatpush.bf16.msrb.mxu3 %v1830_v12 }
  0x44   : > { %706 = vmatpush.bf16.msrb.mxu0 %v1803_v13 }
  0x45   : > { %792 = vmatpush.bf16.msrb.mxu1 %v1811_v16 }
  0x46   : > { %881 = vmatpush.bf16.msrb.mxu2 %v1820_v17 }
  0x47   : > { %971 = vmatpush.bf16.msrb.mxu3 %v1829_v19 }
  0x48   : > { %707 = vmatpush.bf16.msrb.mxu0 %v1802_v22 }
  0x49   : > { %793 = vmatpush.bf16.msrb.mxu1 %v1810_v23 }
  0x4a   : > { %882 = vmatpush.bf16.msrb.mxu2 %v1819_v27  ;;  %v1863_v27 = vld [vmem:[%s2209_s2] ss:$0 sm:$0xff] }
  0x4b   : > { %972 = vmatpush.bf16.msrb.mxu3 %v1828_v33  ;;  %708 = vmatmul.bf16.vlgmr.msrb.gmra.mxu0 %v650_v34 }
  0x4c   : > { %1055 = vmatpush.bf16.msra.mxu0 %v1844_v30  ;;  %794 = vmatmul.bf16.vlgmr.msrb.gmra.mxu1 %v736_v36 }
  0x4d   : > { %1166 = vmatpush.bf16.msra.mxu1 %v1853_v31  ;;  %883 = vmatmul.bf16.vlgmr.msrb.gmra.mxu2 %v1589_v35 }
  0x4e   : > { %973 = vmatmul.bf16.vlgmr.msrb.gmra.mxu3 %v915_v37 }
  0x50   : > { %1056 = vmatpush.bf16.msra.mxu0 %v1843_v38 }
  0x51   : > { %1167 = vmatpush.bf16.msra.mxu1 %v1852_v39 }
  0x54   : > { %1057 = vmatpush.bf16.msra.mxu0 %v1842_v40 }
  0x55   : > { %1168 = vmatpush.bf16.msra.mxu1 %v1851_v41 }
  0x58   : > { %1058 = vmatpush.bf16.msra.mxu0 %v1841_v42 }
  0x59   : > { %1169 = vmatpush.bf16.msra.mxu1 %v1850_v43 }
  0x5c   : > { %1059 = vmatpush.bf16.msra.mxu0 %v1840_v44 }
  0x5d   : > { %1170 = vmatpush.bf16.msra.mxu1 %v1849_v45 }
  0x60   : > { %1060 = vmatpush.bf16.msra.mxu0 %v1839_v47 }
  0x61   : > { %1171 = vmatpush.bf16.msra.mxu1 %v1848_v48 }
  0x64   : > { %1061 = vmatpush.bf16.msra.mxu0 %v1838_v52 }
  0x65   : > { %1172 = vmatpush.bf16.msra.mxu1 %v1847_v55 }
  0x68   : > { %1062 = vmatpush.bf16.msra.mxu0 %v1837_v59 }
  0x69   : > { %1173 = vmatpush.bf16.msra.mxu1 %v1846_v60 }
  0x6b   : > { %1063 = vmatmul.bf16.vlgmr.msra.gmra.mxu0 %v1005_v63 }
  0x6c   : > { %1174 = vmatmul.bf16.vlgmr.msra.gmra.mxu1 %v1116_v0 }
  0xa8   : > { %v366_v1 = vpop.f32.mrf.mxu0 }
  0xa9   : > { %v434_v2 = vpop.f32.mrf.mxu1 }
  0xaa   : > { %v435_v7 = vadd.f32 %v434_v2, %v366_v1 }
  0xb0   : > { %v522_v3 = vpop.f32.mrf.mxu2  ;;  %v368_v4 = vpop.f32.mrf.mxu0 }
  0xb1   : > { %v436_v5 = vpop.f32.mrf.mxu1  ;;  %v612_v6 = vpop.f32.mrf.mxu3  ;;  %v527_v8 = vadd.f32 %v522_v3, %v435_v7 }
  0xb2   : > { %v437_v14 = vadd.f32 %v436_v5, %v368_v4 }
  0xb3   : > { %v617_v11 = vadd.f32 %v612_v6, %v527_v8 }
  0xb8   : > { %v524_v9 = vpop.f32.mrf.mxu2 }
  0xb9   : > { %v614_v13 = vpop.f32.mrf.mxu3  ;;  %v528_v17 = vadd.f32 %v524_v9, %v437_v14 }
  0xbb   : > { %v618_v22 = vadd.f32 %v614_v13, %v528_v17 }
  0xc8   : > { %v709_v10 = vpop.f32.mrf.mxu0 }
  0xc9   : > { %v795_v12 = vpop.f32.mrf.mxu1  ;;  %v714_v15 = vadd.f32 %v709_v10, %v617_v11 }
  0xcb   : > { %v800_v18 = vadd.f32 %v795_v12, %v714_v15 }
  0xd0   : > { %v884_v16 = vpop.f32.mrf.mxu2  ;;  %v711_v19 = vpop.f32.mrf.mxu0 }
  0xd1   : > { %v797_v20 = vpop.f32.mrf.mxu1  ;;  %v974_v21 = vpop.f32.mrf.mxu3  ;;  %v889_v23 = vadd.f32 %v884_v16, %v800_v18  ;;  %v715_v24 = vadd.f32 %v711_v19, %v618_v22 }
  0xd3   : > { %v979_v26 = vadd.f32 %v974_v21, %v889_v23  ;;  %v801_v30 = vadd.f32 %v797_v20, %v715_v24 }
  0xd8   : > { %v886_v28 = vpop.f32.mrf.mxu2 }
  0xd9   : > { %v890_v34 = vadd.f32 %v886_v28, %v801_v30  ;;  %v976_v36 = vpop.f32.mrf.mxu3 }
  0xdb   : > { %v980_v39 = vadd.f32 %v976_v36, %v890_v34 }
  0xe8   : > { %v1064_v29 = vpop.f32.mrf.mxu0 }
  0xe9   : > { %v1069_v31 = vadd.f32 %v1064_v29, %v979_v26  ;;  %v1175_v32 = vpop.f32.mrf.mxu1 }
  0xea   : > { %v1176_v33 = vadd.f32 %v1864_v25, %v1175_v32 }
  0xeb   : > { %v1075_v35 = vadd.f32 %v1863_v27, %v1069_v31 }
  0xec   : > { %v1180_v37 = vpack.c.bf16 %v1176_v33, %v1176_v33 }
  0xed   : > { %v1077_v38 = vmax.f32 %v1075_v35, 0.0 }
  0xee   : > { %1182 = vst [vmem:[%s264_s20] sm:$0xf] %v1180_v37 }
  0xef   : > { %v1079_v40 = vpack.c.bf16 %v1077_v38, %v1077_v38 }
  0xf0   : > { %v1066_v41 = vpop.f32.mrf.mxu0 }
  0xf1   : > { %1081 = vst [vmem:[%s259_s25] sm:$0xf] %v1079_v40  ;;  %v1070_v42 = vadd.f32 %v1066_v41, %v980_v39  ;;  %v1177_v43 = vpop.f32.mrf.mxu1 }
  0xf2   : > { %v1178_v44 = vadd.f32 %v1864_v25, %v1177_v43 }
  0xf3   : > { %v1076_v45 = vadd.f32 %v1863_v27, %v1070_v42 }
  0xf4   : > { %v1181_v46 = vpack.c.bf16 %v1178_v44, %v1178_v44 }
  0xf5   : > { %v1078_v47 = vmax.f32 %v1076_v45, 0.0 }
  0xf6   : > { %1183 = vst [vmem:[%s264_s20 + $0x4] sm:$0x3] %v1181_v46 }
  0xf7   : > { %v1080_v48 = vpack.c.bf16 %v1078_v47, %v1078_v47 }
  0xf9   : > { %1082 = vst [vmem:[%s259_s25 + $0x4] sm:$0x3] %v1080_v48 }
  0xfa PF: > { %s17_s21 = sadd.s32 1, %s1871_s21  }
  0xfb   : > { %p14_p4 = scmp.ge.s32.totalorder %s17_s21, 4  }
  0xfd   :  { %16 = sbr.rel (!%p14_p4) target bundleno = 1 (0x1), region = 90 }

// kernel: resnet_encoder_forward.23
= control target key start
LH: loop header
LB: loop body
LE: loop exit
PB: predicated region body
PF: predicated region fallthrough
CT: control target
= control target key end

     0   :  { %s1787_s15 = smov 0   ;;  %s2070_s0 = inlined_call_operand.vmem [shape: bf16[2,108,128], index: 0, kind: input, shape index: {}]   ;;  %s2071_s1 = inlined_call_operand.vmem [shape: bf16[3,3,128,128], index: 1, kind: input, shape index: {}]   ;;  %s2072_s2 = inlined_call_operand.vmem [shape: f32[1,128], index: 2, kind: input, shape index: {}]   ;;  %s2073_s3 = inlined_call_operand.vmem [shape: bf16[2,20,128], index: 3, kind: input, shape index: {}]   ;;  %s2074_s4 = inlined_call_operand.vmem [shape: bf16[2,20,128], index: 4, kind: output, shape index: {}]  }
   0x1 LB: > { %s1195_s16 = sadd.s32 4294967295, %s1760_s15   ;;  %p1199_p0 = scmp.ge.s32.totalorder %s1760_s15, 1  ;;  %s1760_s15 = sphi %s1787_s15, %s14_s15  }
   0x2   : > { %p172_p1 = scmp.lt.s32.totalorder %s1760_s15, 3 }
   0x4   : > { %p173_p2 = pnand %p1199_p0, %p172_p1 }
   0x5   : > { %p203_p3 = scmp.lt.s32.totalorder (!%p173_p2), %s1195_s16, 1 }
   0x6   : > { %176 = sbr.rel (%p173_p2) target bundleno = 252 (0xfc), region = 36 }
   0xb   : > { %v1648_v0 = vld [vmem:[%s2071_s1 + $0x78] sm:$0xff]  ;;  %v1647_v4 = vld [vmem:[%s2071_s1 + $0x70] sm:$0xff]  ;;  %s2076_s16 = smov (!%p203_p3, %s1195_s16), 1  ;;  %v1646_v8 = vld [vmem:[%s2071_s1 + $0x68] sm:$0xff]  ;;  %vm264_vm0 = vcmask 1045504  }
   0xc   : > { %v1640_v1 = vld [vmem:[%s2071_s1 + $0x38] sm:$0xff]  ;;  %318 = vmatpush.bf16.msra.mxu0 %v1648_v0  ;;  %v1639_v5 = vld [vmem:[%s2071_s1 + $0x30] sm:$0xff]  ;;  %v1638_v9 = vld [vmem:[%s2071_s1 + $0x28] sm:$0xff]  ;;  %s1740_s17 = smul.u32 56, %s2076_s16 }
   0xd   : > { %v1657_v2 = vld [vmem:[%s2071_s1 + $0xb8] sm:$0xff]  ;;  %392 = vmatpush.bf16.msra.mxu1 %v1640_v1  ;;  %v1656_v6 = vld [vmem:[%s2071_s1 + $0xb0] sm:$0xff]  ;;  %v1655_v10 = vld [vmem:[%s2071_s1 + $0xa8] sm:$0xff] }
   0xe   : > { %v1665_v3 = vld [vmem:[%s2071_s1 + $0xf8] sm:$0xff]  ;;  %488 = vmatpush.bf16.msra.mxu2 %v1657_v2  ;;  %v1664_v7 = vld [vmem:[%s2071_s1 + $0xf0] sm:$0xff]  ;;  %v1663_v11 = vld [vmem:[%s2071_s1 + $0xe8] sm:$0xff]  ;;  %s1849_s28 = scalar_lea.vmem %s2070_s0, %s1740_s17 }
   0xf   : > { %587 = vmatpush.bf16.msra.mxu3 %v1665_v3  ;;  %v1645_v12 = vld [vmem:[%s2071_s1 + $0x60] sm:$0xff]  ;;  %v1644_v16 = vld [vmem:[%s2071_s1 + $0x58] sm:$0xff]  ;;  %v238_v20 = vld [vmem:[%s1849_s28 + $0x8] sm:$0xf] }
  0x10   : > { %319 = vmatpush.bf16.msra.mxu0 %v1647_v4  ;;  %v1637_v13 = vld [vmem:[%s2071_s1 + $0x20] sm:$0xff]  ;;  %v1636_v17 = vld [vmem:[%s2071_s1 + $0x18] sm:$0xff]  ;;  %v1643_v21 = vld [vmem:[%s2071_s1 + $0x50] sm:$0xff]  ;;  %v261_v24 = vunpack.c.l.b16 %v238_v20 }
  0x11   : > { %393 = vmatpush.bf16.msra.mxu1 %v1639_v5  ;;  %v1654_v14 = vld [vmem:[%s2071_s1 + $0xa0] sm:$0xff]  ;;  %v1653_v18 = vld [vmem:[%s2071_s1 + $0x98] sm:$0xff]  ;;  %v1635_v22 = vld [vmem:[%s2071_s1 + $0x10] sm:$0xff] }
  0x12   : > { %489 = vmatpush.bf16.msra.mxu2 %v1656_v6  ;;  %v1662_v15 = vld [vmem:[%s2071_s1 + $0xe0] sm:$0xff]  ;;  %v1661_v19 = vld [vmem:[%s2071_s1 + $0xd8] sm:$0xff]  ;;  %v1652_v23 = vld [vmem:[%s2071_s1 + $0x90] sm:$0xff]  ;;  %v1884_v31 = vpack.c.b16 %v261_v24, %v261_v24 }
  0x13   : > { %588 = vmatpush.bf16.msra.mxu3 %v1664_v7  ;;  %v1660_v25 = vld [vmem:[%s2071_s1 + $0xd0] sm:$0xff]  ;;  %v1729_v26 = vld [vmem:[%s1849_s28] sm:$0xf0]  ;;  %v1730_v27 = vld [vmem:[%s1849_s28] sm:$0xc] }
  0x14   : > { %320 = vmatpush.bf16.msra.mxu0 %v1646_v8  ;;  %v1642_v28 = vld [vmem:[%s2071_s1 + $0x48] sm:$0xff]  ;;  %v1731_v30 = vor.u32 %v1730_v27, %v1729_v26  ;;  %v509_v34 = vld [vmem:[%s1849_s28 + $0x14] sm:$0xff]   ;;  %v1641_v36 = vld [vmem:[%s2071_s1 + $0x40] sm:$0xff]  ;;  %v266_v39 = vrot.slane %v1884_v31, 2 }
  0x15   : > { %394 = vmatpush.bf16.msra.mxu1 %v1638_v9  ;;  %v1634_v29 = vld [vmem:[%s2071_s1 + $0x8] sm:$0xff]  ;;  %v1894_v35 = vld [vmem:[%s1849_s28 + $0x14] sm:$0xf0]  ;;  %v1633_v37 = vld [vmem:[%s2071_s1] sm:$0xff] }
  0x16   : > { %490 = vmatpush.bf16.msra.mxu2 %v1655_v10  ;;  %v1651_v32 = vld [vmem:[%s2071_s1 + $0x88] sm:$0xff]  ;;  %v265_v38 = vrot.slane %v1731_v30, 2  ;;  %v1650_v40 = vld [vmem:[%s2071_s1 + $0x80] sm:$0xff]  ;;  %v1673_v42 = vld [vmem:[%s2071_s1 + $0x138] sm:$0xff] }
  0x17   : > { %589 = vmatpush.bf16.msra.mxu3 %v1663_v11  ;;  %v1659_v33 = vld [vmem:[%s2071_s1 + $0xc8] sm:$0xff]  ;;  %v1658_v41 = vld [vmem:[%s2071_s1 + $0xc0] sm:$0xff]  ;;  %v1682_v43 = vld [vmem:[%s2071_s1 + $0x178] sm:$0xff] }
  0x18   : > { %321 = vmatpush.bf16.msra.mxu0 %v1645_v12  ;;  %v267_v44 = vsel %vm264_vm0, %v265_v38, %v266_v39  ;;  %v1709_v45 = vld [vmem:[%s1849_s28] sm:$0xff]   ;;  %v1690_v47 = vld [vmem:[%s2071_s1 + $0x1b8] sm:$0xff]  ;;  %v1672_v49 = vld [vmem:[%s2071_s1 + $0x130] sm:$0xff] }
  0x19   : > { %395 = vmatpush.bf16.msra.mxu1 %v1637_v13  ;;  %v1649_v46 = vld [vmem:[%s1849_s28 + $0x4] sm:$0xff]  ;;  %v1698_v48 = vld [vmem:[%s2071_s1 + $0x1f8] sm:$0xff]  ;;  %v1681_v50 = vld [vmem:[%s2071_s1 + $0x170] sm:$0xff] }
  0x1a   : > { %491 = vmatpush.bf16.msra.mxu2 %v1654_v14  ;;  %v1689_v51 = vld [vmem:[%s2071_s1 + $0x1b0] sm:$0xff]  ;;  %v1671_v53 = vld [vmem:[%s2071_s1 + $0x128] sm:$0xff]  ;;  %v511_v59 = vld [vmem:[%s1849_s28 + $0x1c] sm:$0x3] }
  0x1b   : > { %590 = vmatpush.bf16.msra.mxu3 %v1662_v15  ;;  %v1697_v52 = vld [vmem:[%s2071_s1 + $0x1f0] sm:$0xff]  ;;  %v1680_v54 = vld [vmem:[%s2071_s1 + $0x168] sm:$0xff]  ;;  %v1670_v60 = vld [vmem:[%s2071_s1 + $0x120] sm:$0xff]  ;;  %v534_v0 = vunpack.c.l.b16 %v511_v59 }
  0x1c   : > { %322 = vmatpush.bf16.msra.mxu0 %v1644_v16  ;;  %v1688_v55 = vld [vmem:[%s2071_s1 + $0x1a8] sm:$0xff]  ;;  %v1679_v61 = vld [vmem:[%s2071_s1 + $0x160] sm:$0xff]  ;;  %v1669_v3 = vld [vmem:[%s2071_s1 + $0x118] sm:$0xff] }
  0x1d   : > { %396 = vmatpush.bf16.msra.mxu1 %v1636_v17  ;;  %v220_v56 = vld [vmem:[%s1849_s28 + $0x8] sm:$0x3]  ;;  %v412_v58 = vld [vmem:[%s1849_s28 + $0xc] sm:$0x3]  ;;  %v1687_v1 = vld [vmem:[%s2071_s1 + $0x1a0] sm:$0xff]  ;;  %v536_v8 = vpack.c.b16 %v534_v0, %v534_v0 }
  0x1e   : > { %492 = vmatpush.bf16.msra.mxu2 %v1653_v18  ;;  %v1696_v57 = vld [vmem:[%s2071_s1 + $0x1e8] sm:$0xff]  ;;  %v339_v62 = vunpack.c.l.b16 %v220_v56  ;;  %v435_v63 = vunpack.c.l.b16 %v412_v58  ;;  %v1695_v2 = vld [vmem:[%s2071_s1 + $0x1e0] sm:$0xff]  ;;  %v1678_v4 = vld [vmem:[%s2071_s1 + $0x158] sm:$0xff] }
  0x1f   : > { %591 = vmatpush.bf16.msra.mxu3 %v1661_v19  ;;  %v1752_v6 = vld [vmem:[%s1849_s28 + $0x14] sm:$0xc]  ;;  %v1686_v9 = vld [vmem:[%s2071_s1 + $0x198] sm:$0xff]  ;;  %v906_v14 = vld [vmem:[%s1849_s28 + $0x30] sm:$0xf] }
  0x20   : > { %323 = vmatpush.bf16.msra.mxu0 %v1643_v21  ;;  %v341_v5 = vpack.c.b16 %v339_v62, %v339_v62  ;;  %v437_v7 = vpack.c.b16 %v435_v63, %v435_v63  ;;  %v1694_v10 = vld [vmem:[%s2071_s1 + $0x1d8] sm:$0xff]  ;;  %v1668_v12 = vld [vmem:[%s2071_s1 + $0x110] sm:$0xff]  ;;  %v1667_v18 = vld [vmem:[%s2071_s1 + $0x108] sm:$0xff]  ;;  %v927_v19 = vunpack.c.l.b16 %v906_v14 }
  0x21   : > { %397 = vmatpush.bf16.msra.mxu1 %v1635_v22  ;;  %v609_v11 = vld [vmem:[%s1849_s28 + $0x1c] sm:$0xf]  ;;  %v1677_v13 = vld [vmem:[%s2071_s1 + $0x150] sm:$0xff]  ;;  %v1676_v20 = vld [vmem:[%s2071_s1 + $0x148] sm:$0xff] }
  0x22   : > { %493 = vmatpush.bf16.msra.mxu2 %v1652_v23  ;;  %v630_v15 = vunpack.c.l.b16 %v609_v11  ;;  %v1685_v16 = vld [vmem:[%s2071_s1 + $0x190] sm:$0xff]  ;;  %v1726_v21 = vld [vmem:[%s1849_s28 + $0x28] sm:$0xf0]  ;;  %v1727_v22 = vld [vmem:[%s1849_s28 + $0x28] sm:$0xc]  ;;  %v1753_v23 = vor.u32 %v1752_v6, %v1894_v35 }
  0x23   : > { %592 = vmatpush.bf16.msra.mxu3 %v1660_v25  ;;  %v1693_v17 = vld [vmem:[%s2071_s1 + $0x1d0] sm:$0xff]  ;;  %v1684_v25 = vld [vmem:[%s2071_s1 + $0x188] sm:$0xff]  ;;  %v1728_v27 = vor.u32 %v1727_v22, %v1726_v21  ;;  %v1675_v30 = vld [vmem:[%s2071_s1 + $0x140] sm:$0xff] }
  0x24   : > { %324 = vmatpush.bf16.msra.mxu0 %v1642_v28  ;;  %v632_v24 = vpack.c.b16 %v630_v15, %v630_v15  ;;  %v1692_v26 = vld [vmem:[%s2071_s1 + $0x1c8] sm:$0xff]  ;;  %v929_v28 = vpack.c.b16 %v927_v19, %v927_v19  ;;  %v1707_v31 = vld [vmem:[%s2071_s1 + $0x238] sm:$0xff]  ;;  %v1691_v35 = vld [vmem:[%s2071_s1 + $0x1c0] sm:$0xff] }
  0x25   : > { %398 = vmatpush.bf16.msra.mxu1 %v1634_v29  ;;  %v1666_v29 = vld [vmem:[%s2071_s1 + $0x100] sm:$0xff]  ;;  %v1674_v38 = vld [vmem:[%s1849_s28 + $0x18] sm:$0xff] }
  0x26   : > { %494 = vmatpush.bf16.msra.mxu2 %v1651_v32  ;;  %v633_v32 = vrot.slane %v1753_v23, 2 }
  0x27   : > { %593 = vmatpush.bf16.msra.mxu3 %v1659_v33  ;;  %v634_v33 = vrot.slane %v632_v24, 2 }
  0x28   : > { %325 = vmatpush.bf16.msra.mxu0 %v1641_v36  ;;  %v930_v36 = vrot.slane %v1728_v27, 2 }
  0x29   : > { %399 = vmatpush.bf16.msra.mxu1 %v1633_v37  ;;  %v931_v37 = vrot.slane %v929_v28, 2 }
  0x2a   : > { %495 = vmatpush.bf16.msra.mxu2 %v1650_v40  ;;  %v1725_v40 = vld [vmem:[%s1849_s28 + $0x28] sm:$0xff]  }
  0x2b   : > { %594 = vmatpush.bf16.msra.mxu3 %v1658_v41  ;;  %326 = vmatmul.bf16.vlgmr.msra.gmra.mxu0 %v267_v44  ;;  %v932_v41 = vsel %vm264_vm0, %v930_v36, %v931_v37  ;;  %v709_v44 = vld [vmem:[%s1849_s28 + $0x20] sm:$0x3] }
  0x2c   : > { %686 = vmatpush.bf16.msrb.mxu0 %v1673_v42  ;;  %400 = vmatmul.bf16.vlgmr.msra.gmra.mxu1 %v1709_v45  ;;  %v1706_v42 = vld [vmem:[%s2071_s1 + $0x230] sm:$0xff]  ;;  %v1704_v45 = vld [vmem:[%s2071_s1 + $0x220] sm:$0xff] }
  0x2d   : > { %785 = vmatpush.bf16.msrb.mxu1 %v1682_v43  ;;  %496 = vmatmul.bf16.vlgmr.msra.gmra.mxu2 %v1649_v46  ;;  %v1705_v43 = vld [vmem:[%s2071_s1 + $0x228] sm:$0xff]  ;;  %v808_v46 = vld [vmem:[%s1849_s28 + $0x30] sm:$0x3] }
  0x2e   : > { %595 = vmatmul.bf16.vlgmr.msra.gmra.mxu3 %v509_v34  ;;  %884 = vmatpush.bf16.msrb.mxu2 %v1690_v47  ;;  %v1683_v34 = vld [vmem:[%s2071_s1 + $0x180] sm:$0xff]  ;;  %v732_v47 = vunpack.c.l.b16 %v709_v44 }
  0x2f   : > { %983 = vmatpush.bf16.msrb.mxu3 %v1698_v48  ;;  %v831_v48 = vunpack.c.l.b16 %v808_v46 }
  0x30   : > { %687 = vmatpush.bf16.msrb.mxu0 %v1672_v49  ;;  %v1703_v49 = vld [vmem:[%s2071_s1 + $0x218] sm:$0xff] }
  0x31   : > { %786 = vmatpush.bf16.msrb.mxu1 %v1681_v50  ;;  %v734_v50 = vpack.c.b16 %v732_v47, %v732_v47 }
  0x32   : > { %885 = vmatpush.bf16.msrb.mxu2 %v1689_v51  ;;  %v833_v51 = vpack.c.b16 %v831_v48, %v831_v48 }
  0x33   : > { %984 = vmatpush.bf16.msrb.mxu3 %v1697_v52  ;;  %v1702_v52 = vld [vmem:[%s2071_s1 + $0x210] sm:$0xff] }
  0x34   : > { %688 = vmatpush.bf16.msrb.mxu0 %v1671_v53  ;;  %v1701_v53 = vld [vmem:[%s2071_s1 + $0x208] sm:$0xff] }
  0x35   : > { %787 = vmatpush.bf16.msrb.mxu1 %v1680_v54  ;;  %v1006_v54 = vld [vmem:[%s1849_s28 + $0x34] sm:$0x3] }
  0x36   : > { %886 = vmatpush.bf16.msrb.mxu2 %v1688_v55  ;;  %v1700_v55 = vld [vmem:[%s2071_s1 + $0x200] sm:$0xff]  ;;  %v1029_v56 = vunpack.c.l.b16 %v1006_v54 }
  0x37   : > { %985 = vmatpush.bf16.msrb.mxu3 %v1696_v57  ;;  %v1699_v57 = vld [vmem:[%s1849_s28 + $0x2c] sm:$0xff]  ;;  %s1741_s28 = smul.u32 12, %s2076_s16 }
  0x38   : > { %689 = vmatpush.bf16.msrb.mxu0 %v1670_v60  ;;  %v1031_v58 = vpack.c.b16 %v1029_v56, %v1029_v56 }
  0x39   : > { %788 = vmatpush.bf16.msrb.mxu1 %v1679_v61  ;;  %s212_s27 = scalar_lea.vmem %s2073_s3, %s1741_s28  ;;  %s217_s7 = scalar_lea.vmem %s2074_s4, %s1741_s28 }
  0x3a   : > { %887 = vmatpush.bf16.msrb.mxu2 %v1687_v1 }
  0x3b   : > { %986 = vmatpush.bf16.msrb.mxu3 %v1695_v2  ;;  %331 = vmatmul.bf16.gmra.mxu0 %v266_v39  ;;  %v635_v39 = vsel %vm264_vm0, %v633_v32, %v634_v33 }
  0x3c   : > { %690 = vmatpush.bf16.msrb.mxu0 %v1669_v3  ;;  %405 = vmatmul.bf16.gmra.mxu1 %v341_v5 }
  0x3d   : > { %789 = vmatpush.bf16.msrb.mxu1 %v1678_v4  ;;  %501 = vmatmul.bf16.gmra.mxu2 %v437_v7 }
  0x3e   : > { %600 = vmatmul.bf16.gmra.mxu3 %v536_v8  ;;  %888 = vmatpush.bf16.msrb.mxu2 %v1686_v9 }
  0x3f   : > { %987 = vmatpush.bf16.msrb.mxu3 %v1694_v10 }
  0x40   : > { %691 = vmatpush.bf16.msrb.mxu0 %v1668_v12 }
  0x41   : > { %790 = vmatpush.bf16.msrb.mxu1 %v1677_v13 }
  0x42   : > { %889 = vmatpush.bf16.msrb.mxu2 %v1685_v16 }
  0x43   : > { %988 = vmatpush.bf16.msrb.mxu3 %v1693_v17 }
  0x44   : > { %692 = vmatpush.bf16.msrb.mxu0 %v1667_v18 }
  0x45   : > { %791 = vmatpush.bf16.msrb.mxu1 %v1676_v20 }
  0x46   : > { %890 = vmatpush.bf16.msrb.mxu2 %v1684_v25 }
  0x47   : > { %989 = vmatpush.bf16.msrb.mxu3 %v1692_v26 }
  0x48   : > { %693 = vmatpush.bf16.msrb.mxu0 %v1666_v29 }
  0x49   : > { %792 = vmatpush.bf16.msrb.mxu1 %v1675_v30 }
  0x4a   : > { %891 = vmatpush.bf16.msrb.mxu2 %v1683_v34 }
  0x4b   : > { %990 = vmatpush.bf16.msrb.mxu3 %v1691_v35  ;;  %694 = vmatmul.bf16.vlgmr.msrb.gmra.mxu0 %v635_v39 }
  0x4c   : > { %1082 = vmatpush.bf16.msra.mxu0 %v1707_v31  ;;  %793 = vmatmul.bf16.vlgmr.msrb.gmra.mxu1 %v1674_v38 }
  0x4d   : > { %1732 = vmatpush.bf16.msra.mxu1 %v1707_v31  ;;  %892 = vmatmul.bf16.vlgmr.msrb.gmra.mxu2 %v1725_v40 }
  0x4e   : > { %991 = vmatmul.bf16.vlgmr.msrb.gmra.mxu3 %v932_v41  ;;  %v1112_v41 = vld [vmem:[%s212_s27 + $0x8] sm:$0x3] }
  0x50   : > { %1083 = vmatpush.bf16.msra.mxu0 %v1706_v42 }
  0x51   : > { %1733 = vmatpush.bf16.msra.mxu1 %v1706_v42 }
  0x54   : > { %1084 = vmatpush.bf16.msra.mxu0 %v1705_v43 }
  0x55   : > { %1734 = vmatpush.bf16.msra.mxu1 %v1705_v43  ;;  %v1750_v43 = vld [vmem:[%s2072_s2] ss:$0 sm:$0xff] }
  0x58   : > { %1085 = vmatpush.bf16.msra.mxu0 %v1704_v45 }
  0x59   : > { %1735 = vmatpush.bf16.msra.mxu1 %v1704_v45 }
  0x5b   : > { %699 = vmatmul.bf16.gmra.mxu0 %v634_v33 }
  0x5c   : > { %1086 = vmatpush.bf16.msra.mxu0 %v1703_v49  ;;  %798 = vmatmul.bf16.gmra.mxu1 %v734_v50 }
  0x5d   : > { %1736 = vmatpush.bf16.msra.mxu1 %v1703_v49  ;;  %897 = vmatmul.bf16.gmra.mxu2 %v833_v51  ;;  %v1115_v51 = vunpack.c.l.bf16 %v1112_v41 }
  0x5e   : > { %996 = vmatmul.bf16.gmra.mxu3 %v931_v37 }
  0x60   : > { %1087 = vmatpush.bf16.msra.mxu0 %v1702_v52 }
  0x61   : > { %1737 = vmatpush.bf16.msra.mxu1 %v1702_v52 }
  0x64   : > { %1088 = vmatpush.bf16.msra.mxu0 %v1701_v53 }
  0x65   : > { %1738 = vmatpush.bf16.msra.mxu1 %v1701_v53 }
  0x68   : > { %1089 = vmatpush.bf16.msra.mxu0 %v1700_v55 }
  0x69   : > { %1739 = vmatpush.bf16.msra.mxu1 %v1700_v55  ;;  %v1717_v55 = vld [vmem:[%s212_s27] sm:$0xff]  }
  0x6b   : > { %1090 = vmatmul.bf16.vlgmr.msra.gmra.mxu0 %v1699_v57 }
  0x6c   : > { %1095 = vmatmul.bf16.vlgmr.msra.gmra.mxu1 %v1031_v58 }
  0xa8   : > { %v327_v59 = vpop.f32.mrf.mxu0 }
  0xa9   : > { %v401_v60 = vpop.f32.mrf.mxu1 }
  0xaa   : > { %v402_v18 = vadd.f32 %v401_v60, %v327_v59  ;;  %v1718_v59 = vunpack.c.l.bf16 %v1717_v55 }
  0xb0   : > { %v497_v61 = vpop.f32.mrf.mxu2  ;;  %v329_v63 = vpop.f32.mrf.mxu0 }
  0xb1   : > { %v596_v62 = vpop.f32.mrf.mxu3  ;;  %v403_v0 = vpop.f32.mrf.mxu1  ;;  %v506_v24 = vadd.f32 %v497_v61, %v402_v18 }
  0xb2   : > { %v404_v26 = vadd.f32 %v403_v0, %v329_v63 }
  0xb3   : > { %v605_v27 = vadd.f32 %v596_v62, %v506_v24 }
  0xb8   : > { %v499_v1 = vpop.f32.mrf.mxu2  ;;  %v332_v3 = vpop.f32.mrf.mxu0 }
  0xb9   : > { %v598_v2 = vpop.f32.mrf.mxu3  ;;  %v406_v4 = vpop.f32.mrf.mxu1  ;;  %v507_v29 = vadd.f32 %v499_v1, %v404_v26  ;;  %v1719_v1 = vunpack.c.h.bf16 %v1717_v55 }
  0xba   : > { %v407_v17 = vadd.f32 %v406_v4, %v332_v3 }
  0xbb   : > { %v606_v36 = vadd.f32 %v598_v2, %v507_v29 }
  0xc0   : > { %v502_v5 = vpop.f32.mrf.mxu2  ;;  %v334_v7 = vpop.f32.mrf.mxu0 }
  0xc1   : > { %v601_v6 = vpop.f32.mrf.mxu3  ;;  %v408_v8 = vpop.f32.mrf.mxu1  ;;  %v508_v19 = vadd.f32 %v502_v5, %v407_v17 }
  0xc3   : > { %v607_v25 = vadd.f32 %v601_v6, %v508_v19 }
  0xc8   : > { %v504_v9 = vpop.f32.mrf.mxu2  ;;  %v695_v11 = vpop.f32.mrf.mxu0 }
  0xc9   : > { %v603_v10 = vpop.f32.mrf.mxu3  ;;  %v794_v12 = vpop.f32.mrf.mxu1  ;;  %v704_v30 = vadd.f32 %v695_v11, %v605_v27 }
  0xcb   : > { %v803_v37 = vadd.f32 %v794_v12, %v704_v30 }
  0xd0   : > { %v893_v13 = vpop.f32.mrf.mxu2  ;;  %v697_v15 = vpop.f32.mrf.mxu0 }
  0xd1   : > { %v992_v14 = vpop.f32.mrf.mxu3  ;;  %v796_v16 = vpop.f32.mrf.mxu1  ;;  %v902_v39 = vadd.f32 %v893_v13, %v803_v37  ;;  %v705_v40 = vadd.f32 %v697_v15, %v606_v36 }
  0xd3   : > { %v804_v48 = vadd.f32 %v796_v16, %v705_v40  ;;  %v1001_v49 = vadd.f32 %v992_v14, %v902_v39 }
  0xd8   : > { %v895_v20 = vpop.f32.mrf.mxu2  ;;  %v700_v22 = vpop.f32.mrf.mxu0 }
  0xd9   : > { %v994_v21 = vpop.f32.mrf.mxu3  ;;  %v799_v23 = vpop.f32.mrf.mxu1  ;;  %v706_v28 = vadd.f32 %v700_v22, %v607_v25  ;;  %v903_v52 = vadd.f32 %v895_v20, %v804_v48 }
  0xdb   : > { %v805_v35 = vadd.f32 %v799_v23, %v706_v28  ;;  %v1002_v57 = vadd.f32 %v994_v21, %v903_v52 }
  0xe0   : > { %v898_v31 = vpop.f32.mrf.mxu2  ;;  %v702_v33 = vpop.f32.mrf.mxu0 }
  0xe1   : > { %v997_v32 = vpop.f32.mrf.mxu3  ;;  %v801_v34 = vpop.f32.mrf.mxu1  ;;  %v904_v38 = vadd.f32 %v898_v31, %v805_v35 }
  0xe3   : > { %v1003_v42 = vadd.f32 %v997_v32, %v904_v38 }
  0xe8   : > { %v900_v44 = vpop.f32.mrf.mxu2  ;;  %v1091_v46 = vpop.f32.mrf.mxu0 }
  0xe9   : > { %v999_v45 = vpop.f32.mrf.mxu3  ;;  %v1096_v47 = vpop.f32.mrf.mxu1  ;;  %v1100_v53 = vadd.f32 %v1091_v46, %v1001_v49 }
  0xea   : > { %v1102_v50 = vadd.f32 %v1096_v47, %v1003_v42 }
  0xeb   : > { %v1107_v58 = vadd.f32 %v1750_v43, %v1100_v53 }
  0xec   : > { %v1109_v54 = vadd.f32 %v1750_v43, %v1102_v50 }
  0xed   : > { %v1116_v2 = vadd.f32 %v1718_v59, %v1107_v58 }
  0xee   : > { %v1118_v56 = vadd.f32 %v1115_v51, %v1109_v54 }
  0xef   : > { %v1119_v5 = vmax.f32 %v1116_v2, 0.0 }
  0xf0   : > { %v1121_v60 = vmax.f32 %v1118_v56, 0.0  ;;  %v1093_v61 = vpop.f32.mrf.mxu0 }
  0xf1   : > { %v1098_v62 = vpop.f32.mrf.mxu1  ;;  %v1101_v0 = vadd.f32 %v1093_v61, %v1002_v57 }
  0xf2   : > { %v1124_v63 = vpack.c.bf16 %v1121_v60, %v1121_v60 }
  0xf3   : > { %v1108_v3 = vadd.f32 %v1750_v43, %v1101_v0 }
  0xf4   : > { %1127 = vst [vmem:[%s217_s7 + $0x8] sm:$0x3] %v1124_v63 }
  0xf5   : > { %v1117_v4 = vadd.f32 %v1719_v1, %v1108_v3 }
  0xf7   : > { %v1120_v6 = vmax.f32 %v1117_v4, 0.0 }
  0xf9   : > { %v1723_v7 = vpack.c.bf16 %v1120_v6, %v1119_v5 }
  0xfb   : > { %1724 = vst [vmem:[%s217_s7] sm:$0xff] %v1723_v7  }
  0xfc PF: > { %s14_s15 = sadd.s32 1, %s1760_s15  }
  0xfd   : > { %p11_p4 = scmp.ge.s32.totalorder %s14_s15, 4  }
  0xff   :  { %13 = sbr.rel (!%p11_p4) target bundleno = 1 (0x1), region = 77 }

</bundles_post_ra>
